<compile_context>
chip_gen: v6e
topology: v6e:2x2x1
jax: 0.10.0
libtpu: 0.0.40
codegen_flags: <defaults>
</compile_context>

<pallas_src>
import jax
import jax.numpy as jnp
from jax.experimental import pallas as pl
from jax.experimental.pallas import tpu as pltpu


# ----------------------------- Pallas kernels ------------------------------

def _conv3x3_relu_pool_kernel(z_ref, w_ref, b_ref, o_ref):
    """Fused 3x3 conv (pad=1) + bias + ReLU + 2x2 maxpool for B_TILE images.

    z_ref : (B, Ho+1, Wo+1, 4*Cin)  space-to-depth'd padded input (bf16)
    w_ref : (4, 4*Cin, 4*Cout)      expanded conv weight, one (da,db) tap per
                                    leading index; the 4*Cout columns pack the
                                    four pooling candidates (bf16)
    b_ref : (1, 4*Cout)             bias tiled over the 4 candidates (f32)
    o_ref : (B*Ho*Wo, Cout)         pooled output (bf16)
    """
    nb, hp1, wp1, c4 = z_ref.shape
    ho, wo = hp1 - 1, wp1 - 1
    m = nb * ho * wo
    cout = w_ref.shape[2] // 4

    def tap(da, db):
        # bf16 slice straight from the ref; leading-dims-only reshape.
        return z_ref[:, da:da + ho, db:db + wo, :].reshape(m, c4)

    # Four tap-accumulated MXU matmuls (no f32 upcast, no lane concat).
    acc = jnp.dot(tap(0, 0), w_ref[0], preferred_element_type=jnp.float32)
    acc = acc + jnp.dot(tap(0, 1), w_ref[1], preferred_element_type=jnp.float32)
    acc = acc + jnp.dot(tap(1, 0), w_ref[2], preferred_element_type=jnp.float32)
    acc = acc + jnp.dot(tap(1, 1), w_ref[3], preferred_element_type=jnp.float32)

    acc = jnp.maximum(acc + b_ref[...], 0.0)          # bias + ReLU (f32)
    # 2x2 maxpool == max over the 4 candidate lane groups (ReLU/max commute).
    pooled = jnp.maximum(
        jnp.maximum(acc[:, 0 * cout:1 * cout], acc[:, 1 * cout:2 * cout]),
        jnp.maximum(acc[:, 2 * cout:3 * cout], acc[:, 3 * cout:4 * cout]))
    o_ref[...] = pooled.astype(o_ref.dtype)


def _fused_fc_kernel(x_ref, w1_ref, b1_ref, w2_ref, b2_ref, w3_ref, b3_ref,
                     o_ref):
    """fc1a(2048->256)+ReLU -> fc1b(256->128pad)+ReLU -> fc2(->128pad).

    Single grid step; all weights VMEM-resident; intermediates never touch
    HBM.  bf16 MXU inputs with f32 accumulation; f32 bias/ReLU epilogues.
    """
    h = jnp.dot(x_ref[...], w1_ref[...], preferred_element_type=jnp.float32)
    h = jnp.maximum(h + b1_ref[...], 0.0).astype(jnp.bfloat16)
    h = jnp.dot(h, w2_ref[...], preferred_element_type=jnp.float32)
    h = jnp.maximum(h + b2_ref[...], 0.0).astype(jnp.bfloat16)
    h = jnp.dot(h, w3_ref[...], preferred_element_type=jnp.float32)
    o_ref[...] = (h + b3_ref[...]).astype(o_ref.dtype)


# ------------------------------ kernel wrappers ------------------------------

def _pick_btile(n):
    """Images per conv grid step.

    Pack several images per step so the MXU M dimension is large (>=256 when
    possible), while keeping >=2 grid steps ("parallel") for v7x's two
    TensorCores when the batch allows it.  Always returns a divisor of n, and
    caps at 64 so per-step VMEM stays far below the 32 MiB scoped default.
    """
    for cand in (64, 32, 16, 8, 4):
        if n % cand == 0 and n // cand >= 2:
            return cand
    return n


def space_to_depth_pad(x_nhwc):
    """Pad H,W by 1 and pixel-unshuffle by 2: (N,H,W,C) -> (N,H/2+1,W/2+1,4C)."""
    n, h, w, c = x_nhwc.shape
    xp = jnp.pad(x_nhwc, ((0, 0), (1, 1), (1, 1), (0, 0)))
    hp, wp = h + 2, w + 2
    z = xp.reshape(n, hp // 2, 2, wp // 2, 2, c)
    z = jnp.transpose(z, (0, 1, 3, 2, 4, 5))          # (n, a, b, p, q, c)
    return z.reshape(n, hp // 2, wp // 2, 4 * c)


def conv3x3_relu_pool(x_nhwc, w_taps, bias):
    n, h, w, cin = x_nhwc.shape
    ho, wo = h // 2, w // 2
    cout = w_taps.shape[2] // 4
    z = space_to_depth_pad(x_nhwc)                    # (n, ho+1, wo+1, 4*cin)
    bt = _pick_btile(n)
    out = pl.pallas_call(
        _conv3x3_relu_pool_kernel,
        out_shape=jax.ShapeDtypeStruct((n * ho * wo, cout), jnp.bfloat16),
        grid=(n // bt,),
        in_specs=[
            pl.BlockSpec((bt, ho + 1, wo + 1, 4 * cin), lambda i: (i, 0, 0, 0)),
            pl.BlockSpec(w_taps.shape, lambda i: (0, 0, 0)),
            pl.BlockSpec(bias.shape, lambda i: (0, 0)),
        ],
        out_specs=pl.BlockSpec((bt * ho * wo, cout), lambda i: (i, 0)),
        compiler_params=pltpu.CompilerParams(dimension_semantics=("parallel",)),
    )(z, w_taps, bias)
    return out.reshape(n, ho, wo, cout)


def fused_fc(x, w1, b1, w2, b2, w3, b3):
    """All three FC layers in one single-step pallas_call (weights ~1.1 MiB)."""
    m = x.shape[0]
    return pl.pallas_call(
        _fused_fc_kernel,
        out_shape=jax.ShapeDtypeStruct((m, w3.shape[1]), jnp.float32),
    )(x, w1, b1, w2, b2, w3, b3)


# -------------------------- parameters / layouts ------------------------------

def init_params(key):
    """Synthetic parameters in PyTorch layouts (conv OIHW, linear (out,in))."""
    ks = jax.random.split(key, 6)

    def kaiming(k, shape, fan_in):
        return jax.random.normal(k, shape, jnp.float32) * jnp.sqrt(2.0 / fan_in)

    bound = 1.0 / jnp.sqrt(64.0)
    return {
        'conv1_w': kaiming(ks[0], (32, 3, 3, 3), 3 * 9),
        'conv1_b': jnp.zeros((32,), jnp.float32),
        'conv2_w': kaiming(ks[1], (32, 32, 3, 3), 32 * 9),
        'conv2_b': jnp.zeros((32,), jnp.float32),
        'fc1a_w': kaiming(ks[2], (256, 2048), 2048),
        'fc1a_b': jnp.zeros((256,), jnp.float32),
        'fc1b_w': kaiming(ks[3], (64, 256), 256),
        'fc1b_b': jnp.zeros((64,), jnp.float32),
        'fc2_w': jax.random.uniform(ks[4], (10, 64), jnp.float32, -bound, bound),
        'fc2_b': jax.random.uniform(ks[5], (10,), jnp.float32, -bound, bound),
    }


def expand_conv_weight(w_oihw):
    """(Cout,Cin,3,3) -> (16*Cin, 4*Cout) fused conv+maxpool matmul weight.

    Rows index (da, db, p, q, cin): the 4x4 padded-input window of one pooled
    output pixel after space-to-depth by 2.  Columns index (dy, dx, cout):
    the four conv outputs inside the 2x2 pooling window.
    """
    cout, cin, _, _ = w_oihw.shape
    w_hwio = jnp.transpose(w_oihw, (2, 3, 1, 0))      # (ky, kx, cin, cout)
    big = jnp.zeros((2, 2, 2, 2, cin, 2, 2, cout), jnp.float32)
    for dy in range(2):
        for dx in range(2):
            for ky in range(3):
                for kx in range(3):
                    r, s = dy + ky, dx + kx
                    big = big.at[r // 2, s // 2, r % 2, s % 2, :, dy, dx, :].set(
                        w_hwio[ky, kx])
    return big.reshape(16 * cin, 4 * cout)


def prepare_kernel_params(p):
    """One-time layout/dtype transforms (done once, outside the forward)."""
    kp = {}
    for i in (1, 2):
        w = expand_conv_weight(p[f'conv{i}_w'])       # (16*cin, 4*cout)
        cin4 = w.shape[0] // 4
        # Split into the 4 (da,db) taps so the kernel never row-slices weights.
        kp[f'conv{i}_w'] = w.reshape(4, cin4, w.shape[1]).astype(jnp.bfloat16)
        kp[f'conv{i}_b'] = jnp.tile(p[f'conv{i}_b'], 4).reshape(1, -1)
    # fc1 first layer: permute input rows from torch's (c,h,w) flatten order
    # to the kernel's NHWC (h,w,c) flatten order.
    w = p['fc1a_w'].reshape(256, 32, 8, 8)            # (out, c, h, w)
    w = jnp.transpose(w, (2, 3, 1, 0)).reshape(8 * 8 * 32, 256)
    kp['fc1a_w'] = w.astype(jnp.bfloat16)
    kp['fc1a_b'] = p['fc1a_b'].reshape(1, -1)
    # fc1 second layer: pad 64 -> 128 output lanes (dense stores / dense K).
    kp['fc1b_w'] = jnp.pad(p['fc1b_w'].T, ((0, 0), (0, 64))).astype(jnp.bfloat16)
    kp['fc1b_b'] = jnp.pad(p['fc1b_b'], (0, 64)).reshape(1, -1)
    # fc2: pad K 64 -> 128 (the padded fc1b lanes are zero) and N 10 -> 128.
    kp['fc2_w'] = jnp.pad(p['fc2_w'].T, ((0, 64), (0, 118))).astype(jnp.bfloat16)
    kp['fc2_b'] = jnp.pad(p['fc2_b'], (0, 118)).reshape(1, -1)
    return kp


# --------------------------------- forward -----------------------------------

def model_forward(x_nchw, kp):
    n = x_nchw.shape[0]
    x = jnp.transpose(x_nchw, (0, 2, 3, 1)).astype(jnp.bfloat16)       # NHWC
    y = conv3x3_relu_pool(x, kp['conv1_w'], kp['conv1_b'])             # (n,16,16,32)
    y = conv3x3_relu_pool(y, kp['conv2_w'], kp['conv2_b'])             # (n,8,8,32)
    y = y.reshape(n, 8 * 8 * 32)                                       # free reshape
    y = fused_fc(y, kp['fc1a_w'], kp['fc1a_b'],
                 kp['fc1b_w'], kp['fc1b_b'],
                 kp['fc2_w'], kp['fc2_b'])                             # (n, 128) f32
    return y[:, :10]


# ---------------------------- pure-JAX reference ------------------------------

def ref_forward(x_nchw, p):
    x = jnp.transpose(x_nchw, (0, 2, 3, 1))

    def conv3x3(x, w_oihw, b):
        w = jnp.transpose(w_oihw, (2, 3, 1, 0))
        y = jax.lax.conv_general_dilated(
            x, w, (1, 1), [(1, 1), (1, 1)],
            dimension_numbers=('NHWC', 'HWIO', 'NHWC'))
        return y + b

    def maxpool2(x):
        n, h, w, c = x.shape
        return jnp.max(x.reshape(n, h // 2, 2, w // 2, 2, c), axis=(2, 4))

    y = maxpool2(jax.nn.relu(conv3x3(x, p['conv1_w'], p['conv1_b'])))
    y = maxpool2(jax.nn.relu(conv3x3(y, p['conv2_w'], p['conv2_b'])))
    y = jnp.transpose(y, (0, 3, 1, 2)).reshape(y.shape[0], -1)   # torch .view order
    y = jax.nn.relu(y @ p['fc1a_w'].T + p['fc1a_b'])
    y = jax.nn.relu(y @ p['fc1b_w'].T + p['fc1b_b'])
    return y @ p['fc2_w'].T + p['fc2_b']


# ----------------------------------- main -------------------------------------

if __name__ == "__main__":
    key = jax.random.PRNGKey(0)
    kx, kw = jax.random.split(key)

    batch = 2
    x = jax.random.normal(kx, (batch, 3, 32, 32), jnp.float32)   # CIFAR-10 shape

    params = init_params(kw)
    kparams = prepare_kernel_params(params)

    fwd = jax.jit(model_forward)
    out = jax.block_until_ready(fwd(x, kparams))
    assert out.shape == (batch, 10)

    ref = ref_forward(x, params)
    err = float(jnp.max(jnp.abs(out - ref)))
    # bf16 MXU inputs / bf16 inter-stage activations (f32 accumulation)
    # -> relaxed tolerance vs the f32 reference.
    assert jnp.allclose(out, ref, atol=1e-1, rtol=1e-1), (
        f"mismatch vs JAX reference: max|diff|={err}")

    print("KERNEL_OK")
</pallas_src>

<mosaic_0001>
module attributes {stable_mosaic.version = 11 : i64} {
  func.func @_conv3x3_relu_pool_kernel(%arg0: i32, %arg1: memref<2x17x17x12xbf16, #tpu.memory_space<vmem>>, %arg2: memref<4x12x128xbf16, #tpu.memory_space<vmem>>, %arg3: memref<1x128xf32, #tpu.memory_space<vmem>>, %arg4: memref<512x32xbf16, #tpu.memory_space<vmem>>) attributes {dimension_semantics = [#tpu.dimension_semantics<parallel>], iteration_bounds = array<i64: 1>, scalar_prefetch = 0 : i64, scratch_operands = 0 : i64, tpu.core_type = #tpu.core_type<tc>, window_params = [{transform_indices = @transform_0, window_bounds = array<i64: 2, 17, 17, 12>}, {pipeline_mode = #tpu.pipeline_mode<synchronous>, transform_indices = @transform_1, window_bounds = array<i64: 4, 12, 128>}, {pipeline_mode = #tpu.pipeline_mode<synchronous>, transform_indices = @transform_2, window_bounds = array<i64: 1, 128>}, {transform_indices = @transform_3, window_bounds = array<i64: 512, 32>}]} {
    %c0 = arith.constant 0 : index
    %c0_0 = arith.constant 0 : index
    %c0_1 = arith.constant 0 : index
    %c0_2 = arith.constant 0 : index
    %0 = vector.load %arg1[%c0, %c0_0, %c0_1, %c0_2] : memref<2x17x17x12xbf16, #tpu.memory_space<vmem>>, vector<2x16x16x12xbf16>
    %1 = vector.shape_cast %0 : vector<2x16x16x12xbf16> to vector<512x12xbf16>
    %c0_3 = arith.constant 0 : index
    %c0_4 = arith.constant 0 : index
    %c0_5 = arith.constant 0 : index
    %2 = vector.load %arg2[%c0_3, %c0_4, %c0_5] : memref<4x12x128xbf16, #tpu.memory_space<vmem>>, vector<1x12x128xbf16>
    %3 = vector.shape_cast %2 : vector<1x12x128xbf16> to vector<12x128xbf16>
    %cst = arith.constant dense<0.000000e+00> : vector<512x128xf32>
    %4 = tpu.matmul %1, %3, %cst {dimension_numbers = #tpu.dot_dimension_numbers<[1], [0], [0], [1], [0, 0, 1, 1], [], []>} : vector<512x12xbf16>, vector<12x128xbf16>, vector<512x128xf32> -> vector<512x128xf32>
    %c0_6 = arith.constant 0 : index
    %c0_7 = arith.constant 0 : index
    %c1 = arith.constant 1 : index
    %c0_8 = arith.constant 0 : index
    %5 = vector.load %arg1[%c0_6, %c0_7, %c1, %c0_8] : memref<2x17x17x12xbf16, #tpu.memory_space<vmem>>, vector<2x16x16x12xbf16>
    %6 = vector.shape_cast %5 : vector<2x16x16x12xbf16> to vector<512x12xbf16>
    %c1_9 = arith.constant 1 : index
    %c0_10 = arith.constant 0 : index
    %c0_11 = arith.constant 0 : index
    %7 = vector.load %arg2[%c1_9, %c0_10, %c0_11] : memref<4x12x128xbf16, #tpu.memory_space<vmem>>, vector<1x12x128xbf16>
    %8 = vector.shape_cast %7 : vector<1x12x128xbf16> to vector<12x128xbf16>
    %cst_12 = arith.constant dense<0.000000e+00> : vector<512x128xf32>
    %9 = tpu.matmul %6, %8, %cst_12 {dimension_numbers = #tpu.dot_dimension_numbers<[1], [0], [0], [1], [0, 0, 1, 1], [], []>} : vector<512x12xbf16>, vector<12x128xbf16>, vector<512x128xf32> -> vector<512x128xf32>
    %10 = arith.addf %4, %9 : vector<512x128xf32>
    %c0_13 = arith.constant 0 : index
    %c1_14 = arith.constant 1 : index
    %c0_15 = arith.constant 0 : index
    %c0_16 = arith.constant 0 : index
    %11 = vector.load %arg1[%c0_13, %c1_14, %c0_15, %c0_16] : memref<2x17x17x12xbf16, #tpu.memory_space<vmem>>, vector<2x16x16x12xbf16>
    %12 = vector.shape_cast %11 : vector<2x16x16x12xbf16> to vector<512x12xbf16>
    %c2 = arith.constant 2 : index
    %c0_17 = arith.constant 0 : index
    %c0_18 = arith.constant 0 : index
    %13 = vector.load %arg2[%c2, %c0_17, %c0_18] : memref<4x12x128xbf16, #tpu.memory_space<vmem>>, vector<1x12x128xbf16>
    %14 = vector.shape_cast %13 : vector<1x12x128xbf16> to vector<12x128xbf16>
    %cst_19 = arith.constant dense<0.000000e+00> : vector<512x128xf32>
    %15 = tpu.matmul %12, %14, %cst_19 {dimension_numbers = #tpu.dot_dimension_numbers<[1], [0], [0], [1], [0, 0, 1, 1], [], []>} : vector<512x12xbf16>, vector<12x128xbf16>, vector<512x128xf32> -> vector<512x128xf32>
    %16 = arith.addf %10, %15 : vector<512x128xf32>
    %c0_20 = arith.constant 0 : index
    %c1_21 = arith.constant 1 : index
    %c1_22 = arith.constant 1 : index
    %c0_23 = arith.constant 0 : index
    %17 = vector.load %arg1[%c0_20, %c1_21, %c1_22, %c0_23] : memref<2x17x17x12xbf16, #tpu.memory_space<vmem>>, vector<2x16x16x12xbf16>
    %18 = vector.shape_cast %17 : vector<2x16x16x12xbf16> to vector<512x12xbf16>
    %c3 = arith.constant 3 : index
    %c0_24 = arith.constant 0 : index
    %c0_25 = arith.constant 0 : index
    %19 = vector.load %arg2[%c3, %c0_24, %c0_25] : memref<4x12x128xbf16, #tpu.memory_space<vmem>>, vector<1x12x128xbf16>
    %20 = vector.shape_cast %19 : vector<1x12x128xbf16> to vector<12x128xbf16>
    %cst_26 = arith.constant dense<0.000000e+00> : vector<512x128xf32>
    %21 = tpu.matmul %18, %20, %cst_26 {dimension_numbers = #tpu.dot_dimension_numbers<[1], [0], [0], [1], [0, 0, 1, 1], [], []>} : vector<512x12xbf16>, vector<12x128xbf16>, vector<512x128xf32> -> vector<512x128xf32>
    %22 = arith.addf %16, %21 : vector<512x128xf32>
    %c0_27 = arith.constant 0 : index
    %c0_28 = arith.constant 0 : index
    %23 = vector.load %arg3[%c0_27, %c0_28] : memref<1x128xf32, #tpu.memory_space<vmem>>, vector<1x128xf32>
    %24 = vector.broadcast %23 : vector<1x128xf32> to vector<512x128xf32>
    %25 = arith.addf %22, %24 : vector<512x128xf32>
    %cst_29 = arith.constant 0.000000e+00 : f32
    %26 = vector.broadcast %cst_29 : f32 to vector<512x128xf32>
    %27 = arith.maximumf %25, %26 : vector<512x128xf32>
    %28 = vector.extract_strided_slice %27 {offsets = [0, 0], sizes = [512, 32], strides = [1, 1]} : vector<512x128xf32> to vector<512x32xf32>
    %29 = vector.extract_strided_slice %27 {offsets = [0, 32], sizes = [512, 32], strides = [1, 1]} : vector<512x128xf32> to vector<512x32xf32>
    %30 = arith.maximumf %28, %29 : vector<512x32xf32>
    %31 = vector.extract_strided_slice %27 {offsets = [0, 64], sizes = [512, 32], strides = [1, 1]} : vector<512x128xf32> to vector<512x32xf32>
    %32 = vector.extract_strided_slice %27 {offsets = [0, 96], sizes = [512, 32], strides = [1, 1]} : vector<512x128xf32> to vector<512x32xf32>
    %33 = arith.maximumf %31, %32 : vector<512x32xf32>
    %34 = arith.maximumf %30, %33 : vector<512x32xf32>
    %35 = arith.truncf %34 : vector<512x32xf32> to vector<512x32xbf16>
    %c0_30 = arith.constant 0 : index
    %c0_31 = arith.constant 0 : index
    %36 = vector.load %arg4[%c0_30, %c0_31] : memref<512x32xbf16, #tpu.memory_space<vmem>>, vector<512x32xbf16>
    tpu.vector_store %arg4[%c0_30, %c0_31], %35 {strides = array<i32>} : memref<512x32xbf16, #tpu.memory_space<vmem>>, vector<512x32xbf16>,
    return
  }
  func.func @transform_0(%arg0: i32) -> (i32, i32, i32, i32) {
    %c0_i32 = arith.constant 0 : i32
    %c0_i32_0 = arith.constant 0 : i32
    %c0_i32_1 = arith.constant 0 : i32
    %c0_i32_2 = arith.constant 0 : i32
    return %arg0, %c0_i32, %c0_i32_0, %c0_i32_1 : i32, i32, i32, i32
  }
  func.func @transform_1(%arg0: i32) -> (i32, i32, i32) {
    %c0_i32 = arith.constant 0 : i32
    %c0_i32_0 = arith.constant 0 : i32
    %c0_i32_1 = arith.constant 0 : i32
    %c0_i32_2 = arith.constant 0 : i32
    return %c0_i32, %c0_i32_0, %c0_i32_1 : i32, i32, i32
  }
  func.func @transform_2(%arg0: i32) -> (i32, i32) {
    %c0_i32 = arith.constant 0 : i32
    %c0_i32_0 = arith.constant 0 : i32
    %c0_i32_1 = arith.constant 0 : i32
    return %c0_i32, %c0_i32_0 : i32, i32
  }
  func.func @transform_3(%arg0: i32) -> (i32, i32) {
    %c0_i32 = arith.constant 0 : i32
    %c0_i32_0 = arith.constant 0 : i32
    return %arg0, %c0_i32 : i32, i32
  }
}

module attributes {stable_mosaic.version = 11 : i64} {
  func.func @_conv3x3_relu_pool_kernel(%arg0: i32, %arg1: memref<2x9x9x128xbf16, #tpu.memory_space<vmem>>, %arg2: memref<4x128x128xbf16, #tpu.memory_space<vmem>>, %arg3: memref<1x128xf32, #tpu.memory_space<vmem>>, %arg4: memref<128x32xbf16, #tpu.memory_space<vmem>>) attributes {dimension_semantics = [#tpu.dimension_semantics<parallel>], iteration_bounds = array<i64: 1>, scalar_prefetch = 0 : i64, scratch_operands = 0 : i64, tpu.core_type = #tpu.core_type<tc>, window_params = [{transform_indices = @transform_0, window_bounds = array<i64: 2, 9, 9, 128>}, {pipeline_mode = #tpu.pipeline_mode<synchronous>, transform_indices = @transform_1, window_bounds = array<i64: 4, 128, 128>}, {pipeline_mode = #tpu.pipeline_mode<synchronous>, transform_indices = @transform_2, window_bounds = array<i64: 1, 128>}, {transform_indices = @transform_3, window_bounds = array<i64: 128, 32>}]} {
    %c0 = arith.constant 0 : index
    %c0_0 = arith.constant 0 : index
    %c0_1 = arith.constant 0 : index
    %c0_2 = arith.constant 0 : index
    %0 = vector.load %arg1[%c0, %c0_0, %c0_1, %c0_2] : memref<2x9x9x128xbf16, #tpu.memory_space<vmem>>, vector<2x8x8x128xbf16>
    %1 = vector.shape_cast %0 : vector<2x8x8x128xbf16> to vector<128x128xbf16>
    %c0_3 = arith.constant 0 : index
    %c0_4 = arith.constant 0 : index
    %c0_5 = arith.constant 0 : index
    %2 = vector.load %arg2[%c0_3, %c0_4, %c0_5] : memref<4x128x128xbf16, #tpu.memory_space<vmem>>, vector<1x128x128xbf16>
    %3 = vector.shape_cast %2 : vector<1x128x128xbf16> to vector<128x128xbf16>
    %cst = arith.constant dense<0.000000e+00> : vector<128x128xf32>
    %4 = tpu.matmul %1, %3, %cst {dimension_numbers = #tpu.dot_dimension_numbers<[1], [0], [0], [1], [0, 0, 1, 1], [], []>} : vector<128x128xbf16>, vector<128x128xbf16>, vector<128x128xf32> -> vector<128x128xf32>
    %c0_6 = arith.constant 0 : index
    %c0_7 = arith.constant 0 : index
    %c1 = arith.constant 1 : index
    %c0_8 = arith.constant 0 : index
    %5 = vector.load %arg1[%c0_6, %c0_7, %c1, %c0_8] : memref<2x9x9x128xbf16, #tpu.memory_space<vmem>>, vector<2x8x8x128xbf16>
    %6 = vector.shape_cast %5 : vector<2x8x8x128xbf16> to vector<128x128xbf16>
    %c1_9 = arith.constant 1 : index
    %c0_10 = arith.constant 0 : index
    %c0_11 = arith.constant 0 : index
    %7 = vector.load %arg2[%c1_9, %c0_10, %c0_11] : memref<4x128x128xbf16, #tpu.memory_space<vmem>>, vector<1x128x128xbf16>
    %8 = vector.shape_cast %7 : vector<1x128x128xbf16> to vector<128x128xbf16>
    %cst_12 = arith.constant dense<0.000000e+00> : vector<128x128xf32>
    %9 = tpu.matmul %6, %8, %cst_12 {dimension_numbers = #tpu.dot_dimension_numbers<[1], [0], [0], [1], [0, 0, 1, 1], [], []>} : vector<128x128xbf16>, vector<128x128xbf16>, vector<128x128xf32> -> vector<128x128xf32>
    %10 = arith.addf %4, %9 : vector<128x128xf32>
    %c0_13 = arith.constant 0 : index
    %c1_14 = arith.constant 1 : index
    %c0_15 = arith.constant 0 : index
    %c0_16 = arith.constant 0 : index
    %11 = vector.load %arg1[%c0_13, %c1_14, %c0_15, %c0_16] : memref<2x9x9x128xbf16, #tpu.memory_space<vmem>>, vector<2x8x8x128xbf16>
    %12 = vector.shape_cast %11 : vector<2x8x8x128xbf16> to vector<128x128xbf16>
    %c2 = arith.constant 2 : index
    %c0_17 = arith.constant 0 : index
    %c0_18 = arith.constant 0 : index
    %13 = vector.load %arg2[%c2, %c0_17, %c0_18] : memref<4x128x128xbf16, #tpu.memory_space<vmem>>, vector<1x128x128xbf16>
    %14 = vector.shape_cast %13 : vector<1x128x128xbf16> to vector<128x128xbf16>
    %cst_19 = arith.constant dense<0.000000e+00> : vector<128x128xf32>
    %15 = tpu.matmul %12, %14, %cst_19 {dimension_numbers = #tpu.dot_dimension_numbers<[1], [0], [0], [1], [0, 0, 1, 1], [], []>} : vector<128x128xbf16>, vector<128x128xbf16>, vector<128x128xf32> -> vector<128x128xf32>
    %16 = arith.addf %10, %15 : vector<128x128xf32>
    %c0_20 = arith.constant 0 : index
    %c1_21 = arith.constant 1 : index
    %c1_22 = arith.constant 1 : index
    %c0_23 = arith.constant 0 : index
    %17 = vector.load %arg1[%c0_20, %c1_21, %c1_22, %c0_23] : memref<2x9x9x128xbf16, #tpu.memory_space<vmem>>, vector<2x8x8x128xbf16>
    %18 = vector.shape_cast %17 : vector<2x8x8x128xbf16> to vector<128x128xbf16>
    %c3 = arith.constant 3 : index
    %c0_24 = arith.constant 0 : index
    %c0_25 = arith.constant 0 : index
    %19 = vector.load %arg2[%c3, %c0_24, %c0_25] : memref<4x128x128xbf16, #tpu.memory_space<vmem>>, vector<1x128x128xbf16>
    %20 = vector.shape_cast %19 : vector<1x128x128xbf16> to vector<128x128xbf16>
    %cst_26 = arith.constant dense<0.000000e+00> : vector<128x128xf32>
    %21 = tpu.matmul %18, %20, %cst_26 {dimension_numbers = #tpu.dot_dimension_numbers<[1], [0], [0], [1], [0, 0, 1, 1], [], []>} : vector<128x128xbf16>, vector<128x128xbf16>, vector<128x128xf32> -> vector<128x128xf32>
    %22 = arith.addf %16, %21 : vector<128x128xf32>
    %c0_27 = arith.constant 0 : index
    %c0_28 = arith.constant 0 : index
    %23 = vector.load %arg3[%c0_27, %c0_28] : memref<1x128xf32, #tpu.memory_space<vmem>>, vector<1x128xf32>
    %24 = vector.broadcast %23 : vector<1x128xf32> to vector<128x128xf32>
    %25 = arith.addf %22, %24 : vector<128x128xf32>
    %cst_29 = arith.constant 0.000000e+00 : f32
    %26 = vector.broadcast %cst_29 : f32 to vector<128x128xf32>
    %27 = arith.maximumf %25, %26 : vector<128x128xf32>
    %28 = vector.extract_strided_slice %27 {offsets = [0, 0], sizes = [128, 32], strides = [1, 1]} : vector<128x128xf32> to vector<128x32xf32>
    %29 = vector.extract_strided_slice %27 {offsets = [0, 32], sizes = [128, 32], strides = [1, 1]} : vector<128x128xf32> to vector<128x32xf32>
    %30 = arith.maximumf %28, %29 : vector<128x32xf32>
    %31 = vector.extract_strided_slice %27 {offsets = [0, 64], sizes = [128, 32], strides = [1, 1]} : vector<128x128xf32> to vector<128x32xf32>
    %32 = vector.extract_strided_slice %27 {offsets = [0, 96], sizes = [128, 32], strides = [1, 1]} : vector<128x128xf32> to vector<128x32xf32>
    %33 = arith.maximumf %31, %32 : vector<128x32xf32>
    %34 = arith.maximumf %30, %33 : vector<128x32xf32>
    %35 = arith.truncf %34 : vector<128x32xf32> to vector<128x32xbf16>
    %c0_30 = arith.constant 0 : index
    %c0_31 = arith.constant 0 : index
    %36 = vector.load %arg4[%c0_30, %c0_31] : memref<128x32xbf16, #tpu.memory_space<vmem>>, vector<128x32xbf16>
    tpu.vector_store %arg4[%c0_30, %c0_31], %35 {strides = array<i32>} : memref<128x32xbf16, #tpu.memory_space<vmem>>, vector<128x32xbf16>,
    return
  }
  func.func @transform_0(%arg0: i32) -> (i32, i32, i32, i32) {
    %c0_i32 = arith.constant 0 : i32
    %c0_i32_0 = arith.constant 0 : i32
    %c0_i32_1 = arith.constant 0 : i32
    %c0_i32_2 = arith.constant 0 : i32
    return %arg0, %c0_i32, %c0_i32_0, %c0_i32_1 : i32, i32, i32, i32
  }
  func.func @transform_1(%arg0: i32) -> (i32, i32, i32) {
    %c0_i32 = arith.constant 0 : i32
    %c0_i32_0 = arith.constant 0 : i32
    %c0_i32_1 = arith.constant 0 : i32
    %c0_i32_2 = arith.constant 0 : i32
    return %c0_i32, %c0_i32_0, %c0_i32_1 : i32, i32, i32
  }
  func.func @transform_2(%arg0: i32) -> (i32, i32) {
    %c0_i32 = arith.constant 0 : i32
    %c0_i32_0 = arith.constant 0 : i32
    %c0_i32_1 = arith.constant 0 : i32
    return %c0_i32, %c0_i32_0 : i32, i32
  }
  func.func @transform_3(%arg0: i32) -> (i32, i32) {
    %c0_i32 = arith.constant 0 : i32
    %c0_i32_0 = arith.constant 0 : i32
    return %arg0, %c0_i32 : i32, i32
  }
}

module attributes {stable_mosaic.version = 11 : i64} {
  func.func @_fused_fc_kernel(%arg0: memref<2x2048xbf16, #tpu.memory_space<vmem>>, %arg1: memref<2048x256xbf16, #tpu.memory_space<vmem>>, %arg2: memref<1x256xf32, #tpu.memory_space<vmem>>, %arg3: memref<256x128xbf16, #tpu.memory_space<vmem>>, %arg4: memref<1x128xf32, #tpu.memory_space<vmem>>, %arg5: memref<128x128xbf16, #tpu.memory_space<vmem>>, %arg6: memref<1x128xf32, #tpu.memory_space<vmem>>, %arg7: memref<2x128xf32, #tpu.memory_space<vmem>>) attributes {dimension_semantics = [], scalar_prefetch = 0 : i64, scratch_operands = 0 : i64, tpu.core_type = #tpu.core_type<tc>} {
    %c0 = arith.constant 0 : index
    %c0_0 = arith.constant 0 : index
    %0 = vector.load %arg0[%c0, %c0_0] : memref<2x2048xbf16, #tpu.memory_space<vmem>>, vector<2x2048xbf16>
    %c0_1 = arith.constant 0 : index
    %c0_2 = arith.constant 0 : index
    %1 = vector.load %arg1[%c0_1, %c0_2] : memref<2048x256xbf16, #tpu.memory_space<vmem>>, vector<2048x256xbf16>
    %cst = arith.constant dense<0.000000e+00> : vector<2x256xf32>
    %2 = tpu.matmul %0, %1, %cst {dimension_numbers = #tpu.dot_dimension_numbers<[1], [0], [0], [1], [0, 0, 1, 1], [], []>} : vector<2x2048xbf16>, vector<2048x256xbf16>, vector<2x256xf32> -> vector<2x256xf32>
    %c0_3 = arith.constant 0 : index
    %c0_4 = arith.constant 0 : index
    %3 = vector.load %arg2[%c0_3, %c0_4] : memref<1x256xf32, #tpu.memory_space<vmem>>, vector<1x256xf32>
    %4 = vector.broadcast %3 : vector<1x256xf32> to vector<2x256xf32>
    %5 = arith.addf %2, %4 : vector<2x256xf32>
    %cst_5 = arith.constant 0.000000e+00 : f32
    %6 = vector.broadcast %cst_5 : f32 to vector<2x256xf32>
    %7 = arith.maximumf %5, %6 : vector<2x256xf32>
    %8 = arith.truncf %7 : vector<2x256xf32> to vector<2x256xbf16>
    %c0_6 = arith.constant 0 : index
    %c0_7 = arith.constant 0 : index
    %9 = vector.load %arg3[%c0_6, %c0_7] : memref<256x128xbf16, #tpu.memory_space<vmem>>, vector<256x128xbf16>
    %cst_8 = arith.constant dense<0.000000e+00> : vector<2x128xf32>
    %10 = tpu.matmul %8, %9, %cst_8 {dimension_numbers = #tpu.dot_dimension_numbers<[1], [0], [0], [1], [0, 0, 1, 1], [], []>} : vector<2x256xbf16>, vector<256x128xbf16>, vector<2x128xf32> -> vector<2x128xf32>
    %c0_9 = arith.constant 0 : index
    %c0_10 = arith.constant 0 : index
    %11 = vector.load %arg4[%c0_9, %c0_10] : memref<1x128xf32, #tpu.memory_space<vmem>>, vector<1x128xf32>
    %12 = vector.broadcast %11 : vector<1x128xf32> to vector<2x128xf32>
    %13 = arith.addf %10, %12 : vector<2x128xf32>
    %cst_11 = arith.constant 0.000000e+00 : f32
    %14 = vector.broadcast %cst_11 : f32 to vector<2x128xf32>
    %15 = arith.maximumf %13, %14 : vector<2x128xf32>
    %16 = arith.truncf %15 : vector<2x128xf32> to vector<2x128xbf16>
    %c0_12 = arith.constant 0 : index
    %c0_13 = arith.constant 0 : index
    %17 = vector.load %arg5[%c0_12, %c0_13] : memref<128x128xbf16, #tpu.memory_space<vmem>>, vector<128x128xbf16>
    %cst_14 = arith.constant dense<0.000000e+00> : vector<2x128xf32>
    %18 = tpu.matmul %16, %17, %cst_14 {dimension_numbers = #tpu.dot_dimension_numbers<[1], [0], [0], [1], [0, 0, 1, 1], [], []>} : vector<2x128xbf16>, vector<128x128xbf16>, vector<2x128xf32> -> vector<2x128xf32>
    %c0_15 = arith.constant 0 : index
    %c0_16 = arith.constant 0 : index
    %19 = vector.load %arg6[%c0_15, %c0_16] : memref<1x128xf32, #tpu.memory_space<vmem>>, vector<1x128xf32>
    %20 = vector.broadcast %19 : vector<1x128xf32> to vector<2x128xf32>
    %21 = arith.addf %18, %20 : vector<2x128xf32>
    %c0_17 = arith.constant 0 : index
    %c0_18 = arith.constant 0 : index
    %22 = vector.load %arg7[%c0_17, %c0_18] : memref<2x128xf32, #tpu.memory_space<vmem>>, vector<2x128xf32>
    tpu.vector_store %arg7[%c0_17, %c0_18], %21 {strides = array<i32>} : memref<2x128xf32, #tpu.memory_space<vmem>>, vector<2x128xf32>,
    return
  }
}

</mosaic_0001>

<bundles_post_ra>
// kernel: model_forward.3
= control target key start
LH: loop header
LB: loop body
LE: loop exit
PB: predicated region body
PF: predicated region fallthrough
CT: control target
= control target key end

     0   :  { %vm1085_vm0 = vcmask 1045504   ;;  %vm113_vm1 = vsmask.f32 3328  ;;  %vm114_vm2 = vsmask.f32 7440  ;;  %vm988_vm3 = vcmask 97280   ;;  %s8984_s1 = inlined_call_operand.vmem [shape: bf16[4,12,128], index: 1, kind: input, shape index: {}]   ;;  %s8985_s0 = inlined_call_operand.vmem [shape: bf16[2,17,17,12], index: 0, kind: input, shape index: {}]   ;;  %s8986_s2 = inlined_call_operand.vmem [shape: f32[1,128], index: 2, kind: input, shape index: {}]   ;;  %s8987_s3 = inlined_call_operand.vmem [shape: bf16[512,32], index: 3, kind: output, shape index: {}]  }
   0x1   :  { %v6413_v0 = vld [vmem:[%s8984_s1] sm:$0x3f]   ;;  %v6414_v1 = vld [vmem:[%s8984_s1 + $0x8] sm:$0x3f]   ;;  %v18_v12 = vld [vmem:[%s8985_s0 + $0x10] sm:$0xf] }
   0x2   :  { %6088 = vmatprep.subr.msk.bf16.mxu1 %vm1085_vm0, %v6413_v0  ;;  %v1640_v2 = vsel %vm1085_vm0, %v6413_v0, 0  ;;  %v15_v3 = vld [vmem:[%s8985_s0] sm:$0xf]  ;;  %v16_v4 = vld [vmem:[%s8985_s0 + $0x4] sm:$0xf]  ;;  %6087 = vmatprep.subr.msk.bf16.mxu0 %vm1085_vm0, %v6414_v1  ;;  %v1087_v11 = vsel %vm1085_vm0, %v6414_v1, 0  ;;  %vm6534_vm4 = vmor %vm113_vm1, %vm114_vm2 }
   0x3   :  { %5890 = vmatpush3.bf16.msra.mxu1 %v1640_v2  ;;  %v117_v5 = vshrl.u32 %v15_v3, 16  ;;  %v120_v6 = vshll.u32 %v15_v3, 16  ;;  %v126_v7 = vshll.u32 %v16_v4, 16  ;;  %v130_v8 = vshrl.u32 %v16_v4, 16  ;;  %v17_v9 = vld [vmem:[%s8985_s0 + $0xc] sm:$0xf]  ;;  %5824 = vmatpush3.bf16.msra.mxu0 %v1087_v11 }
   0x4   :  { %v5203_v10 = vcombine.low %v15_v3, %v16_v4  ;;  %v141_v13 = vshrl.u32 %v17_v9, 16  ;;  %v144_v14 = vshll.u32 %v17_v9, 16  ;;  %v81_v19 = vld [vmem:[%s8985_s0 + $0x8] sm:$0x1]  ;;  %v150_v22 = vshll.u32 %v18_v12, 16  ;;  %s6482_s21 = smov 64  }
   0x5   :  { %v119_v15 = vrot.slane %v117_v5, 4  ;;  %v122_v16 = vrot.slane %v120_v6, 5  ;;  %v128_v17 = vrot.slane %v126_v7, 5  ;;  %v132_v18 = vrot.slane %v130_v8, 4  ;;  %v6417_v28 = vld [vmem:[%s8984_s1 + $0x10] sm:$0x3f]  }
   0x6   :  { %5891 = vmatprep.mubr.msk.bf16.mxu1 %vm988_vm3, %v5203_v10  ;;  %v143_v20 = vrot.slane %v141_v13, 4  ;;  %v146_v21 = vrot.slane %v144_v14, 5  ;;  %v154_v23 = vshrl.u32 %v18_v12, 16  ;;  %v5204_v24 = vcombine.low %v17_v9, %v18_v12  ;;  %v82_v32 = vld [vmem:[%s8985_s0 + $0x14] sm:$0x1]  ;;  %6089 = vmatprep.subr.msk.bf16.mxu0 %vm1085_vm0, %v6417_v28 }
   0x7   :  { %v123_v25 = vor.u32 %v122_v16, %v119_v15  ;;  %v133_v26 = vor.u32 %v132_v18, %v128_v17  ;;  %v136_v27 = vshll.u32 %v81_v19, 16  ;;  %v152_v29 = vrot.slane %v150_v22, 5  ;;  %v6418_v41 = vld [vmem:[%s8984_s1 + $0x18] sm:$0x3f]   ;;  %v21_v48 = vld [vmem:[%s8985_s0 + $0x24] sm:$0xf] }
   0x8   :  { %v156_v30 = vrot.slane %v154_v23, 4  ;;  %v147_v33 = vor.u32 %v146_v21, %v143_v20  ;;  %5892 = vmatmul.mubr.msk.bf16.vlgmr.msra.gmra.mxu1 %vm988_vm3, %v5204_v24  ;;  %v160_v37 = vshll.u32 %v82_v32, 16  ;;  %v2261_v40 = vsel %vm1085_vm0, %v6417_v28, 0  ;;  %v19_v42 = vld [vmem:[%s8985_s0 + $0x18] sm:$0xf]  ;;  %6090 = vmatprep.subr.msk.bf16.mxu1 %vm1085_vm0, %v6418_v41 }
   0x9   :  { %v124_v34 = vrot.slane %v123_v25, 4  ;;  %v134_v35 = vrot.slane %v133_v26, 4  ;;  %v138_v36 = vrot.slane %v136_v27, 5  ;;  %v20_v46 = vld [vmem:[%s8985_s0 + $0x1c] sm:$0xf]  ;;  %v165_v47 = vshrl.u32 %v19_v42, 16 }
   0xa   :  { %v148_v38 = vrot.slane %v147_v33, 4  ;;  %v157_v39 = vor.u32 %v156_v30, %v152_v29  ;;  %v162_v45 = vrot.slane %v160_v37, 5  ;;  %v3681_v52 = vsel %vm1085_vm0, %v6418_v41, 0  ;;  %v22_v57 = vld [vmem:[%s8985_s0 + $0x28] sm:$0xf] }
   0xb   :  { %v129_v43 = vsel %vm6534_vm4, %v124_v34, %v128_v17  ;;  %v139_v44 = vsel %vm6534_vm4, %v134_v35, %v138_v36  ;;  %6022 = vmatpush3.bf16.msra.mxu1 %v3681_v52  ;;  %v167_v53 = vrot.slane %v165_v47, 4  ;;  %v168_v54 = vshll.u32 %v19_v42, 16  ;;  %v83_v62 = vld [vmem:[%s8985_s0 + $0x20] sm:$0x1]  ;;  %v84_v3 = vld [vmem:[%s8985_s0 + $0x2c] sm:$0x1] }
   0xc   :  { %v5138_v49 = vcombine.low %v129_v43, %v139_v44  ;;  %v153_v50 = vsel %vm6534_vm4, %v148_v38, %v152_v29  ;;  %v158_v51 = vrot.slane %v157_v39, 4  ;;  %v174_v55 = vshll.u32 %v20_v46, 16  ;;  %v23_v8 = vld [vmem:[%s8985_s0 + $0x30] sm:$0xf]  ;;  %v24_v17 = vld [vmem:[%s8985_s0 + $0x34] sm:$0xf] }
   0xd   :  { %v178_v56 = vshrl.u32 %v20_v46, 16  ;;  %v5205_v59 = vcombine.low %v19_v42, %v20_v46  ;;  %v189_v60 = vshrl.u32 %v21_v48, 16  ;;  %v192_v61 = vshll.u32 %v21_v48, 16  ;;  %v25_v26 = vld [vmem:[%s8985_s0 + $0x3c] sm:$0xf] }
   0xe   :  { %5825 = vmatprep.mubr.msk.bf16.mxu0 %vm988_vm3, %v5138_v49  ;;  %v163_v58 = vsel %vm6534_vm4, %v158_v51, %v162_v45  ;;  %v170_v0 = vrot.slane %v168_v54, 5  ;;  %v176_v1 = vrot.slane %v174_v55, 5  ;;  %v198_v6 = vshll.u32 %v22_v57, 16  ;;  %v26_v32 = vld [vmem:[%s8985_s0 + $0x40] sm:$0xf] }
   0xf   :  { %v5139_v63 = vcombine.low %v153_v50, %v163_v58  ;;  %v180_v2 = vrot.slane %v178_v56, 4  ;;  %5895 = vmatprep.mubr.msk.bf16.mxu1 %vm988_vm3, %v5205_v59  ;;  %v191_v4 = vrot.slane %v189_v60, 4  ;;  %v194_v5 = vrot.slane %v192_v61, 5  ;;  %v85_v37 = vld [vmem:[%s8985_s0 + $0x38] sm:$0x1] }
  0x10   :  { %v202_v7 = vshrl.u32 %v22_v57, 16  ;;  %v5206_v9 = vcombine.low %v21_v48, %v22_v57  ;;  %v171_v10 = vor.u32 %v170_v0, %v167_v53  ;;  %v184_v12 = vshll.u32 %v83_v62, 16  ;;  %v86_v42 = vld [vmem:[%s8985_s0 + $0x44] sm:$0x1]  ;;  %v27_v47 = vld [vmem:[%s8985_s0 + $0x48] sm:$0xf] }
  0x11   :  { %5826 = vmatmul.mubr.msk.bf16.vlgmr.msra.gmra.mxu0 %vm988_vm3, %v5139_v63  ;;  %v181_v11 = vor.u32 %v180_v2, %v176_v1  ;;  %v200_v13 = vrot.slane %v198_v6, 5  ;;  %v195_v15 = vor.u32 %v194_v5, %v191_v4  ;;  %v208_v16 = vshll.u32 %v84_v3, 16  ;;  %v28_v63 = vld [vmem:[%s8985_s0 + $0x4c] sm:$0xf]  ;;  %v29_v5 = vld [vmem:[%s8985_s0 + $0x54] sm:$0xf] }
  0x12   :  { %5956 = vmatpush3.bf16.msra.mxu0 %v2261_v40  ;;  %v204_v14 = vrot.slane %v202_v7, 4  ;;  %5896 = vmatmul.mubr.msk.bf16.gmra.mxu1 %vm988_vm3, %v5206_v9  ;;  %v172_v18 = vrot.slane %v171_v10, 4  ;;  %v186_v20 = vrot.slane %v184_v12, 5  ;;  %v213_v21 = vshrl.u32 %v23_v8, 16 }
  0x13   :  { %v182_v19 = vrot.slane %v181_v11, 4  ;;  %v196_v22 = vrot.slane %v195_v15, 4  ;;  %v210_v24 = vrot.slane %v208_v16, 5  ;;  %v216_v25 = vshll.u32 %v23_v8, 16 }
  0x14   :  { %v205_v23 = vor.u32 %v204_v14, %v200_v13  ;;  %v177_v27 = vsel %vm6534_vm4, %v172_v18, %v176_v1  ;;  %v215_v29 = vrot.slane %v213_v21, 4  ;;  %v222_v30 = vshll.u32 %v24_v17, 16  ;;  %v30_v14 = vld [vmem:[%s8985_s0 + $0x58] sm:$0xf] }
  0x15   :  { %v187_v28 = vsel %vm6534_vm4, %v182_v19, %v186_v20  ;;  %v201_v34 = vsel %vm6534_vm4, %v196_v22, %v200_v13  ;;  %v218_v36 = vrot.slane %v216_v25, 5  ;;  %v226_v39 = vshrl.u32 %v24_v17, 16  ;;  %v87_v19 = vld [vmem:[%s8985_s0 + $0x50] sm:$0x1]  ;;  %v88_v20 = vld [vmem:[%s8985_s0 + $0x5c] sm:$0x1] }
  0x16   :  { %v5140_v33 = vcombine.low %v177_v27, %v187_v28  ;;  %v206_v35 = vrot.slane %v205_v23, 4  ;;  %v224_v38 = vrot.slane %v222_v30, 5  ;;  %v5207_v40 = vcombine.low %v23_v8, %v24_v17  ;;  %v31_v25 = vld [vmem:[%s8985_s0 + $0x60] sm:$0xf] }
  0x17   :  { %v237_v41 = vshrl.u32 %v25_v26, 16  ;;  %v240_v44 = vshll.u32 %v25_v26, 16  ;;  %v246_v45 = vshll.u32 %v26_v32, 16  ;;  %v250_v46 = vshrl.u32 %v26_v32, 16 }
  0x18   :  { %5829 = vmatprep.mubr.msk.bf16.mxu0 %vm988_vm3, %v5140_v33  ;;  %v211_v43 = vsel %vm6534_vm4, %v206_v35, %v210_v24  ;;  %v228_v49 = vrot.slane %v226_v39, 4  ;;  %5899 = vmatprep.mubr.msk.bf16.mxu1 %vm988_vm3, %v5207_v40  ;;  %v5208_v51 = vcombine.low %v25_v26, %v26_v32  ;;  %v219_v55 = vor.u32 %v218_v36, %v215_v29 }
  0x19   :  { %v5141_v48 = vcombine.low %v201_v34, %v211_v43  ;;  %v239_v50 = vrot.slane %v237_v41, 4  ;;  %v242_v52 = vrot.slane %v240_v44, 5  ;;  %v248_v53 = vrot.slane %v246_v45, 5 }
  0x1a   :  { %v252_v54 = vrot.slane %v250_v46, 4  ;;  %5900 = vmatmul.mubr.msk.bf16.gmra.mxu1 %vm988_vm3, %v5208_v51  ;;  %v229_v56 = vor.u32 %v228_v49, %v224_v38  ;;  %v232_v57 = vshll.u32 %v85_v37, 16  ;;  %v256_v58 = vshll.u32 %v86_v42, 16 }
  0x1b   :  { %5830 = vmatmul.mubr.msk.bf16.gmra.mxu0 %vm988_vm3, %v5141_v48  ;;  %v261_v59 = vshrl.u32 %v27_v47, 16  ;;  %v220_v60 = vrot.slane %v219_v55, 4  ;;  %v243_v61 = vor.u32 %v242_v52, %v239_v50  ;;  %v264_v0 = vshll.u32 %v27_v47, 16  ;;  %v33_v48 = vld [vmem:[%s8985_s0 + $0x6c] sm:$0xf] }
  0x1c   :  { %v253_v62 = vor.u32 %v252_v54, %v248_v53  ;;  %v230_v1 = vrot.slane %v229_v56, 4  ;;  %v234_v2 = vrot.slane %v232_v57, 5  ;;  %v258_v3 = vrot.slane %v256_v58, 5 }
  0x1d   :  { %v263_v4 = vrot.slane %v261_v59, 4  ;;  %v225_v6 = vsel %vm6534_vm4, %v220_v60, %v224_v38  ;;  %v244_v7 = vrot.slane %v243_v61, 4  ;;  %v266_v9 = vrot.slane %v264_v0, 5  ;;  %v32_v38 = vld [vmem:[%s8985_s0 + $0x64] sm:$0xf] }
  0x1e   :  { %v254_v8 = vrot.slane %v253_v62, 4  ;;  %v235_v10 = vsel %vm6534_vm4, %v230_v1, %v234_v2  ;;  %v270_v11 = vshll.u32 %v28_v63, 16  ;;  %v274_v12 = vshrl.u32 %v28_v63, 16  ;;  %v89_v62 = vld [vmem:[%s8985_s0 + $0x68] sm:$0x1] }
  0x1f   :  { %v5209_v13 = vcombine.low %v27_v47, %v28_v63  ;;  %v5142_v15 = vcombine.low %v225_v6, %v235_v10  ;;  %v249_v16 = vsel %vm6534_vm4, %v244_v7, %v248_v53  ;;  %v285_v18 = vshrl.u32 %v29_v5, 16  ;;  %v34_v53 = vld [vmem:[%s8985_s0 + $0x70] sm:$0xf]  ;;  %v90_v63 = vld [vmem:[%s8985_s0 + $0x74] sm:$0x1] }
  0x20   :  { %v259_v17 = vsel %vm6534_vm4, %v254_v8, %v258_v3  ;;  %v272_v22 = vrot.slane %v270_v11, 5  ;;  %v276_v23 = vrot.slane %v274_v12, 4  ;;  %v288_v24 = vshll.u32 %v29_v5, 16 }
  0x21   :  { %v5143_v21 = vcombine.low %v249_v16, %v259_v17  ;;  %5903 = vmatprep.mubr.msk.bf16.mxu1 %vm988_vm3, %v5209_v13  ;;  %5833 = vmatprep.mubr.msk.bf16.mxu0 %vm988_vm3, %v5142_v15  ;;  %v287_v26 = vrot.slane %v285_v18, 4  ;;  %v294_v27 = vshll.u32 %v30_v14, 16  ;;  %v298_v28 = vshrl.u32 %v30_v14, 16  ;;  %v36_v16 = vld [vmem:[%s8985_s0 + $0x7c] sm:$0xf] }
  0x22   :  { %v5210_v29 = vcombine.low %v29_v5, %v30_v14  ;;  %v290_v30 = vrot.slane %v288_v24, 5  ;;  %v267_v32 = vor.u32 %v266_v9, %v263_v4  ;;  %v277_v33 = vor.u32 %v276_v23, %v272_v22  ;;  %v35_v4 = vld [vmem:[%s8985_s0 + $0x78] sm:$0xf] }
  0x23   :  { %5834 = vmatmul.mubr.msk.bf16.gmra.mxu0 %vm988_vm3, %v5143_v21  ;;  %v280_v34 = vshll.u32 %v87_v19, 16  ;;  %v296_v35 = vrot.slane %v294_v27, 5  ;;  %v300_v36 = vrot.slane %v298_v28, 4  ;;  %v304_v37 = vshll.u32 %v88_v20, 16 }
  0x24   :  { %5904 = vmatmul.mubr.msk.bf16.gmra.mxu1 %vm988_vm3, %v5210_v29  ;;  %v309_v39 = vshrl.u32 %v31_v25, 16  ;;  %v268_v40 = vrot.slane %v267_v32, 4  ;;  %v278_v41 = vrot.slane %v277_v33, 4  ;;  %v291_v43 = vor.u32 %v290_v30, %v287_v26  ;;  %v37_v26 = vld [vmem:[%s8985_s0 + $0x84] sm:$0xf] }
  0x25   :  { %v282_v42 = vrot.slane %v280_v34, 5  ;;  %v301_v44 = vor.u32 %v300_v36, %v296_v35  ;;  %v306_v45 = vrot.slane %v304_v37, 5  ;;  %v312_v47 = vshll.u32 %v31_v25, 16  ;;  %v38_v32 = vld [vmem:[%s8985_s0 + $0x88] sm:$0xf] }
  0x26   :  { %v311_v46 = vrot.slane %v309_v39, 4  ;;  %v273_v49 = vsel %vm6534_vm4, %v268_v40, %v272_v22  ;;  %v292_v51 = vrot.slane %v291_v43, 4  ;;  %v318_v52 = vshll.u32 %v32_v38, 16 }
  0x27   :  { %v283_v50 = vsel %vm6534_vm4, %v278_v41, %v282_v42  ;;  %v302_v55 = vrot.slane %v301_v44, 4  ;;  %v314_v56 = vrot.slane %v312_v47, 5  ;;  %v322_v57 = vshrl.u32 %v32_v38, 16  ;;  %v91_v41 = vld [vmem:[%s8985_s0 + $0x80] sm:$0x1] }
  0x28   :  { %v5144_v54 = vcombine.low %v273_v49, %v283_v50  ;;  %v297_v58 = vsel %vm6534_vm4, %v292_v51, %v296_v35  ;;  %v320_v59 = vrot.slane %v318_v52, 5  ;;  %v5211_v60 = vcombine.low %v31_v25, %v32_v38  ;;  %v92_v42 = vld [vmem:[%s8985_s0 + $0x8c] sm:$0x1]  ;;  %v39_v47 = vld [vmem:[%s8985_s0 + $0x90] sm:$0xf] }
  0x29   :  { %v333_v61 = vshrl.u32 %v33_v48, 16  ;;  %v307_v0 = vsel %vm6534_vm4, %v302_v55, %v306_v45  ;;  %v324_v1 = vrot.slane %v322_v57, 4  ;;  %v336_v2 = vshll.u32 %v33_v48, 16 }
  0x2a   :  { %5837 = vmatprep.mubr.msk.bf16.mxu0 %vm988_vm3, %v5144_v54  ;;  %v342_v3 = vshll.u32 %v34_v53, 16  ;;  %v5145_v5 = vcombine.low %v297_v58, %v307_v0  ;;  %5907 = vmatprep.mubr.msk.bf16.mxu1 %vm988_vm3, %v5211_v60  ;;  %v346_v7 = vshrl.u32 %v34_v53, 16  ;;  %v5212_v8 = vcombine.low %v33_v48, %v34_v53 }
  0x2b   :  { %v335_v6 = vrot.slane %v333_v61, 4  ;;  %v338_v9 = vrot.slane %v336_v2, 5  ;;  %v315_v11 = vor.u32 %v314_v56, %v311_v46  ;;  %v325_v12 = vor.u32 %v324_v1, %v320_v59 }
  0x2c   :  { %v344_v10 = vrot.slane %v342_v3, 5  ;;  %5838 = vmatmul.mubr.msk.bf16.gmra.mxu0 %vm988_vm3, %v5145_v5  ;;  %v348_v13 = vrot.slane %v346_v7, 4  ;;  %5908 = vmatmul.mubr.msk.bf16.gmra.mxu1 %vm988_vm3, %v5212_v8  ;;  %v328_v14 = vshll.u32 %v89_v62, 16  ;;  %v352_v15 = vshll.u32 %v90_v63, 16  ;;  %v41_v5 = vld [vmem:[%s8985_s0 + $0x9c] sm:$0xf] }
  0x2d   :  { %v357_v17 = vshrl.u32 %v35_v4, 16  ;;  %v316_v18 = vrot.slane %v315_v11, 4  ;;  %v326_v19 = vrot.slane %v325_v12, 4  ;;  %v339_v20 = vor.u32 %v338_v9, %v335_v6 }
  0x2e   :  { %v360_v21 = vshll.u32 %v35_v4, 16  ;;  %v330_v22 = vrot.slane %v328_v14, 5  ;;  %v349_v23 = vor.u32 %v348_v13, %v344_v10  ;;  %v354_v24 = vrot.slane %v352_v15, 5 }
  0x2f   :  { %v359_v25 = vrot.slane %v357_v17, 4  ;;  %v321_v27 = vsel %vm6534_vm4, %v316_v18, %v320_v59  ;;  %v340_v28 = vrot.slane %v339_v20, 4  ;;  %v366_v30 = vshll.u32 %v36_v16, 16  ;;  %v40_v59 = vld [vmem:[%s8985_s0 + $0x94] sm:$0xf] }
  0x30   :  { %v362_v29 = vrot.slane %v360_v21, 5  ;;  %v331_v33 = vsel %vm6534_vm4, %v326_v19, %v330_v22  ;;  %v350_v34 = vrot.slane %v349_v23, 4  ;;  %v370_v35 = vshrl.u32 %v36_v16, 16  ;;  %v93_v19 = vld [vmem:[%s8985_s0 + $0x98] sm:$0x1] }
  0x31   :  { %v5213_v36 = vcombine.low %v35_v4, %v36_v16  ;;  %v5146_v37 = vcombine.low %v321_v27, %v331_v33  ;;  %v345_v38 = vsel %vm6534_vm4, %v340_v28, %v344_v10  ;;  %v368_v39 = vrot.slane %v366_v30, 5  ;;  %v42_v10 = vld [vmem:[%s8985_s0 + $0xa0] sm:$0xf]  ;;  %v94_v20 = vld [vmem:[%s8985_s0 + $0xa4] sm:$0x1] }
  0x32   :  { %v381_v40 = vshrl.u32 %v37_v26, 16  ;;  %v355_v43 = vsel %vm6534_vm4, %v350_v34, %v354_v24  ;;  %v372_v44 = vrot.slane %v370_v35, 4  ;;  %v384_v45 = vshll.u32 %v37_v26, 16 }
  0x33   :  { %5911 = vmatprep.mubr.msk.bf16.mxu1 %vm988_vm3, %v5213_v36  ;;  %v390_v46 = vshll.u32 %v38_v32, 16  ;;  %5841 = vmatprep.mubr.msk.bf16.mxu0 %vm988_vm3, %v5146_v37  ;;  %v5147_v48 = vcombine.low %v345_v38, %v355_v43  ;;  %v394_v50 = vshrl.u32 %v38_v32, 16  ;;  %v5214_v51 = vcombine.low %v37_v26, %v38_v32  ;;  %v44_v38 = vld [vmem:[%s8985_s0 + $0xac] sm:$0xf] }
  0x34   :  { %v383_v49 = vrot.slane %v381_v40, 4  ;;  %v386_v52 = vrot.slane %v384_v45, 5  ;;  %v363_v54 = vor.u32 %v362_v29, %v359_v25  ;;  %v373_v55 = vor.u32 %v372_v44, %v368_v39  ;;  %v43_v25 = vld [vmem:[%s8985_s0 + $0xa8] sm:$0xf] }
  0x35   :  { %v392_v53 = vrot.slane %v390_v46, 5  ;;  %5842 = vmatmul.mubr.msk.bf16.gmra.mxu0 %vm988_vm3, %v5147_v48  ;;  %v396_v56 = vrot.slane %v394_v50, 4  ;;  %5912 = vmatmul.mubr.msk.bf16.gmra.mxu1 %vm988_vm3, %v5214_v51  ;;  %v376_v57 = vshll.u32 %v91_v41, 16  ;;  %v400_v58 = vshll.u32 %v92_v42, 16  ;;  %v45_v48 = vld [vmem:[%s8985_s0 + $0xb4] sm:$0xf] }
  0x36   :  { %v405_v60 = vshrl.u32 %v39_v47, 16  ;;  %v364_v61 = vrot.slane %v363_v54, 4  ;;  %v374_v62 = vrot.slane %v373_v55, 4  ;;  %v387_v63 = vor.u32 %v386_v52, %v383_v49 }
  0x37   :  { %v408_v0 = vshll.u32 %v39_v47, 16  ;;  %v378_v1 = vrot.slane %v376_v57, 5  ;;  %v397_v2 = vor.u32 %v396_v56, %v392_v53  ;;  %v402_v3 = vrot.slane %v400_v58, 5 }
  0x38   :  { %v407_v4 = vrot.slane %v405_v60, 4  ;;  %v369_v6 = vsel %vm6534_vm4, %v364_v61, %v368_v39  ;;  %v388_v7 = vrot.slane %v387_v63, 4  ;;  %v414_v9 = vshll.u32 %v40_v59, 16  ;;  %v96_v63 = vld [vmem:[%s8985_s0 + $0xbc] sm:$0x1] }
  0x39   :  { %v410_v8 = vrot.slane %v408_v0, 5  ;;  %v379_v11 = vsel %vm6534_vm4, %v374_v62, %v378_v1  ;;  %v398_v12 = vrot.slane %v397_v2, 4  ;;  %v418_v13 = vshrl.u32 %v40_v59, 16  ;;  %v95_v62 = vld [vmem:[%s8985_s0 + $0xb0] sm:$0x1] }
  0x3a   :  { %v5215_v14 = vcombine.low %v39_v47, %v40_v59  ;;  %v5148_v15 = vcombine.low %v369_v6, %v379_v11  ;;  %v393_v16 = vsel %vm6534_vm4, %v388_v7, %v392_v53  ;;  %v416_v17 = vrot.slane %v414_v9, 5  ;;  %v46_v53 = vld [vmem:[%s8985_s0 + $0xb8] sm:$0xf] }
  0x3b   :  { %v429_v18 = vshrl.u32 %v41_v5, 16  ;;  %v403_v21 = vsel %vm6534_vm4, %v398_v12, %v402_v3  ;;  %v420_v22 = vrot.slane %v418_v13, 4  ;;  %v432_v23 = vshll.u32 %v41_v5, 16 }
  0x3c   :  { %5915 = vmatprep.mubr.msk.bf16.mxu1 %vm988_vm3, %v5215_v14  ;;  %v438_v24 = vshll.u32 %v42_v10, 16  ;;  %5845 = vmatprep.mubr.msk.bf16.mxu0 %vm988_vm3, %v5148_v15  ;;  %v5149_v26 = vcombine.low %v393_v16, %v403_v21  ;;  %v442_v28 = vshrl.u32 %v42_v10, 16  ;;  %v5216_v29 = vcombine.low %v41_v5, %v42_v10  ;;  %v48_v16 = vld [vmem:[%s8985_s0 + $0xd0] sm:$0xf] }
  0x3d   :  { %v431_v27 = vrot.slane %v429_v18, 4  ;;  %v434_v30 = vrot.slane %v432_v23, 5  ;;  %v411_v33 = vor.u32 %v410_v8, %v407_v4  ;;  %v421_v34 = vor.u32 %v420_v22, %v416_v17  ;;  %v47_v4 = vld [vmem:[%s8985_s0 + $0xcc] sm:$0xf] }
  0x3e   :  { %v440_v32 = vrot.slane %v438_v24, 5  ;;  %5846 = vmatmul.mubr.msk.bf16.gmra.mxu0 %vm988_vm3, %v5149_v26  ;;  %v444_v35 = vrot.slane %v442_v28, 4  ;;  %5916 = vmatmul.mubr.msk.bf16.gmra.mxu1 %vm988_vm3, %v5216_v29  ;;  %v424_v36 = vshll.u32 %v93_v19, 16  ;;  %v448_v37 = vshll.u32 %v94_v20, 16  ;;  %v49_v26 = vld [vmem:[%s8985_s0 + $0xd8] sm:$0xf] }
  0x3f   :  { %v453_v39 = vshrl.u32 %v43_v25, 16  ;;  %v412_v40 = vrot.slane %v411_v33, 4  ;;  %v422_v41 = vrot.slane %v421_v34, 4  ;;  %v435_v42 = vor.u32 %v434_v30, %v431_v27 }
  0x40   :  { %v456_v43 = vshll.u32 %v43_v25, 16  ;;  %v426_v44 = vrot.slane %v424_v36, 5  ;;  %v445_v45 = vor.u32 %v444_v35, %v440_v32  ;;  %v450_v46 = vrot.slane %v448_v37, 5  ;;  %v97_v37 = vld [vmem:[%s8985_s0 + $0xd4] sm:$0x1] }
  0x41   :  { %v455_v47 = vrot.slane %v453_v39, 4  ;;  %v417_v49 = vsel %vm6534_vm4, %v412_v40, %v416_v17  ;;  %v436_v50 = vrot.slane %v435_v42, 4  ;;  %v462_v52 = vshll.u32 %v44_v38, 16 }
  0x42   :  { %v458_v51 = vrot.slane %v456_v43, 5  ;;  %v427_v54 = vsel %vm6534_vm4, %v422_v41, %v426_v44  ;;  %v446_v55 = vrot.slane %v445_v45, 4  ;;  %v466_v56 = vshrl.u32 %v44_v38, 16  ;;  %v51_v43 = vld [vmem:[%s8985_s0 + $0xe4] sm:$0xf] }
  0x43   :  { %v5217_v57 = vcombine.low %v43_v25, %v44_v38  ;;  %v5150_v58 = vcombine.low %v417_v49, %v427_v54  ;;  %v441_v59 = vsel %vm6534_vm4, %v436_v50, %v440_v32  ;;  %v464_v60 = vrot.slane %v462_v52, 5  ;;  %v50_v32 = vld [vmem:[%s8985_s0 + $0xdc] sm:$0xf]  ;;  %v98_v38 = vld [vmem:[%s8985_s0 + $0xe0] sm:$0x1] }
  0x44   :  { %v477_v61 = vshrl.u32 %v45_v48, 16  ;;  %v451_v0 = vsel %vm6534_vm4, %v446_v55, %v450_v46  ;;  %v468_v1 = vrot.slane %v466_v56, 4  ;;  %v480_v2 = vshll.u32 %v45_v48, 16  ;;  %v52_v52 = vld [vmem:[%s8985_s0 + $0xe8] sm:$0xf] }
  0x45   :  { %5919 = vmatprep.mubr.msk.bf16.mxu1 %vm988_vm3, %v5217_v57  ;;  %v486_v3 = vshll.u32 %v46_v53, 16  ;;  %5849 = vmatprep.mubr.msk.bf16.mxu0 %vm988_vm3, %v5150_v58  ;;  %v5151_v5 = vcombine.low %v441_v59, %v451_v0  ;;  %v490_v7 = vshrl.u32 %v46_v53, 16  ;;  %v5218_v8 = vcombine.low %v45_v48, %v46_v53 }
  0x46   :  { %v479_v6 = vrot.slane %v477_v61, 4  ;;  %v482_v9 = vrot.slane %v480_v2, 5  ;;  %v459_v11 = vor.u32 %v458_v51, %v455_v47  ;;  %v469_v12 = vor.u32 %v468_v1, %v464_v60 }
  0x47   :  { %v488_v10 = vrot.slane %v486_v3, 5  ;;  %5850 = vmatmul.mubr.msk.bf16.gmra.mxu0 %vm988_vm3, %v5151_v5  ;;  %v492_v13 = vrot.slane %v490_v7, 4  ;;  %5920 = vmatmul.mubr.msk.bf16.gmra.mxu1 %vm988_vm3, %v5218_v8  ;;  %v472_v14 = vshll.u32 %v95_v62, 16  ;;  %v496_v15 = vshll.u32 %v96_v63, 16  ;;  %v53_v5 = vld [vmem:[%s8985_s0 + $0xf0] sm:$0xf] }
  0x48   :  { %v501_v17 = vshrl.u32 %v47_v4, 16  ;;  %v460_v18 = vrot.slane %v459_v11, 4  ;;  %v470_v19 = vrot.slane %v469_v12, 4  ;;  %v483_v20 = vor.u32 %v482_v9, %v479_v6 }
  0x49   :  { %v504_v21 = vshll.u32 %v47_v4, 16  ;;  %v474_v22 = vrot.slane %v472_v14, 5  ;;  %v493_v23 = vor.u32 %v492_v13, %v488_v10  ;;  %v498_v24 = vrot.slane %v496_v15, 5  ;;  %v99_v15 = vld [vmem:[%s8985_s0 + $0xec] sm:$0x1] }
  0x4a   :  { %v503_v25 = vrot.slane %v501_v17, 4  ;;  %v465_v27 = vsel %vm6534_vm4, %v460_v18, %v464_v60  ;;  %v484_v28 = vrot.slane %v483_v20, 4  ;;  %v510_v30 = vshll.u32 %v48_v16, 16  ;;  %v100_v20 = vld [vmem:[%s8985_s0 + $0xf8] sm:$0x1] }
  0x4b   :  { %v506_v29 = vrot.slane %v504_v21, 5  ;;  %v475_v33 = vsel %vm6534_vm4, %v470_v19, %v474_v22  ;;  %v494_v34 = vrot.slane %v493_v23, 4  ;;  %v514_v35 = vshrl.u32 %v48_v16, 16  ;;  %v55_v21 = vld [vmem:[%s8985_s0 + $0xfc] sm:$0xf] }
  0x4c   :  { %v5219_v36 = vcombine.low %v47_v4, %v48_v16  ;;  %v5152_v39 = vcombine.low %v465_v27, %v475_v33  ;;  %v489_v40 = vsel %vm6534_vm4, %v484_v28, %v488_v10  ;;  %v512_v41 = vrot.slane %v510_v30, 5  ;;  %v54_v10 = vld [vmem:[%s8985_s0 + $0xf4] sm:$0xf] }
  0x4d   :  { %v525_v42 = vshrl.u32 %v49_v26, 16  ;;  %v499_v44 = vsel %vm6534_vm4, %v494_v34, %v498_v24  ;;  %v516_v45 = vrot.slane %v514_v35, 4  ;;  %v528_v46 = vshll.u32 %v49_v26, 16 }
  0x4e   :  { %5923 = vmatprep.mubr.msk.bf16.mxu1 %vm988_vm3, %v5219_v36  ;;  %v534_v47 = vshll.u32 %v50_v32, 16  ;;  %5853 = vmatprep.mubr.msk.bf16.mxu0 %vm988_vm3, %v5152_v39  ;;  %v5153_v48 = vcombine.low %v489_v40, %v499_v44  ;;  %v538_v50 = vshrl.u32 %v50_v32, 16  ;;  %v5220_v51 = vcombine.low %v49_v26, %v50_v32 }
  0x4f   :  { %v527_v49 = vrot.slane %v525_v42, 4  ;;  %v530_v53 = vrot.slane %v528_v46, 5  ;;  %v507_v55 = vor.u32 %v506_v29, %v503_v25  ;;  %v517_v56 = vor.u32 %v516_v45, %v512_v41 }
  0x50   :  { %v536_v54 = vrot.slane %v534_v47, 5  ;;  %5854 = vmatmul.mubr.msk.bf16.gmra.mxu0 %vm988_vm3, %v5153_v48  ;;  %v540_v57 = vrot.slane %v538_v50, 4  ;;  %5924 = vmatmul.mubr.msk.bf16.gmra.mxu1 %vm988_vm3, %v5220_v51  ;;  %v520_v58 = vshll.u32 %v97_v37, 16  ;;  %v544_v59 = vshll.u32 %v98_v38, 16  ;;  %v56_v38 = vld [vmem:[%s8985_s0 + $0x100] sm:$0xf] }
  0x51   :  { %v549_v60 = vshrl.u32 %v51_v43, 16  ;;  %v508_v61 = vrot.slane %v507_v55, 4  ;;  %v518_v62 = vrot.slane %v517_v56, 4  ;;  %v531_v63 = vor.u32 %v530_v53, %v527_v49  ;;  %v57_v48 = vld [vmem:[%s8985_s0 + $0x108] sm:$0xf] }
  0x52   :  { %v552_v0 = vshll.u32 %v51_v43, 16  ;;  %v522_v1 = vrot.slane %v520_v58, 5  ;;  %v541_v2 = vor.u32 %v540_v57, %v536_v54  ;;  %v546_v3 = vrot.slane %v544_v59, 5  ;;  %v58_v53 = vld [vmem:[%s8985_s0 + $0x10c] sm:$0xf] }
  0x53   :  { %v551_v4 = vrot.slane %v549_v60, 4  ;;  %v513_v6 = vsel %vm6534_vm4, %v508_v61, %v512_v41  ;;  %v532_v7 = vrot.slane %v531_v63, 4  ;;  %v558_v9 = vshll.u32 %v52_v52, 16  ;;  %v101_v58 = vld [vmem:[%s8985_s0 + $0x104] sm:$0x1] }
  0x54   :  { %v554_v8 = vrot.slane %v552_v0, 5  ;;  %v523_v11 = vsel %vm6534_vm4, %v518_v62, %v522_v1  ;;  %v542_v12 = vrot.slane %v541_v2, 4  ;;  %v562_v13 = vshrl.u32 %v52_v52, 16  ;;  %v102_v59 = vld [vmem:[%s8985_s0 + $0x110] sm:$0x1] }
  0x55   :  { %v5221_v14 = vcombine.low %v51_v43, %v52_v52  ;;  %v5154_v16 = vcombine.low %v513_v6, %v523_v11  ;;  %v537_v17 = vsel %vm6534_vm4, %v532_v7, %v536_v54  ;;  %v560_v18 = vrot.slane %v558_v9, 5  ;;  %v59_v60 = vld [vmem:[%s8985_s0 + $0x114] sm:$0xf] }
  0x56   :  { %v573_v19 = vshrl.u32 %v53_v5, 16  ;;  %v547_v22 = vsel %vm6534_vm4, %v542_v12, %v546_v3  ;;  %v564_v23 = vrot.slane %v562_v13, 4  ;;  %v576_v24 = vshll.u32 %v53_v5, 16  ;;  %v60_v13 = vld [vmem:[%s8985_s0 + $0x118] sm:$0xf] }
  0x57   :  { %5927 = vmatprep.mubr.msk.bf16.mxu1 %vm988_vm3, %v5221_v14  ;;  %v582_v25 = vshll.u32 %v54_v10, 16  ;;  %5857 = vmatprep.mubr.msk.bf16.mxu0 %vm988_vm3, %v5154_v16  ;;  %v5155_v26 = vcombine.low %v537_v17, %v547_v22  ;;  %v586_v28 = vshrl.u32 %v54_v10, 16  ;;  %v5222_v29 = vcombine.low %v53_v5, %v54_v10 }
  0x58   :  { %v575_v27 = vrot.slane %v573_v19, 4  ;;  %v578_v30 = vrot.slane %v576_v24, 5  ;;  %v555_v33 = vor.u32 %v554_v8, %v551_v4  ;;  %v565_v34 = vor.u32 %v564_v23, %v560_v18  ;;  %v62_v23 = vld [vmem:[%s8985_s0 + $0x124] sm:$0xf] }
  0x59   :  { %v584_v32 = vrot.slane %v582_v25, 5  ;;  %5858 = vmatmul.mubr.msk.bf16.gmra.mxu0 %vm988_vm3, %v5155_v26  ;;  %v588_v35 = vrot.slane %v586_v28, 4  ;;  %5928 = vmatmul.mubr.msk.bf16.gmra.mxu1 %vm988_vm3, %v5222_v29  ;;  %v568_v36 = vshll.u32 %v99_v15, 16  ;;  %v592_v37 = vshll.u32 %v100_v20, 16 }
  0x5a   :  { %v597_v39 = vshrl.u32 %v55_v21, 16  ;;  %v556_v40 = vrot.slane %v555_v33, 4  ;;  %v566_v41 = vrot.slane %v565_v34, 4  ;;  %v579_v42 = vor.u32 %v578_v30, %v575_v27 }
  0x5b   :  { %v600_v43 = vshll.u32 %v55_v21, 16  ;;  %v570_v44 = vrot.slane %v568_v36, 5  ;;  %v589_v45 = vor.u32 %v588_v35, %v584_v32  ;;  %v594_v46 = vrot.slane %v592_v37, 5 }
  0x5c   :  { %v599_v47 = vrot.slane %v597_v39, 4  ;;  %v561_v49 = vsel %vm6534_vm4, %v556_v40, %v560_v18  ;;  %v580_v50 = vrot.slane %v579_v42, 4  ;;  %v606_v52 = vshll.u32 %v56_v38, 16  ;;  %v61_v18 = vld [vmem:[%s8985_s0 + $0x120] sm:$0xf] }
  0x5d   :  { %v602_v51 = vrot.slane %v600_v43, 5  ;;  %v571_v54 = vsel %vm6534_vm4, %v566_v41, %v570_v44  ;;  %v590_v55 = vrot.slane %v589_v45, 4  ;;  %v610_v56 = vshrl.u32 %v56_v38, 16  ;;  %v103_v41 = vld [vmem:[%s8985_s0 + $0x11c] sm:$0x1] }
  0x5e   :  { %v5223_v57 = vcombine.low %v55_v21, %v56_v38  ;;  %v5156_v61 = vcombine.low %v561_v49, %v571_v54  ;;  %v585_v62 = vsel %vm6534_vm4, %v580_v50, %v584_v32  ;;  %v608_v63 = vrot.slane %v606_v52, 5  ;;  %v104_v42 = vld [vmem:[%s8985_s0 + $0x128] sm:$0x1] }
  0x5f   :  { %v621_v0 = vshrl.u32 %v57_v48, 16  ;;  %v595_v1 = vsel %vm6534_vm4, %v590_v55, %v594_v46  ;;  %v612_v2 = vrot.slane %v610_v56, 4  ;;  %v624_v3 = vshll.u32 %v57_v48, 16  ;;  %v64_v56 = vld [vmem:[%s8985_s0 + $0x130] sm:$0xf] }
  0x60   :  { %5931 = vmatprep.mubr.msk.bf16.mxu1 %vm988_vm3, %v5223_v57  ;;  %v630_v4 = vshll.u32 %v58_v53, 16  ;;  %5861 = vmatprep.mubr.msk.bf16.mxu0 %vm988_vm3, %v5156_v61  ;;  %v5157_v5 = vcombine.low %v585_v62, %v595_v1  ;;  %v634_v7 = vshrl.u32 %v58_v53, 16  ;;  %v5224_v8 = vcombine.low %v57_v48, %v58_v53  ;;  %v65_v61 = vld [vmem:[%s8985_s0 + $0x138] sm:$0xf] }
  0x61   :  { %v623_v6 = vrot.slane %v621_v0, 4  ;;  %v626_v9 = vrot.slane %v624_v3, 5  ;;  %v603_v11 = vor.u32 %v602_v51, %v599_v47  ;;  %v613_v12 = vor.u32 %v612_v2, %v608_v63  ;;  %v63_v47 = vld [vmem:[%s8985_s0 + $0x12c] sm:$0xf] }
  0x62   :  { %v632_v10 = vrot.slane %v630_v4, 5  ;;  %5862 = vmatmul.mubr.msk.bf16.gmra.mxu0 %vm988_vm3, %v5157_v5  ;;  %v636_v14 = vrot.slane %v634_v7, 4  ;;  %5932 = vmatmul.mubr.msk.bf16.gmra.mxu1 %vm988_vm3, %v5224_v8  ;;  %v616_v15 = vshll.u32 %v101_v58, 16  ;;  %v640_v16 = vshll.u32 %v102_v59, 16 }
  0x63   :  { %v645_v17 = vshrl.u32 %v59_v60, 16  ;;  %v604_v19 = vrot.slane %v603_v11, 4  ;;  %v614_v20 = vrot.slane %v613_v12, 4  ;;  %v627_v21 = vor.u32 %v626_v9, %v623_v6 }
  0x64   :  { %v648_v22 = vshll.u32 %v59_v60, 16  ;;  %v618_v24 = vrot.slane %v616_v15, 5  ;;  %v637_v25 = vor.u32 %v636_v14, %v632_v10  ;;  %v642_v26 = vrot.slane %v640_v16, 5 }
  0x65   :  { %v647_v27 = vrot.slane %v645_v17, 4  ;;  %v609_v28 = vsel %vm6534_vm4, %v604_v19, %v608_v63  ;;  %v628_v29 = vrot.slane %v627_v21, 4  ;;  %v654_v32 = vshll.u32 %v60_v13, 16  ;;  %v105_v19 = vld [vmem:[%s8985_s0 + $0x134] sm:$0x1] }
  0x66   :  { %v650_v30 = vrot.slane %v648_v22, 5  ;;  %v619_v33 = vsel %vm6534_vm4, %v614_v20, %v618_v24  ;;  %v638_v34 = vrot.slane %v637_v25, 4  ;;  %v658_v35 = vshrl.u32 %v60_v13, 16  ;;  %v106_v20 = vld [vmem:[%s8985_s0 + $0x140] sm:$0x1] }
  0x67   :  { %v5225_v36 = vcombine.low %v59_v60, %v60_v13  ;;  %v5158_v37 = vcombine.low %v609_v28, %v619_v33  ;;  %v633_v38 = vsel %vm6534_vm4, %v628_v29, %v632_v10  ;;  %v656_v39 = vrot.slane %v654_v32, 5  ;;  %v66_v10 = vld [vmem:[%s8985_s0 + $0x13c] sm:$0xf]  ;;  %v67_v25 = vld [vmem:[%s8985_s0 + $0x144] sm:$0xf] }
  0x68   :  { %v669_v40 = vshrl.u32 %v61_v18, 16  ;;  %v643_v43 = vsel %vm6534_vm4, %v638_v34, %v642_v26  ;;  %v660_v44 = vrot.slane %v658_v35, 4  ;;  %v672_v45 = vshll.u32 %v61_v18, 16 }
  0x69   :  { %5935 = vmatprep.mubr.msk.bf16.mxu1 %vm988_vm3, %v5225_v36  ;;  %v678_v46 = vshll.u32 %v62_v23, 16  ;;  %5865 = vmatprep.mubr.msk.bf16.mxu0 %vm988_vm3, %v5158_v37  ;;  %v5159_v48 = vcombine.low %v633_v38, %v643_v43  ;;  %v682_v50 = vshrl.u32 %v62_v23, 16  ;;  %v5226_v51 = vcombine.low %v61_v18, %v62_v23  ;;  %v68_v38 = vld [vmem:[%s8985_s0 + $0x148] sm:$0xf] }
  0x6a   :  { %v671_v49 = vrot.slane %v669_v40, 4  ;;  %v674_v52 = vrot.slane %v672_v45, 5  ;;  %v651_v54 = vor.u32 %v650_v30, %v647_v27  ;;  %v661_v55 = vor.u32 %v660_v44, %v656_v39 }
  0x6b   :  { %v680_v53 = vrot.slane %v678_v46, 5  ;;  %5866 = vmatmul.mubr.msk.bf16.gmra.mxu0 %vm988_vm3, %v5159_v48  ;;  %v684_v57 = vrot.slane %v682_v50, 4  ;;  %5936 = vmatmul.mubr.msk.bf16.gmra.mxu1 %vm988_vm3, %v5226_v51  ;;  %v664_v58 = vshll.u32 %v103_v41, 16  ;;  %v688_v59 = vshll.u32 %v104_v42, 16  ;;  %v69_v48 = vld [vmem:[%s8985_s0 + $0x150] sm:$0xf] }
  0x6c   :  { %v693_v60 = vshrl.u32 %v63_v47, 16  ;;  %v652_v62 = vrot.slane %v651_v54, 4  ;;  %v662_v63 = vrot.slane %v661_v55, 4  ;;  %v675_v0 = vor.u32 %v674_v52, %v671_v49 }
  0x6d   :  { %v696_v1 = vshll.u32 %v63_v47, 16  ;;  %v666_v2 = vrot.slane %v664_v58, 5  ;;  %v685_v3 = vor.u32 %v684_v57, %v680_v53  ;;  %v690_v4 = vrot.slane %v688_v59, 5  ;;  %v107_v58 = vld [vmem:[%s8985_s0 + $0x14c] sm:$0x1] }
  0x6e   :  { %v695_v5 = vrot.slane %v693_v60, 4  ;;  %v657_v6 = vsel %vm6534_vm4, %v652_v62, %v656_v39  ;;  %v676_v7 = vrot.slane %v675_v0, 4  ;;  %v702_v9 = vshll.u32 %v64_v56, 16  ;;  %v108_v59 = vld [vmem:[%s8985_s0 + $0x158] sm:$0x1] }
  0x6f   :  { %v698_v8 = vrot.slane %v696_v1, 5  ;;  %v667_v11 = vsel %vm6534_vm4, %v662_v63, %v666_v2  ;;  %v686_v12 = vrot.slane %v685_v3, 4  ;;  %v706_v13 = vshrl.u32 %v64_v56, 16  ;;  %v71_v60 = vld [vmem:[%s8985_s0 + $0x15c] sm:$0xf] }
  0x70   :  { %v5227_v14 = vcombine.low %v63_v47, %v64_v56  ;;  %v5160_v15 = vcombine.low %v657_v6, %v667_v11  ;;  %v681_v16 = vsel %vm6534_vm4, %v676_v7, %v680_v53  ;;  %v704_v17 = vrot.slane %v702_v9, 5  ;;  %v70_v53 = vld [vmem:[%s8985_s0 + $0x154] sm:$0xf] }
  0x71   :  { %v717_v18 = vshrl.u32 %v65_v61, 16  ;;  %v691_v21 = vsel %vm6534_vm4, %v686_v12, %v690_v4  ;;  %v708_v22 = vrot.slane %v706_v13, 4  ;;  %v720_v23 = vshll.u32 %v65_v61, 16 }
  0x72   :  { %5939 = vmatprep.mubr.msk.bf16.mxu1 %vm988_vm3, %v5227_v14  ;;  %v726_v24 = vshll.u32 %v66_v10, 16  ;;  %5869 = vmatprep.mubr.msk.bf16.mxu0 %vm988_vm3, %v5160_v15  ;;  %v5161_v26 = vcombine.low %v681_v16, %v691_v21  ;;  %v730_v28 = vshrl.u32 %v66_v10, 16  ;;  %v5228_v29 = vcombine.low %v65_v61, %v66_v10  ;;  %v72_v16 = vld [vmem:[%s8985_s0 + $0x160] sm:$0xf] }
  0x73   :  { %v719_v27 = vrot.slane %v717_v18, 4  ;;  %v722_v30 = vrot.slane %v720_v23, 5  ;;  %v699_v33 = vor.u32 %v698_v8, %v695_v5  ;;  %v709_v34 = vor.u32 %v708_v22, %v704_v17  ;;  %v73_v22 = vld [vmem:[%s8985_s0 + $0x168] sm:$0xf] }
  0x74   :  { %v728_v32 = vrot.slane %v726_v24, 5  ;;  %5870 = vmatmul.mubr.msk.bf16.gmra.mxu0 %vm988_vm3, %v5161_v26  ;;  %v732_v35 = vrot.slane %v730_v28, 4  ;;  %5940 = vmatmul.mubr.msk.bf16.gmra.mxu1 %vm988_vm3, %v5228_v29  ;;  %v712_v36 = vshll.u32 %v105_v19, 16  ;;  %v736_v37 = vshll.u32 %v106_v20, 16 }
  0x75   :  { %v741_v39 = vshrl.u32 %v67_v25, 16  ;;  %v700_v40 = vrot.slane %v699_v33, 4  ;;  %v710_v41 = vrot.slane %v709_v34, 4  ;;  %v723_v42 = vor.u32 %v722_v30, %v719_v27  ;;  %v74_v27 = vld [vmem:[%s8985_s0 + $0x16c] sm:$0xf] }
  0x76   :  { %v744_v43 = vshll.u32 %v67_v25, 16  ;;  %v714_v44 = vrot.slane %v712_v36, 5  ;;  %v733_v45 = vor.u32 %v732_v35, %v728_v32  ;;  %v738_v46 = vrot.slane %v736_v37, 5  ;;  %v109_v37 = vld [vmem:[%s8985_s0 + $0x164] sm:$0x1] }
  0x77   :  { %v743_v47 = vrot.slane %v741_v39, 4  ;;  %v705_v49 = vsel %vm6534_vm4, %v700_v40, %v704_v17  ;;  %v724_v50 = vrot.slane %v723_v42, 4  ;;  %v750_v52 = vshll.u32 %v68_v38, 16  ;;  %v110_v42 = vld [vmem:[%s8985_s0 + $0x170] sm:$0x1] }
  0x78   :  { %v746_v51 = vrot.slane %v744_v43, 5  ;;  %v715_v54 = vsel %vm6534_vm4, %v710_v41, %v714_v44  ;;  %v734_v55 = vrot.slane %v733_v45, 4  ;;  %v754_v56 = vshrl.u32 %v68_v38, 16 }
  0x79   :  { %v5229_v57 = vcombine.low %v67_v25, %v68_v38  ;;  %v5162_v61 = vcombine.low %v705_v49, %v715_v54  ;;  %v729_v62 = vsel %vm6534_vm4, %v724_v50, %v728_v32  ;;  %v752_v63 = vrot.slane %v750_v52, 5 }
  0x7a   :  { %v765_v0 = vshrl.u32 %v69_v48, 16  ;;  %v739_v1 = vsel %vm6534_vm4, %v734_v55, %v738_v46  ;;  %v756_v2 = vrot.slane %v754_v56, 4  ;;  %v768_v3 = vshll.u32 %v69_v48, 16  ;;  %v76_v56 = vld [vmem:[%s8985_s0 + $0x178] sm:$0xf] }
  0x7b   :  { %5943 = vmatprep.mubr.msk.bf16.mxu1 %vm988_vm3, %v5229_v57  ;;  %v774_v4 = vshll.u32 %v70_v53, 16  ;;  %5873 = vmatprep.mubr.msk.bf16.mxu0 %vm988_vm3, %v5162_v61  ;;  %v5163_v5 = vcombine.low %v729_v62, %v739_v1  ;;  %v778_v7 = vshrl.u32 %v70_v53, 16  ;;  %v5230_v8 = vcombine.low %v69_v48, %v70_v53  ;;  %v77_v61 = vld [vmem:[%s8985_s0 + $0x180] sm:$0xf] }
  0x7c   :  { %v767_v6 = vrot.slane %v765_v0, 4  ;;  %v770_v9 = vrot.slane %v768_v3, 5  ;;  %v747_v11 = vor.u32 %v746_v51, %v743_v47  ;;  %v757_v12 = vor.u32 %v756_v2, %v752_v63  ;;  %v75_v47 = vld [vmem:[%s8985_s0 + $0x174] sm:$0xf]  ;;  %v78_v2 = vld [vmem:[%s8985_s0 + $0x184] sm:$0xf] }
  0x7d   :  { %v776_v10 = vrot.slane %v774_v4, 5  ;;  %5874 = vmatmul.mubr.msk.bf16.gmra.mxu0 %vm988_vm3, %v5163_v5  ;;  %v780_v13 = vrot.slane %v778_v7, 4  ;;  %5944 = vmatmul.mubr.msk.bf16.gmra.mxu1 %vm988_vm3, %v5230_v8  ;;  %v760_v14 = vshll.u32 %v107_v58, 16  ;;  %v784_v15 = vshll.u32 %v108_v59, 16 }
  0x7e   :  { %v789_v17 = vshrl.u32 %v71_v60, 16  ;;  %v748_v18 = vrot.slane %v747_v11, 4  ;;  %v758_v19 = vrot.slane %v757_v12, 4  ;;  %v771_v20 = vor.u32 %v770_v9, %v767_v6 }
  0x7f   :  { %v792_v21 = vshll.u32 %v71_v60, 16  ;;  %v762_v23 = vrot.slane %v760_v14, 5  ;;  %v781_v24 = vor.u32 %v780_v13, %v776_v10  ;;  %v786_v25 = vrot.slane %v784_v15, 5 }
  0x80   :  { %v791_v26 = vrot.slane %v789_v17, 4  ;;  %v753_v28 = vsel %vm6534_vm4, %v748_v18, %v752_v63  ;;  %v772_v29 = vrot.slane %v771_v20, 4  ;;  %v798_v32 = vshll.u32 %v72_v16, 16  ;;  %v112_v20 = vld [vmem:[%s8985_s0 + $0x188] sm:$0x1] }
  0x81   :  { %v794_v30 = vrot.slane %v792_v21, 5  ;;  %v763_v33 = vsel %vm6534_vm4, %v758_v19, %v762_v23  ;;  %v782_v34 = vrot.slane %v781_v24, 4  ;;  %v802_v35 = vshrl.u32 %v72_v16, 16  ;;  %v111_v19 = vld [vmem:[%s8985_s0 + $0x17c] sm:$0x1] }
  0x82   :  { %v5231_v36 = vcombine.low %v71_v60, %v72_v16  ;;  %v5164_v38 = vcombine.low %v753_v28, %v763_v33  ;;  %v777_v39 = vsel %vm6534_vm4, %v772_v29, %v776_v10  ;;  %v800_v40 = vrot.slane %v798_v32, 5 }
  0x83   :  { %v813_v41 = vshrl.u32 %v73_v22, 16  ;;  %v787_v43 = vsel %vm6534_vm4, %v782_v34, %v786_v25  ;;  %v804_v44 = vrot.slane %v802_v35, 4  ;;  %v816_v45 = vshll.u32 %v73_v22, 16  ;;  %v5399_v25 = vld [vmem:[%s8985_s0 + $0xc] sm:$0xf] }
  0x84   :  { %5947 = vmatprep.mubr.msk.bf16.mxu1 %vm988_vm3, %v5231_v36  ;;  %v822_v46 = vshll.u32 %v74_v27, 16  ;;  %5877 = vmatprep.mubr.msk.bf16.mxu0 %vm988_vm3, %v5164_v38  ;;  %v5165_v48 = vcombine.low %v777_v39, %v787_v43  ;;  %v826_v50 = vshrl.u32 %v74_v27, 16  ;;  %v5232_v51 = vcombine.low %v73_v22, %v74_v27  ;;  %v5401_v43 = vld [vmem:[%s8985_s0 + $0x14] sm:$0x1] }
  0x85   :  { %v815_v49 = vrot.slane %v813_v41, 4  ;;  %v818_v52 = vrot.slane %v816_v45, 5  ;;  %v795_v54 = vor.u32 %v794_v30, %v791_v26  ;;  %v805_v55 = vor.u32 %v804_v44, %v800_v40  ;;  %v5400_v30 = vld [vmem:[%s8985_s0 + $0x10] sm:$0xf] }
  0x86   :  { %v824_v53 = vrot.slane %v822_v46, 5  ;;  %5878 = vmatmul.mubr.msk.bf16.gmra.mxu0 %vm988_vm3, %v5165_v48  ;;  %v828_v57 = vrot.slane %v826_v50, 4  ;;  %5948 = vmatmul.mubr.msk.bf16.gmra.mxu1 %vm988_vm3, %v5232_v51  ;;  %v808_v58 = vshll.u32 %v109_v37, 16  ;;  %v832_v59 = vshll.u32 %v110_v42, 16 }
  0x87   :  { %v837_v60 = vshrl.u32 %v75_v47, 16  ;;  %v796_v62 = vrot.slane %v795_v54, 4  ;;  %v806_v63 = vrot.slane %v805_v55, 4  ;;  %v819_v0 = vor.u32 %v818_v52, %v815_v49 }
  0x88   :  { %v840_v1 = vshll.u32 %v75_v47, 16  ;;  %v810_v3 = vrot.slane %v808_v58, 5  ;;  %v829_v4 = vor.u32 %v828_v57, %v824_v53  ;;  %v834_v5 = vrot.slane %v832_v59, 5  ;;  %v5403_v58 = vld [vmem:[%s8985_s0 + $0x1c] sm:$0xf] }
  0x89   :  { %v839_v6 = vrot.slane %v837_v60, 4  ;;  %v801_v7 = vsel %vm6534_vm4, %v796_v62, %v800_v40  ;;  %v820_v8 = vrot.slane %v819_v0, 4  ;;  %v846_v10 = vshll.u32 %v76_v56, 16  ;;  %v5405_v0 = vld [vmem:[%s8985_s0 + $0x24] sm:$0xf] }
  0x8a   :  { %v842_v9 = vrot.slane %v840_v1, 5  ;;  %v811_v11 = vsel %vm6534_vm4, %v806_v63, %v810_v3  ;;  %v830_v12 = vrot.slane %v829_v4, 4  ;;  %v850_v13 = vshrl.u32 %v76_v56, 16  ;;  %v5404_v63 = vld [vmem:[%s8985_s0 + $0x20] sm:$0x1] }
  0x8b   :  { %v5233_v14 = vcombine.low %v75_v47, %v76_v56  ;;  %v5166_v15 = vcombine.low %v801_v7, %v811_v11  ;;  %v825_v16 = vsel %vm6534_vm4, %v820_v8, %v824_v53  ;;  %v848_v17 = vrot.slane %v846_v10, 5  ;;  %v5402_v53 = vld [vmem:[%s8985_s0 + $0x18] sm:$0xf]  ;;  %v5407_v11 = vld [vmem:[%s8985_s0 + $0x2c] sm:$0x1] }
  0x8c   :  { %v861_v18 = vshrl.u32 %v77_v61, 16  ;;  %v835_v21 = vsel %vm6534_vm4, %v830_v12, %v834_v5  ;;  %v852_v22 = vrot.slane %v850_v13, 4  ;;  %v864_v23 = vshll.u32 %v77_v61, 16  ;;  %v6449_v5 = vld [vmem:[%s8985_s0 + $0xc] sm:$0xff]  }
  0x8d   :  { %5951 = vmatprep.mubr.msk.bf16.mxu1 %vm988_vm3, %v5233_v14  ;;  %v870_v24 = vshll.u32 %v78_v2, 16  ;;  %5881 = vmatprep.mubr.msk.bf16.mxu0 %vm988_vm3, %v5166_v15  ;;  %v5167_v26 = vcombine.low %v825_v16, %v835_v21  ;;  %v874_v28 = vshrl.u32 %v78_v2, 16  ;;  %v5234_v29 = vcombine.low %v77_v61, %v78_v2 }
  0x8e   :  { %v863_v27 = vrot.slane %v861_v18, 4  ;;  %v866_v32 = vrot.slane %v864_v23, 5  ;;  %v843_v34 = vor.u32 %v842_v9, %v839_v6  ;;  %v853_v35 = vor.u32 %v852_v22, %v848_v17  ;;  %v5406_v6 = vld [vmem:[%s8985_s0 + $0x28] sm:$0xf] }
  0x8f   :  { %v872_v33 = vrot.slane %v870_v24, 5  ;;  %5882 = vmatmul.mubr.msk.bf16.gmra.mxu0 %vm988_vm3, %v5167_v26  ;;  %v876_v36 = vrot.slane %v874_v28, 4  ;;  %5952 = vmatmul.mubr.msk.bf16.gmra.mxu1 %vm988_vm3, %v5234_v29  ;;  %v856_v37 = vshll.u32 %v111_v19, 16  ;;  %v880_v38 = vshll.u32 %v112_v20, 16  ;;  %v5408_v28 = vld [vmem:[%s8985_s0 + $0x30] sm:$0xf] }
  0x90   :  { %v2713_v39 = vshrl.u32 %v5399_v25, 16  ;;  %v844_v40 = vrot.slane %v843_v34, 4  ;;  %v854_v41 = vrot.slane %v853_v35, 4  ;;  %v867_v42 = vor.u32 %v866_v32, %v863_v27  ;;  %v5409_v34 = vld [vmem:[%s8985_s0 + $0x34] sm:$0xf] }
  0x91   :  { %v2716_v44 = vshll.u32 %v5399_v25, 16  ;;  %v858_v45 = vrot.slane %v856_v37, 5  ;;  %v877_v46 = vor.u32 %v876_v36, %v872_v33  ;;  %v882_v47 = vrot.slane %v880_v38, 5  ;;  %v6450_v37 = vld [vmem:[%s8985_s0 + $0x18] sm:$0xff]  }
  0x92   :  { %v2715_v48 = vrot.slane %v2713_v39, 4  ;;  %v849_v49 = vsel %vm6534_vm4, %v844_v40, %v848_v17  ;;  %v868_v50 = vrot.slane %v867_v42, 4  ;;  %v2722_v52 = vshll.u32 %v5400_v30, 16  ;;  %v5410_v40 = vld [vmem:[%s8985_s0 + $0x38] sm:$0x1] }
  0x93   :  { %v2718_v51 = vrot.slane %v2716_v44, 5  ;;  %v859_v54 = vsel %vm6534_vm4, %v854_v41, %v858_v45  ;;  %v878_v55 = vrot.slane %v877_v46, 4  ;;  %v2726_v56 = vshrl.u32 %v5400_v30, 16  ;;  %v5411_v41 = vld [vmem:[%s8985_s0 + $0x3c] sm:$0xf] }
  0x94   :  { %v2732_v57 = vshll.u32 %v5401_v43, 16  ;;  %v5168_v59 = vcombine.low %v849_v49, %v859_v54  ;;  %v873_v60 = vsel %vm6534_vm4, %v868_v50, %v872_v33  ;;  %v2724_v62 = vrot.slane %v2722_v52, 5  ;;  %v6451_v43 = vld [vmem:[%s8985_s0 + $0x24] sm:$0xff]  }
  0x95   :  { %v2719_v61 = vor.u32 %v2718_v51, %v2715_v48  ;;  %v883_v1 = vsel %vm6534_vm4, %v878_v55, %v882_v47  ;;  %v2728_v2 = vrot.slane %v2726_v56, 4  ;;  %v2737_v4 = vshrl.u32 %v5402_v53, 16  ;;  %v5412_v47 = vld [vmem:[%s8985_s0 + $0x40] sm:$0xf] }
  0x96   :  { %v2734_v3 = vrot.slane %v2732_v57, 5  ;;  %5885 = vmatprep.mubr.msk.bf16.mxu0 %vm988_vm3, %v5168_v59  ;;  %v5169_v7 = vcombine.low %v873_v60, %v883_v1  ;;  %v2740_v9 = vshll.u32 %v5402_v53, 16  ;;  %v2746_v10 = vshll.u32 %v5403_v58, 16 }
  0x97   :  { %v2720_v8 = vrot.slane %v2719_v61, 4  ;;  %v2729_v12 = vor.u32 %v2728_v2, %v2724_v62  ;;  %v2739_v13 = vrot.slane %v2737_v4, 4  ;;  %v2750_v14 = vshrl.u32 %v5403_v58, 16  ;;  %v5413_v2 = vld [vmem:[%s8985_s0 + $0x44] sm:$0x1] }
  0x98   :  { %v2756_v15 = vshll.u32 %v5404_v63, 16  ;;  %5886 = vmatmul.mubr.msk.bf16.gmra.mxu0 %vm988_vm3, %v5169_v7  ;;  %v2742_v17 = vrot.slane %v2740_v9, 5  ;;  %v2748_v18 = vrot.slane %v2746_v10, 5  ;;  %v2761_v19 = vshrl.u32 %v5405_v0, 16  ;;  %v6453_v10 = vld [vmem:[%s8985_s0 + $0x3c] sm:$0xff]  }
  0x99   :  { %v2725_v16 = vsel %vm6534_vm4, %v2720_v8, %v2724_v62  ;;  %v2730_v20 = vrot.slane %v2729_v12, 4  ;;  %v2752_v21 = vrot.slane %v2750_v14, 4  ;;  %5957 = vmatprep.mubr.msk.bf16.mxu0 %vm988_vm3, %v6449_v5  ;;  %v2764_v23 = vshll.u32 %v5405_v0, 16  ;;  %v5414_v5 = vld [vmem:[%s8985_s0 + $0x48] sm:$0xf] }
  0x9a   :  { %v2758_v22 = vrot.slane %v2756_v15, 5  ;;  %v2743_v24 = vor.u32 %v2742_v17, %v2739_v13  ;;  %v2763_v25 = vrot.slane %v2761_v19, 4  ;;  %v2770_v26 = vshll.u32 %v5406_v6, 16  ;;  %v5415_v12 = vld [vmem:[%s8985_s0 + $0x4c] sm:$0xf] }
  0x9b   :  { %v2774_v27 = vshrl.u32 %v5406_v6, 16  ;;  %v2735_v29 = vsel %vm6534_vm4, %v2730_v20, %v2734_v3  ;;  %v2753_v30 = vor.u32 %v2752_v21, %v2748_v18  ;;  %v2766_v32 = vrot.slane %v2764_v23, 5  ;;  %v6452_v6 = vld [vmem:[%s8985_s0 + $0x30] sm:$0xff]   ;;  %v5418_v23 = vld [vmem:[%s8985_s0 + $0x58] sm:$0xf] }
  0x9c   :  { %v2780_v33 = vshll.u32 %v5407_v11, 16  ;;  %v5497_v35 = vcombine.low %v2725_v16, %v2735_v29  ;;  %v2744_v36 = vrot.slane %v2743_v24, 4  ;;  %v2772_v38 = vrot.slane %v2770_v26, 5  ;;  %v5416_v17 = vld [vmem:[%s8985_s0 + $0x50] sm:$0x1] }
  0x9d   :  { %v2776_v39 = vrot.slane %v2774_v27, 4  ;;  %v2754_v42 = vrot.slane %v2753_v30, 4  ;;  %v2767_v44 = vor.u32 %v2766_v32, %v2763_v25  ;;  %v2785_v46 = vshrl.u32 %v5408_v28, 16 }
  0x9e   :  { %v2782_v45 = vrot.slane %v2780_v33, 5  ;;  %6023 = vmatprep.mubr.msk.bf16.mxu1 %vm988_vm3, %v5497_v35  ;;  %v2749_v48 = vsel %vm6534_vm4, %v2744_v36, %v2748_v18  ;;  %v2788_v50 = vshll.u32 %v5408_v28, 16  ;;  %v2794_v51 = vshll.u32 %v5409_v34, 16  ;;  %v5417_v18 = vld [vmem:[%s8985_s0 + $0x54] sm:$0xf] }
  0x9f   :  { %v2777_v49 = vor.u32 %v2776_v39, %v2772_v38  ;;  %v2759_v52 = vsel %vm6534_vm4, %v2754_v42, %v2758_v22  ;;  %v2768_v53 = vrot.slane %v2767_v44, 4  ;;  %v2787_v54 = vrot.slane %v2785_v46, 4  ;;  %v5420_v46 = vld [vmem:[%s8985_s0 + $0x60] sm:$0xf] }
  0xa0   :  { %v2798_v55 = vshrl.u32 %v5409_v34, 16  ;;  %v5498_v56 = vcombine.low %v2749_v48, %v2759_v52  ;;  %5958 = vmatmul.mubr.msk.bf16.vlgmr.msra.gmra.mxu0 %vm988_vm3, %v6450_v37  ;;  %v2790_v58 = vrot.slane %v2788_v50, 5  ;;  %v2796_v59 = vrot.slane %v2794_v51, 5  ;;  %v5421_v51 = vld [vmem:[%s8985_s0 + $0x64] sm:$0xf]  ;;  %v6454_v52 = vld [vmem:[%s8985_s0 + $0x48] sm:$0xff]  }
  0xa1   :  { %v2778_v57 = vrot.slane %v2777_v49, 4  ;;  %5961 = vmatprep.mubr.msk.bf16.mxu0 %vm988_vm3, %v6451_v43  ;;  %v2773_v60 = vsel %vm6534_vm4, %v2768_v53, %v2772_v38  ;;  %v2804_v62 = vshll.u32 %v5410_v40, 16  ;;  %v2809_v63 = vshrl.u32 %v5411_v41, 16  ;;  %v5419_v40 = vld [vmem:[%s8985_s0 + $0x5c] sm:$0x1] }
  0xa2   :  { %v2800_v61 = vrot.slane %v2798_v55, 4  ;;  %6024 = vmatmul.mubr.msk.bf16.vlgmr.msra.gmra.mxu1 %vm988_vm3, %v5498_v56  ;;  %v2791_v1 = vor.u32 %v2790_v58, %v2787_v54  ;;  %v2812_v3 = vshll.u32 %v5411_v41, 16  ;;  %v2818_v4 = vshll.u32 %v5412_v47, 16 }
  0xa3   :  { %v2783_v0 = vsel %vm6534_vm4, %v2778_v57, %v2782_v45  ;;  %v2806_v9 = vrot.slane %v2804_v62, 5  ;;  %v2811_v11 = vrot.slane %v2809_v63, 4  ;;  %v2822_v16 = vshrl.u32 %v5412_v47, 16  ;;  %v5422_v57 = vld [vmem:[%s8985_s0 + $0x68] sm:$0x1] }
  0xa4   :  { %v5499_v7 = vcombine.low %v2773_v60, %v2783_v0  ;;  %v2801_v8 = vor.u32 %v2800_v61, %v2796_v59  ;;  %v2792_v13 = vrot.slane %v2791_v1, 4  ;;  %v2814_v14 = vrot.slane %v2812_v3, 5  ;;  %v6455_v61 = vld [vmem:[%s8985_s0 + $0x54] sm:$0xff]  }
  0xa5   :  { %v2820_v15 = vrot.slane %v2818_v4, 5  ;;  %v2828_v20 = vshll.u32 %v5413_v2, 16  ;;  %v2833_v21 = vshrl.u32 %v5414_v5, 16  ;;  %v2836_v22 = vshll.u32 %v5414_v5, 16 }
  0xa6   :  { %6027 = vmatprep.mubr.msk.bf16.mxu1 %vm988_vm3, %v5499_v7  ;;  %v2802_v19 = vrot.slane %v2801_v8, 4  ;;  %v2797_v24 = vsel %vm6534_vm4, %v2792_v13, %v2796_v59  ;;  %v2815_v25 = vor.u32 %v2814_v14, %v2811_v11  ;;  %v2824_v26 = vrot.slane %v2822_v16, 4  ;;  %v5423_v11 = vld [vmem:[%s8985_s0 + $0x6c] sm:$0xf]  ;;  %v5424_v16 = vld [vmem:[%s8985_s0 + $0x70] sm:$0xf] }
  0xa7   :  { %v2842_v27 = vshll.u32 %v5415_v12, 16  ;;  %v2830_v29 = vrot.slane %v2828_v20, 5  ;;  %v2835_v30 = vrot.slane %v2833_v21, 4  ;;  %v2838_v32 = vrot.slane %v2836_v22, 5  ;;  %v5425_v21 = vld [vmem:[%s8985_s0 + $0x74] sm:$0x1] }
  0xa8   :  { %v2807_v28 = vsel %vm6534_vm4, %v2802_v19, %v2806_v9  ;;  %5962 = vmatmul.mubr.msk.bf16.gmra.mxu0 %vm988_vm3, %v6452_v6  ;;  %v2816_v34 = vrot.slane %v2815_v25, 4  ;;  %v2825_v35 = vor.u32 %v2824_v26, %v2820_v15  ;;  %v2846_v38 = vshrl.u32 %v5415_v12, 16  ;;  %v5426_v26 = vld [vmem:[%s8985_s0 + $0x78] sm:$0xf] }
  0xa9   :  { %v5500_v33 = vcombine.low %v2797_v24, %v2807_v28  ;;  %v2844_v36 = vrot.slane %v2842_v27, 5  ;;  %5965 = vmatprep.mubr.msk.bf16.mxu0 %vm988_vm3, %v6453_v10  ;;  %v2839_v37 = vor.u32 %v2838_v32, %v2835_v30  ;;  %v2852_v39 = vshll.u32 %v5416_v17, 16  ;;  %v6456_v27 = vld [vmem:[%s8985_s0 + $0x60] sm:$0xff]  }
  0xaa   :  { %v2857_v41 = vshrl.u32 %v5417_v18, 16  ;;  %v2821_v42 = vsel %vm6534_vm4, %v2816_v34, %v2820_v15  ;;  %v2826_v43 = vrot.slane %v2825_v35, 4  ;;  %v2860_v44 = vshll.u32 %v5417_v18, 16 }
  0xab   :  { %6028 = vmatmul.mubr.msk.bf16.gmra.mxu1 %vm988_vm3, %v5500_v33  ;;  %v2866_v45 = vshll.u32 %v5418_v23, 16  ;;  %v2840_v47 = vrot.slane %v2839_v37, 4  ;;  %v2848_v48 = vrot.slane %v2846_v38, 4  ;;  %v2854_v49 = vrot.slane %v2852_v39, 5  ;;  %v5427_v33 = vld [vmem:[%s8985_s0 + $0x7c] sm:$0xf] }
  0xac   :  { %v2859_v50 = vrot.slane %v2857_v41, 4  ;;  %v2831_v53 = vsel %vm6534_vm4, %v2826_v43, %v2830_v29  ;;  %v2862_v54 = vrot.slane %v2860_v44, 5  ;;  %v2870_v56 = vshrl.u32 %v5418_v23, 16  ;;  %v5428_v39 = vld [vmem:[%s8985_s0 + $0x80] sm:$0x1] }
  0xad   :  { %v2868_v55 = vrot.slane %v2866_v45, 5  ;;  %v5501_v58 = vcombine.low %v2821_v42, %v2831_v53  ;;  %v2845_v59 = vsel %vm6534_vm4, %v2840_v47, %v2844_v36  ;;  %v2849_v60 = vor.u32 %v2848_v48, %v2844_v36  ;;  %v6457_v36 = vld [vmem:[%s8985_s0 + $0x6c] sm:$0xff]  }
  0xae   :  { %v2876_v62 = vshll.u32 %v5419_v40, 16  ;;  %v2863_v63 = vor.u32 %v2862_v54, %v2859_v50  ;;  %v2872_v0 = vrot.slane %v2870_v56, 4  ;;  %v2881_v1 = vshrl.u32 %v5420_v46, 16  ;;  %v5429_v40 = vld [vmem:[%s8985_s0 + $0x84] sm:$0xf] }
  0xaf   :  { %v2884_v2 = vshll.u32 %v5420_v46, 16  ;;  %6031 = vmatprep.mubr.msk.bf16.mxu1 %vm988_vm3, %v5501_v58  ;;  %v2850_v3 = vrot.slane %v2849_v60, 4  ;;  %v2890_v5 = vshll.u32 %v5421_v51, 16  ;;  %v2894_v6 = vshrl.u32 %v5421_v51, 16 }
  0xb0   :  { %v2878_v4 = vrot.slane %v2876_v62, 5  ;;  %5966 = vmatmul.mubr.msk.bf16.gmra.mxu0 %vm988_vm3, %v6454_v52  ;;  %v2864_v7 = vrot.slane %v2863_v63, 4  ;;  %v2873_v8 = vor.u32 %v2872_v0, %v2868_v55  ;;  %v2883_v9 = vrot.slane %v2881_v1, 4  ;;  %v5431_v1 = vld [vmem:[%s8985_s0 + $0x8c] sm:$0x1] }
  0xb1   :  { %v2886_v10 = vrot.slane %v2884_v2, 5  ;;  %v2855_v12 = vsel %vm6534_vm4, %v2850_v3, %v2854_v49  ;;  %5969 = vmatprep.mubr.msk.bf16.mxu0 %vm988_vm3, %v6455_v61  ;;  %v2892_v13 = vrot.slane %v2890_v5, 5  ;;  %v2896_v14 = vrot.slane %v2894_v6, 4  ;;  %v5432_v3 = vld [vmem:[%s8985_s0 + $0x90] sm:$0xf] }
  0xb2   :  { %v2900_v15 = vshll.u32 %v5422_v57, 16  ;;  %v5502_v17 = vcombine.low %v2845_v59, %v2855_v12  ;;  %v2869_v18 = vsel %vm6534_vm4, %v2864_v7, %v2868_v55  ;;  %v2874_v19 = vrot.slane %v2873_v8, 4  ;;  %v5430_v57 = vld [vmem:[%s8985_s0 + $0x88] sm:$0xf] }
  0xb3   :  { %v2887_v20 = vor.u32 %v2886_v10, %v2883_v9  ;;  %v2897_v22 = vor.u32 %v2896_v14, %v2892_v13  ;;  %v2905_v24 = vshrl.u32 %v5423_v11, 16  ;;  %v2908_v25 = vshll.u32 %v5423_v11, 16  ;;  %v6459_v12 = vld [vmem:[%s8985_s0 + $0x84] sm:$0xff]   ;;  %v5433_v14 = vld [vmem:[%s8985_s0 + $0x94] sm:$0xf] }
  0xb4   :  { %v2902_v23 = vrot.slane %v2900_v15, 5  ;;  %6032 = vmatmul.mubr.msk.bf16.gmra.mxu1 %vm988_vm3, %v5502_v17  ;;  %v2879_v28 = vsel %vm6534_vm4, %v2874_v19, %v2878_v4  ;;  %v2914_v30 = vshll.u32 %v5424_v16, 16  ;;  %v2918_v32 = vshrl.u32 %v5424_v16, 16  ;;  %v6458_v4 = vld [vmem:[%s8985_s0 + $0x78] sm:$0xff]  }
  0xb5   :  { %v2888_v29 = vrot.slane %v2887_v20, 4  ;;  %v5503_v34 = vcombine.low %v2869_v18, %v2879_v28  ;;  %v2898_v35 = vrot.slane %v2897_v22, 4  ;;  %v2907_v37 = vrot.slane %v2905_v24, 4  ;;  %v5434_v22 = vld [vmem:[%s8985_s0 + $0x98] sm:$0x1] }
  0xb6   :  { %v2910_v38 = vrot.slane %v2908_v25, 5  ;;  %v2916_v42 = vrot.slane %v2914_v30, 5  ;;  %v2920_v43 = vrot.slane %v2918_v32, 4  ;;  %v2924_v44 = vshll.u32 %v5425_v21, 16  ;;  %v5435_v28 = vld [vmem:[%s8985_s0 + $0x9c] sm:$0xf] }
  0xb7   :  { %v2893_v41 = vsel %vm6534_vm4, %v2888_v29, %v2892_v13  ;;  %6035 = vmatprep.mubr.msk.bf16.mxu1 %vm988_vm3, %v5503_v34  ;;  %v2903_v45 = vsel %vm6534_vm4, %v2898_v35, %v2902_v23  ;;  %v2929_v47 = vshrl.u32 %v5426_v26, 16  ;;  %v2932_v48 = vshll.u32 %v5426_v26, 16  ;;  %v5436_v34 = vld [vmem:[%s8985_s0 + $0xa0] sm:$0xf] }
  0xb8   :  { %v2911_v46 = vor.u32 %v2910_v38, %v2907_v37  ;;  %5970 = vmatmul.mubr.msk.bf16.gmra.mxu0 %vm988_vm3, %v6456_v27  ;;  %v5504_v49 = vcombine.low %v2893_v41, %v2903_v45  ;;  %v2921_v50 = vor.u32 %v2920_v43, %v2916_v42  ;;  %v2926_v51 = vrot.slane %v2924_v44, 5  ;;  %v6460_v44 = vld [vmem:[%s8985_s0 + $0x90] sm:$0xff]  }
  0xb9   :  { %v2938_v52 = vshll.u32 %v5427_v33, 16  ;;  %5973 = vmatprep.mubr.msk.bf16.mxu0 %vm988_vm3, %v6457_v36  ;;  %v2931_v54 = vrot.slane %v2929_v47, 4  ;;  %v2934_v55 = vrot.slane %v2932_v48, 5  ;;  %v2942_v56 = vshrl.u32 %v5427_v33, 16 }
  0xba   :  { %v2912_v53 = vrot.slane %v2911_v46, 4  ;;  %v2922_v58 = vrot.slane %v2921_v50, 4  ;;  %v2948_v60 = vshll.u32 %v5428_v39, 16  ;;  %v2953_v61 = vshrl.u32 %v5429_v40, 16 }
  0xbb   :  { %v2940_v59 = vrot.slane %v2938_v52, 5  ;;  %v2935_v63 = vor.u32 %v2934_v55, %v2931_v54  ;;  %v2944_v0 = vrot.slane %v2942_v56, 4  ;;  %v2956_v2 = vshll.u32 %v5429_v40, 16  ;;  %v5438_v54 = vld [vmem:[%s8985_s0 + $0xa8] sm:$0xf] }
  0xbc   :  { %v2917_v62 = vsel %vm6534_vm4, %v2912_v53, %v2916_v42  ;;  %6036 = vmatmul.mubr.msk.bf16.gmra.mxu1 %vm988_vm3, %v5504_v49  ;;  %v2927_v5 = vsel %vm6534_vm4, %v2922_v58, %v2926_v51  ;;  %v2950_v6 = vrot.slane %v2948_v60, 5  ;;  %v2955_v7 = vrot.slane %v2953_v61, 4  ;;  %v5437_v42 = vld [vmem:[%s8985_s0 + $0xa4] sm:$0x1]  ;;  %v6461_v51 = vld [vmem:[%s8985_s0 + $0x9c] sm:$0xff]  }
  0xbd   :  { %v2962_v8 = vshll.u32 %v5430_v57, 16  ;;  %v5505_v9 = vcombine.low %v2917_v62, %v2927_v5  ;;  %v2936_v10 = vrot.slane %v2935_v63, 4  ;;  %v2945_v11 = vor.u32 %v2944_v0, %v2940_v59 }
  0xbe   :  { %v2958_v13 = vrot.slane %v2956_v2, 5  ;;  %v2966_v16 = vshrl.u32 %v5430_v57, 16  ;;  %v2972_v17 = vshll.u32 %v5431_v1, 16  ;;  %v2977_v18 = vshrl.u32 %v5432_v3, 16  ;;  %v5440_v2 = vld [vmem:[%s8985_s0 + $0xb0] sm:$0x1] }
  0xbf   :  { %v2964_v15 = vrot.slane %v2962_v8, 5  ;;  %6039 = vmatprep.mubr.msk.bf16.mxu1 %vm988_vm3, %v5505_v9  ;;  %v2941_v19 = vsel %vm6534_vm4, %v2936_v10, %v2940_v59  ;;  %v2946_v20 = vrot.slane %v2945_v11, 4  ;;  %v2980_v23 = vshll.u32 %v5432_v3, 16  ;;  %v5439_v59 = vld [vmem:[%s8985_s0 + $0xac] sm:$0xf] }
  0xc0   :  { %v2959_v21 = vor.u32 %v2958_v13, %v2955_v7  ;;  %5974 = vmatmul.mubr.msk.bf16.gmra.mxu0 %vm988_vm3, %v6458_v4  ;;  %v2968_v24 = vrot.slane %v2966_v16, 4  ;;  %v2974_v25 = vrot.slane %v2972_v17, 5  ;;  %v2979_v26 = vrot.slane %v2977_v18, 4  ;;  %v5441_v10 = vld [vmem:[%s8985_s0 + $0xb4] sm:$0xf] }
  0xc1   :  { %v2986_v27 = vshll.u32 %v5433_v14, 16  ;;  %v2951_v29 = vsel %vm6534_vm4, %v2946_v20, %v2950_v6  ;;  %5977 = vmatprep.mubr.msk.bf16.mxu0 %vm988_vm3, %v6459_v12  ;;  %v2982_v32 = vrot.slane %v2980_v23, 5  ;;  %v2990_v33 = vshrl.u32 %v5433_v14, 16 }
  0xc2   :  { %v2960_v30 = vrot.slane %v2959_v21, 4  ;;  %v5506_v35 = vcombine.low %v2941_v19, %v2951_v29  ;;  %v2969_v36 = vor.u32 %v2968_v24, %v2964_v15  ;;  %v2996_v38 = vshll.u32 %v5434_v22, 16  ;;  %v6462_v21 = vld [vmem:[%s8985_s0 + $0xa8] sm:$0xff]   ;;  %v5443_v24 = vld [vmem:[%s8985_s0 + $0xbc] sm:$0x1] }
  0xc3   :  { %v2988_v37 = vrot.slane %v2986_v27, 5  ;;  %v2983_v40 = vor.u32 %v2982_v32, %v2979_v26  ;;  %v2992_v41 = vrot.slane %v2990_v33, 4  ;;  %v3001_v43 = vshrl.u32 %v5435_v28, 16  ;;  %v6463_v32 = vld [vmem:[%s8985_s0 + $0xb4] sm:$0xff]  }
  0xc4   :  { %v2965_v39 = vsel %vm6534_vm4, %v2960_v30, %v2964_v15  ;;  %6040 = vmatmul.mubr.msk.bf16.gmra.mxu1 %vm988_vm3, %v5506_v35  ;;  %v2970_v45 = vrot.slane %v2969_v36, 4  ;;  %v2998_v46 = vrot.slane %v2996_v38, 5  ;;  %v3004_v47 = vshll.u32 %v5435_v28, 16  ;;  %v5442_v15 = vld [vmem:[%s8985_s0 + $0xb8] sm:$0xf] }
  0xc5   :  { %v3010_v48 = vshll.u32 %v5436_v34, 16  ;;  %v2984_v49 = vrot.slane %v2983_v40, 4  ;;  %v2993_v50 = vor.u32 %v2992_v41, %v2988_v37  ;;  %v3003_v52 = vrot.slane %v3001_v43, 4 }
  0xc6   :  { %v3014_v53 = vshrl.u32 %v5436_v34, 16  ;;  %v2975_v55 = vsel %vm6534_vm4, %v2970_v45, %v2974_v25  ;;  %v3006_v56 = vrot.slane %v3004_v47, 5  ;;  %v3020_v58 = vshll.u32 %v5437_v42, 16  ;;  %v5444_v34 = vld [vmem:[%s8985_s0 + $0xc0] sm:$0xf] }
  0xc7   :  { %v3012_v57 = vrot.slane %v3010_v48, 5  ;;  %v5507_v60 = vcombine.low %v2965_v39, %v2975_v55  ;;  %v2989_v61 = vsel %vm6534_vm4, %v2984_v49, %v2988_v37  ;;  %v2994_v62 = vrot.slane %v2993_v50, 4  ;;  %v5445_v39 = vld [vmem:[%s8985_s0 + $0xc4] sm:$0xf]  ;;  %v5446_v47 = vld [vmem:[%s8985_s0 + $0xc8] sm:$0x1] }
  0xc8   :  { %v3016_v63 = vrot.slane %v3014_v53, 4  ;;  %5978 = vmatmul.mubr.msk.bf16.gmra.mxu0 %vm988_vm3, %v6460_v44  ;;  %v3007_v0 = vor.u32 %v3006_v56, %v3003_v52  ;;  %v3022_v1 = vrot.slane %v3020_v58, 5  ;;  %v3025_v3 = vshrl.u32 %v5438_v54, 16  ;;  %v7242_v5 = vpop.f32.mrf.mxu1  ;;  %v5447_v55 = vld [vmem:[%s8985_s0 + $0xd8] sm:$0xf] }
  0xc9   :  { %v3028_v4 = vshll.u32 %v5438_v54, 16  ;;  %6043 = vmatprep.mubr.msk.bf16.mxu1 %vm988_vm3, %v5507_v60  ;;  %v2999_v6 = vsel %vm6534_vm4, %v2994_v62, %v2998_v46  ;;  %5981 = vmatprep.mubr.msk.bf16.mxu0 %vm988_vm3, %v6461_v51  ;;  %v3034_v8 = vshll.u32 %v5439_v59, 16  ;;  %v3038_v9 = vshrl.u32 %v5439_v59, 16 }
  0xca   :  { %v3017_v7 = vor.u32 %v3016_v63, %v3012_v57  ;;  %v5508_v11 = vcombine.low %v2989_v61, %v2999_v6  ;;  %v3008_v12 = vrot.slane %v3007_v0, 4  ;;  %v3027_v13 = vrot.slane %v3025_v3, 4  ;;  %v7254_v16 = vpop.f32.mrf.mxu1  ;;  %v6464_v3 = vld [vmem:[%s8985_s0 + $0xc0] sm:$0xff]  }
  0xcb   :  { %v3030_v14 = vrot.slane %v3028_v4, 5  ;;  %v3036_v18 = vrot.slane %v3034_v8, 5  ;;  %v3040_v19 = vrot.slane %v3038_v9, 4  ;;  %v3044_v20 = vshll.u32 %v5440_v2, 16  ;;  %v5448_v2 = vld [vmem:[%s8985_s0 + $0xdc] sm:$0xf] }
  0xcc   :  { %v3018_v17 = vrot.slane %v3017_v7, 4  ;;  %6044 = vmatmul.mubr.msk.bf16.gmra.mxu1 %vm988_vm3, %v5508_v11  ;;  %v3013_v22 = vsel %vm6534_vm4, %v3008_v12, %v3012_v57  ;;  %v3049_v25 = vshrl.u32 %v5441_v10, 16  ;;  %v3052_v26 = vshll.u32 %v5441_v10, 16  ;;  %v7265_v27 = vpop.f32.mrf.mxu1  ;;  %v5449_v8 = vld [vmem:[%s8985_s0 + $0xe0] sm:$0x1] }
  0xcd   :  { %v3031_v23 = vor.u32 %v3030_v14, %v3027_v13  ;;  %v3041_v29 = vor.u32 %v3040_v19, %v3036_v18  ;;  %v3046_v30 = vrot.slane %v3044_v20, 5  ;;  %v3058_v33 = vshll.u32 %v5442_v15, 16 }
  0xce   :  { %v3023_v28 = vsel %vm6534_vm4, %v3018_v17, %v3022_v1  ;;  %v3051_v37 = vrot.slane %v3049_v25, 4  ;;  %v3054_v38 = vrot.slane %v3052_v26, 5  ;;  %v7278_v40 = vpop.f32.mrf.mxu1  ;;  %v3062_v43 = vshrl.u32 %v5442_v15, 16  ;;  %v6465_v15 = vld [vmem:[%s8985_s0 + $0xd8] sm:$0xff]  }
  0xcf   :  { %v5509_v35 = vcombine.low %v3013_v22, %v3023_v28  ;;  %v3032_v36 = vrot.slane %v3031_v23, 4  ;;  %v3042_v41 = vrot.slane %v3041_v29, 4  ;;  %v3060_v42 = vrot.slane %v3058_v33, 5  ;;  %v5450_v28 = vld [vmem:[%s8985_s0 + $0xe4] sm:$0xf] }
  0xd0   :  { %v3068_v44 = vshll.u32 %v5443_v24, 16  ;;  %5982 = vmatmul.mubr.msk.bf16.gmra.mxu0 %vm988_vm3, %v6462_v21  ;;  %v3055_v46 = vor.u32 %v3054_v38, %v3051_v37  ;;  %v3073_v48 = vshrl.u32 %v5444_v34, 16  ;;  %v3076_v49 = vshll.u32 %v5444_v34, 16  ;;  %v5451_v29 = vld [vmem:[%s8985_s0 + $0xe8] sm:$0xf] }
  0xd1   :  { %6047 = vmatprep.mubr.msk.bf16.mxu1 %vm988_vm3, %v5509_v35  ;;  %v3037_v45 = vsel %vm6534_vm4, %v3032_v36, %v3036_v18  ;;  %v5827_v50 = vpop.f32.mrf.mxu0  ;;  %v3047_v51 = vsel %vm6534_vm4, %v3042_v41, %v3046_v30  ;;  %5985 = vmatprep.mubr.msk.bf16.mxu0 %vm988_vm3, %v6463_v32  ;;  %v3064_v52 = vrot.slane %v3062_v43, 4  ;;  %v3082_v54 = vshll.u32 %v5445_v39, 16  ;;  %v5452_v35 = vld [vmem:[%s8985_s0 + $0xec] sm:$0x1] }
  0xd2   :  { %v3070_v53 = vrot.slane %v3068_v44, 5  ;;  %v5510_v56 = vcombine.low %v3037_v45, %v3047_v51  ;;  %v3056_v57 = vrot.slane %v3055_v46, 4  ;;  %v3075_v58 = vrot.slane %v3073_v48, 4  ;;  %v7293_v61 = vpop.f32.mrf.mxu1 }
  0xd3   :  { %v3078_v59 = vrot.slane %v3076_v49, 5  ;;  %v1123_v60 = vpop.f32.mrf.mxu0  ;;  %v3065_v62 = vor.u32 %v3064_v52, %v3060_v42  ;;  %v3084_v63 = vrot.slane %v3082_v54, 5  ;;  %v3086_v0 = vshrl.u32 %v5445_v39, 16 }
  0xd4   :  { %v3092_v1 = vshll.u32 %v5446_v47, 16  ;;  %6048 = vmatmul.mubr.msk.bf16.gmra.mxu1 %vm988_vm3, %v5510_v56  ;;  %v3061_v4 = vsel %vm6534_vm4, %v3056_v57, %v3060_v42  ;;  %v7305_v7 = vadd.f32 %v7242_v5, %v5827_v50  ;;  %v3097_v9 = vshrl.u32 %v5447_v55, 16  ;;  %v7310_v11 = vpop.f32.mrf.mxu1  ;;  %v5453_v56 = vld [vmem:[%s8985_s0 + $0xf0] sm:$0xf] }
  0xd5   :  { %v3079_v6 = vor.u32 %v3078_v59, %v3075_v58  ;;  %v5828_v10 = vpop.f32.mrf.mxu0  ;;  %v3066_v12 = vrot.slane %v3065_v62, 4  ;;  %v3088_v13 = vrot.slane %v3086_v0, 4  ;;  %v3100_v17 = vshll.u32 %v5447_v55, 16  ;;  %v6467_v0 = vld [vmem:[%s8985_s0 + $0xf0] sm:$0xff]  }
  0xd6   :  { %v3094_v14 = vrot.slane %v3092_v1, 5  ;;  %v3099_v19 = vrot.slane %v3097_v9, 4  ;;  %v3106_v5 = vshll.u32 %v5448_v2, 16  ;;  %v3110_v20 = vshrl.u32 %v5448_v2, 16  ;;  %v7315_v22 = vpop.f32.mrf.mxu1  ;;  %v5454_v1 = vld [vmem:[%s8985_s0 + $0xf4] sm:$0xf] }
  0xd7   :  { %v3080_v18 = vrot.slane %v3079_v6, 4  ;;  %v1126_v21 = vpop.f32.mrf.mxu0  ;;  %v3071_v23 = vsel %vm6534_vm4, %v3066_v12, %v3070_v53  ;;  %v3089_v24 = vor.u32 %v3088_v13, %v3084_v63  ;;  %v3102_v25 = vrot.slane %v3100_v17, 5 }
  0xd8   :  { %v3116_v26 = vshll.u32 %v5449_v8, 16  ;;  %5986 = vmatmul.mubr.msk.bf16.gmra.mxu0 %vm988_vm3, %v6464_v3  ;;  %v5511_v30 = vcombine.low %v3061_v4, %v3071_v23  ;;  %v3108_v33 = vrot.slane %v3106_v5, 5  ;;  %v3112_v34 = vrot.slane %v3110_v20, 4  ;;  %v7331_v36 = vpop.f32.mrf.mxu1  ;;  %v5455_v8 = vld [vmem:[%s8985_s0 + $0xf8] sm:$0x1] }
  0xd9   :  { %v3085_v32 = vsel %vm6534_vm4, %v3080_v18, %v3084_v63  ;;  %v3090_v37 = vrot.slane %v3089_v24, 4  ;;  %5989 = vmatprep.mubr.msk.bf16.mxu0 %vm988_vm3, %v6465_v15  ;;  %v3103_v38 = vor.u32 %v3102_v25, %v3099_v19  ;;  %v7335_v41 = vadd.f32 %v7254_v16, %v1123_v60  ;;  %v6466_v16 = vld [vmem:[%s8985_s0 + $0xe4] sm:$0xff]   ;;  %v5456_v19 = vld [vmem:[%s8985_s0 + $0xfc] sm:$0xf]  ;;  %v5457_v25 = vld [vmem:[%s8985_s0 + $0x100] sm:$0xf] }
  0xda   :  { %v3118_v39 = vrot.slane %v3116_v26, 5  ;;  %6051 = vmatprep.mubr.msk.bf16.mxu1 %vm988_vm3, %v5511_v30  ;;  %v3113_v42 = vor.u32 %v3112_v34, %v3108_v33  ;;  %v3121_v43 = vshrl.u32 %v5450_v28, 16  ;;  %v3124_v44 = vshll.u32 %v5450_v28, 16  ;;  %v7338_v47 = vpop.f32.mrf.mxu1 }
  0xdb   :  { %v3130_v45 = vshll.u32 %v5451_v29, 16  ;;  %v5831_v46 = vpop.f32.mrf.mxu0  ;;  %v3095_v48 = vsel %vm6534_vm4, %v3090_v37, %v3094_v14  ;;  %v3104_v49 = vrot.slane %v3103_v38, 4  ;;  %v3134_v50 = vshrl.u32 %v5451_v29, 16 }
  0xdc   :  { %v3140_v51 = vshll.u32 %v5452_v35, 16  ;;  %v5512_v52 = vcombine.low %v3085_v32, %v3095_v48  ;;  %v3114_v53 = vrot.slane %v3113_v42, 4  ;;  %v3123_v54 = vrot.slane %v3121_v43, 4  ;;  %v7348_v58 = vpop.f32.mrf.mxu1  ;;  %v5458_v32 = vld [vmem:[%s8985_s0 + $0x104] sm:$0x1]  ;;  %v6468_v42 = vld [vmem:[%s8985_s0 + $0xfc] sm:$0xff]  }
  0xdd   :  { %v3126_v55 = vrot.slane %v3124_v44, 5  ;;  %v1139_v57 = vpop.f32.mrf.mxu0  ;;  %v3109_v59 = vsel %vm6534_vm4, %v3104_v49, %v3108_v33  ;;  %v3132_v60 = vrot.slane %v3130_v45, 5  ;;  %v3136_v62 = vrot.slane %v3134_v50, 4 }
  0xde   :  { %v3142_v63 = vrot.slane %v3140_v51, 5  ;;  %6052 = vmatmul.mubr.msk.bf16.gmra.mxu1 %vm988_vm3, %v5512_v52  ;;  %v3119_v2 = vsel %vm6534_vm4, %v3114_v53, %v3118_v39  ;;  %v7362_v4 = vadd.f32 %v7265_v27, %v5828_v10  ;;  %v7365_v6 = vadd.f32 %v7278_v40, %v1126_v21  ;;  %v7370_v12 = vpop.f32.mrf.mxu1 }
  0xdf   :  { %v3127_v3 = vor.u32 %v3126_v55, %v3123_v54  ;;  %v5832_v9 = vpop.f32.mrf.mxu0  ;;  %v5513_v13 = vcombine.low %v3109_v59, %v3119_v2  ;;  %v3137_v14 = vor.u32 %v3136_v62, %v3132_v60  ;;  %v7373_v15 = vadd.f32 %v7293_v61, %v5831_v46  ;;  %v6469_v46 = vld [vmem:[%s8985_s0 + $0x108] sm:$0xff]   ;;  %v5461_v2 = vld [vmem:[%s8985_s0 + $0x110] sm:$0x1] }
  0xe0   :  { %v3145_v17 = vshrl.u32 %v5453_v56, 16  ;;  %5990 = vmatmul.mubr.msk.bf16.gmra.mxu0 %vm988_vm3, %v6466_v16  ;;  %v3148_v10 = vshll.u32 %v5453_v56, 16  ;;  %v3154_v18 = vshll.u32 %v5454_v1, 16  ;;  %v3158_v40 = vshrl.u32 %v5454_v1, 16  ;;  %v7379_v20 = vpop.f32.mrf.mxu1  ;;  %v5459_v16 = vld [vmem:[%s8985_s0 + $0x108] sm:$0xf] }
  0xe1   :  { %v3128_v27 = vrot.slane %v3127_v3, 4  ;;  %v1142_v5 = vpop.f32.mrf.mxu0  ;;  %6055 = vmatprep.mubr.msk.bf16.mxu1 %vm988_vm3, %v5513_v13  ;;  %v3138_v21 = vrot.slane %v3137_v14, 4  ;;  %5993 = vmatprep.mubr.msk.bf16.mxu0 %vm988_vm3, %v6467_v0  ;;  %v3164_v23 = vshll.u32 %v5455_v8, 16  ;;  %v7384_v24 = vadd.f32 %v7310_v11, %v1139_v57  ;;  %v5460_v1 = vld [vmem:[%s8985_s0 + $0x10c] sm:$0xf] }
  0xe2   :  { %v3147_v61 = vrot.slane %v3145_v17, 4  ;;  %v3150_v28 = vrot.slane %v3148_v10, 5  ;;  %v3156_v29 = vrot.slane %v3154_v18, 5  ;;  %v3160_v30 = vrot.slane %v3158_v40, 4  ;;  %v5462_v18 = vld [vmem:[%s8985_s0 + $0x114] sm:$0xf] }
  0xe3   :  { %v3133_v26 = vsel %vm6534_vm4, %v3128_v27, %v3132_v60  ;;  %v5835_v33 = vpop.f32.mrf.mxu0  ;;  %v3143_v34 = vsel %vm6534_vm4, %v3138_v21, %v3142_v63  ;;  %v3166_v11 = vrot.slane %v3164_v23, 5  ;;  %v3169_v35 = vshrl.u32 %v5456_v19, 16 }
  0xe4   :  { %v3172_v37 = vshll.u32 %v5456_v19, 16  ;;  %v7396_v38 = vpop.f32.mrf.mxu1  ;;  %v5514_v39 = vcombine.low %v3133_v26, %v3143_v34  ;;  %v3151_v43 = vor.u32 %v3150_v28, %v3147_v61  ;;  %v3161_v44 = vor.u32 %v3160_v30, %v3156_v29  ;;  %v6470_v26 = vld [vmem:[%s8985_s0 + $0x114] sm:$0xff]   ;;  %v5464_v34 = vld [vmem:[%s8985_s0 + $0x11c] sm:$0x1] }
  0xe5   :  { %v3178_v45 = vshll.u32 %v5457_v25, 16  ;;  %v1155_v48 = vpop.f32.mrf.mxu0  ;;  %v3171_v49 = vrot.slane %v3169_v35, 4  ;;  %v3182_v51 = vshrl.u32 %v5457_v25, 16  ;;  %v3188_v52 = vshll.u32 %v5458_v32, 16 }
  0xe6   :  { %v3174_v50 = vrot.slane %v3172_v37, 5  ;;  %v7407_v53 = vpop.f32.mrf.mxu1  ;;  %6056 = vmatmul.mubr.msk.bf16.gmra.mxu1 %vm988_vm3, %v5514_v39  ;;  %v3152_v54 = vrot.slane %v3151_v43, 4  ;;  %v3162_v55 = vrot.slane %v3161_v44, 4  ;;  %v7411_v57 = vadd.f32 %v7315_v22, %v5832_v9 }
  0xe7   :  { %v3180_v56 = vrot.slane %v3178_v45, 5  ;;  %v5836_v59 = vpop.f32.mrf.mxu0  ;;  %v3184_v62 = vrot.slane %v3182_v51, 4  ;;  %v3190_v63 = vrot.slane %v3188_v52, 5  ;;  %v7414_v0 = vadd.f32 %v7331_v36, %v1142_v5 }
  0xe8   :  { %v3175_v60 = vor.u32 %v3174_v50, %v3171_v49  ;;  %v7422_v3 = vpop.f32.mrf.mxu1  ;;  %5994 = vmatmul.mubr.msk.bf16.gmra.mxu0 %vm988_vm3, %v6468_v42  ;;  %v3157_v22 = vsel %vm6534_vm4, %v3152_v54, %v3156_v29  ;;  %v3167_v8 = vsel %vm6534_vm4, %v3162_v55, %v3166_v11  ;;  %v7430_v36 = vadd.f32 %v7338_v47, %v5835_v33  ;;  %v5463_v47 = vld [vmem:[%s8985_s0 + $0x118] sm:$0xf] }
  0xe9   :  { %v3193_v9 = vshrl.u32 %v5459_v16, 16  ;;  %v1158_v13 = vpop.f32.mrf.mxu0  ;;  %v5515_v14 = vcombine.low %v3157_v22, %v3167_v8  ;;  %v3185_v27 = vor.u32 %v3184_v62, %v3180_v56  ;;  %5997 = vmatprep.mubr.msk.bf16.mxu0 %vm988_vm3, %v6469_v46  ;;  %v3196_v10 = vshll.u32 %v5459_v16, 16 }
  0xea   :  { %v3176_v17 = vrot.slane %v3175_v60, 4  ;;  %v7436_v40 = vpop.f32.mrf.mxu1  ;;  %v3202_v5 = vshll.u32 %v5460_v1, 16  ;;  %v3206_v21 = vshrl.u32 %v5460_v1, 16  ;;  %v3212_v61 = vshll.u32 %v5461_v2, 16  ;;  %v5466_v2 = vld [vmem:[%s8985_s0 + $0x124] sm:$0xf] }
  0xeb   :  { %v3195_v19 = vrot.slane %v3193_v9, 4  ;;  %6059 = vmatprep.mubr.msk.bf16.mxu1 %vm988_vm3, %v5515_v14  ;;  %v3186_v25 = vrot.slane %v3185_v27, 4  ;;  %v3198_v28 = vrot.slane %v3196_v10, 5  ;;  %v7448_v29 = vadd.f32 %v7348_v58, %v1155_v48  ;;  %v6471_v58 = vld [vmem:[%s8985_s0 + $0x120] sm:$0xff]  }
  0xec   :  { %v3181_v23 = vsel %vm6534_vm4, %v3176_v17, %v3180_v56  ;;  %v3204_v30 = vrot.slane %v3202_v5, 5  ;;  %v3208_v32 = vrot.slane %v3206_v21, 4  ;;  %v3214_v33 = vrot.slane %v3212_v61, 5  ;;  %v5839_v35 = vpop.f32.mrf.mxu0  ;;  %v7453_v37 = vpop.f32.mrf.mxu1  ;;  %v5465_v56 = vld [vmem:[%s8985_s0 + $0x120] sm:$0xf] }
  0xed   :  { %v3217_v11 = vshrl.u32 %v5462_v18, 16  ;;  %v3191_v39 = vsel %vm6534_vm4, %v3186_v25, %v3190_v63  ;;  %v3199_v42 = vor.u32 %v3198_v28, %v3195_v19  ;;  %v3220_v43 = vshll.u32 %v5462_v18, 16 }
  0xee   :  { %v3226_v44 = vshll.u32 %v5463_v47, 16  ;;  %v5516_v45 = vcombine.low %v3181_v23, %v3191_v39  ;;  %v3209_v46 = vor.u32 %v3208_v32, %v3204_v30  ;;  %v3230_v49 = vshrl.u32 %v5463_v47, 16  ;;  %v1171_v50 = vpop.f32.mrf.mxu0  ;;  %v7460_v51 = vpop.f32.mrf.mxu1  ;;  %v5468_v23 = vld [vmem:[%s8985_s0 + $0x12c] sm:$0xf]  ;;  %v5469_v32 = vld [vmem:[%s8985_s0 + $0x130] sm:$0xf] }
  0xef   :  { %v3219_v48 = vrot.slane %v3217_v11, 4  ;;  %v3200_v52 = vrot.slane %v3199_v42, 4  ;;  %v3222_v16 = vrot.slane %v3220_v43, 5  ;;  %v3236_v55 = vshll.u32 %v5464_v34, 16  ;;  %v5470_v39 = vld [vmem:[%s8985_s0 + $0x134] sm:$0x1] }
  0xf0   :  { %v3228_v54 = vrot.slane %v3226_v44, 5  ;;  %6060 = vmatmul.mubr.msk.bf16.gmra.mxu1 %vm988_vm3, %v5516_v45  ;;  %5998 = vmatmul.mubr.msk.bf16.gmra.mxu0 %vm988_vm3, %v6470_v26  ;;  %v3210_v60 = vrot.slane %v3209_v46, 4  ;;  %v3232_v62 = vrot.slane %v3230_v49, 4  ;;  %v7468_v63 = vadd.f32 %v7370_v12, %v5836_v59  ;;  %v5840_v22 = vpop.f32.mrf.mxu0  ;;  %v7476_v8 = vpop.f32.mrf.mxu1  ;;  %v6473_v42 = vld [vmem:[%s8985_s0 + $0x138] sm:$0xff]  }
  0xf1   :  { %v7471_v1 = vadd.f32 %v7379_v20, %v1158_v13  ;;  %v3205_v9 = vsel %vm6534_vm4, %v3200_v52, %v3204_v30  ;;  %v3223_v14 = vor.u32 %v3222_v16, %v3219_v48  ;;  %v3238_v17 = vrot.slane %v3236_v55, 5  ;;  %6001 = vmatprep.mubr.msk.bf16.mxu0 %vm988_vm3, %v6471_v58  ;;  %v5467_v20 = vld [vmem:[%s8985_s0 + $0x128] sm:$0x1] }
  0xf2   :  { %v7482_v12 = vadd.f32 %v7396_v38, %v5839_v35  ;;  %v3215_v59 = vsel %vm6534_vm4, %v3210_v60, %v3214_v33  ;;  %v3233_v13 = vor.u32 %v3232_v62, %v3228_v54  ;;  %v3241_v27 = vshrl.u32 %v5465_v56, 16  ;;  %v1174_v18 = vpop.f32.mrf.mxu0  ;;  %v7489_v19 = vpop.f32.mrf.mxu1  ;;  %v6472_v38 = vld [vmem:[%s8985_s0 + $0x12c] sm:$0xff]  }
  0xf3   :  { %v3244_v10 = vshll.u32 %v5465_v56, 16  ;;  %v5517_v5 = vcombine.low %v3205_v9, %v3215_v59  ;;  %v3224_v21 = vrot.slane %v3223_v14, 4  ;;  %v3250_v61 = vshll.u32 %v5466_v2, 16  ;;  %v5472_v59 = vld [vmem:[%s8985_s0 + $0x13c] sm:$0xf] }
  0xf4   :  { %v3254_v47 = vshrl.u32 %v5466_v2, 16  ;;  %v3234_v25 = vrot.slane %v3233_v13, 4  ;;  %v3243_v26 = vrot.slane %v3241_v27, 4  ;;  %v3260_v30 = vshll.u32 %v5467_v20, 16  ;;  %v5471_v2 = vld [vmem:[%s8985_s0 + $0x138] sm:$0xf] }
  0xf5   :  { %v3246_v28 = vrot.slane %v3244_v10, 5  ;;  %6063 = vmatprep.mubr.msk.bf16.mxu1 %vm988_vm3, %v5517_v5  ;;  %v3229_v33 = vsel %vm6534_vm4, %v3224_v21, %v3228_v54  ;;  %v3252_v34 = vrot.slane %v3250_v61, 5  ;;  %v7504_v35 = vadd.f32 %v7407_v53, %v1171_v50  ;;  %v5843_v43 = vpop.f32.mrf.mxu0  ;;  %v7512_v44 = vpop.f32.mrf.mxu1 }
  0xf6   :  { %v3256_v11 = vrot.slane %v3254_v47, 4  ;;  %v3239_v58 = vsel %vm6534_vm4, %v3234_v25, %v3238_v17  ;;  %v3262_v46 = vrot.slane %v3260_v30, 5  ;;  %v3265_v48 = vshrl.u32 %v5468_v23, 16 }
  0xf7   :  { %v3247_v45 = vor.u32 %v3246_v28, %v3243_v26  ;;  %v5518_v49 = vcombine.low %v3229_v33, %v3239_v58  ;;  %v3268_v50 = vshll.u32 %v5468_v23, 16  ;;  %v3274_v52 = vshll.u32 %v5469_v32, 16  ;;  %v1187_v16 = vpop.f32.mrf.mxu0  ;;  %v7516_v54 = vpop.f32.mrf.mxu1  ;;  %v5474_v33 = vld [vmem:[%s8985_s0 + $0x144] sm:$0xf] }
  0xf8   :  { %v3257_v53 = vor.u32 %v3256_v11, %v3252_v34  ;;  %6002 = vmatmul.mubr.msk.bf16.gmra.mxu0 %vm988_vm3, %v6472_v38  ;;  %v3267_v56 = vrot.slane %v3265_v48, 4  ;;  %v3278_v60 = vshrl.u32 %v5469_v32, 16  ;;  %v3284_v62 = vshll.u32 %v5470_v39, 16 }
  0xf9   :  { %v3248_v55 = vrot.slane %v3247_v45, 4  ;;  %6064 = vmatmul.mubr.msk.bf16.gmra.mxu1 %vm988_vm3, %v5518_v49  ;;  %v3270_v14 = vrot.slane %v3268_v50, 5  ;;  %v3276_v17 = vrot.slane %v3274_v52, 5  ;;  %v7524_v20 = vadd.f32 %v7422_v3, %v5840_v22  ;;  %6005 = vmatprep.mubr.msk.bf16.mxu0 %vm988_vm3, %v6473_v42  ;;  %v5844_v13 = vpop.f32.mrf.mxu0  ;;  %v7530_v27 = vpop.f32.mrf.mxu1  ;;  %v5473_v3 = vld [vmem:[%s8985_s0 + $0x140] sm:$0x1] }
  0xfa   :  { %v3258_v9 = vrot.slane %v3257_v53, 4  ;;  %v3280_v5 = vrot.slane %v3278_v60, 4  ;;  %v3286_v21 = vrot.slane %v3284_v62, 5  ;;  %v7535_v38 = vadd.f32 %v7436_v40, %v1174_v18  ;;  %v6474_v40 = vld [vmem:[%s8985_s0 + $0x144] sm:$0xff]  }
  0xfb   :  { %v3253_v10 = vsel %vm6534_vm4, %v3248_v55, %v3252_v34  ;;  %v3271_v61 = vor.u32 %v3270_v14, %v3267_v56  ;;  %v7543_v47 = vadd.f32 %v7453_v37, %v5843_v43  ;;  %v3289_v23 = vshrl.u32 %v5471_v2, 16  ;;  %v1190_v25 = vpop.f32.mrf.mxu0  ;;  %v7545_v26 = vpop.f32.mrf.mxu1  ;;  %v6475_v37 = vld [vmem:[%s8985_s0 + $0x150] sm:$0xff]   ;;  %v5475_v43 = vld [vmem:[%s8985_s0 + $0x148] sm:$0xf]  ;;  %v5476_v56 = vld [vmem:[%s8985_s0 + $0x14c] sm:$0x1] }
  0xfc   :  { %v3263_v22 = vsel %vm6534_vm4, %v3258_v9, %v3262_v46  ;;  %v3281_v30 = vor.u32 %v3280_v5, %v3276_v17  ;;  %v3292_v18 = vshll.u32 %v5471_v2, 16  ;;  %v3298_v32 = vshll.u32 %v5472_v59, 16 }
  0xfd   :  { %v5519_v28 = vcombine.low %v3253_v10, %v3263_v22  ;;  %v3272_v34 = vrot.slane %v3271_v61, 4  ;;  %v3291_v11 = vrot.slane %v3289_v23, 4  ;;  %v3302_v39 = vshrl.u32 %v5472_v59, 16 }
  0xfe   :  { %v3308_v42 = vshll.u32 %v5473_v3, 16  ;;  %v3282_v58 = vrot.slane %v3281_v30, 4  ;;  %v3294_v45 = vrot.slane %v3292_v18, 5  ;;  %v3300_v46 = vrot.slane %v3298_v32, 5  ;;  %v5847_v49 = vpop.f32.mrf.mxu0  ;;  %v7563_v53 = vpop.f32.mrf.mxu1 }
  0xff   :  { %6067 = vmatprep.mubr.msk.bf16.mxu1 %vm988_vm3, %v5519_v28  ;;  %v7561_v48 = vadd.f32 %v7460_v51, %v1187_v16  ;;  %v3277_v50 = vsel %vm6534_vm4, %v3272_v34, %v3276_v17  ;;  %v3304_v52 = vrot.slane %v3302_v39, 4  ;;  %v3313_v60 = vshrl.u32 %v5474_v33, 16 }
 0x100   :  { %v3310_v55 = vrot.slane %v3308_v42, 5  ;;  %v3287_v62 = vsel %vm6534_vm4, %v3282_v58, %v3286_v21  ;;  %6006 = vmatmul.mubr.msk.bf16.gmra.mxu0 %vm988_vm3, %v6474_v40  ;;  %v3295_v51 = vor.u32 %v3294_v45, %v3291_v11  ;;  %v3316_v16 = vshll.u32 %v5474_v33, 16  ;;  %v1203_v9 = vpop.f32.mrf.mxu0  ;;  %v7573_v14 = vpop.f32.mrf.mxu1  ;;  %v5477_v21 = vld [vmem:[%s8985_s0 + $0x150] sm:$0xf] }
 0x101   :  { %v3322_v2 = vshll.u32 %v5475_v43, 16  ;;  %v5520_v59 = vcombine.low %v3277_v50, %v3287_v62  ;;  %v3305_v17 = vor.u32 %v3304_v52, %v3300_v46  ;;  %v3315_v10 = vrot.slane %v3313_v60, 4  ;;  %6009 = vmatprep.mubr.msk.bf16.mxu0 %vm988_vm3, %v6475_v37  ;;  %v5478_v37 = vld [vmem:[%s8985_s0 + $0x154] sm:$0xf]  ;;  %v5480_v60 = vld [vmem:[%s8985_s0 + $0x15c] sm:$0xf] }
 0x102   :  { %v3326_v5 = vshrl.u32 %v5475_v43, 16  ;;  %v3296_v3 = vrot.slane %v3295_v51, 4  ;;  %v3318_v22 = vrot.slane %v3316_v16, 5  ;;  %v3332_v23 = vshll.u32 %v5476_v56, 16  ;;  %v5848_v28 = vpop.f32.mrf.mxu0  ;;  %v7579_v30 = vpop.f32.mrf.mxu1 }
 0x103   :  { %v3324_v61 = vrot.slane %v3322_v2, 5  ;;  %6068 = vmatmul.mubr.msk.bf16.gmra.mxu1 %vm988_vm3, %v5520_v59  ;;  %v3306_v40 = vrot.slane %v3305_v17, 4  ;;  %v7583_v32 = vadd.f32 %v7476_v8, %v5844_v13  ;;  %v7586_v33 = vadd.f32 %v7489_v19, %v1190_v25  ;;  %v6476_v8 = vld [vmem:[%s8985_s0 + $0x15c] sm:$0xff]   ;;  %v5479_v19 = vld [vmem:[%s8985_s0 + $0x158] sm:$0x1] }
 0x104   :  { %v3328_v18 = vrot.slane %v3326_v5, 4  ;;  %v3301_v34 = vsel %vm6534_vm4, %v3296_v3, %v3300_v46  ;;  %v3319_v11 = vor.u32 %v3318_v22, %v3315_v10  ;;  %v3334_v39 = vrot.slane %v3332_v23, 5  ;;  %v1206_v13 = vpop.f32.mrf.mxu0  ;;  %v7602_v25 = vpop.f32.mrf.mxu1  ;;  %v5482_v23 = vld [vmem:[%s8985_s0 + $0x164] sm:$0x1] }
 0x105   :  { %v7594_v42 = vadd.f32 %v7512_v44, %v5847_v49  ;;  %v3311_v43 = vsel %vm6534_vm4, %v3306_v40, %v3310_v55  ;;  %v3337_v45 = vshrl.u32 %v5477_v21, 16  ;;  %v3340_v46 = vshll.u32 %v5477_v21, 16  ;;  %v6477_v44 = vld [vmem:[%s8985_s0 + $0x168] sm:$0xff]   ;;  %v5481_v55 = vld [vmem:[%s8985_s0 + $0x160] sm:$0xf] }
 0x106   :  { %v3329_v58 = vor.u32 %v3328_v18, %v3324_v61  ;;  %v5521_v49 = vcombine.low %v3301_v34, %v3311_v43  ;;  %v3320_v50 = vrot.slane %v3319_v11, 4  ;;  %v3346_v52 = vshll.u32 %v5478_v37, 16 }
 0x107   :  { %v3350_v56 = vshrl.u32 %v5478_v37, 16  ;;  %v3339_v51 = vrot.slane %v3337_v45, 4  ;;  %v3342_v16 = vrot.slane %v3340_v46, 5  ;;  %v3356_v2 = vshll.u32 %v5479_v19, 16  ;;  %v5851_v59 = vpop.f32.mrf.mxu0  ;;  %v7615_v17 = vpop.f32.mrf.mxu1 }
 0x108   :  { %v3330_v62 = vrot.slane %v3329_v58, 4  ;;  %6071 = vmatprep.mubr.msk.bf16.mxu1 %vm988_vm3, %v5521_v49  ;;  %v3325_v10 = vsel %vm6534_vm4, %v3320_v50, %v3324_v61  ;;  %6010 = vmatmul.mubr.msk.bf16.gmra.mxu0 %vm988_vm3, %v6476_v8  ;;  %v3348_v5 = vrot.slane %v3346_v52, 5  ;;  %v7622_v22 = vadd.f32 %v7516_v54, %v1203_v9 }
 0x109   :  { %v3352_v3 = vrot.slane %v3350_v56, 4  ;;  %v3343_v40 = vor.u32 %v3342_v16, %v3339_v51  ;;  %v3358_v18 = vrot.slane %v3356_v2, 5  ;;  %v3361_v37 = vshrl.u32 %v5480_v60, 16  ;;  %6013 = vmatprep.mubr.msk.bf16.mxu0 %vm988_vm3, %v6477_v44  ;;  %v1219_v61 = vpop.f32.mrf.mxu0  ;;  %v7630_v34 = vpop.f32.mrf.mxu1 }
 0x10a   :  { %v3335_v21 = vsel %vm6534_vm4, %v3330_v62, %v3334_v39  ;;  %v3364_v19 = vshll.u32 %v5480_v60, 16  ;;  %v3370_v54 = vshll.u32 %v5481_v55, 16  ;;  %v3374_v58 = vshrl.u32 %v5481_v55, 16  ;;  %v5483_v39 = vld [vmem:[%s8985_s0 + $0x168] sm:$0xf]  ;;  %v6478_v60 = vld [vmem:[%s8985_s0 + $0x174] sm:$0xff]  }
 0x10b   :  { %v5522_v11 = vcombine.low %v3325_v10, %v3335_v21  ;;  %v3353_v8 = vor.u32 %v3352_v3, %v3348_v5  ;;  %v3344_v9 = vrot.slane %v3343_v40, 4  ;;  %v3363_v43 = vrot.slane %v3361_v37, 4  ;;  %v7635_v46 = vpop.f32.mrf.mxu0  ;;  %v7637_v49 = vpop.f32.mrf.mxu1  ;;  %v5484_v62 = vld [vmem:[%s8985_s0 + $0x16c] sm:$0xf]  ;;  %v6479_v10 = vld [vmem:[%s8985_s0 + $0x180] sm:$0xff]  }
 0x10c   :  { %v3380_v45 = vshll.u32 %v5482_v23, 16  ;;  %v3366_v50 = vrot.slane %v3364_v19, 5  ;;  %v3372_v52 = vrot.slane %v3370_v54, 5  ;;  %v7641_v56 = vadd.f32 %v7530_v27, %v5848_v28  ;;  %v5485_v27 = vld [vmem:[%s8985_s0 + $0x170] sm:$0x1] }
 0x10d   :  { %6072 = vmatmul.mubr.msk.bf16.gmra.mxu1 %vm988_vm3, %v5522_v11  ;;  %v3354_v44 = vrot.slane %v3353_v8, 4  ;;  %v3349_v51 = vsel %vm6534_vm4, %v3344_v9, %v3348_v5  ;;  %v3376_v16 = vrot.slane %v3374_v58, 4  ;;  %v7652_v55 = vadd.f32 %v7545_v26, %v1206_v13  ;;  %v1222_v28 = vpop.f32.mrf.mxu0  ;;  %v7660_v3 = vpop.f32.mrf.mxu1  ;;  %v5486_v8 = vld [vmem:[%s8985_s0 + $0x174] sm:$0xf] }
 0x10e   :  { %v3382_v2 = vrot.slane %v3380_v45, 5  ;;  %v3367_v5 = vor.u32 %v3366_v50, %v3363_v43  ;;  %v7665_v21 = vadd.f32 %v7563_v53, %v5851_v59  ;;  %v3385_v26 = vshrl.u32 %v5483_v39, 16  ;;  %v5487_v53 = vld [vmem:[%s8985_s0 + $0x178] sm:$0xf] }
 0x10f   :  { %9084 = vst [vmem:[#allocation2_spill] sm:$0xff] %v7652_v55  ;;  %v3359_v23 = vsel %vm6534_vm4, %v3354_v44, %v3358_v18  ;;  %v3377_v40 = vor.u32 %v3376_v16, %v3372_v52  ;;  %v3388_v37 = vshll.u32 %v5483_v39, 16  ;;  %v3394_v11 = vshll.u32 %v5484_v62, 16 }
 0x110   :  { %9085 = vst [vmem:[#allocation3_spill] sm:$0xff] %v7665_v21  ;;  %v5523_v13 = vcombine.low %v3349_v51, %v3359_v23  ;;  %v3368_v19 = vrot.slane %v3367_v5, 4  ;;  %6014 = vmatmul.mubr.msk.bf16.gmra.mxu0 %vm988_vm3, %v6478_v60  ;;  %v3387_v54 = vrot.slane %v3385_v26, 4  ;;  %v3398_v9 = vshrl.u32 %v5484_v62, 16  ;;  %v5855_v59 = vpop.f32.mrf.mxu0  ;;  %v7674_v18 = vpop.f32.mrf.mxu1  ;;  %v5488_v51 = vld [vmem:[%s8985_s0 + $0x17c] sm:$0x1] }
 0x111   :  { %v3404_v58 = vshll.u32 %v5485_v27, 16  ;;  %v3378_v43 = vrot.slane %v3377_v40, 4  ;;  %v3390_v45 = vrot.slane %v3388_v37, 5  ;;  %v3396_v39 = vrot.slane %v3394_v11, 5  ;;  %6017 = vmatprep.mubr.msk.bf16.mxu0 %vm988_vm3, %v6479_v10  ;;  %v6480_v37 = vld [vmem:[%s8985_s0 + $0x18c] sm:$0xff]  }
 0x112   :  { %6075 = vmatprep.mubr.msk.bf16.mxu1 %vm988_vm3, %v5523_v13  ;;  %v7678_v44 = vadd.f32 %v7573_v14, %v1219_v61  ;;  %v3373_v50 = vsel %vm6534_vm4, %v3368_v19, %v3372_v52  ;;  %v3400_v60 = vrot.slane %v3398_v9, 4  ;;  %v3409_v16 = vshrl.u32 %v5486_v8, 16  ;;  %v1235_v27 = vpop.f32.mrf.mxu0  ;;  %v7686_v23 = vpop.f32.mrf.mxu1 }
 0x113   :  { %v3406_v62 = vrot.slane %v3404_v58, 5  ;;  %v3383_v5 = vsel %vm6534_vm4, %v3378_v43, %v3382_v2  ;;  %v3391_v14 = vor.u32 %v3390_v45, %v3387_v54  ;;  %v3412_v61 = vshll.u32 %v5486_v8, 16  ;;  %v5489_v2 = vld [vmem:[%s8985_s0 + $0x180] sm:$0xf]  ;;  %v5490_v45 = vld [vmem:[%s8985_s0 + $0x184] sm:$0xf] }
 0x114   :  { %9086 = vst [vmem:[#allocation4_spill] sm:$0xff] %v7678_v44  ;;  %v3418_v26 = vshll.u32 %v5487_v53, 16  ;;  %v5524_v10 = vcombine.low %v3373_v50, %v3383_v5  ;;  %v3401_v13 = vor.u32 %v3400_v60, %v3396_v39  ;;  %v3411_v40 = vrot.slane %v3409_v16, 4  ;;  %v7693_v11 = vpop.f32.mrf.mxu0  ;;  %v7695_v19 = vpop.f32.mrf.mxu1 }
 0x115   :  { %v3422_v52 = vshrl.u32 %v5487_v53, 16  ;;  %v3392_v9 = vrot.slane %v3391_v14, 4  ;;  %v3414_v58 = vrot.slane %v3412_v61, 5  ;;  %v3428_v21 = vshll.u32 %v5488_v51, 16 }
 0x116   :  { %v3420_v44 = vrot.slane %v3418_v26, 5  ;;  %6076 = vmatmul.mubr.msk.bf16.gmra.mxu1 %vm988_vm3, %v5524_v10  ;;  %v3402_v8 = vrot.slane %v3401_v13, 4  ;;  %v7703_v53 = vadd.f32 %v7579_v30, %v7635_v46  ;;  %v7706_v43 = vadd.f32 %v7602_v25, %v1222_v28  ;;  %v1238_v50 = vpop.f32.mrf.mxu0  ;;  %v7711_v60 = vpop.f32.mrf.mxu1  ;;  %v5491_v30 = vld [vmem:[%s8985_s0 + $0x188] sm:$0x1] }
 0x117   :  { %v3424_v54 = vrot.slane %v3422_v52, 4  ;;  %v3397_v51 = vsel %vm6534_vm4, %v3392_v9, %v3396_v39  ;;  %v3415_v16 = vor.u32 %v3414_v58, %v3411_v40  ;;  %v3430_v5 = vrot.slane %v3428_v21, 5 }
 0x118   :  { %9087 = vst [vmem:[#allocation5_spill] sm:$0xff] %v7703_v53  ;;  %9088 = vst [vmem:[#allocation6_spill] sm:$0xff] %v7706_v43  ;;  %v7716_v14 = vadd.f32 %v7615_v17, %v5855_v59  ;;  %v3407_v25 = vsel %vm6534_vm4, %v3402_v8, %v3406_v62  ;;  %6018 = vmatmul.mubr.msk.bf16.gmra.mxu0 %vm988_vm3, %v6480_v37  ;;  %v3433_v28 = vshrl.u32 %v5489_v2, 16  ;;  %v3436_v61 = vshll.u32 %v5489_v2, 16  ;;  %v5492_v17 = vld [vmem:[%s8985_s0 + $0x18c] sm:$0xf] }
 0x119   :  { %v3425_v46 = vor.u32 %v3424_v54, %v3420_v44  ;;  %v5525_v26 = vcombine.low %v3397_v51, %v3407_v25  ;;  %v3416_v10 = vrot.slane %v3415_v16, 4  ;;  %v3442_v39 = vshll.u32 %v5490_v45, 16  ;;  %v5859_v21 = vpop.f32.mrf.mxu0  ;;  %v5929_v59 = vpop.f32.mrf.mxu1  ;;  %v5493_v62 = vld [vmem:[%s8985_s0 + $0x190] sm:$0xf] }
 0x11a   :  { %9089 = vst [vmem:[#allocation7_spill] sm:$0xff] %v7716_v14  ;;  %v3446_v13 = vshrl.u32 %v5490_v45, 16  ;;  %v3435_v52 = vrot.slane %v3433_v28, 4  ;;  %v3438_v9 = vrot.slane %v3436_v61, 5  ;;  %v3452_v58 = vshll.u32 %v5491_v30, 16 }
 0x11b   :  { %v3426_v40 = vrot.slane %v3425_v46, 4  ;;  %6079 = vmatprep.mubr.msk.bf16.mxu1 %vm988_vm3, %v5525_v26  ;;  %v3421_v37 = vsel %vm6534_vm4, %v3416_v10, %v3420_v44  ;;  %v3444_v2 = vrot.slane %v3442_v39, 5  ;;  %v7734_v54 = vadd.f32 %v7630_v34, %v1235_v27  ;;  %v5494_v45 = vld [vmem:[%s8985_s0 + $0x194] sm:$0x1]  ;;  %v1251_v51 = vpop.f32.mrf.mxu0  ;;  %v1820_v16 = vpop.f32.mrf.mxu1 }
 0x11c   :  { %v3448_v8 = vrot.slane %v3446_v13, 4  ;;  %v3439_v25 = vor.u32 %v3438_v9, %v3435_v52  ;;  %v3454_v46 = vrot.slane %v3452_v58, 5  ;;  %v3457_v28 = vshrl.u32 %v5492_v17, 16 }
 0x11d   :  { %9090 = vst [vmem:[#allocation8_spill] sm:$0xff] %v7734_v54  ;;  %v3431_v30 = vsel %vm6534_vm4, %v3426_v40, %v3430_v5  ;;  %v3460_v44 = vshll.u32 %v5492_v17, 16  ;;  %v3466_v10 = vshll.u32 %v5493_v62, 16  ;;  %v5860_v39 = vpop.f32.mrf.mxu0  ;;  %v5930_v13 = vpop.f32.mrf.mxu1  ;;  %v3470_v54 = vshrl.u32 %v5493_v62, 16 }
 0x11e   :  { %v5526_v61 = vcombine.low %v3421_v37, %v3431_v30  ;;  %v3449_v26 = vor.u32 %v3448_v8, %v3444_v2  ;;  %v3440_v34 = vrot.slane %v3439_v25, 4  ;;  %v3459_v27 = vrot.slane %v3457_v28, 4 }
 0x11f   :  { %v3476_v14 = vshll.u32 %v5494_v45, 16  ;;  %v3462_v53 = vrot.slane %v3460_v44, 5  ;;  %v3468_v55 = vrot.slane %v3466_v10, 5  ;;  %v7744_v5 = vadd.f32 %v7637_v49, %v7693_v11  ;;  %v1254_v40 = vpop.f32.mrf.mxu0  ;;  %v1823_v52 = vpop.f32.mrf.mxu1 }
 0x120   :  { %6080 = vmatmul.mubr.msk.bf16.gmra.mxu1 %vm988_vm3, %v5526_v61  ;;  %v3450_v43 = vrot.slane %v3449_v26, 4  ;;  %v3445_v17 = vsel %vm6534_vm4, %v3440_v34, %v3444_v2  ;;  %v3472_v9 = vrot.slane %v3470_v54, 4  ;;  %v7749_v37 = vadd.f32 %v7660_v3, %v1238_v50 }
 0x121   :  { %v3478_v58 = vrot.slane %v3476_v14, 5  ;;  %v3463_v8 = vor.u32 %v3462_v53, %v3459_v27  ;;  %v7754_v45 = vadd.f32 %v7674_v18, %v5859_v21  ;;  %v7757_v49 = vadd.f32 %v7686_v23, %v1251_v51 }
 0x122   :  { %v3455_v62 = vsel %vm6534_vm4, %v3450_v43, %v3454_v46  ;;  %v3473_v30 = vor.u32 %v3472_v9, %v3468_v55  ;;  %v7760_v25 = vadd.f32 %v7695_v19, %v5860_v39  ;;  %v7763_v14 = vadd.f32 %v7711_v60, %v1254_v40  ;;  %v5863_v3 = vpop.f32.mrf.mxu0  ;;  %v5933_v50 = vpop.f32.mrf.mxu1 }
 0x123   :  { %v5527_v11 = vcombine.low %v3445_v17, %v3455_v62  ;;  %v3464_v2 = vrot.slane %v3463_v8, 4  ;;  %v7765_v54 = vadd.f32 %v5929_v59, %v5863_v3  ;;  %vm5067_vm5 = vcmask 257024  }
 0x124   :  { %v3474_v18 = vrot.slane %v3473_v30, 4  ;;  %v1267_v53 = vpop.f32.mrf.mxu0  ;;  %v1836_v43 = vpop.f32.mrf.mxu1 }
 0x125   :  { %6083 = vmatprep.mubr.msk.bf16.mxu1 %vm988_vm3, %v5527_v11  ;;  %v3469_v23 = vsel %vm6534_vm4, %v3464_v2, %v3468_v55  ;;  %v7770_v21 = vadd.f32 %v1820_v16, %v1267_v53 }
 0x126   :  { %v3479_v19 = vsel %vm6534_vm4, %v3474_v18, %v3478_v58  ;;  %v5864_v60 = vpop.f32.mrf.mxu0  ;;  %v5934_v51 = vpop.f32.mrf.mxu1 }
 0x127   :  { %v5528_v46 = vcombine.low %v3469_v23, %v3479_v19  ;;  %v7774_v28 = vadd.f32 %v5930_v13, %v5864_v60 }
 0x128   :  { %v1270_v59 = vpop.f32.mrf.mxu0  ;;  %v1839_v61 = vpop.f32.mrf.mxu1 }
 0x129   :  { %6084 = vmatmul.mubr.msk.bf16.gmra.mxu1 %vm988_vm3, %v5528_v46  ;;  %v7777_v26 = vadd.f32 %v1823_v52, %v1270_v59 }
 0x12b   :  { %v5867_v44 = vpop.f32.mrf.mxu0  ;;  %v5937_v10 = vpop.f32.mrf.mxu1 }
 0x12c   :  { %v7779_v39 = vadd.f32 %v5933_v50, %v5867_v44 }
 0x12d   :  { %v1283_v55 = vpop.f32.mrf.mxu0  ;;  %v1852_v16 = vpop.f32.mrf.mxu1 }
 0x12e   :  { %v7781_v34 = vadd.f32 %v1836_v43, %v1283_v55 }
 0x12f   :  { %v5868_v31 = vpop.f32.mrf.mxu0  ;;  %v5938_v27 = vpop.f32.mrf.mxu1 }
 0x130   :  { %v7783_v40 = vadd.f32 %v5934_v51, %v5868_v31 }
 0x131   :  { %v1286_v13 = vpop.f32.mrf.mxu0  ;;  %v1855_v17 = vpop.f32.mrf.mxu1 }
 0x132   :  { %v7785_v9 = vadd.f32 %v1839_v61, %v1286_v13 }
 0x134   :  { %v5871_v58 = vpop.f32.mrf.mxu0  ;;  %v5941_v62 = vpop.f32.mrf.mxu1 }
 0x135   :  { %v7787_v52 = vadd.f32 %v5937_v10, %v5871_v58 }
 0x136   :  { %v1299_v8 = vpop.f32.mrf.mxu0  ;;  %v1868_v11 = vpop.f32.mrf.mxu1 }
 0x137   :  { %v7789_v30 = vadd.f32 %v1852_v16, %v1299_v8 }
 0x138   :  { %v5872_v3 = vpop.f32.mrf.mxu0  ;;  %v5942_v50 = vpop.f32.mrf.mxu1 }
 0x139   :  { %v7791_v2 = vadd.f32 %v5938_v27, %v5872_v3 }
 0x13a   :  { %v1302_v18 = vpop.f32.mrf.mxu0  ;;  %v1871_v53 = vpop.f32.mrf.mxu1 }
 0x13b   :  { %v7793_v43 = vadd.f32 %v1855_v17, %v1302_v18 }
 0x13d   :  { %v5875_v23 = vpop.f32.mrf.mxu0  ;;  %v5945_v19 = vpop.f32.mrf.mxu1 }
 0x13e   :  { %v7795_v60 = vadd.f32 %v5941_v62, %v5875_v23 }
 0x13f   :  { %v1315_v51 = vpop.f32.mrf.mxu0  ;;  %v1884_v46 = vpop.f32.mrf.mxu1 }
 0x140   :  { %v7797_v59 = vadd.f32 %v1868_v11, %v1315_v51 }
 0x141   :  { %v5876_v61 = vpop.f32.mrf.mxu0  ;;  %v5946_v44 = vpop.f32.mrf.mxu1 }
 0x142   :  { %v7799_v10 = vadd.f32 %v5942_v50, %v5876_v61 }
 0x143   :  { %v1318_v55 = vpop.f32.mrf.mxu0  ;;  %v1887_v16 = vpop.f32.mrf.mxu1 }
 0x144   :  { %9091 = vst [vmem:[#allocation9_spill] sm:$0xff] %v7799_v10  ;;  %v7801_v31 = vadd.f32 %v1871_v53, %v1318_v55 }
 0x146   :  { %v5879_v27 = vpop.f32.mrf.mxu0  ;;  %v5949_v13 = vpop.f32.mrf.mxu1 }
 0x147   :  { %v7803_v17 = vadd.f32 %v5945_v19, %v5879_v27 }
 0x148   :  { %v1331_v58 = vpop.f32.mrf.mxu0  ;;  %v1900_v8 = vpop.f32.mrf.mxu1 }
 0x149   :  { %9092 = vst [vmem:[#allocation10_spill] sm:$0xff] %v7803_v17  ;;  %v7805_v62 = vadd.f32 %v1884_v46, %v1331_v58 }
 0x14a   :  { %v5880_v3 = vpop.f32.mrf.mxu0  ;;  %v5950_v18 = vpop.f32.mrf.mxu1 }
 0x14b   :  { %9093 = vst [vmem:[#allocation11_spill] sm:$0xff] %v7805_v62  ;;  %v7807_v11 = vadd.f32 %v5946_v44, %v5880_v3 }
 0x14c   :  { %v1334_v23 = vpop.f32.mrf.mxu0  ;;  %v1903_v50 = vpop.f32.mrf.mxu1 }
 0x14d   :  { %v7809_v51 = vadd.f32 %v1887_v16, %v1334_v23 }
 0x14f   :  { %9094 = vst [vmem:[#allocation12_spill] sm:$0xff] %v7809_v51  ;;  %v5883_v61 = vpop.f32.mrf.mxu0  ;;  %v5953_v19 = vpop.f32.mrf.mxu1 }
 0x150   :  { %v7811_v10 = vadd.f32 %v5949_v13, %v5883_v61 }
 0x151   :  { %v1347_v53 = vpop.f32.mrf.mxu0  ;;  %v1916_v62 = vpop.f32.mrf.mxu1 }
 0x152   :  { %v7813_v55 = vadd.f32 %v1900_v8, %v1347_v53 }
 0x153   :  { %v5884_v27 = vpop.f32.mrf.mxu0  ;;  %v5954_v16 = vpop.f32.mrf.mxu1 }
 0x154   :  { %9095 = vst [vmem:[#allocation13_spill] sm:$0xff] %v7813_v55  ;;  %v7815_v17 = vadd.f32 %v5950_v18, %v5884_v27 }
 0x155   :  { %v1350_v46 = vpop.f32.mrf.mxu0  ;;  %v1919_v8 = vpop.f32.mrf.mxu1 }
 0x156   :  { %9096 = vst [vmem:[#allocation14_spill] sm:$0xff] %v7815_v17  ;;  %v7817_v58 = vadd.f32 %v1903_v50, %v1350_v46 }
 0x158   :  { %9097 = vst [vmem:[#allocation15_spill] sm:$0xff] %v7817_v58  ;;  %v5887_v44 = vpop.f32.mrf.mxu0 }
 0x159   :  { %v7819_v3 = vadd.f32 %v5953_v19, %v5887_v44 }
 0x15a   :  { %v1363_v23 = vpop.f32.mrf.mxu0 }
 0x15b   :  { %v7821_v51 = vadd.f32 %v1916_v62, %v1363_v23  ;;  %v7832_v62 = vld [vmem:[%s8986_s2] ss:$0 sm:$0xff]  ;;  %s6481_s2 = smov 96  }
 0x15c   :  { %v5888_v13 = vpop.f32.mrf.mxu0 }
 0x15d   :  { %9098 = vst [vmem:[#allocation16_spill] sm:$0xff] %v7821_v51  ;;  %v7823_v61 = vadd.f32 %v5954_v16, %v5888_v13 }
 0x15e   :  { %v1366_v53 = vpop.f32.mrf.mxu0 }
 0x15f   :  { %9099 = vst [vmem:[#allocation17_spill] sm:$0xff] %v7823_v61  ;;  %v7825_v55 = vadd.f32 %v1919_v8, %v1366_v53 }
 0x160   :  { %v5959_v18 = vpop.f32.mrf.mxu0 }
 0x161   :  { %9100 = vst [vmem:[#allocation18_spill] sm:$0xff] %v7825_v55  ;;  %v2554_v27 = vadd.f32 %v5959_v18, %v7305_v7 }
 0x162   :  { %v6025_v50 = vpop.f32.mrf.mxu1  ;;  %v2297_v46 = vpop.f32.mrf.mxu0 }
 0x163   :  { %v3974_v17 = vadd.f32 %v6025_v50, %v2554_v27  ;;  %v2552_v19 = vadd.f32 %v2297_v46, %v7335_v41 }
 0x164   :  { %v3717_v58 = vpop.f32.mrf.mxu1  ;;  %v5960_v44 = vpop.f32.mrf.mxu0 }
 0x165   :  { %v2555_v16 = vadd.f32 %v5960_v44, %v7362_v4  ;;  %v3972_v7 = vadd.f32 %v3717_v58, %v2552_v19  ;;  %v7837_v27 = vadd.f32 %v7832_v62, %v3974_v17 }
 0x166   :  { %v6026_v23 = vpop.f32.mrf.mxu1  ;;  %v2300_v13 = vpop.f32.mrf.mxu0 }
 0x167   :  { %v3975_v8 = vadd.f32 %v6026_v23, %v2555_v16  ;;  %v2553_v53 = vadd.f32 %v2300_v13, %v7365_v6  ;;  %v7849_v19 = vadd.f32 %v7832_v62, %v3972_v7 }
 0x168   :  { %v3720_v18 = vpop.f32.mrf.mxu1  ;;  %v5963_v55 = vpop.f32.mrf.mxu0 }
 0x169   :  { %v3973_v41 = vadd.f32 %v3720_v18, %v2553_v53  ;;  %v2558_v50 = vadd.f32 %v5963_v55, %v7373_v15  ;;  %v7841_v46 = vadd.f32 %v7832_v62, %v3975_v8  ;;  %v8988_v15 = vmax.f32 %v7837_v27, 0.0 }
 0x16a   :  { %v2313_v61 = vpop.f32.mrf.mxu0  ;;  %v8990_v18 = vmax.f32 %v7849_v19, 0.0 }
 0x16b   :  { %v6029_v51 = vpop.f32.mrf.mxu1  ;;  %v7844_v4 = vadd.f32 %v7832_v62, %v3973_v41  ;;  %v2556_v44 = vadd.f32 %v2313_v61, %v7384_v24  ;;  %v8989_v58 = vmax.f32 %v7841_v46, 0.0 }
 0x16c   :  { %v3978_v6 = vadd.f32 %v6029_v51, %v2558_v50  ;;  %v5964_v17 = vpop.f32.mrf.mxu0 }
 0x16d   :  { %v3733_v16 = vpop.f32.mrf.mxu1  ;;  %v2559_v55 = vadd.f32 %v5964_v17, %v7411_v57  ;;  %v8991_v23 = vmax.f32 %v7844_v4, 0.0  ;;  %v6093_v24 = vpack.i.bf16 %v8989_v58, %v8988_v15 }
 0x16e   :  { %v2316_v13 = vpop.f32.mrf.mxu0  ;;  %v7859_v51 = vadd.f32 %v7832_v62, %v3978_v6  ;;  %v3976_v61 = vadd.f32 %v3733_v16, %v2556_v44 }
 0x16f   :  { %v6030_v8 = vpop.f32.mrf.mxu1  ;;  %v2557_v53 = vadd.f32 %v2316_v13, %v7414_v0  ;;  %6094 = vrot.lane.b32.xlu0 %v6093_v24, %s6481_s2  ;;  %v6098_v0 = vpack.i.bf16 %v8991_v23, %v8990_v18 }
 0x170   :  { %v3979_v7 = vadd.f32 %v6030_v8, %v2559_v55  ;;  %v5967_v57 = vpop.f32.mrf.mxu0  ;;  %v8992_v44 = vmax.f32 %v7859_v51, 0.0  ;;  %v7874_v6 = vadd.f32 %v7832_v62, %v3976_v61 }
 0x171   :  { %v3736_v41 = vpop.f32.mrf.mxu1  ;;  %v2562_v15 = vadd.f32 %v5967_v57, %v7430_v36 }
 0x172   :  { %v7865_v50 = vadd.f32 %v7832_v62, %v3979_v7  ;;  %v3977_v17 = vadd.f32 %v3736_v41, %v2557_v53  ;;  %v2329_v58 = vpop.f32.mrf.mxu0 }
 0x173   :  { %v2560_v13 = vadd.f32 %v2329_v58, %v7448_v29  ;;  %6099 = vrot.lane.b32.xlu0 %v6098_v0, %s6481_s2 }
 0x174   :  { %v9003_v16 = vmax.f32 %v7865_v50, 0.0  ;;  %v7878_v55 = vadd.f32 %v7832_v62, %v3977_v17  ;;  %v6033_v8 = vpop.f32.mrf.mxu1  ;;  %v5968_v36 = vpop.f32.mrf.mxu0  ;;  %v8993_v17 = vmax.f32 %v7874_v6, 0.0 }
 0x175   :  { %v2563_v53 = vadd.f32 %v5968_v36, %v7468_v63  ;;  %v3982_v7 = vadd.f32 %v6033_v8, %v2562_v15 }
 0x176   :  { %v8994_v24 = vmax.f32 %v7878_v55, 0.0  ;;  %v6103_v61 = vpack.i.bf16 %v9003_v16, %v8992_v44  ;;  %v3749_v57 = vpop.f32.mrf.mxu1  ;;  %v2332_v41 = vpop.f32.mrf.mxu0 }
 0x177   :  { %v2561_v29 = vadd.f32 %v2332_v41, %v7471_v1  ;;  %v3980_v58 = vadd.f32 %v3749_v57, %v2560_v13  ;;  %v7896_v36 = vadd.f32 %v7832_v62, %v3982_v7 }
 0x178   :  { %6104 = vrot.lane.b32.xlu1 %v6103_v61, %s6481_s2  ;;  %v6034_v0 = vpop.f32.mrf.mxu1  ;;  %v5971_v18 = vpop.f32.mrf.mxu0  ;;  %v6108_v63 = vpack.i.bf16 %v8994_v24, %v8993_v17 }
 0x179   :  { %v3983_v23 = vadd.f32 %v6034_v0, %v2563_v53  ;;  %v2566_v15 = vadd.f32 %v5971_v18, %v7482_v12  ;;  %v7904_v13 = vadd.f32 %v7832_v62, %v3980_v58 }
 0x17a   :  { %v3752_v8 = vpop.f32.mrf.mxu1  ;;  %v2345_v44 = vpop.f32.mrf.mxu0 }
 0x17b   :  { %v7900_v1 = vadd.f32 %v7832_v62, %v3983_v23  ;;  %v3981_v61 = vadd.f32 %v3752_v8, %v2561_v29  ;;  %v2564_v53 = vadd.f32 %v2345_v44, %v7504_v35  ;;  %v8997_v23 = vmax.f32 %v7896_v36, 0.0 }
 0x17c   :  { %6109 = vrot.lane.b32.xlu1 %v6108_v63, %s6481_s2  ;;  %v6037_v57 = vpop.f32.mrf.mxu1  ;;  %v5972_v41 = vpop.f32.mrf.mxu0  ;;  %v8995_v35 = vmax.f32 %v7904_v13, 0.0 }
 0x17d   :  { %v8998_v7 = vmax.f32 %v7900_v1, 0.0  ;;  %v7909_v0 = vadd.f32 %v7832_v62, %v3981_v61  ;;  %v2567_v12 = vadd.f32 %v5972_v41, %v7524_v20  ;;  %v3986_v18 = vadd.f32 %v6037_v57, %v2566_v15 }
 0x17e   :  { %v3765_v29 = vpop.f32.mrf.mxu1  ;;  %v2348_v8 = vpop.f32.mrf.mxu0 }
 0x17f   :  { %v8996_v63 = vmax.f32 %v7909_v0, 0.0  ;;  %v2565_v58 = vadd.f32 %v2348_v8, %v7535_v38  ;;  %v3984_v44 = vadd.f32 %v3765_v29, %v2564_v53  ;;  %v6113_v61 = vpack.i.bf16 %v8998_v7, %v8997_v23 }
 0x180   :  { %v6038_v17 = vpop.f32.mrf.mxu1  ;;  %v5975_v24 = vpop.f32.mrf.mxu0  ;;  %v7921_v41 = vadd.f32 %v7832_v62, %v3986_v18 }
 0x181   :  { %v3987_v20 = vadd.f32 %v6038_v17, %v2567_v12  ;;  %6114 = vrot.lane.b32.xlu1 %v6113_v61, %s6481_s2  ;;  %v2570_v15 = vadd.f32 %v5975_v24, %v7543_v47  ;;  %v6118_v38 = vpack.i.bf16 %v8996_v63, %v8995_v35  ;;  %v7933_v17 = vadd.f32 %v7832_v62, %v3984_v44 }
 0x182   :  { %v3768_v57 = vpop.f32.mrf.mxu1  ;;  %v2361_v53 = vpop.f32.mrf.mxu0 }
 0x183   :  { %v7930_v29 = vadd.f32 %v7832_v62, %v3987_v20  ;;  %v3985_v8 = vadd.f32 %v3768_v57, %v2565_v58  ;;  %9101 = vst [vmem:[#allocation19_spill] sm:$0xff] %v7933_v17  ;;  %6119 = vrot.lane.b32.xlu0 %v6118_v38, %s6481_s2  ;;  %v2568_v12 = vadd.f32 %v2361_v53, %v7561_v48  ;;  %v9001_v20 = vmax.f32 %v7921_v41, 0.0 }
 0x184   :  { %v6041_v18 = vpop.f32.mrf.mxu1  ;;  %v5976_v47 = vpop.f32.mrf.mxu0  ;;  %v8999_v48 = vmax.f32 %v7933_v17, 0.0 }
 0x185   :  { %v9002_v24 = vmax.f32 %v7930_v29, 0.0  ;;  %v7939_v61 = vadd.f32 %v7832_v62, %v3985_v8  ;;  %v2571_v35 = vadd.f32 %v5976_v47, %v7583_v32  ;;  %v3990_v63 = vadd.f32 %v6041_v18, %v2570_v15 }
 0x186   :  { %v3781_v58 = vpop.f32.mrf.mxu1  ;;  %v2364_v57 = vpop.f32.mrf.mxu0 }
 0x187   :  { %v9000_v44 = vmax.f32 %v7939_v61, 0.0  ;;  %v2569_v38 = vadd.f32 %v2364_v57, %v7586_v33  ;;  %v3988_v53 = vadd.f32 %v3781_v58, %v2568_v12  ;;  %v6123_v8 = vpack.i.bf16 %v9002_v24, %v9001_v20  ;;  %v9104_v20 = vld [vmem:[#allocation2_spill] sm:$0xff] }
 0x188   :  { %v6042_v23 = vpop.f32.mrf.mxu1  ;;  %v5979_v7 = vpop.f32.mrf.mxu0  ;;  %v7951_v47 = vadd.f32 %v7832_v62, %v3990_v63 }
 0x189   :  { %v3991_v32 = vadd.f32 %v6042_v23, %v2571_v35  ;;  %6124 = vrot.lane.b32.xlu1 %v6123_v8, %s6481_s2  ;;  %v2574_v15 = vadd.f32 %v5979_v7, %v7594_v42  ;;  %v6128_v33 = vpack.i.bf16 %v9000_v44, %v8999_v48  ;;  %v7963_v23 = vadd.f32 %v7832_v62, %v3988_v53 }
 0x18a   :  { %v3784_v18 = vpop.f32.mrf.mxu1  ;;  %v2377_v12 = vpop.f32.mrf.mxu0 }
 0x18b   :  { %v7960_v58 = vadd.f32 %v7832_v62, %v3991_v32  ;;  %v3989_v57 = vadd.f32 %v3784_v18, %v2569_v38  ;;  %9102 = vst [vmem:[#allocation20_spill] sm:$0xff] %v7963_v23  ;;  %6129 = vrot.lane.b32.xlu0 %v6128_v33, %s6481_s2  ;;  %v2572_v63 = vadd.f32 %v2377_v12, %v7622_v22  ;;  %v9005_v32 = vmax.f32 %v7951_v47, 0.0 }
 0x18c   :  { %v6045_v35 = vpop.f32.mrf.mxu1  ;;  %v5980_v42 = vpop.f32.mrf.mxu0  ;;  %v9006_v22 = vmax.f32 %v7963_v23, 0.0 }
 0x18d   :  { %v9008_v7 = vmax.f32 %v7960_v58, 0.0  ;;  %v7969_v8 = vadd.f32 %v7832_v62, %v3989_v57  ;;  %v2575_v48 = vadd.f32 %v5980_v42, %v7641_v56  ;;  %v3994_v44 = vadd.f32 %v6045_v35, %v2574_v15  ;;  %v9105_v42 = vld [vmem:[#allocation3_spill] sm:$0xff] }
 0x18e   :  { %v3797_v38 = vpop.f32.mrf.mxu1  ;;  %v2380_v18 = vpop.f32.mrf.mxu0 }
 0x18f   :  { %9103 = vst [vmem:[#allocation21_spill] sm:$0xff] %v7969_v8  ;;  %v9007_v53 = vmax.f32 %v7969_v8, 0.0  ;;  %v2573_v33 = vadd.f32 %v2380_v18, %v9104_v20  ;;  %v3992_v12 = vadd.f32 %v3797_v38, %v2572_v63  ;;  %v6133_v57 = vpack.i.bf16 %v9008_v7, %v9005_v32  ;;  %v9108_v32 = vld [vmem:[#allocation4_spill] sm:$0xff] }
 0x190   :  { %v6046_v24 = vpop.f32.mrf.mxu1  ;;  %v5983_v16 = vpop.f32.mrf.mxu0  ;;  %v7982_v15 = vadd.f32 %v7832_v62, %v3994_v44 }
 0x191   :  { %v3995_v56 = vadd.f32 %v6046_v24, %v2575_v48  ;;  %v2578_v17 = vadd.f32 %v5983_v16, %v9105_v42  ;;  %6134 = vrot.lane.b32.xlu1 %v6133_v57, %s6481_s2  ;;  %v6138_v20 = vpack.i.bf16 %v9007_v53, %v9006_v22  ;;  %v7994_v16 = vadd.f32 %v7832_v62, %v3992_v12  ;;  %v9111_v53 = vld [vmem:[#allocation5_spill] sm:$0xff] }
 0x192   :  { %9106 = vst [vmem:[#allocation2_spill] sm:$0xff] %v7982_v15  ;;  %v3800_v35 = vpop.f32.mrf.mxu1  ;;  %v2393_v63 = vpop.f32.mrf.mxu0 }
 0x193   :  { %v7990_v38 = vadd.f32 %v7832_v62, %v3995_v56  ;;  %v3993_v18 = vadd.f32 %v3800_v35, %v2573_v33  ;;  %v2576_v24 = vadd.f32 %v2393_v63, %v9108_v32  ;;  %9109 = vst [vmem:[#allocation4_spill] sm:$0xff] %v7994_v16  ;;  %6139 = vrot.lane.b32.xlu0 %v6138_v20, %s6481_s2  ;;  %v9011_v56 = vmax.f32 %v7982_v15, 0.0  ;;  %v9112_v63 = vld [vmem:[#allocation6_spill] sm:$0xff] }
 0x194   :  { %v6049_v44 = vpop.f32.mrf.mxu1  ;;  %v5984_v48 = vpop.f32.mrf.mxu0  ;;  %v9015_v20 = vmax.f32 %v7994_v16, 0.0  ;;  %v9114_v16 = vld [vmem:[#allocation8_spill] sm:$0xff] }
 0x195   :  { %9107 = vst [vmem:[#allocation3_spill] sm:$0xff] %v7990_v38  ;;  %v9012_v57 = vmax.f32 %v7990_v38, 0.0  ;;  %v7999_v42 = vadd.f32 %v7832_v62, %v3993_v18  ;;  %v3998_v22 = vadd.f32 %v6049_v44, %v2578_v17  ;;  %v2579_v7 = vadd.f32 %v5984_v48, %v9111_v53 }
 0x196   :  { %v3813_v33 = vpop.f32.mrf.mxu1  ;;  %v2396_v35 = vpop.f32.mrf.mxu0 }
 0x197   :  { %9110 = vst [vmem:[#allocation22_spill] sm:$0xff] %v7999_v42  ;;  %v9016_v32 = vmax.f32 %v7999_v42, 0.0  ;;  %v3996_v12 = vadd.f32 %v3813_v33, %v2576_v24  ;;  %v2577_v23 = vadd.f32 %v2396_v35, %v9112_v63  ;;  %v6143_v18 = vpack.i.bf16 %v9012_v57, %v9011_v56  ;;  %v9113_v56 = vld [vmem:[#allocation7_spill] sm:$0xff] }
 0x198   :  { %v6050_v8 = vpop.f32.mrf.mxu1  ;;  %v5987_v17 = vpop.f32.mrf.mxu0  ;;  %v8011_v53 = vadd.f32 %v7832_v62, %v3998_v22 }
 0x199   :  { %v3999_v44 = vadd.f32 %v6050_v8, %v2579_v7  ;;  %v8014_v48 = vadd.f32 %v7832_v62, %v3996_v12  ;;  %6144 = vrot.lane.b32.xlu1 %v6143_v18, %s6481_s2  ;;  %v6148_v33 = vpack.i.bf16 %v9016_v32, %v9015_v20  ;;  %v2582_v57 = vadd.f32 %v5987_v17, %v9113_v56 }
 0x19a   :  { %v3816_v24 = vpop.f32.mrf.mxu1  ;;  %v2409_v35 = vpop.f32.mrf.mxu0  ;;  %v9021_v8 = vmax.f32 %v8011_v53, 0.0 }
 0x19b   :  { %v8022_v63 = vadd.f32 %v7832_v62, %v3999_v44  ;;  %v3997_v22 = vadd.f32 %v3816_v24, %v2577_v23  ;;  %6149 = vrot.lane.b32.xlu0 %v6148_v33, %s6481_s2  ;;  %v2580_v42 = vadd.f32 %v2409_v35, %v9114_v16  ;;  %v9019_v20 = vmax.f32 %v8014_v48, 0.0 }
 0x19c   :  { %v5988_v7 = vpop.f32.mrf.mxu0 }
 0x19d   :  { %v9022_v12 = vmax.f32 %v8022_v63, 0.0  ;;  %v8029_v18 = vadd.f32 %v7832_v62, %v3997_v22  ;;  %v2583_v23 = vadd.f32 %v5988_v7, %v7744_v5 }
 0x19e   :  { %v6053_v32 = vpop.f32.mrf.mxu1  ;;  %v2412_v44 = vpop.f32.mrf.mxu0 }
 0x19f   :  { %v9020_v15 = vmax.f32 %v8029_v18, 0.0  ;;  %v4002_v56 = vadd.f32 %v6053_v32, %v2582_v57  ;;  %v6153_v17 = vpack.i.bf16 %v9022_v12, %v9021_v8  ;;  %v2581_v38 = vadd.f32 %v2412_v44, %v7749_v37 }
 0x1a0   :  { %v3829_v24 = vpop.f32.mrf.mxu1  ;;  %v5991_v33 = vpop.f32.mrf.mxu0 }
 0x1a1   :  { %v4000_v22 = vadd.f32 %v3829_v24, %v2580_v42  ;;  %6154 = vrot.lane.b32.xlu1 %v6153_v17, %s6481_s2  ;;  %v6158_v16 = vpack.i.bf16 %v9020_v15, %v9019_v20  ;;  %v8046_v57 = vadd.f32 %v7832_v62, %v4002_v56  ;;  %v2586_v7 = vadd.f32 %v5991_v33, %v7754_v45 }
 0x1a2   :  { %v6054_v5 = vpop.f32.mrf.mxu1  ;;  %v2425_v32 = vpop.f32.mrf.mxu0 }
 0x1a3   :  { %v4003_v35 = vadd.f32 %v6054_v5, %v2583_v23  ;;  %6159 = vrot.lane.b32.xlu0 %v6158_v16, %s6481_s2  ;;  %v8051_v42 = vadd.f32 %v7832_v62, %v4000_v22  ;;  %v2584_v20 = vadd.f32 %v2425_v32, %v7757_v49  ;;  %v9025_v56 = vmax.f32 %v8046_v57, 0.0 }
 0x1a4   :  { %v3832_v37 = vpop.f32.mrf.mxu1  ;;  %v5992_v44 = vpop.f32.mrf.mxu0 }
 0x1a5   :  { %9115 = vst [vmem:[#allocation5_spill] sm:$0xff] %v8051_v42  ;;  %v8054_v17 = vadd.f32 %v7832_v62, %v4003_v35  ;;  %v4001_v24 = vadd.f32 %v3832_v37, %v2581_v38  ;;  %v2587_v22 = vadd.f32 %v5992_v44, %v7760_v25  ;;  %v9023_v16 = vmax.f32 %v8051_v42, 0.0 }
 0x1a6   :  { %v6057_v15 = vpop.f32.mrf.mxu1  ;;  %v2428_v8 = vpop.f32.mrf.mxu0 }
 0x1a7   :  { %v9026_v23 = vmax.f32 %v8054_v17, 0.0  ;;  %v8060_v45 = vadd.f32 %v7832_v62, %v4001_v24  ;;  %v4006_v33 = vadd.f32 %v6057_v15, %v2586_v7  ;;  %v2585_v49 = vadd.f32 %v2428_v8, %v7763_v14 }
 0x1a8   :  { %v3845_v5 = vpop.f32.mrf.mxu1  ;;  %v5995_v35 = vpop.f32.mrf.mxu0 }
 0x1a9   :  { %v9024_v38 = vmax.f32 %v8060_v45, 0.0  ;;  %v4004_v37 = vadd.f32 %v3845_v5, %v2584_v20  ;;  %v6163_v32 = vpack.i.bf16 %v9026_v23, %v9025_v56  ;;  %v8071_v15 = vadd.f32 %v7832_v62, %v4006_v33 }
 0x1aa   :  { %v6058_v12 = vpop.f32.mrf.mxu1  ;;  %v2441_v24 = vpop.f32.mrf.mxu0  ;;  %v2590_v5 = vadd.f32 %v5995_v35, %v7765_v54 }
 0x1ab   :  { %v4007_v25 = vadd.f32 %v6058_v12, %v2587_v22  ;;  %6164 = vrot.lane.b32.xlu1 %v6163_v32, %s6481_s2  ;;  %v6168_v20 = vpack.i.bf16 %v9024_v38, %v9023_v16  ;;  %v8079_v14 = vadd.f32 %v7832_v62, %v4004_v37  ;;  %v9030_v22 = vmax.f32 %v8071_v15, 0.0 }
 0x1ac   :  { %v3848_v8 = vpop.f32.mrf.mxu1  ;;  %v5996_v7 = vpop.f32.mrf.mxu0  ;;  %v2588_v37 = vadd.f32 %v2441_v24, %v7770_v21 }
 0x1ad   :  { %v8082_v44 = vadd.f32 %v7832_v62, %v4007_v25  ;;  %v4005_v33 = vadd.f32 %v3848_v8, %v2585_v49  ;;  %6169 = vrot.lane.b32.xlu0 %v6168_v20, %s6481_s2  ;;  %v9028_v38 = vmax.f32 %v8079_v14, 0.0  ;;  %v2591_v35 = vadd.f32 %v5996_v7, %v7774_v28 }
 0x1ae   :  { %v2444_v12 = vpop.f32.mrf.mxu0 }
 0x1af   :  { %v9031_v32 = vmax.f32 %v8082_v44, 0.0  ;;  %v8089_v16 = vadd.f32 %v7832_v62, %v4005_v33  ;;  %v2589_v42 = vadd.f32 %v2444_v12, %v7777_v26 }
 0x1b0   :  { %v6061_v56 = vpop.f32.mrf.mxu1  ;;  %v5999_v25 = vpop.f32.mrf.mxu0 }
 0x1b1   :  { %v9029_v23 = vmax.f32 %v8089_v16, 0.0  ;;  %v4010_v54 = vadd.f32 %v6061_v56, %v2590_v5  ;;  %v6173_v49 = vpack.i.bf16 %v9031_v32, %v9030_v22  ;;  %v2594_v5 = vadd.f32 %v5999_v25, %v7779_v39 }
 0x1b2   :  { %v3861_v20 = vpop.f32.mrf.mxu1  ;;  %v2457_v8 = vpop.f32.mrf.mxu0 }
 0x1b3   :  { %v4008_v33 = vadd.f32 %v3861_v20, %v2588_v37  ;;  %6174 = vrot.lane.b32.xlu1 %v6173_v49, %s6481_s2  ;;  %v6178_v21 = vpack.i.bf16 %v9029_v23, %v9028_v38  ;;  %v8106_v28 = vadd.f32 %v7832_v62, %v4010_v54  ;;  %v2592_v38 = vadd.f32 %v2457_v8, %v7781_v34 }
 0x1b4   :  { %v6062_v56 = vpop.f32.mrf.mxu1  ;;  %v6000_v24 = vpop.f32.mrf.mxu0 }
 0x1b5   :  { %9116 = vst [vmem:[#allocation6_spill] sm:$0xff] %v8106_v28  ;;  %v4011_v7 = vadd.f32 %v6062_v56, %v2591_v35  ;;  %6179 = vrot.lane.b32.xlu0 %v6178_v21, %s6481_s2  ;;  %v8111_v26 = vadd.f32 %v7832_v62, %v4008_v33  ;;  %v9035_v54 = vmax.f32 %v8106_v28, 0.0  ;;  %v2595_v56 = vadd.f32 %v6000_v24, %v7783_v40 }
 0x1b6   :  { %v3864_v37 = vpop.f32.mrf.mxu1  ;;  %v2460_v20 = vpop.f32.mrf.mxu0 }
 0x1b7   :  { %v8114_v12 = vadd.f32 %v7832_v62, %v4011_v7  ;;  %v4009_v49 = vadd.f32 %v3864_v37, %v2589_v42  ;;  %v9033_v22 = vmax.f32 %v8111_v26, 0.0  ;;  %v2593_v37 = vadd.f32 %v2460_v20, %v7785_v9 }
 0x1b8   :  { %v6003_v23 = vpop.f32.mrf.mxu0 }
 0x1b9   :  { %v9036_v35 = vmax.f32 %v8114_v12, 0.0  ;;  %v8120_v21 = vadd.f32 %v7832_v62, %v4009_v49  ;;  %v6065_v39 = vpop.f32.mrf.mxu1  ;;  %v2598_v20 = vadd.f32 %v6003_v23, %v7787_v52 }
 0x1ba   :  { %v4014_v25 = vadd.f32 %v6065_v39, %v2594_v5  ;;  %v2473_v33 = vpop.f32.mrf.mxu0 }
 0x1bb   :  { %v9034_v7 = vmax.f32 %v8120_v21, 0.0  ;;  %v3877_v42 = vpop.f32.mrf.mxu1  ;;  %v6183_v34 = vpack.i.bf16 %v9036_v35, %v9035_v54 }
 0x1bc   :  { %v4012_v8 = vadd.f32 %v3877_v42, %v2592_v38  ;;  %v6004_v49 = vpop.f32.mrf.mxu0  ;;  %v8136_v24 = vadd.f32 %v7832_v62, %v4014_v25 }
 0x1bd   :  { %v6066_v32 = vpop.f32.mrf.mxu1  ;;  %6184 = vrot.lane.b32.xlu1 %v6183_v34, %s6481_s2  ;;  %v6188_v40 = vpack.i.bf16 %v9034_v7, %v9033_v22 }
 0x1be   :  { %v4015_v5 = vadd.f32 %v6066_v32, %v2595_v56  ;;  %v2476_v39 = vpop.f32.mrf.mxu0  ;;  %v8140_v38 = vadd.f32 %v7832_v62, %v4012_v8  ;;  %v9039_v22 = vmax.f32 %v8136_v24, 0.0  ;;  %v2596_v56 = vadd.f32 %v2473_v33, %v7789_v30 }
 0x1bf   :  { %v3880_v28 = vpop.f32.mrf.mxu1  ;;  %6189 = vrot.lane.b32.xlu0 %v6188_v40, %s6481_s2  ;;  %v2599_v8 = vadd.f32 %v6004_v49, %v7791_v2  ;;  %v2597_v35 = vadd.f32 %v2476_v39, %v7793_v43 }
 0x1c0   :  { %9117 = vst [vmem:[#allocation7_spill] sm:$0xff] %v8140_v38  ;;  %v8143_v9 = vadd.f32 %v7832_v62, %v4015_v5  ;;  %v4013_v42 = vadd.f32 %v3880_v28, %v2593_v37  ;;  %v6007_v34 = vpop.f32.mrf.mxu0  ;;  %v9037_v5 = vmax.f32 %v8140_v38, 0.0 }
 0x1c2   :  { %v9040_v25 = vmax.f32 %v8143_v9, 0.0  ;;  %v8149_v32 = vadd.f32 %v7832_v62, %v4013_v42  ;;  %v2489_v40 = vpop.f32.mrf.mxu0 }
 0x1c3   :  { %v6069_v7 = vpop.f32.mrf.mxu1 }
 0x1c4   :  { %v9038_v54 = vmax.f32 %v8149_v32, 0.0  ;;  %v4018_v52 = vadd.f32 %v6069_v7, %v2598_v20  ;;  %v6193_v23 = vpack.i.bf16 %v9040_v25, %v9039_v22  ;;  %v6008_v28 = vpop.f32.mrf.mxu0  ;;  %v9122_v22 = vld [vmem:[#allocation9_spill] sm:$0xff] }
 0x1c5   :  { %v3893_v37 = vpop.f32.mrf.mxu1 }
 0x1c6   :  { %v4016_v42 = vadd.f32 %v3893_v37, %v2596_v56  ;;  %6194 = vrot.lane.b32.xlu1 %v6193_v23, %s6481_s2  ;;  %v6198_v30 = vpack.i.bf16 %v9038_v54, %v9037_v5  ;;  %v2492_v2 = vpop.f32.mrf.mxu0  ;;  %v8166_v7 = vadd.f32 %v7832_v62, %v4018_v52  ;;  %v2602_v56 = vadd.f32 %v6007_v34, %v7795_v60 }
 0x1c7   :  { %v6070_v33 = vpop.f32.mrf.mxu1  ;;  %v2600_v54 = vadd.f32 %v2489_v40, %v7797_v59 }
 0x1c8   :  { %9118 = vst [vmem:[#allocation8_spill] sm:$0xff] %v8166_v7  ;;  %v4019_v49 = vadd.f32 %v6070_v33, %v2599_v8  ;;  %6199 = vrot.lane.b32.xlu0 %v6198_v30, %s6481_s2  ;;  %v6011_v20 = vpop.f32.mrf.mxu0  ;;  %v8171_v43 = vadd.f32 %v7832_v62, %v4016_v42  ;;  %v9043_v52 = vmax.f32 %v8166_v7, 0.0  ;;  %v2603_v42 = vadd.f32 %v6008_v28, %v9122_v22 }
 0x1c9   :  { %v3896_v37 = vpop.f32.mrf.mxu1 }
 0x1ca   :  { %9119 = vst [vmem:[#allocation23_spill] sm:$0xff] %v8171_v43  ;;  %v8174_v39 = vadd.f32 %v7832_v62, %v4019_v49  ;;  %v4017_v23 = vadd.f32 %v3896_v37, %v2597_v35  ;;  %v2505_v5 = vpop.f32.mrf.mxu0  ;;  %v9045_v25 = vmax.f32 %v8171_v43, 0.0 }
 0x1cc   :  { %9120 = vst [vmem:[#allocation24_spill] sm:$0xff] %v8174_v39  ;;  %v9044_v8 = vmax.f32 %v8174_v39, 0.0  ;;  %v8180_v30 = vadd.f32 %v7832_v62, %v4017_v23  ;;  %v6012_v60 = vpop.f32.mrf.mxu0  ;;  %v2601_v23 = vadd.f32 %v2492_v2, %v7801_v31  ;;  %v9124_v2 = vld [vmem:[#allocation10_spill] sm:$0xff] }
 0x1cd   :  { %v6073_v33 = vpop.f32.mrf.mxu1 }
 0x1ce   :  { %9121 = vst [vmem:[#allocation25_spill] sm:$0xff] %v8180_v30  ;;  %v4022_v34 = vadd.f32 %v6073_v33, %v2602_v56  ;;  %v9046_v49 = vmax.f32 %v8180_v30, 0.0  ;;  %v6203_v59 = vpack.i.bf16 %v9044_v8, %v9043_v52  ;;  %v2508_v40 = vpop.f32.mrf.mxu0 }
 0x1cf   :  { %v3909_v35 = vpop.f32.mrf.mxu1 }
 0x1d0   :  { %v4020_v37 = vadd.f32 %v3909_v35, %v2600_v54  ;;  %6204 = vrot.lane.b32.xlu1 %v6203_v59, %s6481_s2  ;;  %v6208_v22 = vpack.i.bf16 %v9046_v49, %v9045_v25  ;;  %v6015_v28 = vpop.f32.mrf.mxu0  ;;  %v8196_v56 = vadd.f32 %v7832_v62, %v4022_v34  ;;  %v2606_v35 = vadd.f32 %v6011_v20, %v9124_v2 }
 0x1d1   :  { %v6074_v38 = vpop.f32.mrf.mxu1 }
 0x1d2   :  { %v4023_v33 = vadd.f32 %v6074_v38, %v2603_v42  ;;  %6209 = vrot.lane.b32.xlu0 %v6208_v22, %s6481_s2  ;;  %v2521_v52 = vpop.f32.mrf.mxu0  ;;  %v8200_v54 = vadd.f32 %v7832_v62, %v4020_v37  ;;  %v9052_v25 = vmax.f32 %v8196_v56, 0.0  ;;  %v9125_v42 = vld [vmem:[#allocation11_spill] sm:$0xff]  ;;  %v2607_v37 = vadd.f32 %v6012_v60, %v7807_v11 }
 0x1d3   :  { %v3912_v7 = vpop.f32.mrf.mxu1  ;;  %v2604_v22 = vadd.f32 %v2505_v5, %v9125_v42 }
 0x1d4   :  { %9123 = vst [vmem:[#allocation9_spill] sm:$0xff] %v8200_v54  ;;  %v8203_v31 = vadd.f32 %v7832_v62, %v4023_v33  ;;  %v4021_v59 = vadd.f32 %v3912_v7, %v2601_v23  ;;  %v6016_v8 = vpop.f32.mrf.mxu0  ;;  %v9050_v43 = vmax.f32 %v8200_v54, 0.0 }
 0x1d6   :  { %v9053_v34 = vmax.f32 %v8203_v31, 0.0  ;;  %v8209_v38 = vadd.f32 %v7832_v62, %v4021_v59  ;;  %v6077_v49 = vpop.f32.mrf.mxu1  ;;  %v2524_v23 = vpop.f32.mrf.mxu0  ;;  %v9126_v59 = vld [vmem:[#allocation12_spill] sm:$0xff] }
 0x1d7   :  { %v4026_v30 = vadd.f32 %v6077_v49, %v2606_v35  ;;  %v2605_v39 = vadd.f32 %v2508_v40, %v9126_v59  ;;  %v2610_v35 = vadd.f32 %v6015_v28, %v7811_v10  ;;  %v9130_v59 = vld [vmem:[#allocation13_spill] sm:$0xff]  ;;  %v9131_v28 = vld [vmem:[#allocation14_spill] sm:$0xff] }
 0x1d8   :  { %v9051_v33 = vmax.f32 %v8209_v38, 0.0  ;;  %v6213_v7 = vpack.i.bf16 %v9053_v34, %v9052_v25  ;;  %v3925_v20 = vpop.f32.mrf.mxu1 }
 0x1d9   :  { %v4024_v2 = vadd.f32 %v3925_v20, %v2604_v22  ;;  %v8226_v60 = vadd.f32 %v7832_v62, %v4026_v30  ;;  %v6019_v22 = vpop.f32.mrf.mxu0 }
 0x1da   :  { %6214 = vrot.lane.b32.xlu1 %v6213_v7, %s6481_s2  ;;  %v6218_v11 = vpack.i.bf16 %v9051_v33, %v9050_v43  ;;  %v6078_v5 = vpop.f32.mrf.mxu1  ;;  %v2608_v43 = vadd.f32 %v2521_v52, %v9130_v59 }
 0x1db   :  { %9127 = vst [vmem:[#allocation10_spill] sm:$0xff] %v8226_v60  ;;  %v4027_v49 = vadd.f32 %v6078_v5, %v2607_v37  ;;  %v8231_v40 = vadd.f32 %v7832_v62, %v4024_v2  ;;  %v9057_v33 = vmax.f32 %v8226_v60, 0.0  ;;  %v2611_v5 = vadd.f32 %v6016_v8, %v9131_v28  ;;  %v2537_v25 = vpop.f32.mrf.mxu0 }
 0x1dc   :  { %6219 = vrot.lane.b32.xlu0 %v6218_v11, %s6481_s2  ;;  %v3928_v42 = vpop.f32.mrf.mxu1 }
 0x1dd   :  { %9128 = vst [vmem:[#allocation11_spill] sm:$0xff] %v8231_v40  ;;  %v8234_v7 = vadd.f32 %v7832_v62, %v4027_v49  ;;  %v4025_v20 = vadd.f32 %v3928_v42, %v2605_v39  ;;  %v9058_v2 = vmax.f32 %v8231_v40, 0.0  ;;  %v9132_v42 = vld [vmem:[#allocation15_spill] sm:$0xff]  ;;  %v6020_v28 = vpop.f32.mrf.mxu0 }
 0x1de   :  { %v2609_v59 = vadd.f32 %v2524_v23, %v9132_v42 }
 0x1df   :  { %9129 = vst [vmem:[#allocation12_spill] sm:$0xff] %v8234_v7  ;;  %v9060_v30 = vmax.f32 %v8234_v7, 0.0  ;;  %v8240_v37 = vadd.f32 %v7832_v62, %v4025_v20 }
 0x1e0   :  { %v6081_v11 = vpop.f32.mrf.mxu1 }
 0x1e1   :  { %v4030_v10 = vadd.f32 %v6081_v11, %v2610_v35  ;;  %v9059_v49 = vmax.f32 %v8240_v37, 0.0  ;;  %v6223_v39 = vpack.i.bf16 %v9060_v30, %v9057_v33  ;;  %v6095_v20 = vpop.permute.xlu0 %6094  ;;  %v2540_v30 = vpop.f32.mrf.mxu0 }
 0x1e2   :  { %v3941_v34 = vpop.f32.mrf.mxu1  ;;  %v6097_v60 = vunpack.i.h.bf16 %v6095_v20  ;;  %v6096_v7 = vunpack.i.l.bf16 %v6095_v20 }
 0x1e3   :  { %v4028_v52 = vadd.f32 %v3941_v34, %v2608_v43  ;;  %v8251_v54 = vadd.f32 %v7832_v62, %v4030_v10  ;;  %6224 = vrot.lane.b32.xlu1 %v6223_v39, %s6481_s2  ;;  %v6228_v8 = vpack.i.bf16 %v9059_v49, %v9058_v2  ;;  %v2614_v10 = vadd.f32 %v6019_v22, %v7819_v3  ;;  %v9133_v2 = vld [vmem:[#allocation16_spill] sm:$0xff] }
 0x1e4   :  { %v6082_v35 = vpop.f32.mrf.mxu1  ;;  %v9135_v3 = vmax.f32 %v7837_v27, 0.0 }
 0x1e5   :  { %v4031_v11 = vadd.f32 %v6082_v35, %v2611_v5  ;;  %v8259_v43 = vadd.f32 %v7832_v62, %v4028_v52  ;;  %6229 = vrot.lane.b32.xlu0 %v6228_v8, %s6481_s2  ;;  %v6100_v42 = vpop.permute.xlu0 %6099  ;;  %v2612_v5 = vadd.f32 %v2537_v25, %v9133_v2  ;;  %v9134_v8 = vmax.f32 %v7841_v46, 0.0  ;;  %v9136_v25 = vld [vmem:[#allocation17_spill] sm:$0xff] }
 0x1e6   :  { %v3944_v34 = vpop.f32.mrf.mxu1  ;;  %v6102_v35 = vunpack.i.h.bf16 %v6100_v42  ;;  %v6101_v49 = vunpack.i.l.bf16 %v6100_v42  ;;  %v8278_v22 = vmax.f32 %v9135_v3, %v6096_v7  ;;  %v2615_v2 = vadd.f32 %v6020_v28, %v9136_v25  ;;  %v9141_v28 = vld [vmem:[#allocation18_spill] sm:$0xff] }
 0x1e7   :  { %v8263_v23 = vadd.f32 %v7832_v62, %v4031_v11  ;;  %v4029_v39 = vadd.f32 %v3944_v34, %v2609_v59  ;;  %v8274_v11 = vmax.f32 %v9134_v8, %v6097_v60  ;;  %v9137_v42 = vmax.f32 %v7844_v4, 0.0 }
 0x1e8   :  { %v9138_v46 = vmax.f32 %v8251_v54, 0.0  ;;  %v9140_v7 = vmax.f32 %v7849_v19, 0.0  ;;  %v2613_v25 = vadd.f32 %v2540_v30, %v9141_v28  ;;  %v9142_v4 = vmax.f32 %v8259_v43, 0.0 }
 0x1e9   :  { %v8270_v52 = vadd.f32 %v7832_v62, %v4029_v39  ;;  %v6085_v34 = vpop.f32.mrf.mxu1  ;;  %v8284_v20 = vmax.f32 %v9137_v42, %v6102_v35  ;;  %v9139_v60 = vmax.f32 %v8263_v23, 0.0  ;;  %v6243_v35 = vpack.i.bf16 %v8274_v11, %v8278_v22 }
 0x1ea   :  { %v6105_v39 = vpop.permute.xlu1 %6104  ;;  %v4034_v40 = vadd.f32 %v6085_v34, %v2614_v10  ;;  %v8293_v8 = vmax.f32 %v9140_v7, %v6101_v49 }
 0x1eb   :  { %v9066_v33 = vmax.f32 %v8270_v52, 0.0  ;;  %v6233_v27 = vpack.i.bf16 %v9139_v60, %v9138_v46  ;;  %v3957_v3 = vpop.f32.mrf.mxu1  ;;  %v6107_v42 = vunpack.i.h.bf16 %v6105_v39  ;;  %v6106_v30 = vunpack.i.l.bf16 %v6105_v39 }
 0x1ec   :  { %v4032_v59 = vadd.f32 %v3957_v3, %v2612_v5  ;;  %v8304_v19 = vadd.f32 %v7832_v62, %v4034_v40  ;;  %v6248_v5 = vpack.i.bf16 %v8284_v20, %v8293_v8 }
 0x1ed   :  { %6234 = vrot.lane.b32.xlu1 %v6233_v27, %s6481_s2  ;;  %v6238_v10 = vpack.i.bf16 %v9066_v33, %v9142_v4  ;;  %v6086_v34 = vpop.f32.mrf.mxu1 }
 0x1ee   :  { %v6110_v46 = vpop.permute.xlu1 %6109  ;;  %v4035_v49 = vadd.f32 %v6086_v34, %v2615_v2  ;;  %v8310_v60 = vadd.f32 %v7832_v62, %v4032_v59  ;;  %v9143_v2 = vmax.f32 %v7865_v50, 0.0  ;;  %v9062_v39 = vmax.f32 %v8304_v19, 0.0 }
 0x1ef   :  { %6239 = vrot.lane.b32.xlu0 %v6238_v10, %s6481_s2  ;;  %v3960_v27 = vpop.f32.mrf.mxu1  ;;  %v6112_v40 = vunpack.i.h.bf16 %v6110_v46  ;;  %v6111_v28 = vunpack.i.l.bf16 %v6110_v46  ;;  %v9144_v34 = vmax.f32 %v7859_v51, 0.0 }
 0x1f0   :  { %v8313_v7 = vadd.f32 %v7832_v62, %v4035_v49  ;;  %v4033_v3 = vadd.f32 %v3960_v27, %v2613_v25  ;;  %v8318_v4 = vmax.f32 %v9143_v2, %v6107_v42  ;;  %v9063_v25 = vmax.f32 %v8310_v60, 0.0 }
 0x1f1   :  { %6244 = vrot.lane.b32.xlu1 %v6243_v35, %s6482_s21  ;;  %v8327_v49 = vmax.f32 %v9144_v34, %v6106_v30  ;;  %v9145_v42 = vmax.f32 %v7878_v55, 0.0 }
 0x1f2   :  { %v9065_v10 = vmax.f32 %v8313_v7, 0.0  ;;  %v8323_v59 = vadd.f32 %v7832_v62, %v4033_v3  ;;  %v9146_v62 = vmax.f32 %v7874_v6, 0.0  ;;  %v9148_v6 = vmax.f32 %v7896_v36, 0.0 }
 0x1f3   :  { %6249 = vrot.lane.b32.xlu0 %v6248_v5, %s6482_s21  ;;  %v8338_v46 = vmax.f32 %v9145_v42, %v6112_v40  ;;  %v6115_v30 = vpop.permute.xlu1 %6114  ;;  %v6263_v3 = vpack.i.bf16 %v8318_v4, %v8327_v49  ;;  %v9147_v40 = vmax.f32 %v7900_v1, 0.0 }
 0x1f4   :  { %v9064_v35 = vmax.f32 %v8323_v59, 0.0  ;;  %v6253_v50 = vpack.i.bf16 %v9065_v10, %v9062_v39  ;;  %v8342_v51 = vmax.f32 %v9146_v62, %v6111_v28  ;;  %v6117_v27 = vunpack.i.h.bf16 %v6115_v30 }
 0x1f5   :  { %v6116_v5 = vunpack.i.l.bf16 %v6115_v30  ;;  %v6120_v55 = vpop.permute.xlu0 %6119  ;;  %v9149_v30 = vmax.f32 %v7909_v0, 0.0 }
 0x1f6   :  { %6254 = vrot.lane.b32.xlu1 %v6253_v50, %s6481_s2  ;;  %v6258_v2 = vpack.i.bf16 %v9064_v35, %v9063_v25  ;;  %v8353_v34 = vmax.f32 %v9147_v40, %v6117_v27  ;;  %v6122_v42 = vunpack.i.h.bf16 %v6120_v55  ;;  %v6121_v62 = vunpack.i.l.bf16 %v6120_v55  ;;  %v9162_v35 = vld [vmem:[#allocation20_spill] sm:$0xff] }
 0x1f7   :  { %v8357_v28 = vmax.f32 %v9148_v6, %v6116_v5  ;;  %v6268_v50 = vpack.i.bf16 %v8338_v46, %v8342_v51  ;;  %v9150_v25 = vmax.f32 %v7904_v13, 0.0  ;;  %v9151_v13 = vmax.f32 %v7930_v29, 0.0 }
 0x1f8   :  { %6259 = vrot.lane.b32.xlu0 %v6258_v2, %s6481_s2  ;;  %v8364_v39 = vmax.f32 %v9149_v30, %v6122_v42  ;;  %v9154_v30 = vld [vmem:[#allocation19_spill] sm:$0xff]  ;;  %v9163_v10 = vmax.f32 %v9162_v35, 0.0 }
 0x1f9   :  { %v8368_v1 = vmax.f32 %v9150_v25, %v6121_v62  ;;  %v6273_v36 = vpack.i.bf16 %v8353_v34, %v8357_v28  ;;  %v9153_v62 = vmax.f32 %v7939_v61, 0.0 }
 0x1fa   :  { %6264 = vrot.lane.b32.xlu1 %v6263_v3, %s6482_s21  ;;  %v9152_v3 = vmax.f32 %v7921_v41, 0.0 }
 0x1fb   :  { %v6125_v27 = vpop.permute.xlu1 %6124  ;;  %v6278_v5 = vpack.i.bf16 %v8364_v39, %v8368_v1 }
 0x1fc   :  { %6269 = vrot.lane.b32.xlu0 %v6268_v50, %s6482_s21  ;;  %v6127_v2 = vunpack.i.h.bf16 %v6125_v27  ;;  %v6126_v55 = vunpack.i.l.bf16 %v6125_v27  ;;  %v9155_v27 = vmax.f32 %v9154_v30, 0.0  ;;  %v9159_v30 = vld [vmem:[#allocation21_spill] sm:$0xff] }
 0x1fd   :  { %v6130_v0 = vpop.permute.xlu0 %6129 }
 0x1fe   :  { %6274 = vrot.lane.b32.xlu1 %v6273_v36, %s6482_s21  ;;  %v8379_v25 = vmax.f32 %v9151_v13, %v6127_v2  ;;  %v8383_v40 = vmax.f32 %v9152_v3, %v6126_v55  ;;  %v6132_v6 = vunpack.i.h.bf16 %v6130_v0  ;;  %v6131_v42 = vunpack.i.l.bf16 %v6130_v0 }
 0x1ff   :  { %v9157_v3 = vmax.f32 %v7951_v47, 0.0 }
 0x200   :  { %6279 = vrot.lane.b32.xlu0 %v6278_v5, %s6482_s21  ;;  %v8388_v50 = vmax.f32 %v9153_v62, %v6132_v6  ;;  %v8392_v36 = vmax.f32 %v9155_v27, %v6131_v42  ;;  %v6283_v29 = vpack.i.bf16 %v8379_v25, %v8383_v40  ;;  %v9156_v5 = vmax.f32 %v7960_v58, 0.0 }
 0x201   :  { %v9160_v27 = vmax.f32 %v9159_v30, 0.0 }
 0x202   :  { %6284 = vrot.lane.b32.xlu1 %v6283_v29, %s6482_s21  ;;  %v6288_v41 = vpack.i.bf16 %v8388_v50, %v8392_v36 }
 0x203   :  { %v6135_v2 = vpop.permute.xlu1 %6134 }
 0x204   :  { %v6137_v55 = vunpack.i.h.bf16 %v6135_v2  ;;  %v6136_v0 = vunpack.i.l.bf16 %v6135_v2  ;;  %6289 = vrot.lane.b32.xlu0 %v6288_v41, %s6482_s21 }
 0x205   :  { %v6140_v61 = vpop.permute.xlu0 %6139 }
 0x206   :  { %v8402_v13 = vmax.f32 %v9156_v5, %v6137_v55  ;;  %v8406_v6 = vmax.f32 %v9157_v3, %v6136_v0  ;;  %v6142_v42 = vunpack.i.h.bf16 %v6140_v61  ;;  %v6141_v62 = vunpack.i.l.bf16 %v6140_v61  ;;  %v9165_v5 = vld [vmem:[#allocation3_spill] sm:$0xff] }
 0x207   :  { %v9166_v3 = vmax.f32 %v9165_v5, 0.0 }
 0x208   :  { %9158 = vst [vmem:[#allocation13_spill] sm:$0xff] %v8406_v6  ;;  %v8410_v29 = vmax.f32 %v9160_v27, %v6142_v42  ;;  %v8414_v2 = vmax.f32 %v9163_v10, %v6141_v62  ;;  %v6293_v41 = vpack.i.bf16 %v8402_v13, %v8406_v6  ;;  %v9167_v10 = vld [vmem:[#allocation2_spill] sm:$0xff] }
 0x209   :  { %v9168_v35 = vmax.f32 %v9167_v10, 0.0 }
 0x20a   :  { %9161 = vst [vmem:[#allocation14_spill] sm:$0xff] %v8410_v29  ;;  %9164 = vst [vmem:[#allocation15_spill] sm:$0xff] %v8414_v2  ;;  %6294 = vrot.lane.b32.xlu1 %v6293_v41, %s6482_s21  ;;  %v6298_v47 = vpack.i.bf16 %v8410_v29, %v8414_v2  ;;  %v9169_v41 = vld [vmem:[#allocation22_spill] sm:$0xff]  ;;  %v9171_v2 = vld [vmem:[#allocation4_spill] sm:$0xff] }
 0x20b   :  { %v6145_v58 = vpop.permute.xlu1 %6144  ;;  %v9170_v33 = vmax.f32 %v9169_v41, 0.0  ;;  %v9172_v29 = vmax.f32 %v9171_v2, 0.0 }
 0x20c   :  { %v6147_v55 = vunpack.i.h.bf16 %v6145_v58  ;;  %v6146_v0 = vunpack.i.l.bf16 %v6145_v58  ;;  %6299 = vrot.lane.b32.xlu0 %v6298_v47, %s6482_s21 }
 0x20d   :  { %v6150_v61 = vpop.permute.xlu0 %6149 }
 0x20e   :  { %v8424_v42 = vmax.f32 %v9166_v3, %v6147_v55  ;;  %v8428_v62 = vmax.f32 %v9168_v35, %v6146_v0  ;;  %v6152_v30 = vunpack.i.h.bf16 %v6150_v61  ;;  %v6151_v27 = vunpack.i.l.bf16 %v6150_v61 }
 0x210   :  { %v8432_v6 = vmax.f32 %v9170_v33, %v6152_v30  ;;  %v8436_v58 = vmax.f32 %v9172_v29, %v6151_v27  ;;  %v6303_v47 = vpack.i.bf16 %v8424_v42, %v8428_v62  ;;  %v9173_v33 = vmax.f32 %v8022_v63, 0.0 }
 0x211   :  { %v9174_v29 = vmax.f32 %v8011_v53, 0.0  ;;  %v9175_v27 = vmax.f32 %v8029_v18, 0.0 }
 0x212   :  { %6304 = vrot.lane.b32.xlu1 %v6303_v47, %s6482_s21  ;;  %v6308_v0 = vpack.i.bf16 %v8432_v6, %v8436_v58  ;;  %v9176_v47 = vmax.f32 %v8014_v48, 0.0  ;;  %v9179_v48 = vmax.f32 %v8046_v57, 0.0 }
 0x213   :  { %v6155_v55 = vpop.permute.xlu1 %6154 }
 0x214   :  { %v6157_v5 = vunpack.i.h.bf16 %v6155_v55  ;;  %v6156_v3 = vunpack.i.l.bf16 %v6155_v55  ;;  %6309 = vrot.lane.b32.xlu0 %v6308_v0, %s6482_s21 }
 0x215   :  { %v6160_v61 = vpop.permute.xlu0 %6159 }
 0x216   :  { %v8446_v10 = vmax.f32 %v9173_v33, %v6157_v5  ;;  %v8450_v2 = vmax.f32 %v9174_v29, %v6156_v3  ;;  %v6162_v35 = vunpack.i.h.bf16 %v6160_v61  ;;  %v6161_v30 = vunpack.i.l.bf16 %v6160_v61 }
 0x217   :  { %v9178_v61 = vmax.f32 %v8054_v17, 0.0 }
 0x218   :  { %v8454_v41 = vmax.f32 %v9175_v27, %v6162_v35  ;;  %v8458_v55 = vmax.f32 %v9176_v47, %v6161_v30  ;;  %v6313_v0 = vpack.i.bf16 %v8446_v10, %v8450_v2  ;;  %v9180_v27 = vmax.f32 %v8060_v45, 0.0 }
 0x21a   :  { %9177 = vst [vmem:[#allocation16_spill] sm:$0xff] %v8458_v55  ;;  %6314 = vrot.lane.b32.xlu1 %v6313_v0, %s6482_s21  ;;  %v6318_v53 = vpack.i.bf16 %v8454_v41, %v8458_v55  ;;  %v9181_v0 = vld [vmem:[#allocation5_spill] sm:$0xff] }
 0x21c   :  { %6319 = vrot.lane.b32.xlu0 %v6318_v53, %s6482_s21  ;;  %v9182_v53 = vmax.f32 %v9181_v0, 0.0  ;;  %v9185_v0 = vmax.f32 %v8089_v16, 0.0 }
 0x21d   :  { %v6165_v63 = vpop.permute.xlu1 %6164 }
 0x21e   :  { %v6167_v5 = vunpack.i.h.bf16 %v6165_v63  ;;  %v6166_v3 = vunpack.i.l.bf16 %v6165_v63 }
 0x21f   :  { %v6170_v18 = vpop.permute.xlu0 %6169 }
 0x220   :  { %v8468_v33 = vmax.f32 %v9178_v61, %v6167_v5  ;;  %v8472_v29 = vmax.f32 %v9179_v48, %v6166_v3  ;;  %v6172_v35 = vunpack.i.h.bf16 %v6170_v18  ;;  %v6171_v30 = vunpack.i.l.bf16 %v6170_v18 }
 0x221   :  { %v9183_v18 = vmax.f32 %v8082_v44, 0.0  ;;  %v9184_v48 = vmax.f32 %v8071_v15, 0.0 }
 0x222   :  { %v8476_v47 = vmax.f32 %v9180_v27, %v6172_v35  ;;  %v8480_v55 = vmax.f32 %v9182_v53, %v6171_v30  ;;  %v6323_v63 = vpack.i.bf16 %v8468_v33, %v8472_v29 }
 0x224   :  { %6324 = vrot.lane.b32.xlu1 %v6323_v63, %s6482_s21  ;;  %v6328_v57 = vpack.i.bf16 %v8476_v47, %v8480_v55  ;;  %v9186_v63 = vmax.f32 %v8079_v14, 0.0  ;;  %v9189_v14 = vld [vmem:[#allocation6_spill] sm:$0xff] }
 0x225   :  { %v6175_v17 = vpop.permute.xlu1 %6174 }
 0x226   :  { %v6177_v5 = vunpack.i.h.bf16 %v6175_v17  ;;  %v6176_v3 = vunpack.i.l.bf16 %v6175_v17  ;;  %6329 = vrot.lane.b32.xlu0 %v6328_v57, %s6482_s21 }
 0x227   :  { %v6180_v45 = vpop.permute.xlu0 %6179 }
 0x228   :  { %v8490_v61 = vmax.f32 %v9183_v18, %v6177_v5  ;;  %v8494_v35 = vmax.f32 %v9184_v48, %v6176_v3  ;;  %v6182_v30 = vunpack.i.h.bf16 %v6180_v45  ;;  %v6181_v27 = vunpack.i.l.bf16 %v6180_v45 }
 0x229   :  { %v9188_v45 = vmax.f32 %v8114_v12, 0.0  ;;  %v9190_v48 = vmax.f32 %v9189_v14, 0.0 }
 0x22a   :  { %v8498_v53 = vmax.f32 %v9185_v0, %v6182_v30  ;;  %v8502_v17 = vmax.f32 %v9186_v63, %v6181_v27  ;;  %v6333_v57 = vpack.i.bf16 %v8490_v61, %v8494_v35  ;;  %v9191_v63 = vmax.f32 %v8120_v21, 0.0 }
 0x22c   :  { %9187 = vst [vmem:[#allocation17_spill] sm:$0xff] %v8502_v17  ;;  %6334 = vrot.lane.b32.xlu1 %v6333_v57, %s6482_s21  ;;  %v6338_v15 = vpack.i.bf16 %v8498_v53, %v8502_v17 }
 0x22e   :  { %6339 = vrot.lane.b32.xlu0 %v6338_v15, %s6482_s21  ;;  %v9192_v15 = vmax.f32 %v8111_v26, 0.0  ;;  %v9196_v26 = vmax.f32 %v8136_v24, 0.0 }
 0x22f   :  { %v6185_v44 = vpop.permute.xlu1 %6184 }
 0x230   :  { %v6187_v5 = vunpack.i.h.bf16 %v6185_v44  ;;  %v6186_v3 = vunpack.i.l.bf16 %v6185_v44 }
 0x231   :  { %v6190_v16 = vpop.permute.xlu0 %6189 }
 0x232   :  { %v8512_v18 = vmax.f32 %v9188_v45, %v6187_v5  ;;  %v8516_v30 = vmax.f32 %v9190_v48, %v6186_v3  ;;  %v6192_v27 = vunpack.i.h.bf16 %v6190_v16  ;;  %v6191_v0 = vunpack.i.l.bf16 %v6190_v16 }
 0x233   :  { %v9194_v45 = vmax.f32 %v8143_v9, 0.0 }
 0x234   :  { %v8520_v57 = vmax.f32 %v9191_v63, %v6192_v27  ;;  %v8524_v17 = vmax.f32 %v9192_v15, %v6191_v0  ;;  %v6343_v44 = vpack.i.bf16 %v8512_v18, %v8516_v30  ;;  %v9198_v63 = vmax.f32 %v8149_v32, 0.0 }
 0x236   :  { %9193 = vst [vmem:[#allocation18_spill] sm:$0xff] %v8524_v17  ;;  %6344 = vrot.lane.b32.xlu1 %v6343_v44, %s6482_s21  ;;  %v6348_v12 = vpack.i.bf16 %v8520_v57, %v8524_v17  ;;  %v9200_v44 = vld [vmem:[#allocation7_spill] sm:$0xff] }
 0x237   :  { %v9201_v17 = vmax.f32 %v9200_v44, 0.0 }
 0x238   :  { %v6195_v5 = vpop.permute.xlu1 %6194  ;;  %6349 = vrot.lane.b32.xlu0 %v6348_v12, %s6482_s21 }
 0x239   :  { %v6197_v3 = vunpack.i.h.bf16 %v6195_v5  ;;  %v6196_v16 = vunpack.i.l.bf16 %v6195_v5 }
 0x23a   :  { %v6200_v21 = vpop.permute.xlu0 %6199 }
 0x23b   :  { %v8534_v14 = vmax.f32 %v9194_v45, %v6197_v3  ;;  %v8538_v48 = vmax.f32 %v9196_v26, %v6196_v16  ;;  %v6202_v27 = vunpack.i.h.bf16 %v6200_v21  ;;  %v6201_v0 = vunpack.i.l.bf16 %v6200_v21  ;;  %v9203_v21 = vld [vmem:[#allocation24_spill] sm:$0xff] }
 0x23c   :  { %v9204_v45 = vmax.f32 %v9203_v21, 0.0 }
 0x23d   :  { %9195 = vst [vmem:[#allocation19_spill] sm:$0xff] %v8534_v14  ;;  %9197 = vst [vmem:[#allocation21_spill] sm:$0xff] %v8538_v48  ;;  %v8542_v15 = vmax.f32 %v9198_v63, %v6202_v27  ;;  %v8546_v12 = vmax.f32 %v9201_v17, %v6201_v0  ;;  %v6353_v5 = vpack.i.bf16 %v8534_v14, %v8538_v48  ;;  %v9205_v17 = vld [vmem:[#allocation8_spill] sm:$0xff] }
 0x23e   :  { %v9206_v27 = vmax.f32 %v9205_v17, 0.0 }
 0x23f   :  { %9199 = vst [vmem:[#allocation20_spill] sm:$0xff] %v8542_v15  ;;  %9202 = vst [vmem:[#allocation3_spill] sm:$0xff] %v8546_v12  ;;  %6354 = vrot.lane.b32.xlu1 %v6353_v5, %s6482_s21  ;;  %v6358_v24 = vpack.i.bf16 %v8542_v15, %v8546_v12  ;;  %v9207_v5 = vld [vmem:[#allocation25_spill] sm:$0xff]  ;;  %v9209_v12 = vld [vmem:[#allocation23_spill] sm:$0xff] }
 0x240   :  { %v9208_v48 = vmax.f32 %v9207_v5, 0.0  ;;  %v9215_v5 = vmax.f32 %v8209_v38, 0.0 }
 0x241   :  { %6359 = vrot.lane.b32.xlu0 %v6358_v24, %s6482_s21  ;;  %v9210_v24 = vmax.f32 %v9209_v12, 0.0  ;;  %v9213_v12 = vmax.f32 %v8196_v56, 0.0 }
 0x242   :  { %v6205_v9 = vpop.permute.xlu1 %6204 }
 0x243   :  { %v6207_v3 = vunpack.i.h.bf16 %v6205_v9  ;;  %v6206_v16 = vunpack.i.l.bf16 %v6205_v9 }
 0x244   :  { %v6210_v32 = vpop.permute.xlu0 %6209 }
 0x245   :  { %v8556_v26 = vmax.f32 %v9204_v45, %v6207_v3  ;;  %v8560_v0 = vmax.f32 %v9206_v27, %v6206_v16  ;;  %v6212_v63 = vunpack.i.h.bf16 %v6210_v32  ;;  %v6211_v44 = vunpack.i.l.bf16 %v6210_v32 }
 0x247   :  { %v8564_v14 = vmax.f32 %v9208_v48, %v6212_v63  ;;  %v8568_v15 = vmax.f32 %v9210_v24, %v6211_v44  ;;  %v6363_v9 = vpack.i.bf16 %v8556_v26, %v8560_v0  ;;  %v9212_v48 = vmax.f32 %v8203_v31, 0.0 }
 0x249   :  { %9211 = vst [vmem:[#allocation2_spill] sm:$0xff] %v8568_v15  ;;  %6364 = vrot.lane.b32.xlu1 %v6363_v9, %s6482_s21  ;;  %v6368_v3 = vpack.i.bf16 %v8564_v14, %v8568_v15  ;;  %v9217_v9 = vld [vmem:[#allocation9_spill] sm:$0xff] }
 0x24a   :  { %v9218_v15 = vmax.f32 %v9217_v9, 0.0 }
 0x24b   :  { %6369 = vrot.lane.b32.xlu0 %v6368_v3, %s6482_s21 }
 0x24c   :  { %v6215_v16 = vpop.permute.xlu1 %6214 }
 0x24d   :  { %v6217_v32 = vunpack.i.h.bf16 %v6215_v16  ;;  %v6216_v21 = vunpack.i.l.bf16 %v6215_v16 }
 0x24e   :  { %v6220_v45 = vpop.permute.xlu0 %6219 }
 0x24f   :  { %v8578_v17 = vmax.f32 %v9212_v48, %v6217_v32  ;;  %v8582_v27 = vmax.f32 %v9213_v12, %v6216_v21  ;;  %v6222_v63 = vunpack.i.h.bf16 %v6220_v45  ;;  %v6221_v44 = vunpack.i.l.bf16 %v6220_v45  ;;  %v9220_v45 = vld [vmem:[#allocation12_spill] sm:$0xff] }
 0x250   :  { %v9221_v48 = vmax.f32 %v9220_v45, 0.0 }
 0x251   :  { %9214 = vst [vmem:[#allocation22_spill] sm:$0xff] %v8582_v27  ;;  %v8586_v24 = vmax.f32 %v9215_v5, %v6222_v63  ;;  %v8590_v3 = vmax.f32 %v9218_v15, %v6221_v44  ;;  %v6373_v16 = vpack.i.bf16 %v8578_v17, %v8582_v27  ;;  %v9222_v15 = vld [vmem:[#allocation10_spill] sm:$0xff] }
 0x252   :  { %v9223_v63 = vmax.f32 %v9222_v15, 0.0 }
 0x253   :  { %9216 = vst [vmem:[#allocation4_spill] sm:$0xff] %v8586_v24  ;;  %9219 = vst [vmem:[#allocation5_spill] sm:$0xff] %v8590_v3  ;;  %6374 = vrot.lane.b32.xlu1 %v6373_v16, %s6482_s21  ;;  %v6378_v56 = vpack.i.bf16 %v8586_v24, %v8590_v3  ;;  %v9224_v16 = vmax.f32 %v8240_v37, 0.0  ;;  %v9225_v3 = vld [vmem:[#allocation11_spill] sm:$0xff] }
 0x255   :  { %6379 = vrot.lane.b32.xlu0 %v6378_v56, %s6482_s21  ;;  %v6225_v31 = vpop.permute.xlu1 %6224  ;;  %v9226_v56 = vmax.f32 %v9225_v3, 0.0  ;;  %v9229_v3 = vmax.f32 %v8251_v54, 0.0 }
 0x256   :  { %v6227_v32 = vunpack.i.h.bf16 %v6225_v31  ;;  %v6226_v21 = vunpack.i.l.bf16 %v6225_v31 }
 0x257   :  { %v6230_v38 = vpop.permute.xlu0 %6229 }
 0x258   :  { %v8600_v12 = vmax.f32 %v9221_v48, %v6227_v32  ;;  %v8604_v44 = vmax.f32 %v9223_v63, %v6226_v21  ;;  %v6232_v5 = vunpack.i.h.bf16 %v6230_v38  ;;  %v6231_v9 = vunpack.i.l.bf16 %v6230_v38 }
 0x259   :  { %v9228_v48 = vmax.f32 %v8263_v23, 0.0 }
 0x25a   :  { %v8608_v27 = vmax.f32 %v9224_v16, %v6232_v5  ;;  %v8612_v24 = vmax.f32 %v9226_v56, %v6231_v9  ;;  %v6383_v31 = vpack.i.bf16 %v8600_v12, %v8604_v44  ;;  %v9230_v56 = vmax.f32 %v8270_v52, 0.0 }
 0x25c   :  { %9227 = vst [vmem:[#allocation6_spill] sm:$0xff] %v8612_v24  ;;  %6384 = vrot.lane.b32.xlu1 %v6383_v31, %s6482_s21  ;;  %v6388_v32 = vpack.i.bf16 %v8608_v27, %v8612_v24 }
 0x25e   :  { %6389 = vrot.lane.b32.xlu0 %v6388_v32, %s6482_s21  ;;  %v9231_v32 = vmax.f32 %v8259_v43, 0.0 }
 0x25f   :  { %v6235_v21 = vpop.permute.xlu1 %6234 }
 0x260   :  { %v6237_v38 = vunpack.i.h.bf16 %v6235_v21  ;;  %v6236_v45 = vunpack.i.l.bf16 %v6235_v21 }
 0x261   :  { %v6240_v37 = vpop.permute.xlu0 %6239 }
 0x262   :  { %v8622_v15 = vmax.f32 %v9228_v48, %v6237_v38  ;;  %v8626_v63 = vmax.f32 %v9229_v3, %v6236_v45  ;;  %v6242_v5 = vunpack.i.h.bf16 %v6240_v37  ;;  %v6241_v9 = vunpack.i.l.bf16 %v6240_v37 }
 0x263   :  { %v6245_v16 = vpop.permute.xlu1 %6244 }
 0x264   :  { %v8630_v31 = vmax.f32 %v9230_v56, %v6242_v5  ;;  %v8634_v24 = vmax.f32 %v9231_v32, %v6241_v9  ;;  %v6393_v23 = vpack.i.bf16 %v8622_v15, %v8626_v63  ;;  %v6247_v21 = vunpack.i.h.bf16 %v6245_v16 }
 0x265   :  { %v6246_v38 = vunpack.i.l.bf16 %v6245_v16  ;;  %v6250_v48 = vpop.permute.xlu0 %6249 }
 0x266   :  { %6394 = vrot.lane.b32.xlu1 %v6393_v23, %s6482_s21  ;;  %v4750_v54 = vmax.f32 %v8274_v11, %v6247_v21  ;;  %v6398_v45 = vpack.i.bf16 %v8630_v31, %v8634_v24  ;;  %v6252_v52 = vunpack.i.h.bf16 %v6250_v48  ;;  %v6251_v37 = vunpack.i.l.bf16 %v6250_v48 }
 0x267   :  { %v4749_v43 = vmax.f32 %v8278_v22, %v6246_v38  ;;  %v9233_v38 = vmax.f32 %v8304_v19, 0.0 }
 0x268   :  { %v5630_v3 = vpack.c.bf16 %v4750_v54, %v4750_v54  ;;  %6399 = vrot.lane.b32.xlu0 %v6398_v45, %s6482_s21  ;;  %v4748_v5 = vmax.f32 %v8284_v20, %v6252_v52  ;;  %v4747_v9 = vmax.f32 %v8293_v8, %v6251_v37  ;;  %v6255_v56 = vpop.permute.xlu1 %6254  ;;  %v9232_v20 = vmax.f32 %v8313_v7, 0.0 }
 0x269   :  { %v5629_v16 = vpack.c.bf16 %v4749_v43, %v4749_v43  ;;  %v6257_v23 = vunpack.i.h.bf16 %v6255_v56  ;;  %v6256_v21 = vunpack.i.l.bf16 %v6255_v56 }
 0x26a   :  { %5071 = vst.msk [vmem:[%s8987_s3 + $0xc] sm:$0xf] %vm5067_vm5, %v5630_v3  ;;  %v5628_v11 = vpack.c.bf16 %v4748_v5, %v4748_v5  ;;  %v5627_v32 = vpack.c.bf16 %v4747_v9, %v4747_v9  ;;  %v6260_v22 = vpop.permute.xlu0 %6259  ;;  %v9234_v3 = vmax.f32 %v8323_v59, 0.0  ;;  %v9235_v9 = vmax.f32 %v8310_v60, 0.0 }
 0x26b   :  { %5070 = vst.msk [vmem:[%s8987_s3 + $0x8] sm:$0xf] %vm5067_vm5, %v5629_v16  ;;  %v8664_v8 = vmax.f32 %v9232_v20, %v6257_v23  ;;  %v8668_v48 = vmax.f32 %v9233_v38, %v6256_v21  ;;  %v6262_v54 = vunpack.i.h.bf16 %v6260_v22  ;;  %v6261_v45 = vunpack.i.l.bf16 %v6260_v22 }
 0x26c   :  { %5069 = vst.msk [vmem:[%s8987_s3 + $0x4] sm:$0xf] %vm5067_vm5, %v5628_v11  ;;  %5068 = vst.msk [vmem:[%s8987_s3] sm:$0xf] %vm5067_vm5, %v5627_v32  ;;  %v6265_v52 = vpop.permute.xlu1 %6264 }
 0x26d   :  { %v6267_v37 = vunpack.i.h.bf16 %v6265_v52  ;;  %v6266_v43 = vunpack.i.l.bf16 %v6265_v52  ;;  %v8672_v5 = vmax.f32 %v9234_v3, %v6262_v54  ;;  %v8676_v16 = vmax.f32 %v9235_v9, %v6261_v45 }
 0x26e   :  { %v6408_v7 = vpack.i.bf16 %v8664_v8, %v8668_v48  ;;  %v6270_v56 = vpop.permute.xlu0 %6269 }
 0x26f   :  { %v4754_v19 = vmax.f32 %v8318_v4, %v6267_v37  ;;  %v4753_v11 = vmax.f32 %v8327_v49, %v6266_v43  ;;  %v6272_v32 = vunpack.i.h.bf16 %v6270_v56  ;;  %v6271_v23 = vunpack.i.l.bf16 %v6270_v56 }
 0x270   :  { %6409 = vrot.lane.b32.xlu1 %v6408_v7, %s6482_s21  ;;  %v6403_v59 = vpack.i.bf16 %v8672_v5, %v8676_v16  ;;  %v6275_v21 = vpop.permute.xlu1 %6274 }
 0x271   :  { %v5634_v22 = vpack.c.bf16 %v4754_v19, %v4754_v19  ;;  %v5633_v60 = vpack.c.bf16 %v4753_v11, %v4753_v11  ;;  %v4752_v20 = vmax.f32 %v8338_v46, %v6272_v32  ;;  %v4751_v38 = vmax.f32 %v8342_v51, %v6271_v23 }
 0x272   :  { %6404 = vrot.lane.b32.xlu0 %v6403_v59, %s6482_s21  ;;  %v6277_v54 = vunpack.i.h.bf16 %v6275_v21  ;;  %v6276_v4 = vunpack.i.l.bf16 %v6275_v21  ;;  %v6280_v45 = vpop.permute.xlu0 %6279 }
 0x273   :  { %5075 = vst.msk [vmem:[%s8987_s3 + $0x1c] sm:$0xf] %vm5067_vm5, %v5634_v22  ;;  %5074 = vst.msk [vmem:[%s8987_s3 + $0x18] sm:$0xf] %vm5067_vm5, %v5633_v60  ;;  %v5632_v49 = vpack.c.bf16 %v4752_v20, %v4752_v20  ;;  %v5631_v52 = vpack.c.bf16 %v4751_v38, %v4751_v38  ;;  %v6282_v46 = vunpack.i.h.bf16 %v6280_v45  ;;  %v6281_v37 = vunpack.i.l.bf16 %v6280_v45 }
 0x274   :  { %v4758_v51 = vmax.f32 %v8353_v34, %v6277_v54  ;;  %v4757_v43 = vmax.f32 %v8357_v28, %v6276_v4  ;;  %v6285_v7 = vpop.permute.xlu1 %6284 }
 0x275   :  { %5073 = vst.msk [vmem:[%s8987_s3 + $0x14] sm:$0xf] %vm5067_vm5, %v5632_v49  ;;  %5072 = vst.msk [vmem:[%s8987_s3 + $0x10] sm:$0xf] %vm5067_vm5, %v5631_v52  ;;  %v4756_v3 = vmax.f32 %v8364_v39, %v6282_v46  ;;  %v4755_v9 = vmax.f32 %v8368_v1, %v6281_v37  ;;  %v6287_v34 = vunpack.i.h.bf16 %v6285_v7  ;;  %v6286_v11 = vunpack.i.l.bf16 %v6285_v7  ;;  %v9236_v49 = vld [vmem:[#allocation13_spill] sm:$0xff]  ;;  %v9238_v7 = vld [vmem:[#allocation15_spill] sm:$0xff] }
 0x276   :  { %v5638_v56 = vpack.c.bf16 %v4758_v51, %v4758_v51  ;;  %v5637_v19 = vpack.c.bf16 %v4757_v43, %v4757_v43  ;;  %v6290_v23 = vpop.permute.xlu0 %6289 }
 0x277   :  { %v5636_v28 = vpack.c.bf16 %v4756_v3, %v4756_v3  ;;  %v5635_v32 = vpack.c.bf16 %v4755_v9, %v4755_v9  ;;  %v4762_v39 = vmax.f32 %v8379_v25, %v6287_v34  ;;  %v4761_v1 = vmax.f32 %v8383_v40, %v6286_v11  ;;  %v9237_v3 = vld [vmem:[#allocation14_spill] sm:$0xff] }
 0x278   :  { %5079 = vst.msk [vmem:[%s8987_s3 + $0x2c] sm:$0xf] %vm5067_vm5, %v5638_v56  ;;  %5078 = vst.msk [vmem:[%s8987_s3 + $0x28] sm:$0xf] %vm5067_vm5, %v5637_v19  ;;  %v6292_v59 = vunpack.i.h.bf16 %v6290_v23  ;;  %v6291_v21 = vunpack.i.l.bf16 %v6290_v23 }
 0x279   :  { %5077 = vst.msk [vmem:[%s8987_s3 + $0x24] sm:$0xf] %vm5067_vm5, %v5636_v28  ;;  %5076 = vst.msk [vmem:[%s8987_s3 + $0x20] sm:$0xf] %vm5067_vm5, %v5635_v32  ;;  %v5642_v22 = vpack.c.bf16 %v4762_v39, %v4762_v39  ;;  %v5641_v60 = vpack.c.bf16 %v4761_v1, %v4761_v1 }
 0x27a   :  { %v4760_v20 = vmax.f32 %v8388_v50, %v6292_v59  ;;  %v4759_v25 = vmax.f32 %v8392_v36, %v6291_v21 }
 0x27b   :  { %5083 = vst.msk [vmem:[%s8987_s3 + $0x3c] sm:$0xf] %vm5067_vm5, %v5642_v22  ;;  %5082 = vst.msk [vmem:[%s8987_s3 + $0x38] sm:$0xf] %vm5067_vm5, %v5641_v60 }
 0x27c   :  { %v5640_v40 = vpack.c.bf16 %v4760_v20, %v4760_v20  ;;  %v5639_v38 = vpack.c.bf16 %v4759_v25, %v4759_v25  ;;  %v6295_v54 = vpop.permute.xlu1 %6294 }
 0x27d   :  { %v6297_v50 = vunpack.i.h.bf16 %v6295_v54  ;;  %v6296_v36 = vunpack.i.l.bf16 %v6295_v54 }
 0x27e   :  { %5081 = vst.msk [vmem:[%s8987_s3 + $0x34] sm:$0xf] %vm5067_vm5, %v5640_v40  ;;  %5080 = vst.msk [vmem:[%s8987_s3 + $0x30] sm:$0xf] %vm5067_vm5, %v5639_v38  ;;  %v6300_v4 = vpop.permute.xlu0 %6299 }
 0x27f   :  { %v4766_v45 = vmax.f32 %v8402_v13, %v6297_v50  ;;  %v4765_v52 = vmax.f32 %v9236_v49, %v6296_v36  ;;  %v6302_v46 = vunpack.i.h.bf16 %v6300_v4  ;;  %v6301_v37 = vunpack.i.l.bf16 %v6300_v4 }
 0x281   :  { %v5646_v51 = vpack.c.bf16 %v4766_v45, %v4766_v45  ;;  %v5645_v43 = vpack.c.bf16 %v4765_v52, %v4765_v52  ;;  %v4764_v9 = vmax.f32 %v9237_v3, %v6302_v46  ;;  %v4763_v56 = vmax.f32 %v9238_v7, %v6301_v37  ;;  %v9239_v52 = vld [vmem:[#allocation16_spill] sm:$0xff] }
 0x283   :  { %5087 = vst.msk [vmem:[%s8987_s3 + $0x4c] sm:$0xf] %vm5067_vm5, %v5646_v51  ;;  %5086 = vst.msk [vmem:[%s8987_s3 + $0x48] sm:$0xf] %vm5067_vm5, %v5645_v43  ;;  %v5644_v13 = vpack.c.bf16 %v4764_v9, %v4764_v9  ;;  %v5643_v19 = vpack.c.bf16 %v4763_v56, %v4763_v56 }
 0x284   :  { %v6305_v34 = vpop.permute.xlu1 %6304 }
 0x285   :  { %5085 = vst.msk [vmem:[%s8987_s3 + $0x44] sm:$0xf] %vm5067_vm5, %v5644_v13  ;;  %5084 = vst.msk [vmem:[%s8987_s3 + $0x40] sm:$0xf] %vm5067_vm5, %v5643_v19  ;;  %v6307_v11 = vunpack.i.h.bf16 %v6305_v34  ;;  %v6306_v28 = vunpack.i.l.bf16 %v6305_v34 }
 0x286   :  { %v6310_v32 = vpop.permute.xlu0 %6309 }
 0x287   :  { %v4770_v23 = vmax.f32 %v8424_v42, %v6307_v11  ;;  %v4769_v39 = vmax.f32 %v8428_v62, %v6306_v28  ;;  %v6312_v1 = vunpack.i.h.bf16 %v6310_v32  ;;  %v6311_v59 = vunpack.i.l.bf16 %v6310_v32 }
 0x289   :  { %v5650_v21 = vpack.c.bf16 %v4770_v23, %v4770_v23  ;;  %v5649_v22 = vpack.c.bf16 %v4769_v39, %v4769_v39  ;;  %v4768_v60 = vmax.f32 %v8432_v6, %v6312_v1  ;;  %v4767_v20 = vmax.f32 %v8436_v58, %v6311_v59 }
 0x28b   :  { %5091 = vst.msk [vmem:[%s8987_s3 + $0x5c] sm:$0xf] %vm5067_vm5, %v5650_v21  ;;  %5090 = vst.msk [vmem:[%s8987_s3 + $0x58] sm:$0xf] %vm5067_vm5, %v5649_v22  ;;  %v5648_v42 = vpack.c.bf16 %v4768_v60, %v4768_v60  ;;  %v5647_v62 = vpack.c.bf16 %v4767_v20, %v4767_v20  ;;  %v9240_v20 = vld [vmem:[#allocation17_spill] sm:$0xff] }
 0x28c   :  { %v6315_v25 = vpop.permute.xlu1 %6314 }
 0x28d   :  { %v6317_v40 = vunpack.i.h.bf16 %v6315_v25  ;;  %v6316_v38 = vunpack.i.l.bf16 %v6315_v25  ;;  %5089 = vst.msk [vmem:[%s8987_s3 + $0x54] sm:$0xf] %vm5067_vm5, %v5648_v42  ;;  %5088 = vst.msk [vmem:[%s8987_s3 + $0x50] sm:$0xf] %vm5067_vm5, %v5647_v62 }
 0x28e   :  { %v6320_v6 = vpop.permute.xlu0 %6319 }
 0x28f   :  { %v4774_v58 = vmax.f32 %v8446_v10, %v6317_v40  ;;  %v4773_v54 = vmax.f32 %v8450_v2, %v6316_v38  ;;  %v6322_v50 = vunpack.i.h.bf16 %v6320_v6  ;;  %v6321_v36 = vunpack.i.l.bf16 %v6320_v6 }
 0x291   :  { %v5654_v4 = vpack.c.bf16 %v4774_v58, %v4774_v58  ;;  %v5653_v45 = vpack.c.bf16 %v4773_v54, %v4773_v54  ;;  %v4772_v49 = vmax.f32 %v8454_v41, %v6322_v50  ;;  %v4771_v46 = vmax.f32 %v9239_v52, %v6321_v36 }
 0x293   :  { %5095 = vst.msk [vmem:[%s8987_s3 + $0x6c] sm:$0xf] %vm5067_vm5, %v5654_v4  ;;  %5094 = vst.msk [vmem:[%s8987_s3 + $0x68] sm:$0xf] %vm5067_vm5, %v5653_v45  ;;  %v5652_v10 = vpack.c.bf16 %v4772_v49, %v4772_v49  ;;  %v5651_v2 = vpack.c.bf16 %v4771_v46, %v4771_v46  ;;  %v9241_v45 = vld [vmem:[#allocation18_spill] sm:$0xff] }
 0x295   :  { %5093 = vst.msk [vmem:[%s8987_s3 + $0x64] sm:$0xf] %vm5067_vm5, %v5652_v10  ;;  %5092 = vst.msk [vmem:[%s8987_s3 + $0x60] sm:$0xf] %vm5067_vm5, %v5651_v2  ;;  %v9242_v2 = vld [vmem:[#allocation19_spill] sm:$0xff] }
 0x296   :  { %v6325_v41 = vpop.permute.xlu1 %6324 }
 0x297   :  { %v6327_v37 = vunpack.i.h.bf16 %v6325_v41  ;;  %v6326_v51 = vunpack.i.l.bf16 %v6325_v41 }
 0x298   :  { %v6330_v43 = vpop.permute.xlu0 %6329 }
 0x299   :  { %v4778_v3 = vmax.f32 %v8468_v33, %v6327_v37  ;;  %v4777_v9 = vmax.f32 %v8472_v29, %v6326_v51  ;;  %v6332_v7 = vunpack.i.h.bf16 %v6330_v43  ;;  %v6331_v56 = vunpack.i.l.bf16 %v6330_v43  ;;  %v9243_v37 = vld [vmem:[#allocation21_spill] sm:$0xff] }
 0x29b   :  { %v5658_v13 = vpack.c.bf16 %v4778_v3, %v4778_v3  ;;  %v5657_v19 = vpack.c.bf16 %v4777_v9, %v4777_v9  ;;  %v4776_v34 = vmax.f32 %v8476_v47, %v6332_v7  ;;  %v4775_v11 = vmax.f32 %v8480_v55, %v6331_v56  ;;  %v9244_v56 = vld [vmem:[#allocation20_spill] sm:$0xff] }
 0x29d   :  { %5099 = vst.msk [vmem:[%s8987_s3 + $0x7c] sm:$0xf] %vm5067_vm5, %v5658_v13  ;;  %5098 = vst.msk [vmem:[%s8987_s3 + $0x78] sm:$0xf] %vm5067_vm5, %v5657_v19  ;;  %v5656_v33 = vpack.c.bf16 %v4776_v34, %v4776_v34  ;;  %v5655_v29 = vpack.c.bf16 %v4775_v11, %v4775_v11  ;;  %v9245_v19 = vld [vmem:[#allocation3_spill] sm:$0xff] }
 0x29e   :  { %v6335_v28 = vpop.permute.xlu1 %6334 }
 0x29f   :  { %5097 = vst.msk [vmem:[%s8987_s3 + $0x74] sm:$0xf] %vm5067_vm5, %v5656_v33  ;;  %5096 = vst.msk [vmem:[%s8987_s3 + $0x70] sm:$0xf] %vm5067_vm5, %v5655_v29  ;;  %v6337_v55 = vunpack.i.h.bf16 %v6335_v28  ;;  %v6336_v47 = vunpack.i.l.bf16 %v6335_v28 }
 0x2a0   :  { %v6340_v32 = vpop.permute.xlu0 %6339 }
 0x2a1   :  { %v4782_v23 = vmax.f32 %v8490_v61, %v6337_v55  ;;  %v4781_v39 = vmax.f32 %v8494_v35, %v6336_v47  ;;  %v6342_v1 = vunpack.i.h.bf16 %v6340_v32  ;;  %v6341_v59 = vunpack.i.l.bf16 %v6340_v32 }
 0x2a3   :  { %v5662_v21 = vpack.c.bf16 %v4782_v23, %v4782_v23  ;;  %v5661_v22 = vpack.c.bf16 %v4781_v39, %v4781_v39  ;;  %v4780_v60 = vmax.f32 %v8498_v53, %v6342_v1  ;;  %v4779_v42 = vmax.f32 %v9240_v20, %v6341_v59 }
 0x2a5   :  { %5103 = vst.msk [vmem:[%s8987_s3 + $0x8c] sm:$0xf] %vm5067_vm5, %v5662_v21  ;;  %5102 = vst.msk [vmem:[%s8987_s3 + $0x88] sm:$0xf] %vm5067_vm5, %v5661_v22  ;;  %v5660_v61 = vpack.c.bf16 %v4780_v60, %v4780_v60  ;;  %v5659_v35 = vpack.c.bf16 %v4779_v42, %v4779_v42  ;;  %v9246_v60 = vld [vmem:[#allocation2_spill] sm:$0xff] }
 0x2a7   :  { %5101 = vst.msk [vmem:[%s8987_s3 + $0x84] sm:$0xf] %vm5067_vm5, %v5660_v61  ;;  %5100 = vst.msk [vmem:[%s8987_s3 + $0x80] sm:$0xf] %vm5067_vm5, %v5659_v35 }
 0x2a8   :  { %v6345_v53 = vpop.permute.xlu1 %6344 }
 0x2a9   :  { %v6347_v62 = vunpack.i.h.bf16 %v6345_v53  ;;  %v6346_v25 = vunpack.i.l.bf16 %v6345_v53 }
 0x2aa   :  { %v6350_v40 = vpop.permute.xlu0 %6349 }
 0x2ab   :  { %v4786_v38 = vmax.f32 %v8512_v18, %v6347_v62  ;;  %v4785_v6 = vmax.f32 %v8516_v30, %v6346_v25  ;;  %v6352_v58 = vunpack.i.h.bf16 %v6350_v40  ;;  %v6351_v54 = vunpack.i.l.bf16 %v6350_v40  ;;  %v9247_v62 = vld [vmem:[#allocation22_spill] sm:$0xff] }
 0x2ad   :  { %v5666_v50 = vpack.c.bf16 %v4786_v38, %v4786_v38  ;;  %v5665_v36 = vpack.c.bf16 %v4785_v6, %v4785_v6  ;;  %v4784_v4 = vmax.f32 %v8520_v57, %v6352_v58  ;;  %v4783_v49 = vmax.f32 %v9241_v45, %v6351_v54  ;;  %v9248_v54 = vld [vmem:[#allocation4_spill] sm:$0xff] }
 0x2af   :  { %5107 = vst.msk [vmem:[%s8987_s3 + $0x9c] sm:$0xf] %vm5067_vm5, %v5666_v50  ;;  %5106 = vst.msk [vmem:[%s8987_s3 + $0x98] sm:$0xf] %vm5067_vm5, %v5665_v36  ;;  %v5664_v18 = vpack.c.bf16 %v4784_v4, %v4784_v4  ;;  %v5663_v30 = vpack.c.bf16 %v4783_v49, %v4783_v49  ;;  %v9249_v36 = vld [vmem:[#allocation5_spill] sm:$0xff] }
 0x2b1   :  { %5105 = vst.msk [vmem:[%s8987_s3 + $0x94] sm:$0xf] %vm5067_vm5, %v5664_v18  ;;  %5104 = vst.msk [vmem:[%s8987_s3 + $0x90] sm:$0xf] %vm5067_vm5, %v5663_v30  ;;  %v6355_v57 = vpop.permute.xlu1 %6354 }
 0x2b2   :  { %v6357_v52 = vunpack.i.h.bf16 %v6355_v57  ;;  %v6356_v46 = vunpack.i.l.bf16 %v6355_v57 }
 0x2b3   :  { %v6360_v10 = vpop.permute.xlu0 %6359 }
 0x2b4   :  { %v4790_v41 = vmax.f32 %v9242_v2, %v6357_v52  ;;  %v4789_v51 = vmax.f32 %v9243_v37, %v6356_v46  ;;  %v6362_v43 = vunpack.i.h.bf16 %v6360_v10  ;;  %v6361_v3 = vunpack.i.l.bf16 %v6360_v10 }
 0x2b6   :  { %v5670_v9 = vpack.c.bf16 %v4790_v41, %v4790_v41  ;;  %v5669_v7 = vpack.c.bf16 %v4789_v51, %v4789_v51  ;;  %v4788_v13 = vmax.f32 %v9244_v56, %v6362_v43  ;;  %v4787_v34 = vmax.f32 %v9245_v19, %v6361_v3  ;;  %v9250_v43 = vld [vmem:[#allocation6_spill] sm:$0xff] }
 0x2b8   :  { %5111 = vst.msk [vmem:[%s8987_s3 + $0xac] sm:$0xf] %vm5067_vm5, %v5670_v9  ;;  %5110 = vst.msk [vmem:[%s8987_s3 + $0xa8] sm:$0xf] %vm5067_vm5, %v5669_v7  ;;  %v5668_v11 = vpack.c.bf16 %v4788_v13, %v4788_v13  ;;  %v5667_v33 = vpack.c.bf16 %v4787_v34, %v4787_v34 }
 0x2ba   :  { %5109 = vst.msk [vmem:[%s8987_s3 + $0xa4] sm:$0xf] %vm5067_vm5, %v5668_v11  ;;  %5108 = vst.msk [vmem:[%s8987_s3 + $0xa0] sm:$0xf] %vm5067_vm5, %v5667_v33 }
 0x2bb   :  { %v6365_v29 = vpop.permute.xlu1 %6364 }
 0x2bc   :  { %v6367_v28 = vunpack.i.h.bf16 %v6365_v29  ;;  %v6366_v55 = vunpack.i.l.bf16 %v6365_v29 }
 0x2bd   :  { %v6370_v47 = vpop.permute.xlu0 %6369 }
 0x2be   :  { %v4794_v32 = vmax.f32 %v8556_v26, %v6367_v28  ;;  %v4793_v23 = vmax.f32 %v8560_v0, %v6366_v55  ;;  %v6372_v39 = vunpack.i.h.bf16 %v6370_v47  ;;  %v6371_v1 = vunpack.i.l.bf16 %v6370_v47 }
 0x2c0   :  { %v5674_v59 = vpack.c.bf16 %v4794_v32, %v4794_v32  ;;  %v5673_v21 = vpack.c.bf16 %v4793_v23, %v4793_v23  ;;  %v4792_v22 = vmax.f32 %v8564_v14, %v6372_v39  ;;  %v4791_v20 = vmax.f32 %v9246_v60, %v6371_v1 }
 0x2c2   :  { %5115 = vst.msk [vmem:[%s8987_s3 + $0xbc] sm:$0xf] %vm5067_vm5, %v5674_v59  ;;  %5114 = vst.msk [vmem:[%s8987_s3 + $0xb8] sm:$0xf] %vm5067_vm5, %v5673_v21  ;;  %v5672_v26 = vpack.c.bf16 %v4792_v22, %v4792_v22  ;;  %v5671_v0 = vpack.c.bf16 %v4791_v20, %v4791_v20 }
 0x2c4   :  { %5113 = vst.msk [vmem:[%s8987_s3 + $0xb4] sm:$0xf] %vm5067_vm5, %v5672_v26  ;;  %5112 = vst.msk [vmem:[%s8987_s3 + $0xb0] sm:$0xf] %vm5067_vm5, %v5671_v0 }
 0x2c5   :  { %v6375_v14 = vpop.permute.xlu1 %6374 }
 0x2c6   :  { %v6377_v42 = vunpack.i.h.bf16 %v6375_v14  ;;  %v6376_v61 = vunpack.i.l.bf16 %v6375_v14 }
 0x2c7   :  { %v6380_v35 = vpop.permute.xlu0 %6379 }
 0x2c8   :  { %v4798_v53 = vmax.f32 %v8578_v17, %v6377_v42  ;;  %v4797_v25 = vmax.f32 %v9247_v62, %v6376_v61  ;;  %v6382_v40 = vunpack.i.h.bf16 %v6380_v35  ;;  %v6381_v38 = vunpack.i.l.bf16 %v6380_v35 }
 0x2ca   :  { %v5678_v6 = vpack.c.bf16 %v4798_v53, %v4798_v53  ;;  %v5677_v58 = vpack.c.bf16 %v4797_v25, %v4797_v25  ;;  %v4796_v50 = vmax.f32 %v9248_v54, %v6382_v40  ;;  %v4795_v4 = vmax.f32 %v9249_v36, %v6381_v38 }
 0x2cc   :  { %5119 = vst.msk [vmem:[%s8987_s3 + $0xcc] sm:$0xf] %vm5067_vm5, %v5678_v6  ;;  %5118 = vst.msk [vmem:[%s8987_s3 + $0xc8] sm:$0xf] %vm5067_vm5, %v5677_v58  ;;  %v5676_v17 = vpack.c.bf16 %v4796_v50, %v4796_v50  ;;  %v5675_v45 = vpack.c.bf16 %v4795_v4, %v4795_v4 }
 0x2ce   :  { %5117 = vst.msk [vmem:[%s8987_s3 + $0xc4] sm:$0xf] %vm5067_vm5, %v5676_v17  ;;  %5116 = vst.msk [vmem:[%s8987_s3 + $0xc0] sm:$0xf] %vm5067_vm5, %v5675_v45  ;;  %v6385_v49 = vpop.permute.xlu1 %6384 }
 0x2cf   :  { %v6387_v18 = vunpack.i.h.bf16 %v6385_v49  ;;  %v6386_v30 = vunpack.i.l.bf16 %v6385_v49 }
 0x2d0   :  { %v6390_v57 = vpop.permute.xlu0 %6389 }
 0x2d1   :  { %v4802_v52 = vmax.f32 %v8600_v12, %v6387_v18  ;;  %v4801_v46 = vmax.f32 %v8604_v44, %v6386_v30  ;;  %v6392_v10 = vunpack.i.h.bf16 %v6390_v57  ;;  %v6391_v2 = vunpack.i.l.bf16 %v6390_v57 }
 0x2d3   :  { %v5682_v41 = vpack.c.bf16 %v4802_v52, %v4802_v52  ;;  %v5681_v37 = vpack.c.bf16 %v4801_v46, %v4801_v46  ;;  %v4800_v51 = vmax.f32 %v8608_v27, %v6392_v10  ;;  %v4799_v3 = vmax.f32 %v9250_v43, %v6391_v2 }
 0x2d5   :  { %5123 = vst.msk [vmem:[%s8987_s3 + $0xdc] sm:$0xf] %vm5067_vm5, %v5682_v41  ;;  %5122 = vst.msk [vmem:[%s8987_s3 + $0xd8] sm:$0xf] %vm5067_vm5, %v5681_v37  ;;  %v5680_v12 = vpack.c.bf16 %v4800_v51, %v4800_v51  ;;  %v5679_v44 = vpack.c.bf16 %v4799_v3, %v4799_v3 }
 0x2d7   :  { %5121 = vst.msk [vmem:[%s8987_s3 + $0xd4] sm:$0xf] %vm5067_vm5, %v5680_v12  ;;  %5120 = vst.msk [vmem:[%s8987_s3 + $0xd0] sm:$0xf] %vm5067_vm5, %v5679_v44 }
 0x2d8   :  { %v6395_v27 = vpop.permute.xlu1 %6394 }
 0x2d9   :  { %v6397_v9 = vunpack.i.h.bf16 %v6395_v27  ;;  %v6396_v7 = vunpack.i.l.bf16 %v6395_v27 }
 0x2da   :  { %v6400_v56 = vpop.permute.xlu0 %6399 }
 0x2db   :  { %v4806_v13 = vmax.f32 %v8622_v15, %v6397_v9  ;;  %v4805_v19 = vmax.f32 %v8626_v63, %v6396_v7  ;;  %v6402_v34 = vunpack.i.h.bf16 %v6400_v56  ;;  %v6401_v11 = vunpack.i.l.bf16 %v6400_v56 }
 0x2dd   :  { %v5686_v33 = vpack.c.bf16 %v4806_v13, %v4806_v13  ;;  %v5685_v29 = vpack.c.bf16 %v4805_v19, %v4805_v19  ;;  %v4804_v28 = vmax.f32 %v8630_v31, %v6402_v34  ;;  %v4803_v55 = vmax.f32 %v8634_v24, %v6401_v11 }
 0x2df   :  { %5127 = vst.msk [vmem:[%s8987_s3 + $0xec] sm:$0xf] %vm5067_vm5, %v5686_v33  ;;  %5126 = vst.msk [vmem:[%s8987_s3 + $0xe8] sm:$0xf] %vm5067_vm5, %v5685_v29  ;;  %v5684_v15 = vpack.c.bf16 %v4804_v28, %v4804_v28  ;;  %v5683_v63 = vpack.c.bf16 %v4803_v55, %v4803_v55 }
 0x2e1   :  { %5125 = vst.msk [vmem:[%s8987_s3 + $0xe4] sm:$0xf] %vm5067_vm5, %v5684_v15  ;;  %5124 = vst.msk [vmem:[%s8987_s3 + $0xe0] sm:$0xf] %vm5067_vm5, %v5683_v63 }
 0x2e2   :  { %v6410_v24 = vpop.permute.xlu1 %6409 }
 0x2e3   :  { %v6412_v31 = vunpack.i.h.bf16 %v6410_v24  ;;  %v6411_v47 = vunpack.i.l.bf16 %v6410_v24 }
 0x2e4   :  { %v6405_v32 = vpop.permute.xlu0 %6404 }
 0x2e5   :  { %v4810_v23 = vmax.f32 %v8664_v8, %v6412_v31  ;;  %v4809_v39 = vmax.f32 %v8668_v48, %v6411_v47  ;;  %v6407_v1 = vunpack.i.h.bf16 %v6405_v32  ;;  %v6406_v59 = vunpack.i.l.bf16 %v6405_v32 }
 0x2e7   :  { %v5690_v21 = vpack.c.bf16 %v4810_v23, %v4810_v23  ;;  %v5689_v22 = vpack.c.bf16 %v4809_v39, %v4809_v39  ;;  %v4808_v60 = vmax.f32 %v8672_v5, %v6407_v1  ;;  %v4807_v20 = vmax.f32 %v8676_v16, %v6406_v59 }
 0x2e9   :  { %5131 = vst.msk [vmem:[%s8987_s3 + $0xfc] sm:$0xf] %vm5067_vm5, %v5690_v21  ;;  %5130 = vst.msk [vmem:[%s8987_s3 + $0xf8] sm:$0xf] %vm5067_vm5, %v5689_v22  ;;  %v5688_v8 = vpack.c.bf16 %v4808_v60, %v4808_v60  ;;  %v5687_v48 = vpack.c.bf16 %v4807_v20, %v4807_v20 }
 0x2eb   :  { %5129 = vst.msk [vmem:[%s8987_s3 + $0xf4] sm:$0xf] %vm5067_vm5, %v5688_v8  ;;  %5128 = vst.msk [vmem:[%s8987_s3 + $0xf0] sm:$0xf] %vm5067_vm5, %v5687_v48 }

// kernel: model_forward.4
= control target key start
LH: loop header
LB: loop body
LE: loop exit
PB: predicated region body
PF: predicated region fallthrough
CT: control target
= control target key end

     0   :  { %vm63_vm0 = vsmask.f32 3328  ;;  %vm64_vm1 = vsmask.f32 7440  ;;  %s2186_s29 = smov 64   ;;  %vm1649_vm3 = vcmask 257024   ;;  %s2904_s1 = inlined_call_operand.vmem [shape: bf16[4,128,128], index: 1, kind: input, shape index: {}]   ;;  %s2905_s0 = inlined_call_operand.vmem [shape: bf16[2,9,9,128], index: 0, kind: input, shape index: {}]   ;;  %s2906_s2 = inlined_call_operand.vmem [shape: f32[1,128], index: 2, kind: input, shape index: {}]   ;;  %s2907_s3 = inlined_call_operand.vmem [shape: bf16[128,32], index: 3, kind: output, shape index: {}]  }
   0x1   :  { %v2137_v0 = vld [vmem:[%s2904_s1 + $0x78] sm:$0xff]   ;;  %v2139_v2 = vld [vmem:[%s2904_s1 + $0x70] sm:$0xff]   ;;  %v2141_v4 = vld [vmem:[%s2904_s1 + $0x68] sm:$0xff]  }
   0x2   :  { %v2138_v1 = vld [vmem:[%s2904_s1 + $0x38] sm:$0xff]   ;;  %1927 = vmatprep.subr.bf16.mxu0 %v2137_v0  ;;  %v2140_v3 = vld [vmem:[%s2904_s1 + $0x30] sm:$0xff]   ;;  %v2142_v5 = vld [vmem:[%s2904_s1 + $0x28] sm:$0xff]  }
   0x3   :  { %1959 = vmatprep.subr.bf16.mxu1 %v2138_v1  ;;  %1928 = vmatpush3.bf16.msra.mxu0 %v2137_v0  ;;  %v2143_v6 = vld [vmem:[%s2904_s1 + $0x60] sm:$0xff]   ;;  %v2145_v8 = vld [vmem:[%s2904_s1 + $0x58] sm:$0xff]   ;;  %v2147_v10 = vld [vmem:[%s2904_s1 + $0x50] sm:$0xff]  }
   0x4   :  { %1960 = vmatpush3.bf16.msra.mxu1 %v2138_v1  ;;  %1929 = vmatprep.subr.bf16.mxu0 %v2139_v2  ;;  %v2144_v7 = vld [vmem:[%s2904_s1 + $0x20] sm:$0xff]   ;;  %v2146_v9 = vld [vmem:[%s2904_s1 + $0x18] sm:$0xff]   ;;  %v2148_v11 = vld [vmem:[%s2904_s1 + $0x10] sm:$0xff]  }
   0x5   :  { %1961 = vmatprep.subr.bf16.mxu1 %v2140_v3  ;;  %v15_v12 = vld [vmem:[%s2905_s0] sm:$0xf]  ;;  %v16_v13 = vld [vmem:[%s2905_s0 + $0x8] sm:$0xf]  ;;  %v47_v14 = vld [vmem:[%s2905_s0 + $0x4] sm:$0x1] }
   0x6   :  { %v48_v15 = vld [vmem:[%s2905_s0 + $0xc] sm:$0x1]  ;;  %v67_v16 = vshrl.u32 %v15_v12, 16  ;;  %v70_v17 = vshll.u32 %v15_v12, 16  ;;  %v76_v18 = vshll.u32 %v47_v14, 16  ;;  %v81_v19 = vshrl.u32 %v16_v13, 16  ;;  %vm2283_vm2 = vmor %vm63_vm0, %vm64_vm1 }
   0x7   :  { %1930 = vmatpush3.bf16.msra.mxu0 %v2139_v2  ;;  %v2149_v20 = vld [vmem:[%s2904_s1 + $0x48] sm:$0xff]   ;;  %v84_v21 = vshll.u32 %v16_v13, 16  ;;  %v90_v22 = vshll.u32 %v48_v15, 16  ;;  %v1702_v23 = vcombine.low %v15_v12, %v16_v13  ;;  %v2261_v24 = vld [vmem:[%s2905_s0 + $0x10] sm:$0xf]  ;;  %v2151_v46 = vld [vmem:[%s2904_s1 + $0x40] sm:$0xff]  }
   0x8   :  { %1962 = vmatpush3.bf16.msra.mxu1 %v2140_v3  ;;  %1931 = vmatprep.subr.bf16.mxu0 %v2141_v4  ;;  %v2266_v25 = vld [vmem:[%s2905_s0 + $0x18] sm:$0xf]  ;;  %v69_v26 = vrot.slane %v67_v16, 4  ;;  %v72_v27 = vrot.slane %v70_v17, 5  ;;  %v78_v28 = vrot.slane %v76_v18, 5  ;;  %v83_v29 = vrot.slane %v81_v19, 4 }
   0x9   :  { %1963 = vmatprep.subr.bf16.mxu1 %v2142_v5  ;;  %v49_v30 = vld [vmem:[%s2905_s0 + $0x14] sm:$0x1]  ;;  %v86_v31 = vrot.slane %v84_v21, 5  ;;  %v92_v32 = vrot.slane %v90_v22, 5  ;;  %v50_v33 = vld [vmem:[%s2905_s0 + $0x1c] sm:$0x1]  ;;  %1975 = vmatprep.mubr.bf16.mxu1 %v1702_v23  ;;  %v1703_v18 = vcombine.low %v2261_v24, %v2266_v25 }
   0xa   :  { %v95_v34 = vshrl.u32 %v2261_v24, 16  ;;  %v98_v35 = vshll.u32 %v2261_v24, 16  ;;  %v2150_v36 = vld [vmem:[%s2904_s1 + $0x8] sm:$0xff]   ;;  %v73_v37 = vor.u32 %v72_v27, %v69_v26  ;;  %v104_v38 = vshll.u32 %v49_v30, 16  ;;  %v2152_v53 = vld [vmem:[%s2904_s1] sm:$0xff]   ;;  %v2155_v2 = vld [vmem:[%s2904_s1 + $0xb8] sm:$0xff]  }
   0xb   :  { %1932 = vmatpush3.bf16.msra.mxu0 %v2141_v4  ;;  %v109_v39 = vshrl.u32 %v2266_v25, 16  ;;  %v112_v40 = vshll.u32 %v2266_v25, 16  ;;  %v87_v42 = vor.u32 %v86_v31, %v83_v29  ;;  %v118_v45 = vshll.u32 %v50_v33, 16  ;;  %v2300_v59 = vld [vmem:[%s2905_s0 + $0x20] sm:$0xf]  ;;  %v2157_v26 = vld [vmem:[%s2904_s1 + $0xb0] sm:$0xff]  }
   0xc   :  { %1964 = vmatpush3.bf16.msra.mxu1 %v2142_v5  ;;  %1933 = vmatprep.subr.bf16.mxu0 %v2143_v6  ;;  %v97_v43 = vrot.slane %v95_v34, 4  ;;  %v100_v44 = vrot.slane %v98_v35, 5  ;;  %v74_v47 = vrot.slane %v73_v37, 4  ;;  %v106_v52 = vrot.slane %v104_v38, 5  ;;  %v2305_v62 = vld [vmem:[%s2905_s0 + $0x28] sm:$0xf] }
   0xd   :  { %1965 = vmatprep.subr.bf16.mxu1 %v2144_v7  ;;  %v111_v48 = vrot.slane %v109_v39, 4  ;;  %v114_v49 = vrot.slane %v112_v40, 5  ;;  %v88_v50 = vrot.slane %v87_v42, 4  ;;  %v120_v56 = vrot.slane %v118_v45, 5  ;;  %v51_v63 = vld [vmem:[%s2905_s0 + $0x24] sm:$0x1] }
   0xe   :  { %v101_v51 = vor.u32 %v100_v44, %v97_v43  ;;  %v79_v54 = vsel %vm2283_vm2, %v74_v47, %v78_v28  ;;  %v123_v0 = vshrl.u32 %v2300_v59, 16  ;;  %v52_v3 = vld [vmem:[%s2905_s0 + $0x2c] sm:$0x1]  ;;  %v126_v4 = vshll.u32 %v2300_v59, 16  ;;  %v2330_v12 = vld [vmem:[%s2905_s0 + $0x30] sm:$0xf] }
   0xf   :  { %1934 = vmatpush3.bf16.msra.mxu0 %v2143_v6  ;;  %v115_v55 = vor.u32 %v114_v49, %v111_v48  ;;  %v93_v57 = vsel %vm2283_vm2, %v88_v50, %v92_v32  ;;  %v132_v5 = vshll.u32 %v51_v63, 16  ;;  %v137_v6 = vshrl.u32 %v2305_v62, 16  ;;  %v2335_v17 = vld [vmem:[%s2905_s0 + $0x38] sm:$0xf]  ;;  %v53_v22 = vld [vmem:[%s2905_s0 + $0x34] sm:$0x1] }
  0x10   :  { %1966 = vmatpush3.bf16.msra.mxu1 %v2144_v7  ;;  %1935 = vmatprep.subr.bf16.mxu0 %v2145_v8  ;;  %v102_v58 = vrot.slane %v101_v51, 4  ;;  %v1686_v60 = vcombine.low %v79_v54, %v93_v57  ;;  %v128_v14 = vrot.slane %v126_v4, 5  ;;  %v1704_v21 = vcombine.low %v2300_v59, %v2305_v62  ;;  %v54_v23 = vld [vmem:[%s2905_s0 + $0x3c] sm:$0x1]  ;;  %v2158_v29 = vld [vmem:[%s2904_s1 + $0xf0] sm:$0xff]   ;;  %v2161_v43 = vld [vmem:[%s2904_s1 + $0xa8] sm:$0xff]  }
  0x11   :  { %1967 = vmatprep.subr.bf16.mxu1 %v2146_v9  ;;  %v116_v61 = vrot.slane %v115_v55, 4  ;;  %v134_v15 = vrot.slane %v132_v5, 5  ;;  %v139_v16 = vrot.slane %v137_v6, 4  ;;  %v151_v25 = vshrl.u32 %v2330_v12, 16  ;;  %v2162_v44 = vld [vmem:[%s2904_s1 + $0xe8] sm:$0xff]   ;;  %v2164_v6 = vld [vmem:[%s2904_s1 + $0xe0] sm:$0xff]  }
  0x12   :  { %v107_v1 = vsel %vm2283_vm2, %v102_v58, %v106_v52  ;;  %1943 = vmatprep.mubr.bf16.mxu0 %v1686_v60  ;;  %v154_v27 = vshll.u32 %v2330_v12, 16  ;;  %v160_v28 = vshll.u32 %v53_v22, 16  ;;  %v165_v31 = vshrl.u32 %v2335_v17, 16  ;;  %v23_v50 = vld [vmem:[%s2905_s0 + $0x48] sm:$0xf] }
  0x13   :  { %1936 = vmatpush3.bf16.msra.mxu0 %v2145_v8  ;;  %v121_v7 = vsel %vm2283_vm2, %v116_v61, %v120_v56  ;;  %v2156_v8 = vld [vmem:[%s2904_s1 + $0xf8] sm:$0xff]   ;;  %v168_v32 = vshll.u32 %v2335_v17, 16  ;;  %v174_v33 = vshll.u32 %v54_v23, 16  ;;  %v153_v35 = vrot.slane %v151_v25, 4  ;;  %v24_v51 = vld [vmem:[%s2905_s0 + $0x50] sm:$0xf] }
  0x14   :  { %1968 = vmatpush3.bf16.msra.mxu1 %v2146_v9  ;;  %1937 = vmatprep.subr.bf16.mxu0 %v2147_v10  ;;  %v125_v9 = vrot.slane %v123_v0, 4  ;;  %v1687_v13 = vcombine.low %v107_v1, %v121_v7  ;;  %v162_v37 = vrot.slane %v160_v28, 5  ;;  %v167_v39 = vrot.slane %v165_v31, 4  ;;  %v55_v54 = vld [vmem:[%s2905_s0 + $0x4c] sm:$0x1]  ;;  %v2163_v0 = vld [vmem:[%s2904_s1 + $0xa0] sm:$0xff]  }
  0x15   :  { %1969 = vmatprep.subr.bf16.mxu1 %v2148_v11  ;;  %v170_v40 = vrot.slane %v168_v32, 5  ;;  %v176_v42 = vrot.slane %v174_v33, 5  ;;  %v1705_v49 = vcombine.low %v2330_v12, %v2335_v17  ;;  %v56_v55 = vld [vmem:[%s2905_s0 + $0x54] sm:$0x1]  ;;  %v179_v56 = vshrl.u32 %v23_v50, 16  ;;  %v2168_v28 = vld [vmem:[%s2904_s1 + $0xd8] sm:$0xff]  }
  0x16   :  { %v129_v24 = vor.u32 %v128_v14, %v125_v9  ;;  %v1706_v57 = vcombine.low %v23_v50, %v24_v51  ;;  %v182_v59 = vshll.u32 %v23_v50, 16  ;;  %v188_v60 = vshll.u32 %v55_v54, 16  ;;  %v2394_v4 = vld [vmem:[%s2905_s0 + $0x60] sm:$0xf]  ;;  %v58_v14 = vld [vmem:[%s2905_s0 + $0x64] sm:$0x1] }
  0x17   :  { %1938 = vmatpush3.bf16.msra.mxu0 %v2147_v10  ;;  %v140_v10 = vshll.u32 %v2305_v62, 16  ;;  %v171_v48 = vor.u32 %v170_v40, %v167_v39  ;;  %v193_v61 = vshrl.u32 %v24_v51, 16  ;;  %v2384_v62 = vld [vmem:[%s2905_s0 + $0x58] sm:$0xf]  ;;  %v181_v1 = vrot.slane %v179_v56, 4 }
  0x18   :  { %1970 = vmatpush3.bf16.msra.mxu1 %v2148_v11  ;;  %1939 = vmatprep.subr.bf16.mxu0 %v2149_v20  ;;  %v146_v11 = vshll.u32 %v52_v3, 16  ;;  %v130_v34 = vrot.slane %v129_v24, 4  ;;  %v202_v3 = vshll.u32 %v56_v55, 16  ;;  %v184_v7 = vrot.slane %v182_v59, 5  ;;  %v27_v40 = vld [vmem:[%s2905_s0 + $0x68] sm:$0xf] }
  0x19   :  { %1971 = vmatprep.subr.bf16.mxu1 %v2150_v36  ;;  %v142_v19 = vrot.slane %v140_v10, 5  ;;  %v172_v58 = vrot.slane %v171_v48, 4  ;;  %v195_v9 = vrot.slane %v193_v61, 4  ;;  %v57_v10 = vld [vmem:[%s2905_s0 + $0x5c] sm:$0x1]  ;;  %v210_v17 = vshll.u32 %v2384_v62, 16 }
  0x1a   :  { %v135_v45 = vsel %vm2283_vm2, %v130_v34, %v134_v15  ;;  %v207_v15 = vshrl.u32 %v2384_v62, 16  ;;  %v224_v22 = vshll.u32 %v2394_v4, 16  ;;  %v230_v23 = vshll.u32 %v58_v14, 16 }
  0x1b   :  { %1940 = vmatpush3.bf16.msra.mxu0 %v2149_v20  ;;  %v148_v20 = vrot.slane %v146_v11, 5  ;;  %v143_v30 = vor.u32 %v142_v19, %v139_v16  ;;  %v177_v5 = vsel %vm2283_vm2, %v172_v58, %v176_v42  ;;  %v185_v16 = vor.u32 %v184_v7, %v181_v1  ;;  %v28_v42 = vld [vmem:[%s2905_s0 + $0x70] sm:$0xf]  ;;  %v30_v58 = vld [vmem:[%s2905_s0 + $0x80] sm:$0xf] }
  0x1c   :  { %1972 = vmatpush3.bf16.msra.mxu1 %v2150_v36  ;;  %1941 = vmatprep.subr.bf16.mxu0 %v2151_v46  ;;  %v156_v36 = vrot.slane %v154_v27, 5  ;;  %v221_v19 = vshrl.u32 %v2394_v4, 16  ;;  %v212_v25 = vrot.slane %v210_v17, 5  ;;  %v226_v31 = vrot.slane %v224_v22, 5 }
  0x1d   :  { %1973 = vmatprep.subr.bf16.mxu1 %v2152_v53  ;;  %v144_v38 = vrot.slane %v143_v30, 4  ;;  %v186_v24 = vrot.slane %v185_v16, 4  ;;  %v232_v32 = vrot.slane %v230_v23, 5  ;;  %v1708_v48 = vcombine.low %v27_v40, %v28_v42 }
  0x1e   :  { %v223_v27 = vrot.slane %v221_v19, 4  ;;  %v238_v50 = vshll.u32 %v27_v40, 16  ;;  %v252_v56 = vshll.u32 %v28_v42, 16 }
  0x1f   :  { %1942 = vmatpush3.bf16.msra.mxu0 %v2151_v46  ;;  %v157_v46 = vor.u32 %v156_v36, %v153_v35  ;;  %v149_v47 = vsel %vm2283_vm2, %v144_v38, %v148_v20  ;;  %v1707_v35 = vcombine.low %v2384_v62, %v2394_v4  ;;  %v2169_v36 = vld [vmem:[%s2904_s1 + $0x90] sm:$0xff]   ;;  %v62_v4 = vld [vmem:[%s2905_s0 + $0x84] sm:$0x1] }
  0x20   :  { %1974 = vmatpush3.bf16.msra.mxu1 %v2152_v53  ;;  %1991 = vmatprep.subr.bf16.mxu0 %v2155_v2  ;;  %v1688_v52 = vcombine.low %v135_v45, %v149_v47  ;;  %v227_v39 = vor.u32 %v226_v31, %v223_v27  ;;  %v59_v45 = vld [vmem:[%s2905_s0 + $0x6c] sm:$0x1]  ;;  %v235_v47 = vshrl.u32 %v27_v40, 16  ;;  %v286_v14 = vshll.u32 %v62_v4, 16  ;;  %v1766_v31 = vld [vmem:[%s2905_s0 + $0x8] sm:$0xf] }
  0x21   :  { %2023 = vmatprep.subr.bf16.mxu1 %v2156_v8  ;;  %v158_v53 = vrot.slane %v157_v46, 4  ;;  %v60_v46 = vld [vmem:[%s2905_s0 + $0x74] sm:$0x1] }
  0x22   :  { %1944 = vmatmul.mubr.bf16.vlgmr.msra.gmra.mxu0 %v1687_v13  ;;  %v204_v13 = vrot.slane %v202_v3, 5  ;;  %v237_v55 = vrot.slane %v235_v47, 4  ;;  %v288_v22 = vrot.slane %v286_v14, 5 }
  0x23   :  { %1976 = vmatmul.mubr.bf16.vlgmr.msra.gmra.mxu1 %v1703_v18  ;;  %1992 = vmatpush3.bf16.msra.mxu0 %v2155_v2  ;;  %v163_v63 = vsel %vm2283_vm2, %v158_v53, %v162_v37  ;;  %v196_v2 = vshll.u32 %v24_v51, 16  ;;  %v216_v18 = vshll.u32 %v57_v10, 16  ;;  %v2170_v37 = vld [vmem:[%s2904_s1 + $0xd0] sm:$0xff]   ;;  %v244_v51 = vshll.u32 %v59_v45, 16  ;;  %v29_v53 = vld [vmem:[%s2905_s0 + $0x78] sm:$0xf] }
  0x24   :  { %2024 = vmatpush3.bf16.msra.mxu1 %v2156_v8  ;;  %1993 = vmatprep.subr.bf16.mxu0 %v2157_v26  ;;  %v190_v8 = vrot.slane %v188_v60, 5  ;;  %v1689_v11 = vcombine.low %v163_v63, %v177_v5  ;;  %v240_v60 = vrot.slane %v238_v50, 5  ;;  %v61_v63 = vld [vmem:[%s2905_s0 + $0x7c] sm:$0x1]  ;;  %v263_v5 = vshrl.u32 %v29_v53, 16 }
  0x25   :  { %2025 = vmatprep.subr.bf16.mxu1 %v2158_v29  ;;  %1979 = vmatprep.mubr.bf16.mxu1 %v1704_v21  ;;  %v198_v12 = vrot.slane %v196_v2, 5  ;;  %v209_v21 = vrot.slane %v207_v15, 4  ;;  %v218_v30 = vrot.slane %v216_v18, 5  ;;  %v246_v61 = vrot.slane %v244_v51, 5  ;;  %v2175_v15 = vld [vmem:[%s2904_s1 + $0x80] sm:$0xff]  }
  0x26   :  { %1947 = vmatprep.mubr.bf16.mxu0 %v1688_v52  ;;  %v191_v33 = vsel %vm2283_vm2, %v186_v24, %v190_v8  ;;  %v249_v52 = vshrl.u32 %v28_v42, 16  ;;  %v254_v2 = vrot.slane %v252_v56, 5  ;;  %v241_v7 = vor.u32 %v240_v60, %v237_v55  ;;  %v1771_v55 = vld [vmem:[%s2905_s0 + $0x1c] sm:$0x1]  ;;  %v1772_v56 = vld [vmem:[%s2905_s0 + $0x20] sm:$0xf] }
  0x27   :  { %1994 = vmatpush3.bf16.msra.mxu0 %v2157_v26  ;;  %v199_v20 = vor.u32 %v198_v12, %v195_v9  ;;  %v2167_v26 = vld [vmem:[%s2904_s1 + $0x98] sm:$0xff]   ;;  %v213_v34 = vor.u32 %v212_v25, %v209_v21  ;;  %v266_v8 = vshll.u32 %v29_v53, 16  ;;  %v272_v9 = vshll.u32 %v61_v63, 16 }
  0x28   :  { %2026 = vmatpush3.bf16.msra.mxu1 %v2158_v29  ;;  %1995 = vmatprep.subr.bf16.mxu0 %v2161_v43  ;;  %v251_v62 = vrot.slane %v249_v52, 4  ;;  %v277_v10 = vshrl.u32 %v30_v58, 16  ;;  %v265_v12 = vrot.slane %v263_v5, 4  ;;  %v242_v16 = vrot.slane %v241_v7, 4  ;;  %v2178_v63 = vld [vmem:[%s2905_s0 + $0x18] ss:$8 sps:$4 sm:$0xff]  }
  0x29   :  { %2027 = vmatprep.subr.bf16.mxu1 %v2162_v44  ;;  %v200_v29 = vrot.slane %v199_v20, 4  ;;  %v268_v17 = vrot.slane %v266_v8, 5  ;;  %v274_v18 = vrot.slane %v272_v9, 5  ;;  %v1709_v23 = vcombine.low %v29_v53, %v30_v58  ;;  %v1770_v53 = vld [vmem:[%s2905_s0 + $0x18] sm:$0xf] }
  0x2a   :  { %1948 = vmatmul.mubr.bf16.gmra.mxu0 %v1689_v11  ;;  %v255_v11 = vor.u32 %v254_v2, %v251_v62  ;;  %v279_v19 = vrot.slane %v277_v10, 4  ;;  %v247_v24 = vsel %vm2283_vm2, %v242_v16, %v246_v61  ;;  %v984_v60 = vshll.u32 %v1770_v53, 16  ;;  %v2179_v7 = vld [vmem:[%s2905_s0 + $0x28] ss:$8 sps:$4 sm:$0xff]  }
  0x2b   :  { %1980 = vmatmul.mubr.bf16.gmra.mxu1 %v1705_v49  ;;  %1996 = vmatpush3.bf16.msra.mxu0 %v2161_v43  ;;  %v205_v38 = vsel %vm2283_vm2, %v200_v29, %v204_v13  ;;  %v228_v49 = vrot.slane %v227_v39, 4  ;;  %v280_v13 = vshll.u32 %v30_v58, 16  ;;  %v269_v25 = vor.u32 %v268_v17, %v265_v12  ;;  %v1774_v12 = vld [vmem:[%s2905_s0 + $0x28] sm:$0xf]  ;;  %v1776_v16 = vld [vmem:[%s2905_s0 + $0x30] sm:$0xf] }
  0x2c   :  { %2028 = vmatpush3.bf16.msra.mxu1 %v2162_v44  ;;  %1997 = vmatprep.subr.bf16.mxu0 %v2163_v0  ;;  %v1690_v43 = vcombine.low %v191_v33, %v205_v38  ;;  %v214_v44 = vrot.slane %v213_v34, 4  ;;  %v256_v20 = vrot.slane %v255_v11, 4  ;;  %v2177_v33 = vld [vmem:[%s2905_s0 + $0x8] ss:$8 sps:$4 sm:$0xff]   ;;  %v1767_v34 = vld [vmem:[%s2905_s0 + $0xc] sm:$0x1] }
  0x2d   :  { %2029 = vmatprep.subr.bf16.mxu1 %v2164_v6  ;;  %1983 = vmatprep.mubr.bf16.mxu1 %v1706_v57  ;;  %v258_v57 = vshll.u32 %v60_v46, 16  ;;  %v233_v59 = vsel %vm2283_vm2, %v228_v49, %v232_v32  ;;  %v282_v21 = vrot.slane %v280_v13, 5  ;;  %v1769_v38 = vld [vmem:[%s2905_s0 + $0x14] sm:$0x1]  ;;  %v956_v39 = vshll.u32 %v1766_v31, 16 }
  0x2e   :  { %1951 = vmatprep.mubr.bf16.mxu0 %v1690_v43  ;;  %v219_v54 = vsel %vm2283_vm2, %v214_v44, %v218_v30  ;;  %v270_v30 = vrot.slane %v269_v25, 4  ;;  %v962_v40 = vshll.u32 %v1767_v34, 16  ;;  %v976_v46 = vshll.u32 %v1769_v38, 16  ;;  %v1777_v17 = vld [vmem:[%s2905_s0 + $0x34] sm:$0x1] }
  0x2f   :  { %1998 = vmatpush3.bf16.msra.mxu0 %v2163_v0  ;;  %v2173_v0 = vld [vmem:[%s2904_s1 + $0x88] sm:$0xff]   ;;  %v1691_v1 = vcombine.low %v219_v54, %v233_v59  ;;  %v260_v3 = vrot.slane %v258_v57, 5  ;;  %v1773_v57 = vld [vmem:[%s2905_s0 + $0x24] sm:$0x1]  ;;  %v981_v59 = vshrl.u32 %v1770_v53, 16  ;;  %v990_v61 = vshll.u32 %v1771_v55, 16 }
  0x30   :  { %2030 = vmatpush3.bf16.msra.mxu1 %v2164_v6  ;;  %1999 = vmatprep.subr.bf16.mxu0 %v2167_v26  ;;  %v2174_v6 = vld [vmem:[%s2904_s1 + $0xc8] sm:$0xff]   ;;  %v964_v50 = vrot.slane %v962_v40, 5  ;;  %v978_v52 = vrot.slane %v976_v46, 5  ;;  %v1004_v2 = vshll.u32 %v1773_v57, 16  ;;  %v986_v5 = vrot.slane %v984_v60, 5 }
  0x31   :  { %2031 = vmatprep.subr.bf16.mxu1 %v2168_v28  ;;  %v261_v27 = vsel %vm2283_vm2, %v256_v20, %v260_v3  ;;  %v983_v4 = vrot.slane %v981_v59, 4  ;;  %v1009_v20 = vshrl.u32 %v1774_v12, 16  ;;  %v1780_v40 = vld [vmem:[%s2905_s0 + $0x40] sm:$0xf]  ;;  %v1782_v57 = vld [vmem:[%s2905_s0 + $0x50] sm:$0xf] }
  0x32   :  { %1952 = vmatmul.mubr.bf16.gmra.mxu0 %v1691_v1  ;;  %v1692_v29 = vcombine.low %v247_v24, %v261_v27  ;;  %v998_v1 = vshll.u32 %v1772_v56, 16  ;;  %v1006_v11 = vrot.slane %v1004_v2, 5  ;;  %v1026_v24 = vshll.u32 %v1776_v16, 16  ;;  %v1785_v2 = vld [vmem:[%s2905_s0 + $0x5c] sm:$0x1] }
  0x33   :  { %1984 = vmatmul.mubr.bf16.gmra.mxu1 %v1707_v35  ;;  %2000 = vmatpush3.bf16.msra.mxu0 %v2167_v26  ;;  %v2176_v26 = vld [vmem:[%s2904_s1 + $0xc0] sm:$0xff]   ;;  %v1768_v35 = vld [vmem:[%s2905_s0 + $0x10] sm:$0xf]  ;;  %v987_v14 = vor.u32 %v986_v5, %v983_v4  ;;  %v1011_v27 = vrot.slane %v1009_v20, 4 }
  0x34   :  { %2032 = vmatpush3.bf16.msra.mxu1 %v2168_v28  ;;  %2001 = vmatprep.subr.bf16.mxu0 %v2169_v36  ;;  %v283_v28 = vor.u32 %v282_v21, %v279_v19  ;;  %v967_v42 = vshrl.u32 %v1768_v35, 16  ;;  %v970_v45 = vshll.u32 %v1768_v35, 16  ;;  %v1000_v10 = vrot.slane %v998_v1, 5  ;;  %v1779_v35 = vld [vmem:[%s2905_s0 + $0x3c] sm:$0x1] }
  0x35   :  { %2033 = vmatprep.subr.bf16.mxu1 %v2170_v37  ;;  %1987 = vmatprep.mubr.bf16.mxu1 %v1708_v48  ;;  %v958_v48 = vrot.slane %v956_v39, 5  ;;  %v1012_v21 = vshll.u32 %v1774_v12, 16  ;;  %v1028_v34 = vrot.slane %v1026_v24, 5  ;;  %v2180_v39 = vld [vmem:[%s2905_s0 + $0x38] ss:$8 sps:$4 sm:$0xff]  }
  0x36   :  { %v284_v32 = vrot.slane %v283_v28, 4  ;;  %1955 = vmatprep.mubr.bf16.mxu0 %v1692_v29  ;;  %v969_v49 = vrot.slane %v967_v42, 4  ;;  %v972_v51 = vrot.slane %v970_v45, 5  ;;  %v1032_v29 = vshll.u32 %v1777_v17, 16  ;;  %v1781_v42 = vld [vmem:[%s2905_s0 + $0x44] sm:$0x1] }
  0x37   :  { %2002 = vmatpush3.bf16.msra.mxu0 %v2169_v36  ;;  %v953_v36 = vshrl.u32 %v1766_v31, 16  ;;  %v1014_v28 = vrot.slane %v1012_v21, 5  ;;  %v1786_v12 = vld [vmem:[%s2905_s0 + $0x60] sm:$0xf] }
  0x38   :  { %2034 = vmatpush3.bf16.msra.mxu1 %v2170_v37  ;;  %2003 = vmatprep.subr.bf16.mxu0 %v2173_v0  ;;  %v275_v37 = vsel %vm2283_vm2, %v270_v30, %v274_v18  ;;  %v289_v43 = vsel %vm2283_vm2, %v284_v32, %v288_v22  ;;  %v973_v58 = vor.u32 %v972_v51, %v969_v49  ;;  %v988_v22 = vrot.slane %v987_v14, 4  ;;  %v1778_v30 = vld [vmem:[%s2905_s0 + $0x38] sm:$0xf]  ;;  %v2182_v17 = vld [vmem:[%s2905_s0 + $0x60] ss:$8 sps:$4 sm:$0xff]  }
  0x39   :  { %2035 = vmatprep.subr.bf16.mxu1 %v2174_v6  ;;  %v955_v44 = vrot.slane %v953_v36, 4  ;;  %v1693_v47 = vcombine.low %v275_v37, %v289_v43  ;;  %v1015_v37 = vor.u32 %v1014_v28, %v1011_v27  ;;  %v1034_v38 = vrot.slane %v1032_v29, 5 }
  0x3a   :  { %v974_v3 = vrot.slane %v973_v58, 4  ;;  %v1037_v43 = vshrl.u32 %v1778_v30, 16  ;;  %v1040_v46 = vshll.u32 %v1778_v30, 16  ;;  %v1054_v51 = vshll.u32 %v1780_v40, 16 }
  0x3b   :  { %1988 = vmatmul.mubr.bf16.gmra.mxu1 %v1709_v23  ;;  %2004 = vmatpush3.bf16.msra.mxu0 %v2173_v0  ;;  %v959_v54 = vor.u32 %v958_v48, %v955_v44  ;;  %v995_v0 = vshrl.u32 %v1772_v56, 16  ;;  %v1016_v48 = vrot.slane %v1015_v37, 4  ;;  %v1060_v56 = vshll.u32 %v1781_v42, 16 }
  0x3c   :  { %2036 = vmatpush3.bf16.msra.mxu1 %v2174_v6  ;;  %2005 = vmatprep.subr.bf16.mxu0 %v2175_v15  ;;  %v992_v6 = vrot.slane %v990_v61, 5  ;;  %v979_v13 = vsel %vm2283_vm2, %v974_v3, %v978_v52  ;;  %v1039_v49 = vrot.slane %v1037_v43, 4  ;;  %v2181_v52 = vld [vmem:[%s2905_s0 + $0x50] ss:$8 sps:$4 sm:$0xff]   ;;  %v1056_v60 = vrot.slane %v1054_v51, 5 }
  0x3d   :  { %2037 = vmatprep.subr.bf16.mxu1 %v2176_v26  ;;  %1956 = vmatmul.mubr.bf16.gmra.mxu0 %v1693_v47  ;;  %v960_v62 = vrot.slane %v959_v54, 4  ;;  %v997_v9 = vrot.slane %v995_v0, 4  ;;  %v1046_v47 = vshll.u32 %v1779_v35, 16  ;;  %v1042_v54 = vrot.slane %v1040_v46, 5  ;;  %v1783_v61 = vld [vmem:[%s2905_s0 + $0x54] sm:$0x1] }
  0x3e   :  { %2007 = vmatprep.mubr.bf16.mxu0 %v2177_v33  ;;  %v993_v31 = vsel %vm2283_vm2, %v988_v22, %v992_v6  ;;  %v1062_v1 = vrot.slane %v1060_v56, 5  ;;  %v1065_v3 = vshrl.u32 %v1782_v57, 16  ;;  %v1068_v6 = vshll.u32 %v1782_v57, 16  ;;  %v1788_v22 = vld [vmem:[%s2905_s0 + $0x68] sm:$0xf] }
  0x3f   :  { %2006 = vmatpush3.bf16.msra.mxu0 %v2175_v15  ;;  %v965_v8 = vsel %vm2283_vm2, %v960_v62, %v964_v50  ;;  %v1775_v15 = vld [vmem:[%s2905_s0 + $0x2c] sm:$0x1]  ;;  %v1001_v19 = vor.u32 %v1000_v10, %v997_v9  ;;  %v1051_v50 = vshrl.u32 %v1780_v40, 16  ;;  %v1048_v55 = vrot.slane %v1046_v47, 5  ;;  %v1784_v62 = vld [vmem:[%s2905_s0 + $0x58] sm:$0xf] }
  0x40   :  { %2038 = vmatpush3.bf16.msra.mxu1 %v2176_v26  ;;  %v1814_v18 = vcombine.low %v965_v8, %v979_v13  ;;  %v1018_v23 = vshll.u32 %v1775_v15, 16  ;;  %v1023_v26 = vshrl.u32 %v1776_v16, 16  ;;  %v1043_v0 = vor.u32 %v1042_v54, %v1039_v49 }
  0x41   :  { %v1002_v25 = vrot.slane %v1001_v19, 4  ;;  %v1053_v59 = vrot.slane %v1051_v50, 4  ;;  %v1067_v9 = vrot.slane %v1065_v3, 4  ;;  %v1079_v10 = vshrl.u32 %v1784_v62, 16  ;;  %v1795_v3 = vld [vmem:[%s2905_s0 + $0x84] sm:$0x1] }
  0x42   :  { %2039 = vmatprep.mubr.bf16.mxu1 %v1814_v18  ;;  %v1020_v32 = vrot.slane %v1018_v23, 5  ;;  %v1025_v33 = vrot.slane %v1023_v26, 4  ;;  %v1044_v8 = vrot.slane %v1043_v0, 4  ;;  %v1070_v14 = vrot.slane %v1068_v6, 5  ;;  %v1787_v18 = vld [vmem:[%s2905_s0 + $0x64] sm:$0x1] }
  0x43   :  { %v1007_v36 = vsel %vm2283_vm2, %v1002_v25, %v1006_v11  ;;  %v1057_v5 = vor.u32 %v1056_v60, %v1053_v59  ;;  %v1082_v11 = vshll.u32 %v1784_v62, 16  ;;  %v1088_v16 = vshll.u32 %v1785_v2, 16  ;;  %v1789_v23 = vld [vmem:[%s2905_s0 + $0x6c] sm:$0x1] }
  0x44   :  { %v1815_v44 = vcombine.low %v993_v31, %v1007_v36  ;;  %v1029_v45 = vor.u32 %v1028_v34, %v1025_v33  ;;  %v1021_v58 = vsel %vm2283_vm2, %v1016_v48, %v1020_v32  ;;  %v1049_v19 = vsel %vm2283_vm2, %v1044_v8, %v1048_v55  ;;  %v2183_v32 = vld [vmem:[%s2905_s0 + $0x70] ss:$8 sps:$4 sm:$0xff]   ;;  %v1793_v48 = vld [vmem:[%s2905_s0 + $0x7c] sm:$0x1] }
  0x45   :  { %2008 = vmatmul.mubr.bf16.vlgmr.msra.gmra.mxu0 %v2178_v63  ;;  %v1058_v13 = vrot.slane %v1057_v5, 4  ;;  %v1081_v20 = vrot.slane %v1079_v10, 4  ;;  %v1084_v21 = vrot.slane %v1082_v11, 5  ;;  %v1071_v24 = vor.u32 %v1070_v14, %v1067_v9  ;;  %v1790_v33 = vld [vmem:[%s2905_s0 + $0x70] sm:$0xf] }
  0x46   :  { %2011 = vmatprep.mubr.bf16.mxu0 %v2179_v7  ;;  %2040 = vmatmul.mubr.bf16.vlgmr.msra.gmra.mxu1 %v1815_v44  ;;  %v1030_v53 = vrot.slane %v1029_v45, 4  ;;  %v1074_v7 = vshll.u32 %v1783_v61, 16  ;;  %v1090_v25 = vrot.slane %v1088_v16, 5  ;;  %v1093_v27 = vshrl.u32 %v1786_v12, 16  ;;  %v1792_v44 = vld [vmem:[%s2905_s0 + $0x78] sm:$0xf] }
  0x47   :  { %v1063_v26 = vsel %vm2283_vm2, %v1058_v13, %v1062_v1  ;;  %v1085_v29 = vor.u32 %v1084_v21, %v1081_v20  ;;  %v1096_v30 = vshll.u32 %v1786_v12, 16  ;;  %v1102_v31 = vshll.u32 %v1787_v18, 16  ;;  %v1796_v9 = vld [vmem:[%s2905_s0 + $0x88] sm:$0xf]  ;;  %v1797_v10 = vld [vmem:[%s2905_s0 + $0x8c] sm:$0x1] }
  0x48   :  { %v1035_v63 = vsel %vm2283_vm2, %v1030_v53, %v1034_v38  ;;  %v1076_v15 = vrot.slane %v1074_v7, 5  ;;  %v1817_v28 = vcombine.low %v1049_v19, %v1063_v26  ;;  %v1072_v34 = vrot.slane %v1071_v24, 4  ;;  %v1791_v38 = vld [vmem:[%s2905_s0 + $0x74] sm:$0x1] }
  0x49   :  { %v1816_v4 = vcombine.low %v1021_v58, %v1035_v63  ;;  %v1095_v35 = vrot.slane %v1093_v27, 4  ;;  %v1107_v36 = vshrl.u32 %v1788_v22, 16  ;;  %v1110_v37 = vshll.u32 %v1788_v22, 16  ;;  %v1794_v58 = vld [vmem:[%s2905_s0 + $0x80] sm:$0xf] }
  0x4a   :  { %v1098_v40 = vrot.slane %v1096_v30, 5  ;;  %v1104_v42 = vrot.slane %v1102_v31, 5  ;;  %v1116_v43 = vshll.u32 %v1789_v23, 16  ;;  %v1077_v45 = vsel %vm2283_vm2, %v1072_v34, %v1076_v15  ;;  %v2184_v63 = vld [vmem:[%s2905_s0 + $0x80] ss:$8 sps:$4 sm:$0xff]  }
  0x4b   :  { %2043 = vmatprep.mubr.bf16.mxu1 %v1816_v4  ;;  %v1109_v46 = vrot.slane %v1107_v36, 4  ;;  %v1112_v47 = vrot.slane %v1110_v37, 5  ;;  %v1121_v49 = vshrl.u32 %v1790_v33, 16  ;;  %v1124_v53 = vshll.u32 %v1790_v33, 16 }
  0x4c   :  { %v1099_v51 = vor.u32 %v1098_v40, %v1095_v35  ;;  %v1130_v57 = vshll.u32 %v1791_v38, 16  ;;  %v1135_v61 = vshrl.u32 %v1792_v44, 16  ;;  %v1138_v62 = vshll.u32 %v1792_v44, 16 }
  0x4d   :  { %2012 = vmatmul.mubr.bf16.gmra.mxu0 %v2180_v39  ;;  %v1086_v39 = vrot.slane %v1085_v29, 4  ;;  %v1113_v55 = vor.u32 %v1112_v47, %v1109_v46  ;;  %v1123_v56 = vrot.slane %v1121_v49, 4  ;;  %v1126_v60 = vrot.slane %v1124_v53, 5 }
  0x4e   :  { %2015 = vmatprep.mubr.bf16.mxu0 %v2181_v52  ;;  %2044 = vmatmul.mubr.bf16.gmra.mxu1 %v1817_v28  ;;  %v1118_v52 = vrot.slane %v1116_v43, 5  ;;  %v1100_v59 = vrot.slane %v1099_v51, 4  ;;  %v1132_v1 = vrot.slane %v1130_v57, 5  ;;  %v1144_v2 = vshll.u32 %v1793_v48, 16 }
  0x4f   :  { %v1091_v50 = vsel %vm2283_vm2, %v1086_v39, %v1090_v25  ;;  %v1114_v0 = vrot.slane %v1113_v55, 4  ;;  %v1149_v4 = vshrl.u32 %v1794_v58, 16  ;;  %v1127_v6 = vor.u32 %v1126_v60, %v1123_v56 }
  0x50   :  { %v1818_v54 = vcombine.low %v1077_v45, %v1091_v50  ;;  %v1105_v5 = vsel %vm2283_vm2, %v1100_v59, %v1104_v42  ;;  %v1137_v7 = vrot.slane %v1135_v61, 4  ;;  %v1140_v8 = vrot.slane %v1138_v62, 5 }
  0x51   :  { %v1119_v11 = vsel %vm2283_vm2, %v1114_v0, %v1118_v52  ;;  %v1146_v12 = vrot.slane %v1144_v2, 5  ;;  %v1151_v13 = vrot.slane %v1149_v4, 4  ;;  %v1152_v14 = vshll.u32 %v1794_v58, 16 }
  0x52   :  { %2047 = vmatprep.mubr.bf16.mxu1 %v1818_v54  ;;  %v1819_v15 = vcombine.low %v1105_v5, %v1119_v11  ;;  %v1128_v16 = vrot.slane %v1127_v6, 4  ;;  %v1158_v18 = vshll.u32 %v1795_v3, 16  ;;  %v1163_v20 = vshrl.u32 %v1796_v9, 16 }
  0x53   :  { %v1154_v19 = vrot.slane %v1152_v14, 5  ;;  %v1166_v21 = vshll.u32 %v1796_v9, 16  ;;  %v1172_v22 = vshll.u32 %v1797_v10, 16 }
  0x54   :  { %v1133_v23 = vsel %vm2283_vm2, %v1128_v16, %v1132_v1  ;;  %v1160_v25 = vrot.slane %v1158_v18, 5  ;;  %v1165_v27 = vrot.slane %v1163_v20, 4 }
  0x55   :  { %2016 = vmatmul.mubr.bf16.gmra.mxu0 %v2182_v17  ;;  %v1141_v17 = vor.u32 %v1140_v8, %v1137_v7  ;;  %v1155_v24 = vor.u32 %v1154_v19, %v1151_v13  ;;  %v1168_v28 = vrot.slane %v1166_v21, 5  ;;  %v1174_v33 = vrot.slane %v1172_v22, 5  ;;  %v2664_v19 = vld [vmem:[%s2906_s2] ss:$0 sm:$0xff]  ;;  %s2185_s2 = smov 96  }
  0x56   :  { %2019 = vmatprep.mubr.bf16.mxu0 %v2183_v32  ;;  %2048 = vmatmul.mubr.bf16.gmra.mxu1 %v1819_v15 }
  0x57   :  { %v1142_v26 = vrot.slane %v1141_v17, 4  ;;  %v1156_v31 = vrot.slane %v1155_v24, 4  ;;  %v1169_v32 = vor.u32 %v1168_v28, %v1165_v27 }
  0x59   :  { %v1147_v29 = vsel %vm2283_vm2, %v1142_v26, %v1146_v12  ;;  %v1161_v34 = vsel %vm2283_vm2, %v1156_v31, %v1160_v25  ;;  %v1170_v35 = vrot.slane %v1169_v32, 4 }
  0x5a   :  { %v1820_v30 = vcombine.low %v1133_v23, %v1147_v29 }
  0x5b   :  { %v1175_v36 = vsel %vm2283_vm2, %v1170_v35, %v1174_v33 }
  0x5c   :  { %2051 = vmatprep.mubr.bf16.mxu1 %v1820_v30  ;;  %v1821_v37 = vcombine.low %v1161_v34, %v1175_v36 }
  0x5d   :  { %2020 = vmatmul.mubr.bf16.gmra.mxu0 %v2184_v63 }
  0x5e   :  { %2052 = vmatmul.mubr.bf16.gmra.mxu1 %v1821_v37 }
  0xe2   :  { %v1945_v38 = vpop.f32.mrf.mxu0 }
  0xe3   :  { %v1977_v39 = vpop.f32.mrf.mxu1 }
  0xe4   :  { %v421_v40 = vpop.f32.mrf.mxu0  ;;  %v623_v5 = vadd.f32 %v1977_v39, %v1945_v38 }
  0xe5   :  { %v614_v42 = vpop.f32.mrf.mxu1 }
  0xe6   :  { %v1946_v43 = vpop.f32.mrf.mxu0  ;;  %v615_v10 = vadd.f32 %v614_v42, %v421_v40 }
  0xe7   :  { %v1978_v44 = vpop.f32.mrf.mxu1 }
  0xe8   :  { %v424_v45 = vpop.f32.mrf.mxu0  ;;  %v626_v11 = vadd.f32 %v1978_v44, %v1946_v43 }
  0xe9   :  { %v617_v46 = vpop.f32.mrf.mxu1 }
  0xea   :  { %v1949_v48 = vpop.f32.mrf.mxu0  ;;  %v618_v14 = vadd.f32 %v617_v46, %v424_v45 }
  0xeb   :  { %v1981_v47 = vpop.f32.mrf.mxu1 }
  0xec   :  { %v437_v50 = vpop.f32.mrf.mxu0  ;;  %v639_v26 = vadd.f32 %v1981_v47, %v1949_v48 }
  0xed   :  { %v630_v49 = vpop.f32.mrf.mxu1 }
  0xee   :  { %v1950_v52 = vpop.f32.mrf.mxu0  ;;  %v631_v34 = vadd.f32 %v630_v49, %v437_v50 }
  0xef   :  { %v1982_v51 = vpop.f32.mrf.mxu1 }
  0xf0   :  { %v440_v54 = vpop.f32.mrf.mxu0  ;;  %v642_v35 = vadd.f32 %v1982_v51, %v1950_v52 }
  0xf1   :  { %v633_v53 = vpop.f32.mrf.mxu1 }
  0xf2   :  { %v2633_v56 = vpop.f32.mrf.mxu0  ;;  %v634_v42 = vadd.f32 %v633_v53, %v440_v54 }
  0xf3   :  { %v2629_v41 = vpop.f32.mrf.mxu1 }
  0xf4   :  { %v2637_v58 = vpop.f32.mrf.mxu0  ;;  %v655_v54 = vadd.f32 %v2629_v41, %v2633_v56 }
  0xf5   :  { %v2631_v55 = vpop.f32.mrf.mxu1 }
  0xf6   :  { %v2639_v59 = vpop.f32.mrf.mxu0 }
  0xf7   :  { %v2635_v57 = vpop.f32.mrf.mxu1 }
  0xf8   :  { %v2643_v61 = vpop.f32.mrf.mxu0 }
  0xf9   :  { %v2641_v60 = vpop.f32.mrf.mxu1 }
  0xfb   :  { %v2645_v62 = vpop.f32.mrf.mxu1 }
  0xfd   :  { %v2647_v63 = vpop.f32.mrf.mxu0  ;;  %v2649_v0 = vpop.f32.mrf.mxu1 }
  0xff   :  { %v2651_v1 = vpop.f32.mrf.mxu0  ;;  %v2655_v3 = vpop.f32.mrf.mxu1 }
 0x101   :  { %v2653_v2 = vpop.f32.mrf.mxu0  ;;  %v2659_v7 = vpop.f32.mrf.mxu1 }
 0x103   :  { %v2657_v4 = vpop.f32.mrf.mxu0 }
 0x105   :  { %v2009_v6 = vpop.f32.mrf.mxu0 }
 0x106   :  { %v906_v8 = vadd.f32 %v2009_v6, %v623_v5  ;;  %v2041_v13 = vpop.f32.mrf.mxu1 }
 0x107   :  { %v841_v9 = vpop.f32.mrf.mxu0 }
 0x108   :  { %v1372_v15 = vadd.f32 %v2041_v13, %v906_v8  ;;  %v904_v16 = vadd.f32 %v841_v9, %v615_v10  ;;  %v1307_v20 = vpop.f32.mrf.mxu1 }
 0x109   :  { %v2010_v12 = vpop.f32.mrf.mxu0 }
 0x10a   :  { %v907_v17 = vadd.f32 %v2010_v12, %v626_v11  ;;  %v2042_v23 = vpop.f32.mrf.mxu1  ;;  %v2667_v24 = vadd.f32 %v2664_v19, %v1372_v15  ;;  %v1370_v25 = vadd.f32 %v1307_v20, %v904_v16  ;;  %v647_v12 = vadd.f32 %v2631_v55, %v2637_v58 }
 0x10b   :  { %v844_v18 = vpop.f32.mrf.mxu0  ;;  %v658_v16 = vadd.f32 %v2635_v57, %v2639_v59 }
 0x10c   :  { %v905_v21 = vadd.f32 %v844_v18, %v618_v14  ;;  %v1373_v27 = vadd.f32 %v2042_v23, %v907_v17  ;;  %v1310_v29 = vpop.f32.mrf.mxu1  ;;  %v1411_v36 = vmax.f32 %v2667_v24, 0.0  ;;  %v2674_v37 = vadd.f32 %v2664_v19, %v1370_v25 }
 0x10d   :  { %v2013_v22 = vpop.f32.mrf.mxu0 }
 0x10e   :  { %v2670_v30 = vadd.f32 %v2664_v19, %v1373_v27  ;;  %v1371_v31 = vadd.f32 %v1310_v29, %v905_v21  ;;  %v910_v32 = vadd.f32 %v2013_v22, %v639_v26  ;;  %v2045_v43 = vpop.f32.mrf.mxu1  ;;  %v1409_v51 = vmax.f32 %v2674_v37, 0.0 }
 0x10f   :  { %v857_v28 = vpop.f32.mrf.mxu0  ;;  %v650_v22 = vadd.f32 %v2641_v60, %v2643_v61  ;;  %v671_v60 = vadd.f32 %v2645_v62, %v2647_v63 }
 0x110   :  { %v1412_v38 = vmax.f32 %v2670_v30, 0.0  ;;  %v2678_v39 = vadd.f32 %v2664_v19, %v1371_v31  ;;  %v908_v44 = vadd.f32 %v857_v28, %v631_v34  ;;  %v1376_v46 = vadd.f32 %v2045_v43, %v910_v32  ;;  %v1323_v50 = vpop.f32.mrf.mxu1 }
 0x111   :  { %v2014_v33 = vpop.f32.mrf.mxu0 }
 0x112   :  { %v1410_v45 = vmax.f32 %v2678_v39, 0.0  ;;  %v911_v47 = vadd.f32 %v2014_v33, %v642_v35  ;;  %v2057_v48 = vpack.i.bf16 %v1412_v38, %v1411_v36  ;;  %v2046_v5 = vpop.f32.mrf.mxu1  ;;  %v2690_v6 = vadd.f32 %v2664_v19, %v1376_v46 }
 0x113   :  { %v860_v40 = vpop.f32.mrf.mxu0  ;;  %v1374_v8 = vadd.f32 %v1323_v50, %v908_v44  ;;  %v666_v50 = vadd.f32 %v2659_v7, %v2657_v4 }
 0x114   :  { %v909_v52 = vadd.f32 %v860_v40, %v634_v42  ;;  %2058 = vrot.lane.b32.xlu0 %v2057_v48, %s2185_s2  ;;  %v1377_v9 = vadd.f32 %v2046_v5, %v911_v47  ;;  %v2062_v10 = vpack.i.bf16 %v1410_v45, %v1409_v51  ;;  %v1326_v13 = vpop.f32.mrf.mxu1  ;;  %v1415_v18 = vmax.f32 %v2690_v6, 0.0 }
 0x115   :  { %v2017_v49 = vpop.f32.mrf.mxu0  ;;  %v2706_v20 = vadd.f32 %v2664_v19, %v1374_v8  ;;  %v663_v40 = vadd.f32 %v2649_v0, %v2651_v1  ;;  %v674_v47 = vadd.f32 %v2655_v3, %v2653_v2 }
 0x116   :  { %v2699_v14 = vadd.f32 %v2664_v19, %v1377_v9  ;;  %v1375_v41 = vadd.f32 %v1326_v13, %v909_v52  ;;  %v914_v56 = vadd.f32 %v2017_v49, %v655_v54  ;;  %v2049_v23 = vpop.f32.mrf.mxu1 }
 0x117   :  { %v873_v53 = vpop.f32.mrf.mxu0  ;;  %v1413_v29 = vmax.f32 %v2706_v20, 0.0 }
 0x118   :  { %2063 = vrot.lane.b32.xlu0 %v2062_v10, %s2185_s2  ;;  %v912_v17 = vadd.f32 %v873_v53, %v647_v12  ;;  %v1416_v55 = vmax.f32 %v2699_v14, 0.0  ;;  %v2710_v58 = vadd.f32 %v2664_v19, %v1375_v41  ;;  %v1380_v25 = vadd.f32 %v2049_v23, %v914_v56  ;;  %v1339_v27 = vpop.f32.mrf.mxu1 }
 0x119   :  { %v2018_v11 = vpop.f32.mrf.mxu0 }
 0x11a   :  { %v1414_v26 = vmax.f32 %v2710_v58, 0.0  ;;  %v915_v57 = vadd.f32 %v2018_v11, %v658_v16  ;;  %v2067_v59 = vpack.i.bf16 %v1416_v55, %v1415_v18  ;;  %v1378_v31 = vadd.f32 %v1339_v27, %v912_v17  ;;  %v2050_v33 = vpop.f32.mrf.mxu1 }
 0x11b   :  { %v876_v15 = vpop.f32.mrf.mxu0  ;;  %v2724_v61 = vadd.f32 %v2664_v19, %v1380_v25 }
 0x11c   :  { %v913_v32 = vadd.f32 %v876_v15, %v650_v22  ;;  %2068 = vrot.lane.b32.xlu1 %v2067_v59, %s2185_s2  ;;  %v1381_v34 = vadd.f32 %v2050_v33, %v915_v57  ;;  %v2072_v35 = vpack.i.bf16 %v1414_v26, %v1413_v29  ;;  %v1342_v42 = vpop.f32.mrf.mxu1  ;;  %v2733_v44 = vadd.f32 %v2664_v19, %v1378_v31 }
 0x11d   :  { %v2021_v21 = vpop.f32.mrf.mxu0  ;;  %v1419_v48 = vmax.f32 %v2724_v61, 0.0 }
 0x11e   :  { %v2736_v46 = vadd.f32 %v2664_v19, %v1381_v34  ;;  %v1379_v62 = vadd.f32 %v1342_v42, %v913_v32  ;;  %v918_v63 = vadd.f32 %v2021_v21, %v671_v60  ;;  %v2053_v52 = vpop.f32.mrf.mxu1  ;;  %v1417_v5 = vmax.f32 %v2733_v44, 0.0 }
 0x11f   :  { %v889_v28 = vpop.f32.mrf.mxu0 }
 0x120   :  { %2073 = vrot.lane.b32.xlu1 %v2072_v35, %s2185_s2  ;;  %v1420_v49 = vmax.f32 %v2736_v46, 0.0  ;;  %v2744_v0 = vadd.f32 %v2664_v19, %v1379_v62  ;;  %v916_v1 = vadd.f32 %v889_v28, %v663_v40  ;;  %v1384_v9 = vadd.f32 %v2053_v52, %v918_v63  ;;  %v1355_v3 = vpop.f32.mrf.mxu1 }
 0x121   :  { %v2022_v43 = vpop.f32.mrf.mxu0 }
 0x122   :  { %v919_v53 = vadd.f32 %v2022_v43, %v674_v47  ;;  %v1418_v8 = vmax.f32 %v2744_v0, 0.0  ;;  %v2077_v2 = vpack.i.bf16 %v1420_v49, %v1419_v48  ;;  %v1382_v10 = vadd.f32 %v1355_v3, %v916_v1  ;;  %v2054_v7 = vpop.f32.mrf.mxu1 }
 0x123   :  { %v892_v54 = vpop.f32.mrf.mxu0  ;;  %v2758_v12 = vadd.f32 %v2664_v19, %v1384_v9 }
 0x124   :  { %v917_v11 = vadd.f32 %v892_v54, %v666_v50  ;;  %2078 = vrot.lane.b32.xlu1 %v2077_v2, %s2185_s2  ;;  %v2082_v4 = vpack.i.bf16 %v1418_v8, %v1417_v5  ;;  %v1385_v13 = vadd.f32 %v2054_v7, %v919_v53  ;;  %v1358_v41 = vpop.f32.mrf.mxu1  ;;  %v2762_v56 = vadd.f32 %v2664_v19, %v1382_v10 }
 0x125   :  { %v1423_v17 = vmax.f32 %v2758_v12, 0.0 }
 0x126   :  { %2083 = vrot.lane.b32.xlu0 %v2082_v4, %s2185_s2  ;;  %v1408_v15 = vadd.f32 %v2664_v19, %v1385_v13  ;;  %v1383_v16 = vadd.f32 %v1358_v41, %v917_v11  ;;  %v1421_v23 = vmax.f32 %v2762_v56, 0.0 }
 0x128   :  { %v1424_v21 = vmax.f32 %v1408_v15, 0.0  ;;  %v1406_v22 = vadd.f32 %v2664_v19, %v1383_v16 }
 0x12a   :  { %v1422_v25 = vmax.f32 %v1406_v22, 0.0  ;;  %v2092_v57 = vpack.i.bf16 %v1424_v21, %v1423_v17 }
 0x12c   :  { %2093 = vrot.lane.b32.xlu1 %v2092_v57, %s2185_s2  ;;  %v2087_v59 = vpack.i.bf16 %v1422_v25, %v1421_v23 }
 0x12e   :  { %2088 = vrot.lane.b32.xlu0 %v2087_v59, %s2185_s2 }
 0x186   :  { %v2059_v27 = vpop.permute.xlu0 %2058 }
 0x187   :  { %v2061_v28 = vunpack.i.h.bf16 %v2059_v27  ;;  %v2060_v31 = vunpack.i.l.bf16 %v2059_v27 }
 0x189   :  { %v1492_v32 = vmax.f32 %v1412_v38, %v2061_v28  ;;  %v1491_v33 = vmax.f32 %v1411_v36, %v2060_v31 }
 0x18a   :  { %v2064_v60 = vpop.permute.xlu0 %2063 }
 0x18b   :  { %v2066_v19 = vunpack.i.h.bf16 %v2064_v60  ;;  %v2065_v34 = vunpack.i.l.bf16 %v2064_v60  ;;  %v2097_v35 = vpack.i.bf16 %v1492_v32, %v1491_v33 }
 0x18d   :  { %v1490_v40 = vmax.f32 %v1410_v45, %v2066_v19  ;;  %v1489_v42 = vmax.f32 %v1409_v51, %v2065_v34  ;;  %2098 = vrot.lane.b32.xlu1 %v2097_v35, %s2186_s29 }
 0x18e   :  { %v2069_v62 = vpop.permute.xlu1 %2068 }
 0x18f   :  { %v2102_v43 = vpack.i.bf16 %v1490_v40, %v1489_v42  ;;  %v2071_v30 = vunpack.i.h.bf16 %v2069_v62  ;;  %v2070_v38 = vunpack.i.l.bf16 %v2069_v62 }
 0x191   :  { %2103 = vrot.lane.b32.xlu0 %v2102_v43, %s2186_s29  ;;  %v1496_v24 = vmax.f32 %v1416_v55, %v2071_v30  ;;  %v1495_v36 = vmax.f32 %v1415_v18, %v2070_v38 }
 0x192   :  { %v2074_v39 = vpop.permute.xlu1 %2073 }
 0x193   :  { %v2076_v45 = vunpack.i.h.bf16 %v2074_v39  ;;  %v2075_v63 = vunpack.i.l.bf16 %v2074_v39  ;;  %v2107_v37 = vpack.i.bf16 %v1496_v24, %v1495_v36 }
 0x195   :  { %v2786_v51 = vmax.f32 %v1414_v26, %v2076_v45  ;;  %v2790_v47 = vmax.f32 %v1413_v29, %v2075_v63  ;;  %2108 = vrot.lane.b32.xlu1 %v2107_v37, %s2186_s29 }
 0x196   :  { %v2079_v55 = vpop.permute.xlu1 %2078 }
 0x197   :  { %v2112_v14 = vpack.i.bf16 %v2786_v51, %v2790_v47  ;;  %v2081_v6 = vunpack.i.h.bf16 %v2079_v55  ;;  %v2080_v18 = vunpack.i.l.bf16 %v2079_v55 }
 0x198   :  { %v2084_v0 = vpop.permute.xlu0 %2083 }
 0x199   :  { %2113 = vrot.lane.b32.xlu0 %v2112_v14, %s2186_s29  ;;  %v2798_v58 = vmax.f32 %v1420_v49, %v2081_v6  ;;  %v2802_v20 = vmax.f32 %v1419_v48, %v2080_v18  ;;  %v2086_v26 = vunpack.i.h.bf16 %v2084_v0  ;;  %v2085_v29 = vunpack.i.l.bf16 %v2084_v0 }
 0x19b   :  { %v2804_v1 = vmax.f32 %v1418_v8, %v2086_v26  ;;  %v2808_v50 = vmax.f32 %v1417_v5, %v2085_v29  ;;  %v2117_v52 = vpack.i.bf16 %v2798_v58, %v2802_v20 }
 0x19d   :  { %2118 = vrot.lane.b32.xlu1 %v2117_v52, %s2186_s29  ;;  %v2122_v46 = vpack.i.bf16 %v2804_v1, %v2808_v50 }
 0x19e   :  { %v2094_v61 = vpop.permute.xlu1 %2093 }
 0x19f   :  { %2123 = vrot.lane.b32.xlu0 %v2122_v46, %s2186_s29  ;;  %v2096_v48 = vunpack.i.h.bf16 %v2094_v61  ;;  %v2095_v49 = vunpack.i.l.bf16 %v2094_v61 }
 0x1a0   :  { %v2089_v53 = vpop.permute.xlu0 %2088 }
 0x1a1   :  { %v2816_v54 = vmax.f32 %v1424_v21, %v2096_v48  ;;  %v2818_v8 = vmax.f32 %v1423_v17, %v2095_v49  ;;  %v2091_v44 = vunpack.i.h.bf16 %v2089_v53  ;;  %v2090_v5 = vunpack.i.l.bf16 %v2089_v53 }
 0x1a3   :  { %v2820_v9 = vmax.f32 %v1422_v25, %v2091_v44  ;;  %v2822_v2 = vmax.f32 %v1421_v23, %v2090_v5  ;;  %v2132_v3 = vpack.i.bf16 %v2816_v54, %v2818_v8 }
 0x1a5   :  { %2133 = vrot.lane.b32.xlu1 %v2132_v3, %s2186_s29  ;;  %v2127_v10 = vpack.i.bf16 %v2820_v9, %v2822_v2 }
 0x1a7   :  { %2128 = vrot.lane.b32.xlu0 %v2127_v10, %s2186_s29 }
 0x1ff   :  { %v2099_v11 = vpop.permute.xlu1 %2098 }
 0x200   :  { %v2101_v4 = vunpack.i.h.bf16 %v2099_v11  ;;  %v2100_v7 = vunpack.i.l.bf16 %v2099_v11 }
 0x202   :  { %v1572_v12 = vmax.f32 %v1492_v32, %v2101_v4  ;;  %v1571_v13 = vmax.f32 %v1491_v33, %v2100_v7 }
 0x203   :  { %v2104_v41 = vpop.permute.xlu0 %2103 }
 0x204   :  { %v1850_v56 = vpack.c.bf16 %v1572_v12, %v1572_v12  ;;  %v1849_v15 = vpack.c.bf16 %v1571_v13, %v1571_v13  ;;  %v2106_v16 = vunpack.i.h.bf16 %v2104_v41  ;;  %v2105_v17 = vunpack.i.l.bf16 %v2104_v41 }
 0x206   :  { %1653 = vst.msk [vmem:[%s2907_s3 + $0xc] sm:$0xf] %vm1649_vm3, %v1850_v56  ;;  %1652 = vst.msk [vmem:[%s2907_s3 + $0x8] sm:$0xf] %vm1649_vm3, %v1849_v15  ;;  %v1570_v21 = vmax.f32 %v1490_v40, %v2106_v16  ;;  %v1569_v22 = vmax.f32 %v1489_v42, %v2105_v17 }
 0x207   :  { %v2109_v57 = vpop.permute.xlu1 %2108 }
 0x208   :  { %v1848_v23 = vpack.c.bf16 %v1570_v21, %v1570_v21  ;;  %v1847_v25 = vpack.c.bf16 %v1569_v22, %v1569_v22  ;;  %v2111_v59 = vunpack.i.h.bf16 %v2109_v57  ;;  %v2110_v27 = vunpack.i.l.bf16 %v2109_v57 }
 0x20a   :  { %1651 = vst.msk [vmem:[%s2907_s3 + $0x4] sm:$0xf] %vm1649_vm3, %v1848_v23  ;;  %1650 = vst.msk [vmem:[%s2907_s3] sm:$0xf] %vm1649_vm3, %v1847_v25  ;;  %v1576_v28 = vmax.f32 %v1496_v24, %v2111_v59  ;;  %v1575_v31 = vmax.f32 %v1495_v36, %v2110_v27 }
 0x20b   :  { %v2114_v32 = vpop.permute.xlu0 %2113 }
 0x20c   :  { %v1854_v33 = vpack.c.bf16 %v1576_v28, %v1576_v28  ;;  %v1853_v60 = vpack.c.bf16 %v1575_v31, %v1575_v31  ;;  %v2116_v19 = vunpack.i.h.bf16 %v2114_v32  ;;  %v2115_v34 = vunpack.i.l.bf16 %v2114_v32 }
 0x20e   :  { %1657 = vst.msk [vmem:[%s2907_s3 + $0x1c] sm:$0xf] %vm1649_vm3, %v1854_v33  ;;  %1656 = vst.msk [vmem:[%s2907_s3 + $0x18] sm:$0xf] %vm1649_vm3, %v1853_v60  ;;  %v1574_v35 = vmax.f32 %v2786_v51, %v2116_v19  ;;  %v1573_v40 = vmax.f32 %v2790_v47, %v2115_v34 }
 0x20f   :  { %v2119_v62 = vpop.permute.xlu1 %2118 }
 0x210   :  { %v1852_v42 = vpack.c.bf16 %v1574_v35, %v1574_v35  ;;  %v1851_v43 = vpack.c.bf16 %v1573_v40, %v1573_v40  ;;  %v2121_v30 = vunpack.i.h.bf16 %v2119_v62  ;;  %v2120_v38 = vunpack.i.l.bf16 %v2119_v62 }
 0x211   :  { %v2124_v24 = vpop.permute.xlu0 %2123 }
 0x212   :  { %1655 = vst.msk [vmem:[%s2907_s3 + $0x14] sm:$0xf] %vm1649_vm3, %v1852_v42  ;;  %1654 = vst.msk [vmem:[%s2907_s3 + $0x10] sm:$0xf] %vm1649_vm3, %v1851_v43  ;;  %v1580_v36 = vmax.f32 %v2798_v58, %v2121_v30  ;;  %v1579_v39 = vmax.f32 %v2802_v20, %v2120_v38  ;;  %v2126_v45 = vunpack.i.h.bf16 %v2124_v24  ;;  %v2125_v63 = vunpack.i.l.bf16 %v2124_v24 }
 0x214   :  { %v1858_v37 = vpack.c.bf16 %v1580_v36, %v1580_v36  ;;  %v1857_v51 = vpack.c.bf16 %v1579_v39, %v1579_v39  ;;  %v1578_v47 = vmax.f32 %v2804_v1, %v2126_v45  ;;  %v1577_v14 = vmax.f32 %v2808_v50, %v2125_v63 }
 0x216   :  { %1661 = vst.msk [vmem:[%s2907_s3 + $0x2c] sm:$0xf] %vm1649_vm3, %v1858_v37  ;;  %1660 = vst.msk [vmem:[%s2907_s3 + $0x28] sm:$0xf] %vm1649_vm3, %v1857_v51  ;;  %v1856_v55 = vpack.c.bf16 %v1578_v47, %v1578_v47  ;;  %v1855_v6 = vpack.c.bf16 %v1577_v14, %v1577_v14 }
 0x217   :  { %v2134_v18 = vpop.permute.xlu1 %2133 }
 0x218   :  { %1659 = vst.msk [vmem:[%s2907_s3 + $0x24] sm:$0xf] %vm1649_vm3, %v1856_v55  ;;  %1658 = vst.msk [vmem:[%s2907_s3 + $0x20] sm:$0xf] %vm1649_vm3, %v1855_v6  ;;  %v2136_v0 = vunpack.i.h.bf16 %v2134_v18  ;;  %v2135_v58 = vunpack.i.l.bf16 %v2134_v18 }
 0x219   :  { %v2129_v20 = vpop.permute.xlu0 %2128 }
 0x21a   :  { %v1584_v26 = vmax.f32 %v2816_v54, %v2136_v0  ;;  %v1583_v29 = vmax.f32 %v2818_v8, %v2135_v58  ;;  %v2131_v1 = vunpack.i.h.bf16 %v2129_v20  ;;  %v2130_v50 = vunpack.i.l.bf16 %v2129_v20 }
 0x21c   :  { %v1862_v52 = vpack.c.bf16 %v1584_v26, %v1584_v26  ;;  %v1861_v46 = vpack.c.bf16 %v1583_v29, %v1583_v29  ;;  %v1582_v61 = vmax.f32 %v2820_v9, %v2131_v1  ;;  %v1581_v48 = vmax.f32 %v2822_v2, %v2130_v50 }
 0x21e   :  { %1665 = vst.msk [vmem:[%s2907_s3 + $0x3c] sm:$0xf] %vm1649_vm3, %v1862_v52  ;;  %1664 = vst.msk [vmem:[%s2907_s3 + $0x38] sm:$0xf] %vm1649_vm3, %v1861_v46  ;;  %v1860_v49 = vpack.c.bf16 %v1582_v61, %v1582_v61  ;;  %v1859_v53 = vpack.c.bf16 %v1581_v48, %v1581_v48 }
 0x220   :  { %1663 = vst.msk [vmem:[%s2907_s3 + $0x34] sm:$0xf] %vm1649_vm3, %v1860_v49  ;;  %1662 = vst.msk [vmem:[%s2907_s3 + $0x30] sm:$0xf] %vm1649_vm3, %v1859_v53 }

// kernel: model_forward.5
= control target key start
LH: loop header
LB: loop body
LE: loop exit
PB: predicated region body
PF: predicated region fallthrough
CT: control target
= control target key end

     0   :  { %v288_v36 = vlaneseq  ;;  %v3098_v37 = vmov 1966171168   ;;  %s4039_s0 = inlined_call_operand.vmem [shape: bf16[2,2048], index: 0, kind: input, shape index: {}]   ;;  %s4040_s1 = inlined_call_operand.vmem [shape: bf16[2048,256], index: 1, kind: input, shape index: {}]   ;;  %s4041_s2 = inlined_call_operand.vmem [shape: f32[1,256], index: 2, kind: input, shape index: {}]   ;;  %s4042_s3 = inlined_call_operand.vmem [shape: bf16[256,128], index: 3, kind: input, shape index: {}]   ;;  %s4043_s4 = inlined_call_operand.vmem [shape: f32[1,128], index: 4, kind: input, shape index: {}]   ;;  %s4044_s5 = inlined_call_operand.vmem [shape: bf16[128,128], index: 5, kind: input, shape index: {}]   ;;  %s4045_s6 = inlined_call_operand.vmem [shape: f32[1,128], index: 6, kind: input, shape index: {}]   ;;  %s4046_s7 = inlined_call_operand.hbm [shape: f32[2,128], index: 7, kind: output, shape index: {}]  }
   0x1   :  { %v2666_v0 = vld [vmem:[%s4040_s1 + $0x74] ss:$8 sps:$4 sm:$0xff]   ;;  %v2670_v2 = vld [vmem:[%s4040_s1 + $0x70] ss:$8 sps:$4 sm:$0xff]   ;;  %v2672_v4 = vld [vmem:[%s4040_s1 + $0x64] ss:$8 sps:$4 sm:$0xff]   ;;  %v302_v38 = vunpack.c.l.s4 %v3098_v37 }
   0x2   :  { %v2668_v1 = vld [vmem:[%s4040_s1 + $0x174] ss:$8 sps:$4 sm:$0xff]   ;;  %1694 = vmatprep.subr.bf16.mxu0 %v2666_v0  ;;  %v2671_v3 = vld [vmem:[%s4040_s1 + $0x170] ss:$8 sps:$4 sm:$0xff]   ;;  %v2674_v5 = vld [vmem:[%s4040_s1 + $0x164] ss:$8 sps:$4 sm:$0xff]  }
   0x3   :  { %1735 = vmatprep.subr.bf16.mxu1 %v2668_v1  ;;  %1695 = vmatpush1.bf16.msra.mxu0 %v2670_v2  ;;  %v2676_v6 = vld [vmem:[%s4040_s1 + $0x60] ss:$8 sps:$4 sm:$0xff]   ;;  %v2678_v8 = vld [vmem:[%s4040_s1 + $0x54] ss:$8 sps:$4 sm:$0xff]   ;;  %v2682_v10 = vld [vmem:[%s4040_s1 + $0x50] ss:$8 sps:$4 sm:$0xff]   ;;  %v303_v43 = vunpack.c.0.s8 %v302_v38 }
   0x4   :  { %1736 = vmatpush1.bf16.msra.mxu1 %v2671_v3  ;;  %1696 = vmatprep.subr.bf16.mxu0 %v2672_v4  ;;  %v2677_v7 = vld [vmem:[%s4040_s1 + $0x160] ss:$8 sps:$4 sm:$0xff]   ;;  %v2680_v9 = vld [vmem:[%s4040_s1 + $0x154] ss:$8 sps:$4 sm:$0xff]   ;;  %v2683_v11 = vld [vmem:[%s4040_s1 + $0x150] ss:$8 sps:$4 sm:$0xff]  }
   0x5   :  { %1737 = vmatprep.subr.bf16.mxu1 %v2674_v5  ;;  %v2684_v12 = vld [vmem:[%s4040_s1 + $0x44] ss:$8 sps:$4 sm:$0xff]   ;;  %v2688_v14 = vld [vmem:[%s4040_s1 + $0x40] ss:$8 sps:$4 sm:$0xff]   ;;  %v2690_v16 = vld [vmem:[%s4040_s1 + $0x34] ss:$8 sps:$4 sm:$0xff]  }
   0x6   :  { %v2686_v13 = vld [vmem:[%s4040_s1 + $0x144] ss:$8 sps:$4 sm:$0xff]   ;;  %v2689_v15 = vld [vmem:[%s4040_s1 + $0x140] ss:$8 sps:$4 sm:$0xff]   ;;  %v2692_v17 = vld [vmem:[%s4040_s1 + $0x134] ss:$8 sps:$4 sm:$0xff]  }
   0x7   :  { %1697 = vmatpush1.bf16.msra.mxu0 %v2676_v6  ;;  %v2694_v18 = vld [vmem:[%s4040_s1 + $0x30] ss:$8 sps:$4 sm:$0xff]   ;;  %v2696_v20 = vld [vmem:[%s4040_s1 + $0x24] ss:$8 sps:$4 sm:$0xff]   ;;  %v2700_v22 = vld [vmem:[%s4040_s1 + $0x20] ss:$8 sps:$4 sm:$0xff]  }
   0x8   :  { %1738 = vmatpush1.bf16.msra.mxu1 %v2677_v7  ;;  %1698 = vmatprep.subr.bf16.mxu0 %v2678_v8  ;;  %v2695_v19 = vld [vmem:[%s4040_s1 + $0x130] ss:$8 sps:$4 sm:$0xff]   ;;  %v2698_v21 = vld [vmem:[%s4040_s1 + $0x124] ss:$8 sps:$4 sm:$0xff]   ;;  %v2701_v23 = vld [vmem:[%s4040_s1 + $0x120] ss:$8 sps:$4 sm:$0xff]  }
   0x9   :  { %1739 = vmatprep.subr.bf16.mxu1 %v2680_v9  ;;  %v2702_v24 = vld [vmem:[%s4040_s1 + $0x14] ss:$8 sps:$4 sm:$0xff]   ;;  %v2706_v26 = vld [vmem:[%s4040_s1 + $0x10] ss:$8 sps:$4 sm:$0xff]   ;;  %v2708_v28 = vld [vmem:[%s4040_s1 + $0x4] ss:$8 sps:$4 sm:$0xff]  }
   0xa   :  { %v2704_v25 = vld [vmem:[%s4040_s1 + $0x114] ss:$8 sps:$4 sm:$0xff]   ;;  %v2707_v27 = vld [vmem:[%s4040_s1 + $0x110] ss:$8 sps:$4 sm:$0xff]   ;;  %v2710_v29 = vld [vmem:[%s4040_s1 + $0x104] ss:$8 sps:$4 sm:$0xff]  }
   0xb   :  { %1699 = vmatpush1.bf16.msra.mxu0 %v2682_v10  ;;  %v2712_v30 = vld [vmem:[%s4040_s1] ss:$8 sps:$4 sm:$0xff]   ;;  %v2714_v32 = vld [vmem:[%s4040_s1 + $0xf4] ss:$8 sps:$4 sm:$0xff]   ;;  %v2718_v34 = vld [vmem:[%s4040_s1 + $0xf0] ss:$8 sps:$4 sm:$0xff]  }
   0xc   :  { %1740 = vmatpush1.bf16.msra.mxu1 %v2683_v11  ;;  %1700 = vmatprep.subr.bf16.mxu0 %v2684_v12  ;;  %v2713_v31 = vld [vmem:[%s4040_s1 + $0x100] ss:$8 sps:$4 sm:$0xff]   ;;  %v2716_v33 = vld [vmem:[%s4040_s1 + $0x1f4] ss:$8 sps:$4 sm:$0xff]   ;;  %v2719_v35 = vld [vmem:[%s4040_s1 + $0x1f0] ss:$8 sps:$4 sm:$0xff]  }
   0xd   :  { %1741 = vmatprep.subr.bf16.mxu1 %v2686_v13  ;;  %v2720_v39 = vld [vmem:[%s4040_s1 + $0xe4] ss:$8 sps:$4 sm:$0xff]   ;;  %v2724_v41 = vld [vmem:[%s4040_s1 + $0xe0] ss:$8 sps:$4 sm:$0xff]   ;;  %v3259_v42 = vshrl.u32 %v288_v36, 7 }
   0xe   :  { %v2722_v40 = vld [vmem:[%s4040_s1 + $0x1e4] ss:$8 sps:$4 sm:$0xff]   ;;  %v2725_v44 = vld [vmem:[%s4040_s1 + $0x1e0] ss:$8 sps:$4 sm:$0xff]   ;;  %v2726_v45 = vld [vmem:[%s4040_s1 + $0xd4] ss:$8 sps:$4 sm:$0xff]  }
   0xf   :  { %1701 = vmatpush1.bf16.msra.mxu0 %v2688_v14  ;;  %v2728_v46 = vld [vmem:[%s4040_s1 + $0x1d4] ss:$8 sps:$4 sm:$0xff]   ;;  %v2730_v47 = vld [vmem:[%s4040_s1 + $0xd0] ss:$8 sps:$4 sm:$0xff]   ;;  %v3277_v49 = vsub.s32 %v303_v43, %v3259_v42  ;;  %v2732_v50 = vld [vmem:[%s4040_s1 + $0xc4] ss:$8 sps:$4 sm:$0xff]  }
  0x10   :  { %1742 = vmatpush1.bf16.msra.mxu1 %v2689_v15  ;;  %1702 = vmatprep.subr.bf16.mxu0 %v2690_v16  ;;  %v2731_v48 = vld [vmem:[%s4040_s1 + $0x1d0] ss:$8 sps:$4 sm:$0xff]   ;;  %v2734_v51 = vld [vmem:[%s4040_s1 + $0x1c4] ss:$8 sps:$4 sm:$0xff]   ;;  %v2736_v53 = vld [vmem:[%s4040_s1 + $0xc0] ss:$8 sps:$4 sm:$0xff]  }
  0x11   :  { %1743 = vmatprep.subr.bf16.mxu1 %v2692_v17  ;;  %v28_v52 = vld [vmem:[%s4039_s0] sm:$0xff]  ;;  %v2738_v56 = vld [vmem:[%s4040_s1 + $0xb4] ss:$8 sps:$4 sm:$0xff]   ;;  %v2742_v59 = vld [vmem:[%s4040_s1 + $0xb0] ss:$8 sps:$4 sm:$0xff]  }
  0x12   :  { %v307_v54 = vrot.slane %v28_v52, %v3277_v49  ;;  %v2737_v55 = vld [vmem:[%s4040_s1 + $0x1c0] ss:$8 sps:$4 sm:$0xff]   ;;  %v2740_v57 = vld [vmem:[%s4040_s1 + $0x1b4] ss:$8 sps:$4 sm:$0xff]   ;;  %v2743_v61 = vld [vmem:[%s4040_s1 + $0x1b0] ss:$8 sps:$4 sm:$0xff]   ;;  %v300_v1 = vcombine.high %v28_v52, %v28_v52 }
  0x13   :  { %1703 = vmatpush1.bf16.msra.mxu0 %v2694_v18  ;;  %v2744_v62 = vld [vmem:[%s4040_s1 + $0xa4] ss:$8 sps:$4 sm:$0xff]   ;;  %v2748_v2 = vld [vmem:[%s4040_s1 + $0xa0] ss:$8 sps:$4 sm:$0xff]   ;;  %v2750_v4 = vld [vmem:[%s4040_s1 + $0x94] ss:$8 sps:$4 sm:$0xff]  }
  0x14   :  { %1744 = vmatpush1.bf16.msra.mxu1 %v2695_v19  ;;  %1704 = vmatprep.subr.bf16.mxu0 %v2696_v20  ;;  %v315_v58 = vcombine.high %v307_v54, %v307_v54  ;;  %v2746_v63 = vld [vmem:[%s4040_s1 + $0x1a4] ss:$8 sps:$4 sm:$0xff]   ;;  %v2749_v3 = vld [vmem:[%s4040_s1 + $0x1a0] ss:$8 sps:$4 sm:$0xff]   ;;  %v2752_v5 = vld [vmem:[%s4040_s1 + $0x194] ss:$8 sps:$4 sm:$0xff]   ;;  %v3327_v6 = vrot.slane %v300_v1, %v3277_v49  ;;  %v323_v13 = vrot.slane %v307_v54, %v3277_v49 }
  0x15   :  { %1745 = vmatprep.subr.bf16.mxu1 %v2698_v21  ;;  %v2754_v7 = vld [vmem:[%s4040_s1 + $0x90] ss:$8 sps:$4 sm:$0xff]   ;;  %v2756_v9 = vld [vmem:[%s4040_s1 + $0x84] ss:$8 sps:$4 sm:$0xff]   ;;  %v2760_v12 = vld [vmem:[%s4040_s1 + $0x80] ss:$8 sps:$4 sm:$0xff]  }
  0x16   :  { %v337_v60 = vrot.slane %v315_v58, %v3277_v49  ;;  %v2755_v8 = vld [vmem:[%s4040_s1 + $0x190] ss:$8 sps:$4 sm:$0xff]   ;;  %v2758_v10 = vld [vmem:[%s4040_s1 + $0x184] ss:$8 sps:$4 sm:$0xff]   ;;  %v316_v11 = vcombine.high %v3327_v6, %v3327_v6  ;;  %v2761_v14 = vld [vmem:[%s4040_s1 + $0x180] ss:$8 sps:$4 sm:$0xff]   ;;  %v345_v18 = vcombine.high %v323_v13, %v323_v13 }
  0x17   :  { %1705 = vmatpush1.bf16.msra.mxu0 %v2700_v22  ;;  %v2765_v15 = vld [vmem:[%s4040_s1 + $0x274] ss:$8 sps:$4 sm:$0xff]   ;;  %v2763_v19 = vld [vmem:[%s4040_s1 + $0x270] ss:$8 sps:$4 sm:$0xff]   ;;  %v2771_v21 = vld [vmem:[%s4040_s1 + $0x264] ss:$8 sps:$4 sm:$0xff]  }
  0x18   :  { %1746 = vmatpush1.bf16.msra.mxu1 %v2701_v23  ;;  %1706 = vmatprep.subr.bf16.mxu0 %v2702_v24  ;;  %v347_v0 = vcombine.high %v337_v60, %v337_v60  ;;  %v2768_v16 = vld [vmem:[%s4040_s1 + $0x374] ss:$8 sps:$4 sm:$0xff]   ;;  %v344_v17 = vrot.slane %v316_v11, %v3277_v49  ;;  %v2766_v20 = vld [vmem:[%s4040_s1 + $0x370] ss:$8 sps:$4 sm:$0xff]   ;;  %v2774_v22 = vld [vmem:[%s4040_s1 + $0x364] ss:$8 sps:$4 sm:$0xff]  }
  0x19   :  { %1747 = vmatprep.subr.bf16.mxu1 %v2704_v25  ;;  %1726 = vmatprep.mubr.bf16.mxu0 %v337_v60  ;;  %v2769_v24 = vld [vmem:[%s4040_s1 + $0x260] ss:$8 sps:$4 sm:$0xff]   ;;  %v2787_v36 = vld [vmem:[%s4040_s1 + $0x230] ss:$8 sps:$4 sm:$0xff]   ;;  %v2795_v38 = vld [vmem:[%s4040_s1 + $0x224] ss:$8 sps:$4 sm:$0xff]  }
  0x1a   :  { %1767 = vmatprep.mubr.bf16.mxu1 %v347_v0  ;;  %v348_v23 = vcombine.high %v344_v17, %v344_v17  ;;  %v2772_v25 = vld [vmem:[%s4040_s1 + $0x360] ss:$8 sps:$4 sm:$0xff]   ;;  %v2790_v37 = vld [vmem:[%s4040_s1 + $0x330] ss:$8 sps:$4 sm:$0xff]   ;;  %v2801_v43 = vld [vmem:[%s4040_s1 + $0x214] ss:$8 sps:$4 sm:$0xff]  }
  0x1b   :  { %1707 = vmatpush1.bf16.msra.mxu0 %v2706_v26  ;;  %v2777_v26 = vld [vmem:[%s4040_s1 + $0x254] ss:$8 sps:$4 sm:$0xff]   ;;  %v2811_v54 = vld [vmem:[%s4040_s1 + $0x2f0] ss:$8 sps:$4 sm:$0xff]   ;;  %v2817_v58 = vld [vmem:[%s4040_s1 + $0x2e0] ss:$8 sps:$4 sm:$0xff]  }
  0x1c   :  { %1748 = vmatpush1.bf16.msra.mxu1 %v2707_v27  ;;  %1708 = vmatprep.subr.bf16.mxu0 %v2708_v28  ;;  %v2780_v27 = vld [vmem:[%s4040_s1 + $0x354] ss:$8 sps:$4 sm:$0xff]   ;;  %v2775_v28 = vld [vmem:[%s4040_s1 + $0x250] ss:$8 sps:$4 sm:$0xff]   ;;  %v2831_v0 = vld [vmem:[%s4040_s1 + $0x2c4] ss:$8 sps:$4 sm:$0xff]  }
  0x1d   :  { %1749 = vmatprep.subr.bf16.mxu1 %v2710_v29  ;;  %v2778_v29 = vld [vmem:[%s4040_s1 + $0x350] ss:$8 sps:$4 sm:$0xff]   ;;  %v2813_v52 = vld [vmem:[%s4040_s1 + $0x2f4] ss:$8 sps:$4 sm:$0xff]   ;;  %v2834_v1 = vld [vmem:[%s4040_s1 + $0x3c4] ss:$8 sps:$4 sm:$0xff]  }
  0x1e   :  { %v2825_v60 = vld [vmem:[%s4040_s1 + $0x2d4] ss:$8 sps:$4 sm:$0xff]   ;;  %v2841_v11 = vld [vmem:[%s4040_s1 + $0x2a0] ss:$8 sps:$4 sm:$0xff]  }
  0x1f   :  { %1709 = vmatpush1.bf16.msra.mxu0 %v2712_v30  ;;  %v2783_v30 = vld [vmem:[%s4040_s1 + $0x244] ss:$8 sps:$4 sm:$0xff]  }
  0x20   :  { %1750 = vmatpush1.bf16.msra.mxu1 %v2713_v31  ;;  %1710 = vmatprep.subr.bf16.mxu0 %v2714_v32  ;;  %v2786_v31 = vld [vmem:[%s4040_s1 + $0x344] ss:$8 sps:$4 sm:$0xff]   ;;  %v2781_v32 = vld [vmem:[%s4040_s1 + $0x240] ss:$8 sps:$4 sm:$0xff]  }
  0x21   :  { %1751 = vmatprep.subr.bf16.mxu1 %v2716_v33  ;;  %v2784_v33 = vld [vmem:[%s4040_s1 + $0x340] ss:$8 sps:$4 sm:$0xff]  }
  0x23   :  { %1711 = vmatpush2.bf16.msra.mxu0 %v2718_v34  ;;  %v2789_v34 = vld [vmem:[%s4040_s1 + $0x234] ss:$8 sps:$4 sm:$0xff]  }
  0x24   :  { %1752 = vmatpush2.bf16.msra.mxu1 %v2719_v35  ;;  %1712 = vmatprep.subr.bf16.mxu0 %v2720_v39  ;;  %v2792_v35 = vld [vmem:[%s4040_s1 + $0x334] ss:$8 sps:$4 sm:$0xff]   ;;  %v2798_v39 = vld [vmem:[%s4040_s1 + $0x324] ss:$8 sps:$4 sm:$0xff]  }
  0x25   :  { %1753 = vmatprep.subr.bf16.mxu1 %v2722_v40  ;;  %v2793_v40 = vld [vmem:[%s4040_s1 + $0x220] ss:$8 sps:$4 sm:$0xff]  }
  0x27   :  { %1713 = vmatpush2.bf16.msra.mxu0 %v2724_v41  ;;  %v2796_v41 = vld [vmem:[%s4040_s1 + $0x320] ss:$8 sps:$4 sm:$0xff]  }
  0x28   :  { %1754 = vmatpush2.bf16.msra.mxu1 %v2725_v44  ;;  %1714 = vmatprep.subr.bf16.mxu0 %v2726_v45  ;;  %v2804_v44 = vld [vmem:[%s4040_s1 + $0x314] ss:$8 sps:$4 sm:$0xff]   ;;  %v2799_v45 = vld [vmem:[%s4040_s1 + $0x210] ss:$8 sps:$4 sm:$0xff]  }
  0x29   :  { %1755 = vmatprep.subr.bf16.mxu1 %v2728_v46  ;;  %v2802_v46 = vld [vmem:[%s4040_s1 + $0x310] ss:$8 sps:$4 sm:$0xff]  }
  0x2b   :  { %1715 = vmatpush2.bf16.msra.mxu0 %v2730_v47  ;;  %v2807_v47 = vld [vmem:[%s4040_s1 + $0x204] ss:$8 sps:$4 sm:$0xff]  }
  0x2c   :  { %1756 = vmatpush2.bf16.msra.mxu1 %v2731_v48  ;;  %1716 = vmatprep.subr.bf16.mxu0 %v2732_v50  ;;  %v2810_v48 = vld [vmem:[%s4040_s1 + $0x304] ss:$8 sps:$4 sm:$0xff]   ;;  %v2805_v50 = vld [vmem:[%s4040_s1 + $0x200] ss:$8 sps:$4 sm:$0xff]  }
  0x2d   :  { %1757 = vmatprep.subr.bf16.mxu1 %v2734_v51  ;;  %v2808_v51 = vld [vmem:[%s4040_s1 + $0x300] ss:$8 sps:$4 sm:$0xff]  }
  0x2f   :  { %1717 = vmatpush2.bf16.msra.mxu0 %v2736_v53  ;;  %v2816_v53 = vld [vmem:[%s4040_s1 + $0x3f4] ss:$8 sps:$4 sm:$0xff]  }
  0x30   :  { %1758 = vmatpush2.bf16.msra.mxu1 %v2737_v55  ;;  %1718 = vmatprep.subr.bf16.mxu0 %v2738_v56  ;;  %v2814_v55 = vld [vmem:[%s4040_s1 + $0x3f0] ss:$8 sps:$4 sm:$0xff]   ;;  %v2819_v56 = vld [vmem:[%s4040_s1 + $0x2e4] ss:$8 sps:$4 sm:$0xff]  }
  0x31   :  { %1759 = vmatprep.subr.bf16.mxu1 %v2740_v57  ;;  %v2822_v57 = vld [vmem:[%s4040_s1 + $0x3e4] ss:$8 sps:$4 sm:$0xff]  }
  0x33   :  { %1719 = vmatpush2.bf16.msra.mxu0 %v2742_v59  ;;  %v2820_v59 = vld [vmem:[%s4040_s1 + $0x3e0] ss:$8 sps:$4 sm:$0xff]  }
  0x34   :  { %1760 = vmatpush2.bf16.msra.mxu1 %v2743_v61  ;;  %1720 = vmatprep.subr.bf16.mxu0 %v2744_v62  ;;  %v2828_v61 = vld [vmem:[%s4040_s1 + $0x3d4] ss:$8 sps:$4 sm:$0xff]   ;;  %v2823_v62 = vld [vmem:[%s4040_s1 + $0x2d0] ss:$8 sps:$4 sm:$0xff]  }
  0x35   :  { %1761 = vmatprep.subr.bf16.mxu1 %v2746_v63  ;;  %v2826_v63 = vld [vmem:[%s4040_s1 + $0x3d0] ss:$8 sps:$4 sm:$0xff]  }
  0x37   :  { %1721 = vmatpush2.bf16.msra.mxu0 %v2748_v2  ;;  %v2829_v2 = vld [vmem:[%s4040_s1 + $0x2c0] ss:$8 sps:$4 sm:$0xff]  }
  0x38   :  { %1762 = vmatpush2.bf16.msra.mxu1 %v2749_v3  ;;  %1722 = vmatprep.subr.bf16.mxu0 %v2750_v4  ;;  %v2832_v3 = vld [vmem:[%s4040_s1 + $0x3c0] ss:$8 sps:$4 sm:$0xff]   ;;  %v2837_v4 = vld [vmem:[%s4040_s1 + $0x2b4] ss:$8 sps:$4 sm:$0xff]  }
  0x39   :  { %1763 = vmatprep.subr.bf16.mxu1 %v2752_v5  ;;  %v2840_v5 = vld [vmem:[%s4040_s1 + $0x3b4] ss:$8 sps:$4 sm:$0xff]  }
  0x3b   :  { %1723 = vmatpush2.bf16.msra.mxu0 %v2754_v7  ;;  %v2835_v7 = vld [vmem:[%s4040_s1 + $0x2b0] ss:$8 sps:$4 sm:$0xff]  }
  0x3c   :  { %1764 = vmatpush2.bf16.msra.mxu1 %v2755_v8  ;;  %1724 = vmatprep.subr.bf16.mxu0 %v2756_v9  ;;  %v2838_v8 = vld [vmem:[%s4040_s1 + $0x3b0] ss:$8 sps:$4 sm:$0xff]   ;;  %v2843_v9 = vld [vmem:[%s4040_s1 + $0x2a4] ss:$8 sps:$4 sm:$0xff]  }
  0x3d   :  { %1765 = vmatprep.subr.bf16.mxu1 %v2758_v10  ;;  %v2846_v10 = vld [vmem:[%s4040_s1 + $0x3a4] ss:$8 sps:$4 sm:$0xff]  }
  0x3f   :  { %1725 = vmatpush2.bf16.msra.mxu0 %v2760_v12  ;;  %v2844_v12 = vld [vmem:[%s4040_s1 + $0x3a0] ss:$8 sps:$4 sm:$0xff]  }
  0x40   :  { %1766 = vmatpush2.bf16.msra.mxu1 %v2761_v14  ;;  %1776 = vmatprep.subr.bf16.mxu0 %v2765_v15  ;;  %v2852_v14 = vld [vmem:[%s4040_s1 + $0x394] ss:$8 sps:$4 sm:$0xff]   ;;  %v2847_v15 = vld [vmem:[%s4040_s1 + $0x290] ss:$8 sps:$4 sm:$0xff]  }
  0x41   :  { %1817 = vmatprep.subr.bf16.mxu1 %v2768_v16  ;;  %v2850_v16 = vld [vmem:[%s4040_s1 + $0x390] ss:$8 sps:$4 sm:$0xff]  }
  0x42   :  { %1727 = vmatmul.mubr.bf16.vlgmr.msra.gmra.mxu0 %v323_v13  ;;  %v2849_v13 = vld [vmem:[%s4040_s1 + $0x294] ss:$8 sps:$4 sm:$0xff]  }
  0x43   :  { %1768 = vmatmul.mubr.bf16.vlgmr.msra.gmra.mxu1 %v345_v18  ;;  %1777 = vmatpush1.bf16.msra.mxu0 %v2763_v19  ;;  %v2858_v18 = vld [vmem:[%s4040_s1 + $0x384] ss:$8 sps:$4 sm:$0xff]   ;;  %v2853_v19 = vld [vmem:[%s4040_s1 + $0x280] ss:$8 sps:$4 sm:$0xff]  }
  0x44   :  { %1818 = vmatpush1.bf16.msra.mxu1 %v2766_v20  ;;  %1778 = vmatprep.subr.bf16.mxu0 %v2771_v21  ;;  %v330_v20 = vrot.slane %v3327_v6, %v3277_v49  ;;  %v2856_v21 = vld [vmem:[%s4040_s1 + $0x380] ss:$8 sps:$4 sm:$0xff]   ;;  %v2859_v6 = vld [vmem:[%s4040_s1 + $0x470] ss:$8 sps:$4 sm:$0xff]  }
  0x45   :  { %1819 = vmatprep.subr.bf16.mxu1 %v2774_v22  ;;  %1808 = vmatprep.mubr.bf16.mxu0 %v344_v17  ;;  %v2855_v17 = vld [vmem:[%s4040_s1 + $0x284] ss:$8 sps:$4 sm:$0xff]   ;;  %v2861_v22 = vld [vmem:[%s4040_s1 + $0x474] ss:$8 sps:$4 sm:$0xff]  }
  0x46   :  { %1849 = vmatprep.mubr.bf16.mxu1 %v348_v23  ;;  %v2864_v23 = vld [vmem:[%s4040_s1 + $0x574] ss:$8 sps:$4 sm:$0xff]  }
  0x47   :  { %1779 = vmatpush1.bf16.msra.mxu0 %v2769_v24  ;;  %v346_v24 = vcombine.high %v330_v20, %v330_v20 }
  0x48   :  { %1820 = vmatpush1.bf16.msra.mxu1 %v2772_v25  ;;  %1780 = vmatprep.subr.bf16.mxu0 %v2777_v26  ;;  %v2862_v25 = vld [vmem:[%s4040_s1 + $0x570] ss:$8 sps:$4 sm:$0xff]   ;;  %v3560_v26 = vld [vmem:[%s4039_s0 + $0x8] sm:$0xff] }
  0x49   :  { %1821 = vmatprep.subr.bf16.mxu1 %v2780_v27  ;;  %v2867_v27 = vld [vmem:[%s4040_s1 + $0x464] ss:$8 sps:$4 sm:$0xff]  }
  0x4b   :  { %1781 = vmatpush1.bf16.msra.mxu0 %v2775_v28  ;;  %v2870_v28 = vld [vmem:[%s4040_s1 + $0x564] ss:$8 sps:$4 sm:$0xff]  }
  0x4c   :  { %1822 = vmatpush1.bf16.msra.mxu1 %v2778_v29  ;;  %1782 = vmatprep.subr.bf16.mxu0 %v2783_v30  ;;  %v3570_v29 = vrot.slane %v3560_v26, %v3277_v49 }
  0x4d   :  { %1823 = vmatprep.subr.bf16.mxu1 %v2786_v31  ;;  %v2865_v31 = vld [vmem:[%s4040_s1 + $0x460] ss:$8 sps:$4 sm:$0xff]  }
  0x4e   :  { %v364_v30 = vcombine.high %v3570_v29, %v3570_v29 }
  0x4f   :  { %1783 = vmatpush1.bf16.msra.mxu0 %v2781_v32  ;;  %v2868_v32 = vld [vmem:[%s4040_s1 + $0x560] ss:$8 sps:$4 sm:$0xff]  }
  0x50   :  { %1824 = vmatpush1.bf16.msra.mxu1 %v2784_v33  ;;  %1784 = vmatprep.subr.bf16.mxu0 %v2789_v34  ;;  %v2873_v33 = vld [vmem:[%s4040_s1 + $0x454] ss:$8 sps:$4 sm:$0xff]  }
  0x51   :  { %1825 = vmatprep.subr.bf16.mxu1 %v2792_v35  ;;  %v2876_v34 = vld [vmem:[%s4040_s1 + $0x554] ss:$8 sps:$4 sm:$0xff]   ;;  %v386_v35 = vrot.slane %v364_v30, %v3277_v49 }
  0x53   :  { %1785 = vmatpush1.bf16.msra.mxu0 %v2787_v36  ;;  %v396_v36 = vcombine.high %v386_v35, %v386_v35 }
  0x54   :  { %1826 = vmatpush1.bf16.msra.mxu1 %v2790_v37  ;;  %1786 = vmatprep.subr.bf16.mxu0 %v2795_v38  ;;  %v2871_v37 = vld [vmem:[%s4040_s1 + $0x450] ss:$8 sps:$4 sm:$0xff]  }
  0x55   :  { %1827 = vmatprep.subr.bf16.mxu1 %v2798_v39  ;;  %v2874_v38 = vld [vmem:[%s4040_s1 + $0x550] ss:$8 sps:$4 sm:$0xff]   ;;  %v2879_v39 = vld [vmem:[%s4040_s1 + $0x444] ss:$8 sps:$4 sm:$0xff]  }
  0x57   :  { %1787 = vmatpush1.bf16.msra.mxu0 %v2793_v40  ;;  %v2882_v40 = vld [vmem:[%s4040_s1 + $0x544] ss:$8 sps:$4 sm:$0xff]  }
  0x58   :  { %1828 = vmatpush1.bf16.msra.mxu1 %v2796_v41  ;;  %1788 = vmatprep.subr.bf16.mxu0 %v2801_v43  ;;  %v2877_v41 = vld [vmem:[%s4040_s1 + $0x440] ss:$8 sps:$4 sm:$0xff]  }
  0x59   :  { %1829 = vmatprep.subr.bf16.mxu1 %v2804_v44  ;;  %v2880_v43 = vld [vmem:[%s4040_s1 + $0x540] ss:$8 sps:$4 sm:$0xff]   ;;  %v2885_v44 = vld [vmem:[%s4040_s1 + $0x434] ss:$8 sps:$4 sm:$0xff]  }
  0x5b   :  { %1789 = vmatpush1.bf16.msra.mxu0 %v2799_v45  ;;  %v2888_v45 = vld [vmem:[%s4040_s1 + $0x534] ss:$8 sps:$4 sm:$0xff]  }
  0x5c   :  { %1830 = vmatpush1.bf16.msra.mxu1 %v2802_v46  ;;  %1790 = vmatprep.subr.bf16.mxu0 %v2807_v47  ;;  %v2883_v46 = vld [vmem:[%s4040_s1 + $0x430] ss:$8 sps:$4 sm:$0xff]  }
  0x5d   :  { %1831 = vmatprep.subr.bf16.mxu1 %v2810_v48  ;;  %v2886_v47 = vld [vmem:[%s4040_s1 + $0x530] ss:$8 sps:$4 sm:$0xff]   ;;  %v2891_v48 = vld [vmem:[%s4040_s1 + $0x424] ss:$8 sps:$4 sm:$0xff]  }
  0x5f   :  { %1791 = vmatpush1.bf16.msra.mxu0 %v2805_v50  ;;  %v2894_v50 = vld [vmem:[%s4040_s1 + $0x524] ss:$8 sps:$4 sm:$0xff]  }
  0x60   :  { %1832 = vmatpush1.bf16.msra.mxu1 %v2808_v51  ;;  %1792 = vmatprep.subr.bf16.mxu0 %v2813_v52  ;;  %v2889_v51 = vld [vmem:[%s4040_s1 + $0x420] ss:$8 sps:$4 sm:$0xff]  }
  0x61   :  { %1833 = vmatprep.subr.bf16.mxu1 %v2816_v53  ;;  %v2892_v52 = vld [vmem:[%s4040_s1 + $0x520] ss:$8 sps:$4 sm:$0xff]   ;;  %v2897_v53 = vld [vmem:[%s4040_s1 + $0x414] ss:$8 sps:$4 sm:$0xff]  }
  0x63   :  { %1793 = vmatpush2.bf16.msra.mxu0 %v2811_v54  ;;  %v2900_v54 = vld [vmem:[%s4040_s1 + $0x514] ss:$8 sps:$4 sm:$0xff]  }
  0x64   :  { %1834 = vmatpush2.bf16.msra.mxu1 %v2814_v55  ;;  %1794 = vmatprep.subr.bf16.mxu0 %v2819_v56  ;;  %v2895_v55 = vld [vmem:[%s4040_s1 + $0x410] ss:$8 sps:$4 sm:$0xff]  }
  0x65   :  { %1835 = vmatprep.subr.bf16.mxu1 %v2822_v57  ;;  %v2898_v56 = vld [vmem:[%s4040_s1 + $0x510] ss:$8 sps:$4 sm:$0xff]   ;;  %v2903_v57 = vld [vmem:[%s4040_s1 + $0x404] ss:$8 sps:$4 sm:$0xff]  }
  0x67   :  { %1795 = vmatpush2.bf16.msra.mxu0 %v2817_v58  ;;  %v2906_v58 = vld [vmem:[%s4040_s1 + $0x504] ss:$8 sps:$4 sm:$0xff]  }
  0x68   :  { %1836 = vmatpush2.bf16.msra.mxu1 %v2820_v59  ;;  %1796 = vmatprep.subr.bf16.mxu0 %v2825_v60  ;;  %v2901_v59 = vld [vmem:[%s4040_s1 + $0x400] ss:$8 sps:$4 sm:$0xff]  }
  0x69   :  { %1837 = vmatprep.subr.bf16.mxu1 %v2828_v61  ;;  %v2904_v60 = vld [vmem:[%s4040_s1 + $0x500] ss:$8 sps:$4 sm:$0xff]   ;;  %v2909_v61 = vld [vmem:[%s4040_s1 + $0x4f4] ss:$8 sps:$4 sm:$0xff]  }
  0x6b   :  { %1797 = vmatpush2.bf16.msra.mxu0 %v2823_v62  ;;  %v2912_v62 = vld [vmem:[%s4040_s1 + $0x5f4] ss:$8 sps:$4 sm:$0xff]  }
  0x6c   :  { %1838 = vmatpush2.bf16.msra.mxu1 %v2826_v63  ;;  %1798 = vmatprep.subr.bf16.mxu0 %v2831_v0  ;;  %v2907_v63 = vld [vmem:[%s4040_s1 + $0x4f0] ss:$8 sps:$4 sm:$0xff]  }
  0x6d   :  { %1839 = vmatprep.subr.bf16.mxu1 %v2834_v1  ;;  %v2910_v0 = vld [vmem:[%s4040_s1 + $0x5f0] ss:$8 sps:$4 sm:$0xff]   ;;  %v2915_v1 = vld [vmem:[%s4040_s1 + $0x4e4] ss:$8 sps:$4 sm:$0xff]  }
  0x6f   :  { %1799 = vmatpush2.bf16.msra.mxu0 %v2829_v2  ;;  %v2918_v2 = vld [vmem:[%s4040_s1 + $0x5e4] ss:$8 sps:$4 sm:$0xff]  }
  0x70   :  { %1840 = vmatpush2.bf16.msra.mxu1 %v2832_v3  ;;  %1800 = vmatprep.subr.bf16.mxu0 %v2837_v4  ;;  %v2913_v3 = vld [vmem:[%s4040_s1 + $0x4e0] ss:$8 sps:$4 sm:$0xff]  }
  0x71   :  { %1841 = vmatprep.subr.bf16.mxu1 %v2840_v5  ;;  %v2916_v4 = vld [vmem:[%s4040_s1 + $0x5e0] ss:$8 sps:$4 sm:$0xff]   ;;  %v2921_v5 = vld [vmem:[%s4040_s1 + $0x4d4] ss:$8 sps:$4 sm:$0xff]  }
  0x73   :  { %1801 = vmatpush2.bf16.msra.mxu0 %v2835_v7  ;;  %v2924_v7 = vld [vmem:[%s4040_s1 + $0x5d4] ss:$8 sps:$4 sm:$0xff]  }
  0x74   :  { %1842 = vmatpush2.bf16.msra.mxu1 %v2838_v8  ;;  %1802 = vmatprep.subr.bf16.mxu0 %v2843_v9  ;;  %v2919_v8 = vld [vmem:[%s4040_s1 + $0x4d0] ss:$8 sps:$4 sm:$0xff]  }
  0x75   :  { %1843 = vmatprep.subr.bf16.mxu1 %v2846_v10  ;;  %v2922_v9 = vld [vmem:[%s4040_s1 + $0x5d0] ss:$8 sps:$4 sm:$0xff]   ;;  %v2927_v10 = vld [vmem:[%s4040_s1 + $0x4c4] ss:$8 sps:$4 sm:$0xff]  }
  0x77   :  { %1803 = vmatpush2.bf16.msra.mxu0 %v2841_v11  ;;  %v2930_v11 = vld [vmem:[%s4040_s1 + $0x5c4] ss:$8 sps:$4 sm:$0xff]  }
  0x78   :  { %1844 = vmatpush2.bf16.msra.mxu1 %v2844_v12  ;;  %1804 = vmatprep.subr.bf16.mxu0 %v2849_v13  ;;  %v2925_v12 = vld [vmem:[%s4040_s1 + $0x4c0] ss:$8 sps:$4 sm:$0xff]  }
  0x79   :  { %1845 = vmatprep.subr.bf16.mxu1 %v2852_v14  ;;  %v2928_v13 = vld [vmem:[%s4040_s1 + $0x5c0] ss:$8 sps:$4 sm:$0xff]   ;;  %v2933_v14 = vld [vmem:[%s4040_s1 + $0x4b4] ss:$8 sps:$4 sm:$0xff]  }
  0x7b   :  { %1805 = vmatpush2.bf16.msra.mxu0 %v2847_v15  ;;  %v2936_v15 = vld [vmem:[%s4040_s1 + $0x5b4] ss:$8 sps:$4 sm:$0xff]  }
  0x7c   :  { %1846 = vmatpush2.bf16.msra.mxu1 %v2850_v16  ;;  %1806 = vmatprep.subr.bf16.mxu0 %v2855_v17  ;;  %v2931_v16 = vld [vmem:[%s4040_s1 + $0x4b0] ss:$8 sps:$4 sm:$0xff]  }
  0x7d   :  { %1847 = vmatprep.subr.bf16.mxu1 %v2858_v18  ;;  %v2934_v17 = vld [vmem:[%s4040_s1 + $0x5b0] ss:$8 sps:$4 sm:$0xff]   ;;  %v2939_v18 = vld [vmem:[%s4040_s1 + $0x4a4] ss:$8 sps:$4 sm:$0xff]  }
  0x7f   :  { %1807 = vmatpush2.bf16.msra.mxu0 %v2853_v19  ;;  %v2942_v19 = vld [vmem:[%s4040_s1 + $0x5a4] ss:$8 sps:$4 sm:$0xff]  }
  0x80   :  { %1848 = vmatpush2.bf16.msra.mxu1 %v2856_v21  ;;  %1858 = vmatprep.subr.bf16.mxu0 %v2861_v22  ;;  %v2940_v21 = vld [vmem:[%s4040_s1 + $0x5a0] ss:$8 sps:$4 sm:$0xff]   ;;  %v349_v22 = vcombine.high %v3560_v26, %v3560_v26 }
  0x81   :  { %1899 = vmatprep.subr.bf16.mxu1 %v2864_v23  ;;  %v2945_v23 = vld [vmem:[%s4040_s1 + $0x494] ss:$8 sps:$4 sm:$0xff]  }
  0x82   :  { %1809 = vmatmul.mubr.bf16.vlgmr.msra.gmra.mxu0 %v330_v20  ;;  %v2937_v20 = vld [vmem:[%s4040_s1 + $0x4a0] ss:$8 sps:$4 sm:$0xff]   ;;  %v3740_v26 = vrot.slane %v349_v22, %v3277_v49 }
  0x83   :  { %1850 = vmatmul.mubr.bf16.vlgmr.msra.gmra.mxu1 %v346_v24  ;;  %1859 = vmatpush1.bf16.msra.mxu0 %v2859_v6  ;;  %v2948_v24 = vld [vmem:[%s4040_s1 + $0x594] ss:$8 sps:$4 sm:$0xff]   ;;  %v2943_v6 = vld [vmem:[%s4040_s1 + $0x490] ss:$8 sps:$4 sm:$0xff]  }
  0x84   :  { %1900 = vmatpush1.bf16.msra.mxu1 %v2862_v25  ;;  %1860 = vmatprep.subr.bf16.mxu0 %v2867_v27  ;;  %v2946_v25 = vld [vmem:[%s4040_s1 + $0x590] ss:$8 sps:$4 sm:$0xff]   ;;  %v2951_v27 = vld [vmem:[%s4040_s1 + $0x484] ss:$8 sps:$4 sm:$0xff]   ;;  %v365_v30 = vcombine.high %v3740_v26, %v3740_v26 }
  0x85   :  { %1901 = vmatprep.subr.bf16.mxu1 %v2870_v28  ;;  %1890 = vmatprep.mubr.bf16.mxu0 %v386_v35  ;;  %v2954_v28 = vld [vmem:[%s4040_s1 + $0x584] ss:$8 sps:$4 sm:$0xff]  }
  0x86   :  { %1931 = vmatprep.mubr.bf16.mxu1 %v396_v36 }
  0x87   :  { %1861 = vmatpush1.bf16.msra.mxu0 %v2865_v31  ;;  %v372_v31 = vrot.slane %v3570_v29, %v3277_v49 }
  0x88   :  { %1902 = vmatpush1.bf16.msra.mxu1 %v2868_v32  ;;  %1862 = vmatprep.subr.bf16.mxu0 %v2873_v33 }
  0x89   :  { %1903 = vmatprep.subr.bf16.mxu1 %v2876_v34 }
  0x8b   :  { %1863 = vmatpush1.bf16.msra.mxu0 %v2871_v37 }
  0x8c   :  { %1904 = vmatpush1.bf16.msra.mxu1 %v2874_v38  ;;  %1864 = vmatprep.subr.bf16.mxu0 %v2879_v39 }
  0x8d   :  { %1905 = vmatprep.subr.bf16.mxu1 %v2882_v40 }
  0x8f   :  { %1865 = vmatpush1.bf16.msra.mxu0 %v2877_v41 }
  0x90   :  { %1906 = vmatpush1.bf16.msra.mxu1 %v2880_v43  ;;  %1866 = vmatprep.subr.bf16.mxu0 %v2885_v44 }
  0x91   :  { %1907 = vmatprep.subr.bf16.mxu1 %v2888_v45 }
  0x93   :  { %1867 = vmatpush1.bf16.msra.mxu0 %v2883_v46 }
  0x94   :  { %1908 = vmatpush1.bf16.msra.mxu1 %v2886_v47  ;;  %1868 = vmatprep.subr.bf16.mxu0 %v2891_v48 }
  0x95   :  { %1909 = vmatprep.subr.bf16.mxu1 %v2894_v50 }
  0x97   :  { %1869 = vmatpush1.bf16.msra.mxu0 %v2889_v51 }
  0x98   :  { %1910 = vmatpush1.bf16.msra.mxu1 %v2892_v52  ;;  %1870 = vmatprep.subr.bf16.mxu0 %v2897_v53 }
  0x99   :  { %1911 = vmatprep.subr.bf16.mxu1 %v2900_v54 }
  0x9b   :  { %1871 = vmatpush1.bf16.msra.mxu0 %v2895_v55 }
  0x9c   :  { %1912 = vmatpush1.bf16.msra.mxu1 %v2898_v56  ;;  %1872 = vmatprep.subr.bf16.mxu0 %v2903_v57 }
  0x9d   :  { %1913 = vmatprep.subr.bf16.mxu1 %v2906_v58 }
  0x9f   :  { %1873 = vmatpush1.bf16.msra.mxu0 %v2901_v59 }
  0xa0   :  { %1914 = vmatpush1.bf16.msra.mxu1 %v2904_v60  ;;  %1874 = vmatprep.subr.bf16.mxu0 %v2909_v61 }
  0xa1   :  { %1915 = vmatprep.subr.bf16.mxu1 %v2912_v62 }
  0xa3   :  { %1875 = vmatpush2.bf16.msra.mxu0 %v2907_v63 }
  0xa4   :  { %1916 = vmatpush2.bf16.msra.mxu1 %v2910_v0  ;;  %1876 = vmatprep.subr.bf16.mxu0 %v2915_v1 }
  0xa5   :  { %1917 = vmatprep.subr.bf16.mxu1 %v2918_v2 }
  0xa7   :  { %1877 = vmatpush2.bf16.msra.mxu0 %v2913_v3 }
  0xa8   :  { %1918 = vmatpush2.bf16.msra.mxu1 %v2916_v4  ;;  %1878 = vmatprep.subr.bf16.mxu0 %v2921_v5 }
  0xa9   :  { %1919 = vmatprep.subr.bf16.mxu1 %v2924_v7 }
  0xab   :  { %1879 = vmatpush2.bf16.msra.mxu0 %v2919_v8 }
  0xac   :  { %1920 = vmatpush2.bf16.msra.mxu1 %v2922_v9  ;;  %1880 = vmatprep.subr.bf16.mxu0 %v2927_v10 }
  0xad   :  { %1921 = vmatprep.subr.bf16.mxu1 %v2930_v11 }
  0xaf   :  { %1881 = vmatpush2.bf16.msra.mxu0 %v2925_v12 }
  0xb0   :  { %1922 = vmatpush2.bf16.msra.mxu1 %v2928_v13  ;;  %1882 = vmatprep.subr.bf16.mxu0 %v2933_v14 }
  0xb1   :  { %1923 = vmatprep.subr.bf16.mxu1 %v2936_v15 }
  0xb3   :  { %1883 = vmatpush2.bf16.msra.mxu0 %v2931_v16 }
  0xb4   :  { %1924 = vmatpush2.bf16.msra.mxu1 %v2934_v17  ;;  %1884 = vmatprep.subr.bf16.mxu0 %v2939_v18 }
  0xb5   :  { %1925 = vmatprep.subr.bf16.mxu1 %v2942_v19 }
  0xb7   :  { %1885 = vmatpush2.bf16.msra.mxu0 %v2937_v20 }
  0xb8   :  { %1926 = vmatpush2.bf16.msra.mxu1 %v2940_v21  ;;  %1886 = vmatprep.subr.bf16.mxu0 %v2945_v23 }
  0xb9   :  { %1927 = vmatprep.subr.bf16.mxu1 %v2948_v24 }
  0xba   :  { %12 = vsyncpa [#allocation3], 0  ;;  %v2949_v32 = vld [vmem:[%s4040_s1 + $0x480] ss:$8 sps:$4 sm:$0xff]   ;;  %v2957_v34 = vld [vmem:[%s4040_s1 + $0x674] ss:$8 sps:$4 sm:$0xff]   ;;  %v393_v35 = vrot.slane %v365_v30, %v3277_v49  ;;  %v394_v36 = vcombine.high %v372_v31, %v372_v31 }
  0xbb   :  { %1887 = vmatpush2.bf16.msra.mxu0 %v2943_v6  ;;  %v2952_v33 = vld [vmem:[%s4040_s1 + $0x580] ss:$8 sps:$4 sm:$0xff]   ;;  %v2960_v29 = vld [vmem:[%s4040_s1 + $0x774] ss:$8 sps:$4 sm:$0xff]   ;;  %v2955_v37 = vld [vmem:[%s4040_s1 + $0x670] ss:$8 sps:$4 sm:$0xff]  }
  0xbc   :  { %1928 = vmatpush2.bf16.msra.mxu1 %v2946_v25  ;;  %1888 = vmatprep.subr.bf16.mxu0 %v2951_v27  ;;  %v2958_v38 = vld [vmem:[%s4040_s1 + $0x770] ss:$8 sps:$4 sm:$0xff]   ;;  %v2963_v39 = vld [vmem:[%s4040_s1 + $0x664] ss:$8 sps:$4 sm:$0xff]   ;;  %v397_v41 = vcombine.high %v393_v35, %v393_v35  ;;  %v2961_v43 = vld [vmem:[%s4040_s1 + $0x660] ss:$8 sps:$4 sm:$0xff]  }
  0xbd   :  { %1929 = vmatprep.subr.bf16.mxu1 %v2954_v28  ;;  %v2966_v40 = vld [vmem:[%s4040_s1 + $0x764] ss:$8 sps:$4 sm:$0xff]   ;;  %v2964_v44 = vld [vmem:[%s4040_s1 + $0x760] ss:$8 sps:$4 sm:$0xff]   ;;  %v2969_v45 = vld [vmem:[%s4040_s1 + $0x654] ss:$8 sps:$4 sm:$0xff]  }
  0xbe   :  { %v2972_v46 = vld [vmem:[%s4040_s1 + $0x754] ss:$8 sps:$4 sm:$0xff]   ;;  %v2967_v47 = vld [vmem:[%s4040_s1 + $0x650] ss:$8 sps:$4 sm:$0xff]   ;;  %v2975_v50 = vld [vmem:[%s4040_s1 + $0x644] ss:$8 sps:$4 sm:$0xff]  }
  0xbf   :  { %1889 = vmatpush2.bf16.msra.mxu0 %v2949_v32  ;;  %v2970_v48 = vld [vmem:[%s4040_s1 + $0x750] ss:$8 sps:$4 sm:$0xff]   ;;  %v2978_v51 = vld [vmem:[%s4040_s1 + $0x744] ss:$8 sps:$4 sm:$0xff]   ;;  %v2973_v52 = vld [vmem:[%s4040_s1 + $0x640] ss:$8 sps:$4 sm:$0xff]  }
  0xc0   :  { %1930 = vmatpush2.bf16.msra.mxu1 %v2952_v33  ;;  %1940 = vmatprep.subr.bf16.mxu0 %v2957_v34  ;;  %v2976_v53 = vld [vmem:[%s4040_s1 + $0x740] ss:$8 sps:$4 sm:$0xff]   ;;  %v2981_v54 = vld [vmem:[%s4040_s1 + $0x634] ss:$8 sps:$4 sm:$0xff]   ;;  %v2979_v56 = vld [vmem:[%s4040_s1 + $0x630] ss:$8 sps:$4 sm:$0xff]  }
  0xc1   :  { %1981 = vmatprep.subr.bf16.mxu1 %v2960_v29  ;;  %v2984_v55 = vld [vmem:[%s4040_s1 + $0x734] ss:$8 sps:$4 sm:$0xff]   ;;  %v2982_v57 = vld [vmem:[%s4040_s1 + $0x730] ss:$8 sps:$4 sm:$0xff]   ;;  %v2987_v58 = vld [vmem:[%s4040_s1 + $0x624] ss:$8 sps:$4 sm:$0xff]  }
  0xc2   :  { %1891 = vmatmul.mubr.bf16.vlgmr.msra.gmra.mxu0 %v372_v31  ;;  %v2990_v59 = vld [vmem:[%s4040_s1 + $0x724] ss:$8 sps:$4 sm:$0xff]   ;;  %v2985_v60 = vld [vmem:[%s4040_s1 + $0x620] ss:$8 sps:$4 sm:$0xff]   ;;  %v2993_v62 = vld [vmem:[%s4040_s1 + $0x614] ss:$8 sps:$4 sm:$0xff]  }
  0xc3   :  { %1932 = vmatmul.mubr.bf16.vlgmr.msra.gmra.mxu1 %v394_v36  ;;  %1941 = vmatpush1.bf16.msra.mxu0 %v2955_v37  ;;  %v2988_v61 = vld [vmem:[%s4040_s1 + $0x720] ss:$8 sps:$4 sm:$0xff]   ;;  %v2996_v63 = vld [vmem:[%s4040_s1 + $0x714] ss:$8 sps:$4 sm:$0xff]   ;;  %v2991_v0 = vld [vmem:[%s4040_s1 + $0x610] ss:$8 sps:$4 sm:$0xff]   ;;  %v379_v37 = vrot.slane %v3740_v26, %v3277_v49 }
  0xc4   :  { %1982 = vmatpush1.bf16.msra.mxu1 %v2958_v38  ;;  %1942 = vmatprep.subr.bf16.mxu0 %v2963_v39  ;;  %v2994_v1 = vld [vmem:[%s4040_s1 + $0x710] ss:$8 sps:$4 sm:$0xff]   ;;  %v2999_v2 = vld [vmem:[%s4040_s1 + $0x604] ss:$8 sps:$4 sm:$0xff]   ;;  %v2997_v4 = vld [vmem:[%s4040_s1 + $0x600] ss:$8 sps:$4 sm:$0xff]  }
  0xc5   :  { %1983 = vmatprep.subr.bf16.mxu1 %v2966_v40  ;;  %1972 = vmatprep.mubr.bf16.mxu0 %v393_v35  ;;  %v3002_v3 = vld [vmem:[%s4040_s1 + $0x704] ss:$8 sps:$4 sm:$0xff]   ;;  %v3000_v5 = vld [vmem:[%s4040_s1 + $0x700] ss:$8 sps:$4 sm:$0xff]   ;;  %v3005_v7 = vld [vmem:[%s4040_s1 + $0x6f4] ss:$8 sps:$4 sm:$0xff]   ;;  %v395_v26 = vcombine.high %v379_v37, %v379_v37 }
  0xc6   :  { %2013 = vmatprep.mubr.bf16.mxu1 %v397_v41  ;;  %v3008_v8 = vld [vmem:[%s4040_s1 + $0x7f4] ss:$8 sps:$4 sm:$0xff]   ;;  %v3003_v9 = vld [vmem:[%s4040_s1 + $0x6f0] ss:$8 sps:$4 sm:$0xff]   ;;  %v3011_v11 = vld [vmem:[%s4040_s1 + $0x6e4] ss:$8 sps:$4 sm:$0xff]  }
  0xc7   :  { %1943 = vmatpush1.bf16.msra.mxu0 %v2961_v43  ;;  %v3006_v10 = vld [vmem:[%s4040_s1 + $0x7f0] ss:$8 sps:$4 sm:$0xff]   ;;  %v3014_v12 = vld [vmem:[%s4040_s1 + $0x7e4] ss:$8 sps:$4 sm:$0xff]   ;;  %v3009_v13 = vld [vmem:[%s4040_s1 + $0x6e0] ss:$8 sps:$4 sm:$0xff]  }
  0xc8   :  { %1984 = vmatpush1.bf16.msra.mxu1 %v2964_v44  ;;  %1944 = vmatprep.subr.bf16.mxu0 %v2969_v45  ;;  %v3012_v14 = vld [vmem:[%s4040_s1 + $0x7e0] ss:$8 sps:$4 sm:$0xff]   ;;  %v3017_v15 = vld [vmem:[%s4040_s1 + $0x6d4] ss:$8 sps:$4 sm:$0xff]   ;;  %v3015_v17 = vld [vmem:[%s4040_s1 + $0x6d0] ss:$8 sps:$4 sm:$0xff]  }
  0xc9   :  { %1985 = vmatprep.subr.bf16.mxu1 %v2972_v46  ;;  %v3020_v16 = vld [vmem:[%s4040_s1 + $0x7d4] ss:$8 sps:$4 sm:$0xff]   ;;  %v3018_v18 = vld [vmem:[%s4040_s1 + $0x7d0] ss:$8 sps:$4 sm:$0xff]   ;;  %v3023_v19 = vld [vmem:[%s4040_s1 + $0x6c4] ss:$8 sps:$4 sm:$0xff]  }
  0xca   :  { %v3026_v20 = vld [vmem:[%s4040_s1 + $0x7c4] ss:$8 sps:$4 sm:$0xff]   ;;  %v3021_v21 = vld [vmem:[%s4040_s1 + $0x6c0] ss:$8 sps:$4 sm:$0xff]   ;;  %v3029_v23 = vld [vmem:[%s4040_s1 + $0x6b4] ss:$8 sps:$4 sm:$0xff]  }
  0xcb   :  { %1945 = vmatpush1.bf16.msra.mxu0 %v2967_v47  ;;  %v3024_v22 = vld [vmem:[%s4040_s1 + $0x7c0] ss:$8 sps:$4 sm:$0xff]   ;;  %v3032_v24 = vld [vmem:[%s4040_s1 + $0x7b4] ss:$8 sps:$4 sm:$0xff]   ;;  %v3027_v6 = vld [vmem:[%s4040_s1 + $0x6b0] ss:$8 sps:$4 sm:$0xff]  }
  0xcc   :  { %1986 = vmatpush1.bf16.msra.mxu1 %v2970_v48  ;;  %1946 = vmatprep.subr.bf16.mxu0 %v2975_v50  ;;  %v3030_v25 = vld [vmem:[%s4040_s1 + $0x7b0] ss:$8 sps:$4 sm:$0xff]   ;;  %v3035_v27 = vld [vmem:[%s4040_s1 + $0x6a4] ss:$8 sps:$4 sm:$0xff]   ;;  %v3033_v30 = vld [vmem:[%s4040_s1 + $0x6a0] ss:$8 sps:$4 sm:$0xff]  }
  0xcd   :  { %1987 = vmatprep.subr.bf16.mxu1 %v2978_v51  ;;  %v3038_v28 = vld [vmem:[%s4040_s1 + $0x7a4] ss:$8 sps:$4 sm:$0xff]   ;;  %v3036_v31 = vld [vmem:[%s4040_s1 + $0x7a0] ss:$8 sps:$4 sm:$0xff]   ;;  %v3041_v32 = vld [vmem:[%s4040_s1 + $0x694] ss:$8 sps:$4 sm:$0xff]  }
  0xce   :  { %v3044_v33 = vld [vmem:[%s4040_s1 + $0x794] ss:$8 sps:$4 sm:$0xff]   ;;  %v3039_v34 = vld [vmem:[%s4040_s1 + $0x690] ss:$8 sps:$4 sm:$0xff]   ;;  %v3047_v35 = vld [vmem:[%s4040_s1 + $0x684] ss:$8 sps:$4 sm:$0xff]  }
  0xcf   :  { %1947 = vmatpush1.bf16.msra.mxu0 %v2973_v52  ;;  %v3042_v29 = vld [vmem:[%s4040_s1 + $0x790] ss:$8 sps:$4 sm:$0xff]   ;;  %v3050_v36 = vld [vmem:[%s4040_s1 + $0x784] ss:$8 sps:$4 sm:$0xff]   ;;  %v3045_v38 = vld [vmem:[%s4040_s1 + $0x680] ss:$8 sps:$4 sm:$0xff]  }
  0xd0   :  { %1988 = vmatpush1.bf16.msra.mxu1 %v2976_v53  ;;  %1948 = vmatprep.subr.bf16.mxu0 %v2981_v54  ;;  %v3048_v39 = vld [vmem:[%s4040_s1 + $0x780] ss:$8 sps:$4 sm:$0xff]   ;;  %v290_v40 = vsub.s32 0, %v3259_v42  ;;  %v294_v49 = vsub.s32 1, %v3259_v42  ;;  %v3052_v42 = vld [vmem:[%s4042_s3 + $0x78] sm:$0xff]   ;;  %vm3100_vm0 = vmmov 0  }
  0xd1   :  { %1989 = vmatprep.subr.bf16.mxu1 %v2984_v55  ;;  %v286_v41 = vld [vmem:[%s4041_s2] sm:$0x3] }
  0xd2   :  { %v291_v43 = vrot.slane %v286_v41, %v290_v40  ;;  %v295_v44 = vrot.slane %v286_v41, %v294_v49 }
  0xd3   :  { %1949 = vmatpush1.bf16.msra.mxu0 %v2979_v56 }
  0xd4   :  { %1990 = vmatpush1.bf16.msra.mxu1 %v2982_v57  ;;  %1950 = vmatprep.subr.bf16.mxu0 %v2987_v58  ;;  %v3053_v58 = vld [vmem:[%s4042_s3 + $0x38] sm:$0xff]  }
  0xd5   :  { %1991 = vmatprep.subr.bf16.mxu1 %v2990_v59  ;;  %v3054_v59 = vld [vmem:[%s4042_s3 + $0x70] sm:$0xff]  }
  0xd7   :  { %1951 = vmatpush1.bf16.msra.mxu0 %v2985_v60  ;;  %v3055_v60 = vld [vmem:[%s4042_s3 + $0x30] sm:$0xff]  }
  0xd8   :  { %1992 = vmatpush1.bf16.msra.mxu1 %v2988_v61  ;;  %1952 = vmatprep.subr.bf16.mxu0 %v2993_v62  ;;  %v3056_v61 = vld [vmem:[%s4042_s3 + $0x68] sm:$0xff]  }
  0xd9   :  { %1993 = vmatprep.subr.bf16.mxu1 %v2996_v63  ;;  %v3057_v62 = vld [vmem:[%s4042_s3 + $0x28] sm:$0xff]   ;;  %v3058_v63 = vld [vmem:[%s4042_s3 + $0x60] sm:$0xff]  }
  0xdb   :  { %1953 = vmatpush1.bf16.msra.mxu0 %v2991_v0  ;;  %v3059_v0 = vld [vmem:[%s4042_s3 + $0x20] sm:$0xff]  }
  0xdc   :  { %1994 = vmatpush1.bf16.msra.mxu1 %v2994_v1  ;;  %1954 = vmatprep.subr.bf16.mxu0 %v2999_v2  ;;  %v3060_v1 = vld [vmem:[%s4042_s3 + $0x58] sm:$0xff]  }
  0xdd   :  { %1995 = vmatprep.subr.bf16.mxu1 %v3002_v3  ;;  %v3061_v2 = vld [vmem:[%s4042_s3 + $0x18] sm:$0xff]   ;;  %v3062_v3 = vld [vmem:[%s4042_s3 + $0x50] sm:$0xff]  }
  0xdf   :  { %1955 = vmatpush1.bf16.msra.mxu0 %v2997_v4  ;;  %v3063_v4 = vld [vmem:[%s4042_s3 + $0x10] sm:$0xff]  }
  0xe0   :  { %1996 = vmatpush1.bf16.msra.mxu1 %v3000_v5  ;;  %1956 = vmatprep.subr.bf16.mxu0 %v3005_v7 }
  0xe1   :  { %1997 = vmatprep.subr.bf16.mxu1 %v3008_v8 }
  0xe3   :  { %1957 = vmatpush2.bf16.msra.mxu0 %v3003_v9 }
  0xe4   :  { %1998 = vmatpush2.bf16.msra.mxu1 %v3006_v10  ;;  %1958 = vmatprep.subr.bf16.mxu0 %v3011_v11  ;;  %v3064_v11 = vld [vmem:[%s4042_s3 + $0x48] sm:$0xff]  }
  0xe5   :  { %1999 = vmatprep.subr.bf16.mxu1 %v3014_v12 }
  0xe7   :  { %1959 = vmatpush2.bf16.msra.mxu0 %v3009_v13 }
  0xe8   :  { %2000 = vmatpush2.bf16.msra.mxu1 %v3012_v14  ;;  %1960 = vmatprep.subr.bf16.mxu0 %v3017_v15  ;;  %v3065_v14 = vld [vmem:[%s4042_s3 + $0x8] sm:$0xff]  }
  0xe9   :  { %2001 = vmatprep.subr.bf16.mxu1 %v3020_v16 }
  0xeb   :  { %1961 = vmatpush2.bf16.msra.mxu0 %v3015_v17 }
  0xec   :  { %2002 = vmatpush2.bf16.msra.mxu1 %v3018_v18  ;;  %1962 = vmatprep.subr.bf16.mxu0 %v3023_v19 }
  0xed   :  { %2003 = vmatprep.subr.bf16.mxu1 %v3026_v20  ;;  %v3066_v20 = vld [vmem:[%s4042_s3 + $0x40] sm:$0xff]  }
  0xef   :  { %1963 = vmatpush2.bf16.msra.mxu0 %v3021_v21  ;;  %v3067_v21 = vld [vmem:[%s4042_s3] sm:$0xff]  }
  0xf0   :  { %2004 = vmatpush2.bf16.msra.mxu1 %v3024_v22  ;;  %1964 = vmatprep.subr.bf16.mxu0 %v3029_v23  ;;  %v3068_v22 = vld [vmem:[%s4044_s5 + $0x38] sm:$0xff]   ;;  %v3099_v23 = vmov 0.0  }
  0xf1   :  { %2005 = vmatprep.subr.bf16.mxu1 %v3032_v24  ;;  %v3069_v24 = vld [vmem:[%s4044_s5 + $0x30] sm:$0xff]  }
  0xf3   :  { %1965 = vmatpush2.bf16.msra.mxu0 %v3027_v6  ;;  %v3070_v6 = vld [vmem:[%s4044_s5 + $0x28] sm:$0xff]  }
  0xf4   :  { %2006 = vmatpush2.bf16.msra.mxu1 %v3030_v25  ;;  %1966 = vmatprep.subr.bf16.mxu0 %v3035_v27  ;;  %v3071_v25 = vld [vmem:[%s4044_s5 + $0x20] sm:$0xff]   ;;  %v3072_v27 = vld [vmem:[%s4044_s5 + $0x18] sm:$0xff]  }
  0xf5   :  { %2007 = vmatprep.subr.bf16.mxu1 %v3038_v28 }
  0xf7   :  { %1967 = vmatpush2.bf16.msra.mxu0 %v3033_v30 }
  0xf8   :  { %2008 = vmatpush2.bf16.msra.mxu1 %v3036_v31  ;;  %1968 = vmatprep.subr.bf16.mxu0 %v3041_v32 }
  0xf9   :  { %2009 = vmatprep.subr.bf16.mxu1 %v3044_v33 }
  0xfb   :  { %1969 = vmatpush2.bf16.msra.mxu0 %v3039_v34 }
  0xfc   :  { %2010 = vmatpush2.bf16.msra.mxu1 %v3042_v29  ;;  %1970 = vmatprep.subr.bf16.mxu0 %v3047_v35 }
  0xfd   :  { %2011 = vmatprep.subr.bf16.mxu1 %v3050_v36 }
  0xff   :  { %1971 = vmatpush2.bf16.msra.mxu0 %v3045_v38 }
 0x100   :  { %2012 = vmatpush2.bf16.msra.mxu1 %v3048_v39  ;;  %2611 = vmatprep.subr.bf16.mxu0 %v3052_v42  ;;  %v3075_v42 = vld [vmem:[%s4044_s5] sm:$0xff]  }
 0x101   :  { %2642 = vmatprep.subr.bf16.mxu1 %v3099_v23 }
 0x102   :  { %v1728_v45 = vpop.f32.mrf.mxu0  ;;  %1973 = vmatmul.mubr.bf16.vlgmr.msra.gmra.mxu0 %v379_v37 }
 0x103   :  { %v1769_v46 = vpop.f32.mrf.mxu1  ;;  %2014 = vmatmul.mubr.bf16.vlgmr.msra.gmra.mxu1 %v395_v26  ;;  %v1729_v47 = vadd.f32 %v1728_v45, %v291_v43  ;;  %2612 = vmatpush3.bf16.msra.mxu0 %v3053_v58 }
 0x104   :  { %v1730_v48 = vpop.f32.mrf.mxu0  ;;  %2613 = vmatprep.subr.bf16.mxu0 %v3054_v59  ;;  %2643 = vmatpush3.bf16.msra.mxu1 %v3068_v22  ;;  %v2585_v59 = vld [vmem:[%s4043_s4] ss:$0 sm:$0xff] }
 0x105   :  { %v1771_v50 = vpop.f32.mrf.mxu1  ;;  %v1770_v51 = vadd.f32 %v1769_v46, %v1729_v47  ;;  %v1731_v52 = vadd.f32 %v1730_v48, %v295_v44  ;;  %2644 = vmatprep.subr.bf16.mxu1 %v3099_v23  ;;  %2658 = vmatprep.mubr.msk.bf16.mxu1 %vm3100_vm0, %v3099_v23 }
 0x106   :  { %v1732_v53 = vpop.f32.mrf.mxu0 }
 0x107   :  { %v1773_v54 = vpop.f32.mrf.mxu1  ;;  %v1772_v55 = vadd.f32 %v1771_v50, %v1731_v52  ;;  %2614 = vmatpush3.bf16.msra.mxu0 %v3055_v60 }
 0x108   :  { %v1733_v56 = vpop.f32.mrf.mxu0  ;;  %2615 = vmatprep.subr.bf16.mxu0 %v3056_v61  ;;  %2645 = vmatpush3.bf16.msra.mxu1 %v3069_v24 }
 0x109   :  { %v1774_v57 = vpop.f32.mrf.mxu1  ;;  %2646 = vmatprep.subr.bf16.mxu1 %v3099_v23  ;;  %v3073_v56 = vld [vmem:[%s4044_s5 + $0x10] sm:$0xff]  }
 0x10a   :  { %v3074_v57 = vld [vmem:[%s4044_s5 + $0x8] sm:$0xff]   ;;  %s3101_s5 = smov [#allocation2]  }
 0x10b   :  { %2616 = vmatpush3.bf16.msra.mxu0 %v3057_v62  ;;  %s2321_s24 = sshll.u32 %s3101_s5, 4  ;;  %s2322_s24 = int_to_ptr.vmem [resolvable:$true] %s2321_s24 }
 0x10c   :  { %2617 = vmatprep.subr.bf16.mxu0 %v3058_v63  ;;  %2647 = vmatpush3.bf16.msra.mxu1 %v3070_v6  ;;  %s3076_s4 = scalar_lea.vmem %s2322_s24, 32  ;;  %p3081_p1 = scmp.lt.s32.totalorder %s2322_s24, %s2322_s24 }
 0x10d   :  { %2648 = vmatprep.subr.bf16.mxu1 %v3099_v23  ;;  %p3077_p0 = scmp.ne.s32.totalorder %s2322_s24, %s3076_s4  ;;  %p3082_p2 = scmp.lt.s32.totalorder %s3076_s4, %s3076_s4 }
 0x10f   :  { %2618 = vmatpush3.bf16.msra.mxu0 %v3059_v0  ;;  %p3083_p3 = por %p3082_p2, %p3081_p1 }
 0x110   :  { %2619 = vmatprep.subr.bf16.mxu0 %v3060_v1  ;;  %2649 = vmatpush3.bf16.msra.mxu1 %v3071_v25 }
 0x111   :  { %2650 = vmatprep.subr.bf16.mxu1 %v3099_v23  ;;  %p3084_p4 = pnand %p3083_p3, %p3077_p0 }
 0x113   :  { %2620 = vmatpush3.bf16.msra.mxu0 %v3061_v2 }
 0x114   :  { %2621 = vmatprep.subr.bf16.mxu0 %v3062_v3  ;;  %2651 = vmatpush3.bf16.msra.mxu1 %v3072_v27  ;;  %v2602_v3 = vld [vmem:[%s4045_s6] ss:$0 sm:$0xff] }
 0x115   :  { %2652 = vmatprep.subr.bf16.mxu1 %v3099_v23 }
 0x117   :  { %2622 = vmatpush3.bf16.msra.mxu0 %v3063_v4 }
 0x118   :  { %2623 = vmatprep.subr.bf16.mxu0 %v3064_v11  ;;  %2653 = vmatpush3.bf16.msra.mxu1 %v3073_v56 }
 0x119   :  { %2654 = vmatprep.subr.bf16.mxu1 %v3099_v23 }
 0x11b   :  { %2624 = vmatpush3.bf16.msra.mxu0 %v3065_v14 }
 0x11c   :  { %2625 = vmatprep.subr.bf16.mxu0 %v3066_v20  ;;  %2655 = vmatpush3.bf16.msra.mxu1 %v3074_v57 }
 0x11d   :  { %2656 = vmatprep.subr.bf16.mxu1 %v3099_v23 }
 0x11f   :  { %2626 = vmatpush3.bf16.msra.mxu0 %v3067_v21 }
 0x120   :  { %2657 = vmatpush3.bf16.msra.mxu1 %v3075_v42 }
 0x142   :  { %v1810_v5 = vpop.f32.mrf.mxu0 }
 0x143   :  { %v1851_v7 = vpop.f32.mrf.mxu1  ;;  %v1811_v8 = vadd.f32 %v1810_v5, %v1770_v51 }
 0x144   :  { %v1812_v9 = vpop.f32.mrf.mxu0 }
 0x145   :  { %v1853_v10 = vpop.f32.mrf.mxu1  ;;  %v1852_v12 = vadd.f32 %v1851_v7, %v1811_v8  ;;  %v1813_v13 = vadd.f32 %v1812_v9, %v1772_v55 }
 0x146   :  { %v1814_v15 = vpop.f32.mrf.mxu0 }
 0x147   :  { %v1855_v16 = vpop.f32.mrf.mxu1  ;;  %v1854_v17 = vadd.f32 %v1853_v10, %v1813_v13 }
 0x148   :  { %v1815_v18 = vpop.f32.mrf.mxu0 }
 0x149   :  { %v1856_v19 = vpop.f32.mrf.mxu1 }
 0x182   :  { %v1892_v28 = vpop.f32.mrf.mxu0 }
 0x183   :  { %v1933_v30 = vpop.f32.mrf.mxu1  ;;  %v1893_v31 = vadd.f32 %v1892_v28, %v1852_v12 }
 0x184   :  { %v1894_v32 = vpop.f32.mrf.mxu0 }
 0x185   :  { %v1935_v33 = vpop.f32.mrf.mxu1  ;;  %v1934_v34 = vadd.f32 %v1933_v30, %v1893_v31  ;;  %v1895_v38 = vadd.f32 %v1894_v32, %v1854_v17 }
 0x186   :  { %v1896_v29 = vpop.f32.mrf.mxu0 }
 0x187   :  { %v1937_v35 = vpop.f32.mrf.mxu1  ;;  %v1936_v41 = vadd.f32 %v1935_v33, %v1895_v38 }
 0x188   :  { %v1897_v36 = vpop.f32.mrf.mxu0 }
 0x189   :  { %v1938_v37 = vpop.f32.mrf.mxu1 }
 0x1c2   :  { %v1974_v39 = vpop.f32.mrf.mxu0 }
 0x1c3   :  { %v2015_v40 = vpop.f32.mrf.mxu1  ;;  %v1975_v49 = vadd.f32 %v1974_v39, %v1934_v34 }
 0x1c4   :  { %v1976_v26 = vpop.f32.mrf.mxu0 }
 0x1c5   :  { %v2017_v43 = vpop.f32.mrf.mxu1  ;;  %v2016_v44 = vadd.f32 %v2015_v40, %v1975_v49  ;;  %v1977_v45 = vadd.f32 %v1976_v26, %v1936_v41 }
 0x1c6   :  { %v1978_v46 = vpop.f32.mrf.mxu0 }
 0x1c7   :  { %v2019_v47 = vpop.f32.mrf.mxu1  ;;  %v2018_v48 = vadd.f32 %v2017_v43, %v1977_v45  ;;  %v2022_v50 = vmax.f32 %v2016_v44, 0.0 }
 0x1c8   :  { %v1979_v51 = vpop.f32.mrf.mxu0 }
 0x1c9   :  { %v2020_v52 = vpop.f32.mrf.mxu1  ;;  %v2023_v53 = vmax.f32 %v2018_v48, 0.0  ;;  %v2024_v55 = vpack.c.bf16 %v2022_v50, %v2022_v50 }
 0x1cb   :  { %v2025_v54 = vpack.c.bf16 %v2023_v53, %v2023_v53 }
 0x1cd   :  { %2193 = vmatprep.mubr.bf16.mxu0 %v2025_v54 }
 0x1ce   :  { %2194 = vmatmul.mubr.bf16.vlgmr.msra.gmra.mxu0 %v2024_v55 }
 0x28e   :  { %v2627_v58 = vpop.f32.mrf.mxu0 }
 0x290   :  { %v2628_v60 = vpop.f32.mrf.mxu0 }
 0x291   :  { %v2629_v61 = vadd.f32 %v2628_v60, %v2627_v58 }
 0x292   :  { %v2630_v62 = vpop.f32.mrf.mxu0 }
 0x293   :  { %v2196_v63 = vadd.f32 %v2629_v61, %v2585_v59 }
 0x294   :  { %v2631_v0 = vpop.f32.mrf.mxu0 }
 0x295   :  { %v2201_v1 = vmax.f32 %v2196_v63, 0.0 }
 0x297   :  { %v2202_v2 = vpack.c.bf16 %v2201_v1, %v2201_v1 }
 0x299   :  { %2659 = vmatmul.mubr.bf16.vlgmr.msra.gmra.mxu1 %v2202_v2 }
 0x359   :  { %v2308_v4 = vpop.f32.mrf.mxu1 }
 0x35a   :  { %v2309_v5 = vadd.f32 %v2602_v3, %v2308_v4 }
 0x35b   :  { %v2660_v7 = vpop.f32.mrf.mxu1 }
 0x35c   :  { %2314 = vst [vmem:[#allocation2] sm:$0x3] %v2309_v5 }
 0x35d   :  { %v2311_v8 = vpop.f32.mrf.mxu1 }
 0x35e   :  { %3087 = shalt.err (!%p3084_p4)
}
 0x35f   :  { %2324 = dma.vmem_to_hbm [thread:$0]  %s2322_s24, 32, %s4046_s7, [#allocation3]   ;;  %v2661_v9 = vpop.f32.mrf.mxu1 }
 0x360   :  { %3096 = dma.done.wait [#allocation3], 32  }
 0x361   :  { %3097 = vsyncadd [#allocation3], 4294967264 }
 0x362   :  { %2328 = vsyncpa [#allocation3], 1 }

</bundles_post_ra>
